<compile_context>
chip_gen: v7x
topology: tpu7x:2x2x1
jax: 0.10.0
libtpu: 0.0.40
codegen_flags: <defaults>
</compile_context>

<pallas_src>
import jax
import jax.numpy as jnp
from jax.experimental import pallas as pl
from jax.experimental.pallas import tpu as pltpu


def _round_up(x, m):
    return ((x + m - 1) // m) * m


def _pick_tm(m):
    """M-tile choice: large tiles for the big conv GEMMs (each grid step costs
    ~0.35us), but keep >=2 parallel M blocks when feasible so v7x's two
    TensorCores can both be used via the 'parallel' grid axis."""
    mp8 = _round_up(m, 8)
    if mp8 >= 2048:
        return 1024
    if mp8 >= 512:
        return _round_up(mp8 // 2, 8)   # two parallel M blocks
    return mp8


# ----------------------------------------------------------------------------
# Pallas kernels
# ----------------------------------------------------------------------------
def _matmul_bias_kernel(a_ref, b_ref, bias_ref, o_ref):
    acc = jnp.dot(a_ref[...], b_ref[...], preferred_element_type=jnp.float32)
    o_ref[...] = (acc + bias_ref[...]).astype(o_ref.dtype)


def pallas_matmul_bias(a, b, bias2d, *, out_dtype=jnp.bfloat16):
    """(a @ b) + bias with a tiled Pallas TPU kernel.

    a: (M, K) bf16 (GEMM-ready), b: (K, N) bf16 (pre-transposed / pre-cast at
    param-prep time), bias2d: (1, N) f32.  K is a single full-extent block
    (K <= 1024 for every Encoder3 layer) so there is no reduction grid axis
    and no accumulator scratch.  N is kept at its true width and spanned by a
    single full-extent block, so no channel padding / slicing is materialized.
    """
    M, K = a.shape
    K2, N = b.shape
    assert K == K2 and bias2d.shape == (1, N)

    tm = _pick_tm(M)
    Mp = _round_up(M, tm)
    if Mp > M:
        a = jnp.pad(a, ((0, Mp - M), (0, 0)))
    tn = min(512, N) if N % 128 == 0 else N      # lane-dense when possible
    grid = (Mp // tm, N // tn)

    out_bytes = jnp.dtype(out_dtype).itemsize
    cost = pl.CostEstimate(
        flops=2 * Mp * K * N,
        transcendentals=0,
        bytes_accessed=Mp * K * 2 + K * N * 2 + N * 4 + Mp * N * out_bytes)

    out = pl.pallas_call(
        _matmul_bias_kernel,
        out_shape=jax.ShapeDtypeStruct((Mp, N), out_dtype),
        grid_spec=pltpu.PrefetchScalarGridSpec(
            num_scalar_prefetch=0,
            grid=grid,
            in_specs=[
                pl.BlockSpec((tm, K), lambda i, j: (i, 0)),
                pl.BlockSpec((K, tn), lambda i, j: (0, j)),
                pl.BlockSpec((1, tn), lambda i, j: (0, j)),
            ],
            out_specs=pl.BlockSpec((tm, tn), lambda i, j: (i, j)),
        ),
        compiler_params=pltpu.CompilerParams(
            dimension_semantics=("parallel", "parallel")),
        cost_estimate=cost,
    )(a, b, bias2d)
    return out[:M] if Mp > M else out


def _dense_heads_kernel(x_ref, w1_ref, b1_ref, w2_ref, b2_ref, o_ref):
    # FC1 of both heads (concatenated columns) + fused LeakyReLU(0.2).
    h = jnp.dot(x_ref[...], w1_ref[...], preferred_element_type=jnp.float32)
    h = h + b1_ref[...]
    h = jnp.where(h > 0, h, 0.2 * h)
    # Block-diagonal FC2 of both heads; h never leaves VMEM/vregs.
    out = jnp.dot(h.astype(jnp.bfloat16), w2_ref[...],
                  preferred_element_type=jnp.float32)
    o_ref[...] = out + b2_ref[...]


def pallas_dense_heads(feat, w1, b1, w2, b2):
    """Both dense heads (Linear->LeakyReLU->Linear, x2) in ONE pallas_call.

    feat: (M, 1024); w1: (1024, 512) bf16; b1: (1, 512) f32;
    w2: (512, 2L) bf16 block-diagonal; b2: (1, 2L) f32.  Output (M, 2L) f32.
    All operands (<1.5 MB) fit a single full-extent VMEM block on every gen.
    """
    M, K = feat.shape
    N1 = w1.shape[1]
    N2 = w2.shape[1]
    Mp = _round_up(M, 8)
    fp = feat.astype(jnp.bfloat16)
    if Mp > M:
        fp = jnp.pad(fp, ((0, Mp - M), (0, 0)))

    cost = pl.CostEstimate(
        flops=2 * Mp * (K * N1 + N1 * N2),
        transcendentals=0,
        bytes_accessed=(Mp * K * 2 + K * N1 * 2 + N1 * N2 * 2
                        + N1 * 4 + N2 * 4 + Mp * N2 * 4))

    out = pl.pallas_call(
        _dense_heads_kernel,
        out_shape=jax.ShapeDtypeStruct((Mp, N2), jnp.float32),
        grid_spec=pltpu.PrefetchScalarGridSpec(
            num_scalar_prefetch=0,
            grid=(1,),
            in_specs=[
                pl.BlockSpec((Mp, K), lambda i: (0, 0)),
                pl.BlockSpec((K, N1), lambda i: (0, 0)),
                pl.BlockSpec((1, N1), lambda i: (0, 0)),
                pl.BlockSpec((N1, N2), lambda i: (0, 0)),
                pl.BlockSpec((1, N2), lambda i: (0, 0)),
            ],
            out_specs=pl.BlockSpec((Mp, N2), lambda i: (0, 0)),
        ),
        compiler_params=pltpu.CompilerParams(
            dimension_semantics=("arbitrary",)),
        cost_estimate=cost,
    )(fp, w1, b1, w2, b2)
    return out[:M] if Mp > M else out


# ----------------------------------------------------------------------------
# Conv / norm glue around the Pallas matmuls (bf16 end-to-end)
# ----------------------------------------------------------------------------
def conv4x4_s2(x, wk, bias2d):
    """PyTorch Conv2d(k=4, s=2, p=1).  x: (N,H,W,C) bf16; wk: (16*C, O) bf16
    (rows ordered (ky, kx, c) to match the tap concat); bias2d: (1, O) f32."""
    N, H, W, C = x.shape
    O = wk.shape[1]
    Ho, Wo = H // 2, W // 2
    xp = jnp.pad(x, ((0, 0), (1, 2), (1, 2), (0, 0)))   # pad 1 left/top, 2 right/bot
    taps = [xp[:, dy:dy + 2 * Ho:2, dx:dx + 2 * Wo:2, :]
            for dy in range(4) for dx in range(4)]
    patches = jnp.concatenate(taps, axis=-1).reshape(N * Ho * Wo, 16 * C)
    y = pallas_matmul_bias(patches, wk, bias2d, out_dtype=jnp.bfloat16)
    return y.reshape(N, Ho, Wo, O)


def batchnorm_leaky(x, gamma, beta, eps=1e-5, slope=0.2):
    """Fresh BatchNorm2d training-mode forward (batch stats, biased variance)
    followed by LeakyReLU(0.2).  Stats in f32, output back in bf16."""
    xf = x.astype(jnp.float32)
    mean = jnp.mean(xf, axis=(0, 1, 2), keepdims=True)
    var = jnp.mean(jnp.square(xf - mean), axis=(0, 1, 2), keepdims=True)
    y = (xf - mean) * jax.lax.rsqrt(var + eps) * gamma + beta
    y = jnp.where(y > 0, y, slope * y)
    return y.astype(jnp.bfloat16)


# ----------------------------------------------------------------------------
# Encoder3 forward (expects GEMM-ready params from prepare_encoder3_params)
# ----------------------------------------------------------------------------
def encoder3_forward(prep, x_nchw):
    x = jnp.transpose(x_nchw, (0, 2, 3, 1)).astype(jnp.bfloat16)   # NCHW -> NHWC bf16

    n_conv = len(prep['conv_w'])
    for i in range(n_conv):
        x = conv4x4_s2(x, prep['conv_w'][i], prep['conv_b'][i])
        if i < n_conv - 1:                                          # last conv: no norm/act
            gamma, beta = prep['bn'][i]
            x = batchnorm_leaky(x, gamma, beta)

    # View((-1, 64*4*4)): PyTorch flattens NCHW, so transpose back first.
    n = x.shape[0]
    feat = jnp.transpose(x, (0, 3, 1, 2)).reshape(n, 64 * 4 * 4)

    out = pallas_dense_heads(feat, prep['w1'], prep['b1'], prep['w2'], prep['b2'])
    L = prep['w2'].shape[1] // 2
    return out[:, :L], out[:, L:]


# ----------------------------------------------------------------------------
# One-time parameter preparation (runs OUTSIDE the jitted forward)
# ----------------------------------------------------------------------------
def prepare_encoder3_params(params):
    prep = {'conv_w': [], 'conv_b': [], 'bn': []}
    for (w, b) in params['convs']:
        o = w.shape[0]
        # (O, I, ky, kx) -> (ky, kx, I, O) -> (16*I, O), rows ordered (ky, kx, c).
        wk = jnp.transpose(w, (2, 3, 1, 0)).reshape(-1, o).astype(jnp.bfloat16)
        prep['conv_w'].append(wk)
        prep['conv_b'].append(b.astype(jnp.float32).reshape(1, o))
    for (g, bt) in params['bn']:
        prep['bn'].append((g.astype(jnp.float32), bt.astype(jnp.float32)))

    w1m, b1m = params['mean_fc1']
    w1v, b1v = params['logvar_fc1']
    w2m, b2m = params['mean_fc2']
    w2v, b2v = params['logvar_fc2']
    L = w2m.shape[1]
    prep['w1'] = jnp.concatenate([w1m, w1v], axis=1).astype(jnp.bfloat16)      # (1024, 512)
    prep['b1'] = jnp.concatenate([b1m, b1v], axis=0).reshape(1, -1).astype(jnp.float32)
    z = jnp.zeros((w2m.shape[0], L), jnp.float32)
    w2 = jnp.concatenate([jnp.concatenate([w2m, z], axis=1),
                          jnp.concatenate([z, w2v], axis=1)], axis=0)          # (512, 2L)
    prep['w2'] = w2.astype(jnp.bfloat16)
    prep['b2'] = jnp.concatenate([b2m, b2v], axis=0).reshape(1, -1).astype(jnp.float32)
    return prep


# ----------------------------------------------------------------------------
# Deterministic parameter initialization (PyTorch-like uniform bounds)
# ----------------------------------------------------------------------------
def _conv_params(key, in_ch, out_ch, k):
    kw, kb = jax.random.split(key)
    bound = 1.0 / (in_ch * k * k) ** 0.5
    w = jax.random.uniform(kw, (out_ch, in_ch, k, k), jnp.float32, -bound, bound)
    b = jax.random.uniform(kb, (out_ch,), jnp.float32, -bound, bound)
    return w, b


def _linear_params(key, in_f, out_f):
    kw, kb = jax.random.split(key)
    bound = 1.0 / in_f ** 0.5
    w = jax.random.uniform(kw, (in_f, out_f), jnp.float32, -bound, bound)
    b = jax.random.uniform(kb, (out_f,), jnp.float32, -bound, bound)
    return w, b


def init_encoder3_params(key, in_ch=3, latent_vec_dim=128):
    keys = jax.random.split(key, 9)
    chans = [(in_ch, 32), (32, 32), (32, 64), (64, 64), (64, 64)]
    convs = [_conv_params(keys[i], ci, co, 4) for i, (ci, co) in enumerate(chans)]
    bn = [(jnp.ones((co,), jnp.float32), jnp.zeros((co,), jnp.float32))
          for (_, co) in chans[:4]]                      # last conv has no Norm
    return {
        'convs': convs,
        'bn': bn,
        'mean_fc1': _linear_params(keys[5], 1024, 256),
        'mean_fc2': _linear_params(keys[6], 256, latent_vec_dim),
        'logvar_fc1': _linear_params(keys[7], 1024, 256),
        'logvar_fc2': _linear_params(keys[8], 256, latent_vec_dim),
    }


# ----------------------------------------------------------------------------
# Main
# ----------------------------------------------------------------------------
if __name__ == "__main__":
    key = jax.random.PRNGKey(0)
    pkey, xkey = jax.random.split(key)

    params = init_encoder3_params(pkey)
    prep = prepare_encoder3_params(params)   # one-time GEMM-ready layouts, outside jit

    # View hard-codes 64*4*4 = 1024, so after five stride-2 convs the input
    # spatial size must be 128x128.  Batch = 2 keeps the example small.
    x = jax.random.normal(xkey, (2, 3, 128, 128), jnp.float32)

    fwd = jax.jit(encoder3_forward)
    mean, log_var = fwd(prep, x)
    jax.block_until_ready(mean)
    jax.block_until_ready(log_var)

    assert mean.shape == (2, 128), mean.shape
    assert log_var.shape == (2, 128), log_var.shape
    assert jnp.all(jnp.isfinite(mean)) and jnp.all(jnp.isfinite(log_var))

    print("KERNEL_OK")
</pallas_src>

<mosaic_0001>
module attributes {stable_mosaic.version = 11 : i64} {
  func.func @_matmul_bias_kernel(%arg0: i32, %arg1: i32, %arg2: memref<1024x48xbf16, #tpu.memory_space<vmem>>, %arg3: memref<48x32xbf16, #tpu.memory_space<vmem>>, %arg4: memref<1x32xf32, #tpu.memory_space<vmem>>, %arg5: memref<1024x32xbf16, #tpu.memory_space<vmem>>) attributes {dimension_semantics = [#tpu.dimension_semantics<parallel>, #tpu.dimension_semantics<parallel>], iteration_bounds = array<i64: 8, 1>, scalar_prefetch = 0 : i64, scratch_operands = 0 : i64, tpu.core_type = #tpu.core_type<tc>, window_params = [{transform_indices = @transform_0, window_bounds = array<i64: 1024, 48>}, {transform_indices = @transform_1, window_bounds = array<i64: 48, 32>}, {transform_indices = @transform_2, window_bounds = array<i64: 1, 32>}, {transform_indices = @transform_3, window_bounds = array<i64: 1024, 32>}]} {
    %c0 = arith.constant 0 : index
    %c0_0 = arith.constant 0 : index
    %0 = vector.load %arg2[%c0, %c0_0] : memref<1024x48xbf16, #tpu.memory_space<vmem>>, vector<1024x48xbf16>
    %c0_1 = arith.constant 0 : index
    %c0_2 = arith.constant 0 : index
    %1 = vector.load %arg3[%c0_1, %c0_2] : memref<48x32xbf16, #tpu.memory_space<vmem>>, vector<48x32xbf16>
    %cst = arith.constant dense<0.000000e+00> : vector<1024x32xf32>
    %2 = tpu.matmul %0, %1, %cst {dimension_numbers = #tpu.dot_dimension_numbers<[1], [0], [0], [1], [0, 0, 1, 1], [], []>} : vector<1024x48xbf16>, vector<48x32xbf16>, vector<1024x32xf32> -> vector<1024x32xf32>
    %c0_3 = arith.constant 0 : index
    %c0_4 = arith.constant 0 : index
    %3 = vector.load %arg4[%c0_3, %c0_4] : memref<1x32xf32, #tpu.memory_space<vmem>>, vector<1x32xf32>
    %4 = vector.broadcast %3 : vector<1x32xf32> to vector<1024x32xf32>
    %5 = arith.addf %2, %4 : vector<1024x32xf32>
    %6 = arith.truncf %5 : vector<1024x32xf32> to vector<1024x32xbf16>
    %c0_5 = arith.constant 0 : index
    %c0_6 = arith.constant 0 : index
    %7 = vector.load %arg5[%c0_5, %c0_6] : memref<1024x32xbf16, #tpu.memory_space<vmem>>, vector<1024x32xbf16>
    tpu.vector_store %arg5[%c0_5, %c0_6], %6 {strides = array<i32>} : memref<1024x32xbf16, #tpu.memory_space<vmem>>, vector<1024x32xbf16>,
    return
  }
  func.func @transform_0(%arg0: i32, %arg1: i32) -> (i32, i32) {
    %c0_i32 = arith.constant 0 : i32
    %c0_i32_0 = arith.constant 0 : i32
    return %arg0, %c0_i32 : i32, i32
  }
  func.func @transform_1(%arg0: i32, %arg1: i32) -> (i32, i32) {
    %c0_i32 = arith.constant 0 : i32
    %c0_i32_0 = arith.constant 0 : i32
    return %c0_i32, %arg1 : i32, i32
  }
  func.func @transform_2(%arg0: i32, %arg1: i32) -> (i32, i32) {
    %c0_i32 = arith.constant 0 : i32
    %c0_i32_0 = arith.constant 0 : i32
    return %c0_i32, %arg1 : i32, i32
  }
  func.func @transform_3(%arg0: i32, %arg1: i32) -> (i32, i32) {
    %c0_i32 = arith.constant 0 : i32
    return %arg0, %arg1 : i32, i32
  }
}

module attributes {stable_mosaic.version = 11 : i64} {
  func.func @_matmul_bias_kernel(%arg0: i32, %arg1: i32, %arg2: memref<1024x512xbf16, #tpu.memory_space<vmem>>, %arg3: memref<512x32xbf16, #tpu.memory_space<vmem>>, %arg4: memref<1x32xf32, #tpu.memory_space<vmem>>, %arg5: memref<1024x32xbf16, #tpu.memory_space<vmem>>) attributes {dimension_semantics = [#tpu.dimension_semantics<parallel>, #tpu.dimension_semantics<parallel>], iteration_bounds = array<i64: 2, 1>, scalar_prefetch = 0 : i64, scratch_operands = 0 : i64, tpu.core_type = #tpu.core_type<tc>, window_params = [{transform_indices = @transform_0, window_bounds = array<i64: 1024, 512>}, {transform_indices = @transform_1, window_bounds = array<i64: 512, 32>}, {transform_indices = @transform_2, window_bounds = array<i64: 1, 32>}, {transform_indices = @transform_3, window_bounds = array<i64: 1024, 32>}]} {
    %c0 = arith.constant 0 : index
    %c0_0 = arith.constant 0 : index
    %0 = vector.load %arg2[%c0, %c0_0] : memref<1024x512xbf16, #tpu.memory_space<vmem>>, vector<1024x512xbf16>
    %c0_1 = arith.constant 0 : index
    %c0_2 = arith.constant 0 : index
    %1 = vector.load %arg3[%c0_1, %c0_2] : memref<512x32xbf16, #tpu.memory_space<vmem>>, vector<512x32xbf16>
    %cst = arith.constant dense<0.000000e+00> : vector<1024x32xf32>
    %2 = tpu.matmul %0, %1, %cst {dimension_numbers = #tpu.dot_dimension_numbers<[1], [0], [0], [1], [0, 0, 1, 1], [], []>} : vector<1024x512xbf16>, vector<512x32xbf16>, vector<1024x32xf32> -> vector<1024x32xf32>
    %c0_3 = arith.constant 0 : index
    %c0_4 = arith.constant 0 : index
    %3 = vector.load %arg4[%c0_3, %c0_4] : memref<1x32xf32, #tpu.memory_space<vmem>>, vector<1x32xf32>
    %4 = vector.broadcast %3 : vector<1x32xf32> to vector<1024x32xf32>
    %5 = arith.addf %2, %4 : vector<1024x32xf32>
    %6 = arith.truncf %5 : vector<1024x32xf32> to vector<1024x32xbf16>
    %c0_5 = arith.constant 0 : index
    %c0_6 = arith.constant 0 : index
    %7 = vector.load %arg5[%c0_5, %c0_6] : memref<1024x32xbf16, #tpu.memory_space<vmem>>, vector<1024x32xbf16>
    tpu.vector_store %arg5[%c0_5, %c0_6], %6 {strides = array<i32>} : memref<1024x32xbf16, #tpu.memory_space<vmem>>, vector<1024x32xbf16>,
    return
  }
  func.func @transform_0(%arg0: i32, %arg1: i32) -> (i32, i32) {
    %c0_i32 = arith.constant 0 : i32
    %c0_i32_0 = arith.constant 0 : i32
    return %arg0, %c0_i32 : i32, i32
  }
  func.func @transform_1(%arg0: i32, %arg1: i32) -> (i32, i32) {
    %c0_i32 = arith.constant 0 : i32
    %c0_i32_0 = arith.constant 0 : i32
    return %c0_i32, %arg1 : i32, i32
  }
  func.func @transform_2(%arg0: i32, %arg1: i32) -> (i32, i32) {
    %c0_i32 = arith.constant 0 : i32
    %c0_i32_0 = arith.constant 0 : i32
    return %c0_i32, %arg1 : i32, i32
  }
  func.func @transform_3(%arg0: i32, %arg1: i32) -> (i32, i32) {
    %c0_i32 = arith.constant 0 : i32
    return %arg0, %arg1 : i32, i32
  }
}

module attributes {stable_mosaic.version = 11 : i64} {
  func.func @_matmul_bias_kernel(%arg0: i32, %arg1: i32, %arg2: memref<256x512xbf16, #tpu.memory_space<vmem>>, %arg3: memref<512x64xbf16, #tpu.memory_space<vmem>>, %arg4: memref<1x64xf32, #tpu.memory_space<vmem>>, %arg5: memref<256x64xbf16, #tpu.memory_space<vmem>>) attributes {dimension_semantics = [#tpu.dimension_semantics<parallel>, #tpu.dimension_semantics<parallel>], iteration_bounds = array<i64: 2, 1>, scalar_prefetch = 0 : i64, scratch_operands = 0 : i64, tpu.core_type = #tpu.core_type<tc>, window_params = [{transform_indices = @transform_0, window_bounds = array<i64: 256, 512>}, {transform_indices = @transform_1, window_bounds = array<i64: 512, 64>}, {transform_indices = @transform_2, window_bounds = array<i64: 1, 64>}, {transform_indices = @transform_3, window_bounds = array<i64: 256, 64>}]} {
    %c0 = arith.constant 0 : index
    %c0_0 = arith.constant 0 : index
    %0 = vector.load %arg2[%c0, %c0_0] : memref<256x512xbf16, #tpu.memory_space<vmem>>, vector<256x512xbf16>
    %c0_1 = arith.constant 0 : index
    %c0_2 = arith.constant 0 : index
    %1 = vector.load %arg3[%c0_1, %c0_2] : memref<512x64xbf16, #tpu.memory_space<vmem>>, vector<512x64xbf16>
    %cst = arith.constant dense<0.000000e+00> : vector<256x64xf32>
    %2 = tpu.matmul %0, %1, %cst {dimension_numbers = #tpu.dot_dimension_numbers<[1], [0], [0], [1], [0, 0, 1, 1], [], []>} : vector<256x512xbf16>, vector<512x64xbf16>, vector<256x64xf32> -> vector<256x64xf32>
    %c0_3 = arith.constant 0 : index
    %c0_4 = arith.constant 0 : index
    %3 = vector.load %arg4[%c0_3, %c0_4] : memref<1x64xf32, #tpu.memory_space<vmem>>, vector<1x64xf32>
    %4 = vector.broadcast %3 : vector<1x64xf32> to vector<256x64xf32>
    %5 = arith.addf %2, %4 : vector<256x64xf32>
    %6 = arith.truncf %5 : vector<256x64xf32> to vector<256x64xbf16>
    %c0_5 = arith.constant 0 : index
    %c0_6 = arith.constant 0 : index
    %7 = vector.load %arg5[%c0_5, %c0_6] : memref<256x64xbf16, #tpu.memory_space<vmem>>, vector<256x64xbf16>
    tpu.vector_store %arg5[%c0_5, %c0_6], %6 {strides = array<i32>} : memref<256x64xbf16, #tpu.memory_space<vmem>>, vector<256x64xbf16>,
    return
  }
  func.func @transform_0(%arg0: i32, %arg1: i32) -> (i32, i32) {
    %c0_i32 = arith.constant 0 : i32
    %c0_i32_0 = arith.constant 0 : i32
    return %arg0, %c0_i32 : i32, i32
  }
  func.func @transform_1(%arg0: i32, %arg1: i32) -> (i32, i32) {
    %c0_i32 = arith.constant 0 : i32
    %c0_i32_0 = arith.constant 0 : i32
    return %c0_i32, %arg1 : i32, i32
  }
  func.func @transform_2(%arg0: i32, %arg1: i32) -> (i32, i32) {
    %c0_i32 = arith.constant 0 : i32
    %c0_i32_0 = arith.constant 0 : i32
    return %c0_i32, %arg1 : i32, i32
  }
  func.func @transform_3(%arg0: i32, %arg1: i32) -> (i32, i32) {
    %c0_i32 = arith.constant 0 : i32
    return %arg0, %arg1 : i32, i32
  }
}

module attributes {stable_mosaic.version = 11 : i64} {
  func.func @_matmul_bias_kernel(%arg0: i32, %arg1: i32, %arg2: memref<128x1024xbf16, #tpu.memory_space<vmem>>, %arg3: memref<1024x64xbf16, #tpu.memory_space<vmem>>, %arg4: memref<1x64xf32, #tpu.memory_space<vmem>>, %arg5: memref<128x64xbf16, #tpu.memory_space<vmem>>) attributes {dimension_semantics = [#tpu.dimension_semantics<parallel>, #tpu.dimension_semantics<parallel>], iteration_bounds = array<i64: 1, 1>, scalar_prefetch = 0 : i64, scratch_operands = 0 : i64, tpu.core_type = #tpu.core_type<tc>, window_params = [{transform_indices = @transform_0, window_bounds = array<i64: 128, 1024>}, {transform_indices = @transform_1, window_bounds = array<i64: 1024, 64>}, {transform_indices = @transform_2, window_bounds = array<i64: 1, 64>}, {transform_indices = @transform_3, window_bounds = array<i64: 128, 64>}]} {
    %c0 = arith.constant 0 : index
    %c0_0 = arith.constant 0 : index
    %0 = vector.load %arg2[%c0, %c0_0] : memref<128x1024xbf16, #tpu.memory_space<vmem>>, vector<128x1024xbf16>
    %c0_1 = arith.constant 0 : index
    %c0_2 = arith.constant 0 : index
    %1 = vector.load %arg3[%c0_1, %c0_2] : memref<1024x64xbf16, #tpu.memory_space<vmem>>, vector<1024x64xbf16>
    %cst = arith.constant dense<0.000000e+00> : vector<128x64xf32>
    %2 = tpu.matmul %0, %1, %cst {dimension_numbers = #tpu.dot_dimension_numbers<[1], [0], [0], [1], [0, 0, 1, 1], [], []>} : vector<128x1024xbf16>, vector<1024x64xbf16>, vector<128x64xf32> -> vector<128x64xf32>
    %c0_3 = arith.constant 0 : index
    %c0_4 = arith.constant 0 : index
    %3 = vector.load %arg4[%c0_3, %c0_4] : memref<1x64xf32, #tpu.memory_space<vmem>>, vector<1x64xf32>
    %4 = vector.broadcast %3 : vector<1x64xf32> to vector<128x64xf32>
    %5 = arith.addf %2, %4 : vector<128x64xf32>
    %6 = arith.truncf %5 : vector<128x64xf32> to vector<128x64xbf16>
    %c0_5 = arith.constant 0 : index
    %c0_6 = arith.constant 0 : index
    %7 = vector.load %arg5[%c0_5, %c0_6] : memref<128x64xbf16, #tpu.memory_space<vmem>>, vector<128x64xbf16>
    tpu.vector_store %arg5[%c0_5, %c0_6], %6 {strides = array<i32>} : memref<128x64xbf16, #tpu.memory_space<vmem>>, vector<128x64xbf16>,
    return
  }
  func.func @transform_0(%arg0: i32, %arg1: i32) -> (i32, i32) {
    %c0_i32 = arith.constant 0 : i32
    %c0_i32_0 = arith.constant 0 : i32
    return %arg0, %c0_i32 : i32, i32
  }
  func.func @transform_1(%arg0: i32, %arg1: i32) -> (i32, i32) {
    %c0_i32 = arith.constant 0 : i32
    %c0_i32_0 = arith.constant 0 : i32
    return %c0_i32, %arg1 : i32, i32
  }
  func.func @transform_2(%arg0: i32, %arg1: i32) -> (i32, i32) {
    %c0_i32 = arith.constant 0 : i32
    %c0_i32_0 = arith.constant 0 : i32
    return %c0_i32, %arg1 : i32, i32
  }
  func.func @transform_3(%arg0: i32, %arg1: i32) -> (i32, i32) {
    %c0_i32 = arith.constant 0 : i32
    return %arg0, %arg1 : i32, i32
  }
}

module attributes {stable_mosaic.version = 11 : i64} {
  func.func @_matmul_bias_kernel(%arg0: i32, %arg1: i32, %arg2: memref<32x1024xbf16, #tpu.memory_space<vmem>>, %arg3: memref<1024x64xbf16, #tpu.memory_space<vmem>>, %arg4: memref<1x64xf32, #tpu.memory_space<vmem>>, %arg5: memref<32x64xbf16, #tpu.memory_space<vmem>>) attributes {dimension_semantics = [#tpu.dimension_semantics<parallel>, #tpu.dimension_semantics<parallel>], iteration_bounds = array<i64: 1, 1>, scalar_prefetch = 0 : i64, scratch_operands = 0 : i64, tpu.core_type = #tpu.core_type<tc>, window_params = [{transform_indices = @transform_0, window_bounds = array<i64: 32, 1024>}, {transform_indices = @transform_1, window_bounds = array<i64: 1024, 64>}, {transform_indices = @transform_2, window_bounds = array<i64: 1, 64>}, {transform_indices = @transform_3, window_bounds = array<i64: 32, 64>}]} {
    %c0 = arith.constant 0 : index
    %c0_0 = arith.constant 0 : index
    %0 = vector.load %arg2[%c0, %c0_0] : memref<32x1024xbf16, #tpu.memory_space<vmem>>, vector<32x1024xbf16>
    %c0_1 = arith.constant 0 : index
    %c0_2 = arith.constant 0 : index
    %1 = vector.load %arg3[%c0_1, %c0_2] : memref<1024x64xbf16, #tpu.memory_space<vmem>>, vector<1024x64xbf16>
    %cst = arith.constant dense<0.000000e+00> : vector<32x64xf32>
    %2 = tpu.matmul %0, %1, %cst {dimension_numbers = #tpu.dot_dimension_numbers<[1], [0], [0], [1], [0, 0, 1, 1], [], []>} : vector<32x1024xbf16>, vector<1024x64xbf16>, vector<32x64xf32> -> vector<32x64xf32>
    %c0_3 = arith.constant 0 : index
    %c0_4 = arith.constant 0 : index
    %3 = vector.load %arg4[%c0_3, %c0_4] : memref<1x64xf32, #tpu.memory_space<vmem>>, vector<1x64xf32>
    %4 = vector.broadcast %3 : vector<1x64xf32> to vector<32x64xf32>
    %5 = arith.addf %2, %4 : vector<32x64xf32>
    %6 = arith.truncf %5 : vector<32x64xf32> to vector<32x64xbf16>
    %c0_5 = arith.constant 0 : index
    %c0_6 = arith.constant 0 : index
    %7 = vector.load %arg5[%c0_5, %c0_6] : memref<32x64xbf16, #tpu.memory_space<vmem>>, vector<32x64xbf16>
    tpu.vector_store %arg5[%c0_5, %c0_6], %6 {strides = array<i32>} : memref<32x64xbf16, #tpu.memory_space<vmem>>, vector<32x64xbf16>,
    return
  }
  func.func @transform_0(%arg0: i32, %arg1: i32) -> (i32, i32) {
    %c0_i32 = arith.constant 0 : i32
    %c0_i32_0 = arith.constant 0 : i32
    return %arg0, %c0_i32 : i32, i32
  }
  func.func @transform_1(%arg0: i32, %arg1: i32) -> (i32, i32) {
    %c0_i32 = arith.constant 0 : i32
    %c0_i32_0 = arith.constant 0 : i32
    return %c0_i32, %arg1 : i32, i32
  }
  func.func @transform_2(%arg0: i32, %arg1: i32) -> (i32, i32) {
    %c0_i32 = arith.constant 0 : i32
    %c0_i32_0 = arith.constant 0 : i32
    return %c0_i32, %arg1 : i32, i32
  }
  func.func @transform_3(%arg0: i32, %arg1: i32) -> (i32, i32) {
    %c0_i32 = arith.constant 0 : i32
    return %arg0, %arg1 : i32, i32
  }
}

module attributes {stable_mosaic.version = 11 : i64} {
  func.func @_dense_heads_kernel(%arg0: i32, %arg1: memref<8x1024xbf16, #tpu.memory_space<vmem>>, %arg2: memref<1024x512xbf16, #tpu.memory_space<vmem>>, %arg3: memref<1x512xf32, #tpu.memory_space<vmem>>, %arg4: memref<512x256xbf16, #tpu.memory_space<vmem>>, %arg5: memref<1x256xf32, #tpu.memory_space<vmem>>, %arg6: memref<8x256xf32, #tpu.memory_space<vmem>>) attributes {dimension_semantics = [#tpu.dimension_semantics<arbitrary>], iteration_bounds = array<i64: 1>, scalar_prefetch = 0 : i64, scratch_operands = 0 : i64, tpu.core_type = #tpu.core_type<tc>, window_params = [{pipeline_mode = #tpu.pipeline_mode<synchronous>, transform_indices = @transform_0, window_bounds = array<i64: 8, 1024>}, {pipeline_mode = #tpu.pipeline_mode<synchronous>, transform_indices = @transform_1, window_bounds = array<i64: 1024, 512>}, {pipeline_mode = #tpu.pipeline_mode<synchronous>, transform_indices = @transform_2, window_bounds = array<i64: 1, 512>}, {pipeline_mode = #tpu.pipeline_mode<synchronous>, transform_indices = @transform_3, window_bounds = array<i64: 512, 256>}, {pipeline_mode = #tpu.pipeline_mode<synchronous>, transform_indices = @transform_4, window_bounds = array<i64: 1, 256>}, {pipeline_mode = #tpu.pipeline_mode<synchronous>, transform_indices = @transform_5, window_bounds = array<i64: 8, 256>}]} {
    %c0 = arith.constant 0 : index
    %c0_0 = arith.constant 0 : index
    %0 = vector.load %arg1[%c0, %c0_0] : memref<8x1024xbf16, #tpu.memory_space<vmem>>, vector<8x1024xbf16>
    %c0_1 = arith.constant 0 : index
    %c0_2 = arith.constant 0 : index
    %1 = vector.load %arg2[%c0_1, %c0_2] : memref<1024x512xbf16, #tpu.memory_space<vmem>>, vector<1024x512xbf16>
    %cst = arith.constant dense<0.000000e+00> : vector<8x512xf32>
    %2 = tpu.matmul %0, %1, %cst {dimension_numbers = #tpu.dot_dimension_numbers<[1], [0], [0], [1], [0, 0, 1, 1], [], []>} : vector<8x1024xbf16>, vector<1024x512xbf16>, vector<8x512xf32> -> vector<8x512xf32>
    %c0_3 = arith.constant 0 : index
    %c0_4 = arith.constant 0 : index
    %3 = vector.load %arg3[%c0_3, %c0_4] : memref<1x512xf32, #tpu.memory_space<vmem>>, vector<1x512xf32>
    %4 = vector.broadcast %3 : vector<1x512xf32> to vector<8x512xf32>
    %5 = arith.addf %2, %4 : vector<8x512xf32>
    %cst_5 = arith.constant 0.000000e+00 : f32
    %6 = vector.broadcast %cst_5 : f32 to vector<8x512xf32>
    %7 = arith.cmpf ogt, %5, %6 : vector<8x512xf32>
    %cst_6 = arith.constant 2.000000e-01 : f32
    %8 = vector.broadcast %cst_6 : f32 to vector<8x512xf32>
    %9 = arith.mulf %8, %5 : vector<8x512xf32>
    %10 = arith.select %7, %5, %9 : vector<8x512xi1>, vector<8x512xf32>
    %11 = arith.truncf %10 : vector<8x512xf32> to vector<8x512xbf16>
    %c0_7 = arith.constant 0 : index
    %c0_8 = arith.constant 0 : index
    %12 = vector.load %arg4[%c0_7, %c0_8] : memref<512x256xbf16, #tpu.memory_space<vmem>>, vector<512x256xbf16>
    %cst_9 = arith.constant dense<0.000000e+00> : vector<8x256xf32>
    %13 = tpu.matmul %11, %12, %cst_9 {dimension_numbers = #tpu.dot_dimension_numbers<[1], [0], [0], [1], [0, 0, 1, 1], [], []>} : vector<8x512xbf16>, vector<512x256xbf16>, vector<8x256xf32> -> vector<8x256xf32>
    %c0_10 = arith.constant 0 : index
    %c0_11 = arith.constant 0 : index
    %14 = vector.load %arg5[%c0_10, %c0_11] : memref<1x256xf32, #tpu.memory_space<vmem>>, vector<1x256xf32>
    %15 = vector.broadcast %14 : vector<1x256xf32> to vector<8x256xf32>
    %16 = arith.addf %13, %15 : vector<8x256xf32>
    %c0_12 = arith.constant 0 : index
    %c0_13 = arith.constant 0 : index
    %17 = vector.load %arg6[%c0_12, %c0_13] : memref<8x256xf32, #tpu.memory_space<vmem>>, vector<8x256xf32>
    tpu.vector_store %arg6[%c0_12, %c0_13], %16 {strides = array<i32>} : memref<8x256xf32, #tpu.memory_space<vmem>>, vector<8x256xf32>,
    return
  }
  func.func @transform_0(%arg0: i32) -> (i32, i32) {
    %c0_i32 = arith.constant 0 : i32
    %c0_i32_0 = arith.constant 0 : i32
    %c0_i32_1 = arith.constant 0 : i32
    return %c0_i32, %c0_i32_0 : i32, i32
  }
  func.func @transform_1(%arg0: i32) -> (i32, i32) {
    %c0_i32 = arith.constant 0 : i32
    %c0_i32_0 = arith.constant 0 : i32
    %c0_i32_1 = arith.constant 0 : i32
    return %c0_i32, %c0_i32_0 : i32, i32
  }
  func.func @transform_2(%arg0: i32) -> (i32, i32) {
    %c0_i32 = arith.constant 0 : i32
    %c0_i32_0 = arith.constant 0 : i32
    %c0_i32_1 = arith.constant 0 : i32
    return %c0_i32, %c0_i32_0 : i32, i32
  }
  func.func @transform_3(%arg0: i32) -> (i32, i32) {
    %c0_i32 = arith.constant 0 : i32
    %c0_i32_0 = arith.constant 0 : i32
    %c0_i32_1 = arith.constant 0 : i32
    return %c0_i32, %c0_i32_0 : i32, i32
  }
  func.func @transform_4(%arg0: i32) -> (i32, i32) {
    %c0_i32 = arith.constant 0 : i32
    %c0_i32_0 = arith.constant 0 : i32
    %c0_i32_1 = arith.constant 0 : i32
    return %c0_i32, %c0_i32_0 : i32, i32
  }
  func.func @transform_5(%arg0: i32) -> (i32, i32) {
    %c0_i32 = arith.constant 0 : i32
    %c0_i32_0 = arith.constant 0 : i32
    %c0_i32_1 = arith.constant 0 : i32
    return %c0_i32, %c0_i32_0 : i32, i32
  }
}

</mosaic_0001>

<bundles_post_ra>
// kernel: encoder3_forward.6
= control target key start
LH: loop header
LB: loop body
LE: loop exit
PB: predicated region body
PF: predicated region fallthrough
CT: control target
= control target key end

     0   :  { %s2929_s12 = smov 0   ;;  %s2931_s13 = smov 0   ;;  %s3499_s0 = inlined_call_operand.vmem [shape: bf16[8192,48], index: 0, kind: input, shape index: {}]   ;;  %s3500_s1 = inlined_call_operand.vmem [shape: bf16[48,32], index: 1, kind: input, shape index: {}]   ;;  %s3501_s2 = inlined_call_operand.vmem [shape: f32[1,32], index: 2, kind: input, shape index: {}]   ;;  %s3502_s3 = inlined_call_operand.vmem [shape: bf16[8192,32], index: 3, kind: output, shape index: {}]  }
   0x1   :  { %s2933_s14 = smov 0  }
   0x2 LB: > { %s25_s15 = sadd.s32 1, %s2903_s13  ;;  %p2192_p0 = scmp.ge.s32.totalorder %s2907_s14, 1  ;;  %s2907_s14 = sphi %s2933_s14, %s13_s14   ;;  %s2903_s13 = sphi %s2931_s13, %s3504_s13   ;;  %s2899_s12 = sphi %s2929_s12, %s3503_s12  }
   0x3   : > { %p27_p1 = scmp.ge.s32.totalorder %s25_s15, 8  ;;  %p169_p2 = scmp.lt.s32.totalorder %s2907_s14, 9 }
   0x5   : > { %s3506_s15 = smov (%p27_p1, %s25_s15), 0  ;;  %p170_p3 = pnand %p2192_p0, %p169_p2 }
   0x6   : > { %v2818_v0 = vld [vmem:[%s3500_s1] sm:$0xff] (!%p170_p3)   ;;  %s2193_s18 = sshll.u32 (!%p170_p3), %s2899_s12, 7  ;;  %v2819_v1 = vld [vmem:[%s3500_s1 + $0x8] sm:$0xff] (!%p170_p3)   ;;  %v2820_v2 = vld [vmem:[%s3500_s1 + $0x10] sm:$0xff] (!%p170_p3)   ;;  %vm705_vm0 = vcmask (!%p170_p3), 392192   ;;  %vm1955_vm1 = vcmask (!%p170_p3), 257024  }
   0x7   : > { %173 = sbr.rel (%p170_p3) target bundleno = 360 (0x168), region = 32  ;;  %p204_p4 = scmp.lt.s32.totalorder (!%p170_p3), %s2193_s18, 1023  ;;  %2654 = vmatprep.subr.bf16.mxu0 (!%p170_p3), %v2818_v0  ;;  %2788 = vmatprep.subr.bf16.mxu1 (!%p170_p3), %v2818_v0 }
   0x8   : > { %2655 = vmatpush3.bf16.msra.mxu0 (!%p170_p3), %v2818_v0  ;;  %2791 = vmatpush3.bf16.msra.mxu1 (!%p170_p3), %v2818_v0 }
   0x9   : > { %2656 = vmatprep.subr.bf16.mxu0 (!%p170_p3), %v2819_v1  ;;  %2789 = vmatprep.subr.bf16.mxu1 (!%p170_p3), %v2819_v1 }
   0xc   : > { %2657 = vmatpush3.bf16.msra.mxu0 (!%p170_p3), %v2819_v1  ;;  %2792 = vmatpush3.bf16.msra.mxu1 (!%p170_p3), %v2819_v1 }
   0xd   : > { %2658 = vmatprep.subr.bf16.mxu0 (!%p170_p3), %v2820_v2  ;;  %2790 = vmatprep.subr.bf16.mxu1 (!%p170_p3), %v2820_v2 }
   0xe   : > { %s3508_s18 = smov (!%p204_p4, %s2193_s18), 1023 }
   0xf   : > { %s2194_s23 = sshll.u32 %s3508_s18, 2 }
  0x10   : > { %s2964_s26 = scalar_lea.vmem %s3499_s0, %s2194_s23  ;;  %2659 = vmatpush3.bf16.msra.mxu0 %v2820_v2  ;;  %2793 = vmatpush3.bf16.msra.mxu1 %v2820_v2  ;;  %s3106_s4 = scalar_lea.vmem %s3502_s3, %s2194_s23 }
  0x11   : > { %v2821_v3 = vld [vmem:[%s2964_s26] sm:$0xff]   ;;  %v2823_v5 = vld [vmem:[%s2964_s26 + $0x8] sm:$0xff]   ;;  %v2825_v7 = vld [vmem:[%s2964_s26 + $0x10] sm:$0xff]  }
  0x12   : > { %v2822_v4 = vld [vmem:[%s2964_s26 + $0x100] sm:$0xff]   ;;  %2660 = vmatprep.mubr.msk.bf16.mxu0 %vm705_vm0, %v2821_v3  ;;  %v2824_v6 = vld [vmem:[%s2964_s26 + $0x108] sm:$0xff]   ;;  %v2826_v8 = vld [vmem:[%s2964_s26 + $0x110] sm:$0xff]  }
  0x13   : > { %2724 = vmatprep.mubr.msk.bf16.mxu1 %vm705_vm0, %v2822_v4  ;;  %2661 = vmatmul.mubr.msk.bf16.vlgmr.msra.gmra.mrb[0].mxu0 %vm705_vm0, %v2823_v5  ;;  %v2827_v9 = vld [vmem:[%s2964_s26 + $0x18] sm:$0xff]   ;;  %v2829_v11 = vld [vmem:[%s2964_s26 + $0x20] sm:$0xff]   ;;  %v2831_v13 = vld [vmem:[%s2964_s26 + $0x28] sm:$0xff]  }
  0x14   : > { %2725 = vmatmul.mubr.msk.bf16.vlgmr.msra.gmra.mrb[0].mxu1 %vm705_vm0, %v2824_v6  ;;  %2664 = vmatprep.mubr.msk.bf16.mxu0 %vm705_vm0, %v2825_v7  ;;  %v2828_v10 = vld [vmem:[%s2964_s26 + $0x118] sm:$0xff]   ;;  %v2830_v12 = vld [vmem:[%s2964_s26 + $0x120] sm:$0xff]   ;;  %v2832_v14 = vld [vmem:[%s2964_s26 + $0x128] sm:$0xff]  }
  0x15   : > { %2728 = vmatprep.mubr.msk.bf16.mxu1 %vm705_vm0, %v2826_v8  ;;  %v2833_v15 = vld [vmem:[%s2964_s26 + $0x30] sm:$0xff]   ;;  %v2835_v17 = vld [vmem:[%s2964_s26 + $0x38] sm:$0xff]   ;;  %v2837_v19 = vld [vmem:[%s2964_s26 + $0x40] sm:$0xff]  }
  0x16   : > { %v2834_v16 = vld [vmem:[%s2964_s26 + $0x130] sm:$0xff]   ;;  %v2836_v18 = vld [vmem:[%s2964_s26 + $0x138] sm:$0xff]   ;;  %v2838_v20 = vld [vmem:[%s2964_s26 + $0x140] sm:$0xff]  }
  0x17   : > { %v2839_v21 = vld [vmem:[%s2964_s26 + $0x48] sm:$0xff]   ;;  %v2841_v23 = vld [vmem:[%s2964_s26 + $0x50] sm:$0xff]   ;;  %v2843_v25 = vld [vmem:[%s2964_s26 + $0x58] sm:$0xff]  }
  0x18   : > { %v2840_v22 = vld [vmem:[%s2964_s26 + $0x148] sm:$0xff]   ;;  %v2842_v24 = vld [vmem:[%s2964_s26 + $0x150] sm:$0xff]   ;;  %v2844_v26 = vld [vmem:[%s2964_s26 + $0x158] sm:$0xff]  }
  0x19   : > { %v2845_v27 = vld [vmem:[%s2964_s26 + $0x60] sm:$0xff]   ;;  %v2847_v29 = vld [vmem:[%s2964_s26 + $0x68] sm:$0xff]   ;;  %v2849_v31 = vld [vmem:[%s2964_s26 + $0x70] sm:$0xff]  }
  0x1a   : > { %v2846_v28 = vld [vmem:[%s2964_s26 + $0x160] sm:$0xff]   ;;  %v2848_v30 = vld [vmem:[%s2964_s26 + $0x168] sm:$0xff]   ;;  %v2850_v32 = vld [vmem:[%s2964_s26 + $0x170] sm:$0xff]  }
  0x1b   : > { %2665 = vmatmul.mubr.msk.bf16.gmra.mrb[4].mxu0 %vm705_vm0, %v2827_v9  ;;  %v2851_v33 = vld [vmem:[%s2964_s26 + $0x78] sm:$0xff]   ;;  %v2853_v35 = vld [vmem:[%s2964_s26 + $0x80] sm:$0xff]   ;;  %v2855_v37 = vld [vmem:[%s2964_s26 + $0x88] sm:$0xff]  }
  0x1c   : > { %2729 = vmatmul.mubr.msk.bf16.gmra.mrb[4].mxu1 %vm705_vm0, %v2828_v10  ;;  %2668 = vmatprep.mubr.msk.bf16.mxu0 %vm705_vm0, %v2829_v11  ;;  %v2852_v34 = vld [vmem:[%s2964_s26 + $0x178] sm:$0xff]   ;;  %v2854_v36 = vld [vmem:[%s2964_s26 + $0x180] sm:$0xff]   ;;  %v2856_v38 = vld [vmem:[%s2964_s26 + $0x188] sm:$0xff]  }
  0x1d   : > { %2732 = vmatprep.mubr.msk.bf16.mxu1 %vm705_vm0, %v2830_v12  ;;  %v2857_v39 = vld [vmem:[%s2964_s26 + $0x90] sm:$0xff]   ;;  %v2859_v41 = vld [vmem:[%s2964_s26 + $0x98] sm:$0xff]   ;;  %v2861_v43 = vld [vmem:[%s2964_s26 + $0xa0] sm:$0xff]  }
  0x1e   : > { %v2858_v40 = vld [vmem:[%s2964_s26 + $0x190] sm:$0xff]   ;;  %v2860_v42 = vld [vmem:[%s2964_s26 + $0x198] sm:$0xff]   ;;  %v2862_v44 = vld [vmem:[%s2964_s26 + $0x1a0] sm:$0xff]  }
  0x1f   : > { %v2863_v45 = vld [vmem:[%s2964_s26 + $0xa8] sm:$0xff]   ;;  %v2865_v47 = vld [vmem:[%s2964_s26 + $0xb0] sm:$0xff]   ;;  %v2867_v49 = vld [vmem:[%s2964_s26 + $0xb8] sm:$0xff]  }
  0x20   : > { %v2864_v46 = vld [vmem:[%s2964_s26 + $0x1a8] sm:$0xff]   ;;  %v2866_v48 = vld [vmem:[%s2964_s26 + $0x1b0] sm:$0xff]   ;;  %v2868_v50 = vld [vmem:[%s2964_s26 + $0x1b8] sm:$0xff]  }
  0x21   : > { %v2869_v51 = vld [vmem:[%s2964_s26 + $0xc0] sm:$0xff]   ;;  %v2871_v53 = vld [vmem:[%s2964_s26 + $0xc8] sm:$0xff]   ;;  %v2873_v55 = vld [vmem:[%s2964_s26 + $0xd0] sm:$0xff]  }
  0x22   : > { %v2870_v52 = vld [vmem:[%s2964_s26 + $0x1c0] sm:$0xff]   ;;  %v2872_v54 = vld [vmem:[%s2964_s26 + $0x1c8] sm:$0xff]   ;;  %v2874_v56 = vld [vmem:[%s2964_s26 + $0x1d0] sm:$0xff]  }
  0x23   : > { %2669 = vmatmul.mubr.msk.bf16.gmra.mrb[8].mxu0 %vm705_vm0, %v2831_v13  ;;  %v2875_v57 = vld [vmem:[%s2964_s26 + $0xd8] sm:$0xff]   ;;  %v2877_v59 = vld [vmem:[%s2964_s26 + $0xe0] sm:$0xff]   ;;  %v2879_v61 = vld [vmem:[%s2964_s26 + $0xe8] sm:$0xff]  }
  0x24   : > { %2733 = vmatmul.mubr.msk.bf16.gmra.mrb[8].mxu1 %vm705_vm0, %v2832_v14  ;;  %2672 = vmatprep.mubr.msk.bf16.mxu0 %vm705_vm0, %v2833_v15  ;;  %v2876_v58 = vld [vmem:[%s2964_s26 + $0x1d8] sm:$0xff]   ;;  %v2878_v60 = vld [vmem:[%s2964_s26 + $0x1e0] sm:$0xff]   ;;  %v2880_v62 = vld [vmem:[%s2964_s26 + $0x1e8] sm:$0xff]  }
  0x25   : > { %2736 = vmatprep.mubr.msk.bf16.mxu1 %vm705_vm0, %v2834_v16  ;;  %v2881_v63 = vld [vmem:[%s2964_s26 + $0xf0] sm:$0xff]   ;;  %v2883_v1 = vld [vmem:[%s2964_s26 + $0xf8] sm:$0xff]   ;;  %v3097_v3 = vld [vmem:[%s3501_s2] ss:$0 sm:$0xff] }
  0x26   : > { %v2882_v0 = vld [vmem:[%s2964_s26 + $0x1f0] sm:$0xff]   ;;  %v2884_v2 = vld [vmem:[%s2964_s26 + $0x1f8] sm:$0xff]  }
  0x2b   : > { %2673 = vmatmul.mubr.msk.bf16.gmra.mrb[12].mxu0 %vm705_vm0, %v2835_v17 }
  0x2c   : > { %2737 = vmatmul.mubr.msk.bf16.gmra.mrb[12].mxu1 %vm705_vm0, %v2836_v18  ;;  %2676 = vmatprep.mubr.msk.bf16.mxu0 %vm705_vm0, %v2837_v19 }
  0x2d   : > { %2740 = vmatprep.mubr.msk.bf16.mxu1 %vm705_vm0, %v2838_v20 }
  0x33   : > { %2677 = vmatmul.mubr.msk.bf16.gmra.mrb[16].mxu0 %vm705_vm0, %v2839_v21 }
  0x34   : > { %2741 = vmatmul.mubr.msk.bf16.gmra.mrb[16].mxu1 %vm705_vm0, %v2840_v22  ;;  %2680 = vmatprep.mubr.msk.bf16.mxu0 %vm705_vm0, %v2841_v23 }
  0x35   : > { %2744 = vmatprep.mubr.msk.bf16.mxu1 %vm705_vm0, %v2842_v24 }
  0x3b   : > { %2681 = vmatmul.mubr.msk.bf16.gmra.mrb[20].mxu0 %vm705_vm0, %v2843_v25 }
  0x3c   : > { %2745 = vmatmul.mubr.msk.bf16.gmra.mrb[20].mxu1 %vm705_vm0, %v2844_v26  ;;  %2684 = vmatprep.mubr.msk.bf16.mxu0 %vm705_vm0, %v2845_v27 }
  0x3d   : > { %2748 = vmatprep.mubr.msk.bf16.mxu1 %vm705_vm0, %v2846_v28 }
  0x43   : > { %2685 = vmatmul.mubr.msk.bf16.gmra.mrb[24].mxu0 %vm705_vm0, %v2847_v29 }
  0x44   : > { %2749 = vmatmul.mubr.msk.bf16.gmra.mrb[24].mxu1 %vm705_vm0, %v2848_v30  ;;  %2688 = vmatprep.mubr.msk.bf16.mxu0 %vm705_vm0, %v2849_v31 }
  0x45   : > { %2752 = vmatprep.mubr.msk.bf16.mxu1 %vm705_vm0, %v2850_v32 }
  0x4b   : > { %2689 = vmatmul.mubr.msk.bf16.gmra.mrb[28].mxu0 %vm705_vm0, %v2851_v33 }
  0x4c   : > { %2753 = vmatmul.mubr.msk.bf16.gmra.mrb[28].mxu1 %vm705_vm0, %v2852_v34  ;;  %2692 = vmatprep.mubr.msk.bf16.mxu0 %vm705_vm0, %v2853_v35 }
  0x4d   : > { %2756 = vmatprep.mubr.msk.bf16.mxu1 %vm705_vm0, %v2854_v36 }
  0x53   : > { %2693 = vmatmul.mubr.msk.bf16.gmra.mrb[32].mxu0 %vm705_vm0, %v2855_v37 }
  0x54   : > { %2757 = vmatmul.mubr.msk.bf16.gmra.mrb[32].mxu1 %vm705_vm0, %v2856_v38  ;;  %2696 = vmatprep.mubr.msk.bf16.mxu0 %vm705_vm0, %v2857_v39 }
  0x55   : > { %2760 = vmatprep.mubr.msk.bf16.mxu1 %vm705_vm0, %v2858_v40 }
  0x5b   : > { %2697 = vmatmul.mubr.msk.bf16.gmra.mrb[36].mxu0 %vm705_vm0, %v2859_v41 }
  0x5c   : > { %2761 = vmatmul.mubr.msk.bf16.gmra.mrb[36].mxu1 %vm705_vm0, %v2860_v42  ;;  %2700 = vmatprep.mubr.msk.bf16.mxu0 %vm705_vm0, %v2861_v43 }
  0x5d   : > { %2764 = vmatprep.mubr.msk.bf16.mxu1 %vm705_vm0, %v2862_v44 }
  0x63   : > { %2701 = vmatmul.mubr.msk.bf16.gmra.mrb[40].mxu0 %vm705_vm0, %v2863_v45 }
  0x64   : > { %2765 = vmatmul.mubr.msk.bf16.gmra.mrb[40].mxu1 %vm705_vm0, %v2864_v46  ;;  %2704 = vmatprep.mubr.msk.bf16.mxu0 %vm705_vm0, %v2865_v47 }
  0x65   : > { %2768 = vmatprep.mubr.msk.bf16.mxu1 %vm705_vm0, %v2866_v48 }
  0x6b   : > { %2705 = vmatmul.mubr.msk.bf16.gmra.mrb[44].mxu0 %vm705_vm0, %v2867_v49 }
  0x6c   : > { %2769 = vmatmul.mubr.msk.bf16.gmra.mrb[44].mxu1 %vm705_vm0, %v2868_v50  ;;  %2708 = vmatprep.mubr.msk.bf16.mxu0 %vm705_vm0, %v2869_v51 }
  0x6d   : > { %2772 = vmatprep.mubr.msk.bf16.mxu1 %vm705_vm0, %v2870_v52 }
  0x73   : > { %2709 = vmatmul.mubr.msk.bf16.gmra.mrb[48].mxu0 %vm705_vm0, %v2871_v53 }
  0x74   : > { %2773 = vmatmul.mubr.msk.bf16.gmra.mrb[48].mxu1 %vm705_vm0, %v2872_v54  ;;  %2712 = vmatprep.mubr.msk.bf16.mxu0 %vm705_vm0, %v2873_v55 }
  0x75   : > { %2776 = vmatprep.mubr.msk.bf16.mxu1 %vm705_vm0, %v2874_v56 }
  0x7b   : > { %2713 = vmatmul.mubr.msk.bf16.gmra.mrb[52].mxu0 %vm705_vm0, %v2875_v57 }
  0x7c   : > { %2777 = vmatmul.mubr.msk.bf16.gmra.mrb[52].mxu1 %vm705_vm0, %v2876_v58  ;;  %2716 = vmatprep.mubr.msk.bf16.mxu0 %vm705_vm0, %v2877_v59 }
  0x7d   : > { %2780 = vmatprep.mubr.msk.bf16.mxu1 %vm705_vm0, %v2878_v60 }
  0x83   : > { %2717 = vmatmul.mubr.msk.bf16.gmra.mrb[56].mxu0 %vm705_vm0, %v2879_v61 }
  0x84   : > { %2781 = vmatmul.mubr.msk.bf16.gmra.mrb[56].mxu1 %vm705_vm0, %v2880_v62  ;;  %2720 = vmatprep.mubr.msk.bf16.mxu0 %vm705_vm0, %v2881_v63 }
  0x85   : > { %2784 = vmatprep.mubr.msk.bf16.mxu1 %vm705_vm0, %v2882_v0 }
  0x8b   : > { %2721 = vmatmul.mubr.msk.bf16.gmra.mrb[60].mxu0 %vm705_vm0, %v2883_v1 }
  0x8c   : > { %2785 = vmatmul.mubr.msk.bf16.gmra.mrb[60].mxu1 %vm705_vm0, %v2884_v2 }
  0xe6   : > { %v2662_v4 = vpop.f32.mrb[0].mxu0 }
  0xe7   : > { %v2726_v5 = vpop.f32.mrb[0].mxu1  ;;  %v941_v6 = vadd.f32 %v2662_v4, %v3097_v3  ;;  %v932_v8 = vpop.f32.mrb[1].mxu0 }
  0xe8   : > { %v1197_v7 = vadd.f32 %v2726_v5, %v3097_v3  ;;  %v1188_v9 = vpop.f32.mrb[1].mxu1  ;;  %v933_v10 = vadd.f32 %v3097_v3, %v932_v8  ;;  %v2663_v12 = vpop.f32.mrb[2].mxu0 }
  0xe9   : > { %v1189_v11 = vadd.f32 %v3097_v3, %v1188_v9  ;;  %v2727_v13 = vpop.f32.mrb[2].mxu1  ;;  %v2461_v14 = vpack.c.bf16 %v941_v6, %v941_v6  ;;  %v944_v16 = vadd.f32 %v2663_v12, %v3097_v3  ;;  %v935_v18 = vpop.f32.mrb[3].mxu0 }
  0xea   : > { %v2525_v15 = vpack.c.bf16 %v1197_v7, %v1197_v7  ;;  %v1200_v17 = vadd.f32 %v2727_v13, %v3097_v3  ;;  %v1191_v19 = vpop.f32.mrb[3].mxu1  ;;  %v2459_v20 = vpack.c.bf16 %v933_v10, %v933_v10  ;;  %v936_v22 = vadd.f32 %v3097_v3, %v935_v18 }
  0xeb   : > { %v2523_v21 = vpack.c.bf16 %v1189_v11, %v1189_v11  ;;  %v1192_v23 = vadd.f32 %v3097_v3, %v1191_v19  ;;  %1958 = vst.msk [vmem:[%s3106_s4 + $0x8] sm:$0xf] %vm1955_vm1, %v2461_v14  ;;  %v2462_v24 = vpack.c.bf16 %v944_v16, %v944_v16 }
  0xec   : > { %2022 = vst.msk [vmem:[%s3106_s4 + $0x108] sm:$0xf] %vm1955_vm1, %v2525_v15  ;;  %v2526_v25 = vpack.c.bf16 %v1200_v17, %v1200_v17  ;;  %1956 = vst.msk [vmem:[%s3106_s4] sm:$0xf] %vm1955_vm1, %v2459_v20  ;;  %v2460_v26 = vpack.c.bf16 %v936_v22, %v936_v22 }
  0xed   : > { %2020 = vst.msk [vmem:[%s3106_s4 + $0x100] sm:$0xf] %vm1955_vm1, %v2523_v21  ;;  %v2524_v27 = vpack.c.bf16 %v1192_v23, %v1192_v23  ;;  %1959 = vst.msk [vmem:[%s3106_s4 + $0xc] sm:$0xf] %vm1955_vm1, %v2462_v24 }
  0xee   : > { %2023 = vst.msk [vmem:[%s3106_s4 + $0x10c] sm:$0xf] %vm1955_vm1, %v2526_v25  ;;  %1957 = vst.msk [vmem:[%s3106_s4 + $0x4] sm:$0xf] %vm1955_vm1, %v2460_v26  ;;  %v2666_v28 = vpop.f32.mrb[4].mxu0 }
  0xef   : > { %2021 = vst.msk [vmem:[%s3106_s4 + $0x104] sm:$0xf] %vm1955_vm1, %v2524_v27  ;;  %v2730_v29 = vpop.f32.mrb[4].mxu1  ;;  %v957_v30 = vadd.f32 %v2666_v28, %v3097_v3  ;;  %v948_v32 = vpop.f32.mrb[5].mxu0 }
  0xf0   : > { %v1213_v31 = vadd.f32 %v2730_v29, %v3097_v3  ;;  %v1204_v33 = vpop.f32.mrb[5].mxu1  ;;  %v949_v34 = vadd.f32 %v3097_v3, %v948_v32  ;;  %v2667_v36 = vpop.f32.mrb[6].mxu0 }
  0xf1   : > { %v1205_v35 = vadd.f32 %v3097_v3, %v1204_v33  ;;  %v2731_v37 = vpop.f32.mrb[6].mxu1  ;;  %v2465_v38 = vpack.c.bf16 %v957_v30, %v957_v30  ;;  %v960_v40 = vadd.f32 %v2667_v36, %v3097_v3  ;;  %v951_v42 = vpop.f32.mrb[7].mxu0 }
  0xf2   : > { %v2529_v39 = vpack.c.bf16 %v1213_v31, %v1213_v31  ;;  %v1216_v41 = vadd.f32 %v2731_v37, %v3097_v3  ;;  %v1207_v43 = vpop.f32.mrb[7].mxu1  ;;  %v2463_v44 = vpack.c.bf16 %v949_v34, %v949_v34  ;;  %v952_v46 = vadd.f32 %v3097_v3, %v951_v42 }
  0xf3   : > { %v2527_v45 = vpack.c.bf16 %v1205_v35, %v1205_v35  ;;  %v1208_v47 = vadd.f32 %v3097_v3, %v1207_v43  ;;  %1962 = vst.msk [vmem:[%s3106_s4 + $0x18] sm:$0xf] %vm1955_vm1, %v2465_v38  ;;  %v2466_v48 = vpack.c.bf16 %v960_v40, %v960_v40 }
  0xf4   : > { %2026 = vst.msk [vmem:[%s3106_s4 + $0x118] sm:$0xf] %vm1955_vm1, %v2529_v39  ;;  %v2530_v49 = vpack.c.bf16 %v1216_v41, %v1216_v41  ;;  %1960 = vst.msk [vmem:[%s3106_s4 + $0x10] sm:$0xf] %vm1955_vm1, %v2463_v44  ;;  %v2464_v50 = vpack.c.bf16 %v952_v46, %v952_v46 }
  0xf5   : > { %2024 = vst.msk [vmem:[%s3106_s4 + $0x110] sm:$0xf] %vm1955_vm1, %v2527_v45  ;;  %v2528_v51 = vpack.c.bf16 %v1208_v47, %v1208_v47  ;;  %1963 = vst.msk [vmem:[%s3106_s4 + $0x1c] sm:$0xf] %vm1955_vm1, %v2466_v48 }
  0xf6   : > { %2027 = vst.msk [vmem:[%s3106_s4 + $0x11c] sm:$0xf] %vm1955_vm1, %v2530_v49  ;;  %1961 = vst.msk [vmem:[%s3106_s4 + $0x14] sm:$0xf] %vm1955_vm1, %v2464_v50  ;;  %v2670_v52 = vpop.f32.mrb[8].mxu0 }
  0xf7   : > { %2025 = vst.msk [vmem:[%s3106_s4 + $0x114] sm:$0xf] %vm1955_vm1, %v2528_v51  ;;  %v2734_v53 = vpop.f32.mrb[8].mxu1  ;;  %v973_v54 = vadd.f32 %v2670_v52, %v3097_v3  ;;  %v964_v56 = vpop.f32.mrb[9].mxu0 }
  0xf8   : > { %v1229_v55 = vadd.f32 %v2734_v53, %v3097_v3  ;;  %v1220_v57 = vpop.f32.mrb[9].mxu1  ;;  %v965_v58 = vadd.f32 %v3097_v3, %v964_v56  ;;  %v2671_v60 = vpop.f32.mrb[10].mxu0 }
  0xf9   : > { %v1221_v59 = vadd.f32 %v3097_v3, %v1220_v57  ;;  %v2735_v61 = vpop.f32.mrb[10].mxu1  ;;  %v2469_v62 = vpack.c.bf16 %v973_v54, %v973_v54  ;;  %v976_v0 = vadd.f32 %v2671_v60, %v3097_v3  ;;  %v967_v2 = vpop.f32.mrb[11].mxu0 }
  0xfa   : > { %v2533_v63 = vpack.c.bf16 %v1229_v55, %v1229_v55  ;;  %v1232_v1 = vadd.f32 %v2735_v61, %v3097_v3  ;;  %v1223_v4 = vpop.f32.mrb[11].mxu1  ;;  %v2467_v5 = vpack.c.bf16 %v965_v58, %v965_v58  ;;  %v968_v7 = vadd.f32 %v3097_v3, %v967_v2 }
  0xfb   : > { %v2531_v6 = vpack.c.bf16 %v1221_v59, %v1221_v59  ;;  %v1224_v8 = vadd.f32 %v3097_v3, %v1223_v4  ;;  %1966 = vst.msk [vmem:[%s3106_s4 + $0x28] sm:$0xf] %vm1955_vm1, %v2469_v62  ;;  %v2470_v9 = vpack.c.bf16 %v976_v0, %v976_v0 }
  0xfc   : > { %2030 = vst.msk [vmem:[%s3106_s4 + $0x128] sm:$0xf] %vm1955_vm1, %v2533_v63  ;;  %v2534_v10 = vpack.c.bf16 %v1232_v1, %v1232_v1  ;;  %1964 = vst.msk [vmem:[%s3106_s4 + $0x20] sm:$0xf] %vm1955_vm1, %v2467_v5  ;;  %v2468_v11 = vpack.c.bf16 %v968_v7, %v968_v7 }
  0xfd   : > { %2028 = vst.msk [vmem:[%s3106_s4 + $0x120] sm:$0xf] %vm1955_vm1, %v2531_v6  ;;  %v2532_v12 = vpack.c.bf16 %v1224_v8, %v1224_v8  ;;  %1967 = vst.msk [vmem:[%s3106_s4 + $0x2c] sm:$0xf] %vm1955_vm1, %v2470_v9 }
  0xfe   : > { %2031 = vst.msk [vmem:[%s3106_s4 + $0x12c] sm:$0xf] %vm1955_vm1, %v2534_v10  ;;  %1965 = vst.msk [vmem:[%s3106_s4 + $0x24] sm:$0xf] %vm1955_vm1, %v2468_v11  ;;  %v2674_v13 = vpop.f32.mrb[12].mxu0 }
  0xff   : > { %2029 = vst.msk [vmem:[%s3106_s4 + $0x124] sm:$0xf] %vm1955_vm1, %v2532_v12  ;;  %v2738_v14 = vpop.f32.mrb[12].mxu1  ;;  %v989_v15 = vadd.f32 %v2674_v13, %v3097_v3  ;;  %v980_v17 = vpop.f32.mrb[13].mxu0 }
 0x100   : > { %v1245_v16 = vadd.f32 %v2738_v14, %v3097_v3  ;;  %v1236_v18 = vpop.f32.mrb[13].mxu1  ;;  %v981_v19 = vadd.f32 %v3097_v3, %v980_v17  ;;  %v2675_v21 = vpop.f32.mrb[14].mxu0 }
 0x101   : > { %v1237_v20 = vadd.f32 %v3097_v3, %v1236_v18  ;;  %v2739_v22 = vpop.f32.mrb[14].mxu1  ;;  %v2473_v23 = vpack.c.bf16 %v989_v15, %v989_v15  ;;  %v992_v25 = vadd.f32 %v2675_v21, %v3097_v3  ;;  %v983_v27 = vpop.f32.mrb[15].mxu0 }
 0x102   : > { %v2537_v24 = vpack.c.bf16 %v1245_v16, %v1245_v16  ;;  %v1248_v26 = vadd.f32 %v2739_v22, %v3097_v3  ;;  %v1239_v28 = vpop.f32.mrb[15].mxu1  ;;  %v2471_v29 = vpack.c.bf16 %v981_v19, %v981_v19  ;;  %v984_v31 = vadd.f32 %v3097_v3, %v983_v27 }
 0x103   : > { %v2535_v30 = vpack.c.bf16 %v1237_v20, %v1237_v20  ;;  %v1240_v32 = vadd.f32 %v3097_v3, %v1239_v28  ;;  %1970 = vst.msk [vmem:[%s3106_s4 + $0x38] sm:$0xf] %vm1955_vm1, %v2473_v23  ;;  %v2474_v33 = vpack.c.bf16 %v992_v25, %v992_v25 }
 0x104   : > { %2034 = vst.msk [vmem:[%s3106_s4 + $0x138] sm:$0xf] %vm1955_vm1, %v2537_v24  ;;  %v2538_v34 = vpack.c.bf16 %v1248_v26, %v1248_v26  ;;  %1968 = vst.msk [vmem:[%s3106_s4 + $0x30] sm:$0xf] %vm1955_vm1, %v2471_v29  ;;  %v2472_v35 = vpack.c.bf16 %v984_v31, %v984_v31 }
 0x105   : > { %2032 = vst.msk [vmem:[%s3106_s4 + $0x130] sm:$0xf] %vm1955_vm1, %v2535_v30  ;;  %v2536_v36 = vpack.c.bf16 %v1240_v32, %v1240_v32  ;;  %1971 = vst.msk [vmem:[%s3106_s4 + $0x3c] sm:$0xf] %vm1955_vm1, %v2474_v33 }
 0x106   : > { %2035 = vst.msk [vmem:[%s3106_s4 + $0x13c] sm:$0xf] %vm1955_vm1, %v2538_v34  ;;  %1969 = vst.msk [vmem:[%s3106_s4 + $0x34] sm:$0xf] %vm1955_vm1, %v2472_v35  ;;  %v2678_v37 = vpop.f32.mrb[16].mxu0 }
 0x107   : > { %2033 = vst.msk [vmem:[%s3106_s4 + $0x134] sm:$0xf] %vm1955_vm1, %v2536_v36  ;;  %v2742_v38 = vpop.f32.mrb[16].mxu1  ;;  %v1005_v39 = vadd.f32 %v2678_v37, %v3097_v3  ;;  %v996_v41 = vpop.f32.mrb[17].mxu0 }
 0x108   : > { %v1261_v40 = vadd.f32 %v2742_v38, %v3097_v3  ;;  %v1252_v42 = vpop.f32.mrb[17].mxu1  ;;  %v997_v43 = vadd.f32 %v3097_v3, %v996_v41  ;;  %v2679_v45 = vpop.f32.mrb[18].mxu0 }
 0x109   : > { %v1253_v44 = vadd.f32 %v3097_v3, %v1252_v42  ;;  %v2743_v46 = vpop.f32.mrb[18].mxu1  ;;  %v2477_v47 = vpack.c.bf16 %v1005_v39, %v1005_v39  ;;  %v1008_v49 = vadd.f32 %v2679_v45, %v3097_v3  ;;  %v999_v51 = vpop.f32.mrb[19].mxu0 }
 0x10a   : > { %v2541_v48 = vpack.c.bf16 %v1261_v40, %v1261_v40  ;;  %v1264_v50 = vadd.f32 %v2743_v46, %v3097_v3  ;;  %v1255_v52 = vpop.f32.mrb[19].mxu1  ;;  %v2475_v53 = vpack.c.bf16 %v997_v43, %v997_v43  ;;  %v1000_v55 = vadd.f32 %v3097_v3, %v999_v51 }
 0x10b   : > { %v2539_v54 = vpack.c.bf16 %v1253_v44, %v1253_v44  ;;  %v1256_v56 = vadd.f32 %v3097_v3, %v1255_v52  ;;  %1974 = vst.msk [vmem:[%s3106_s4 + $0x48] sm:$0xf] %vm1955_vm1, %v2477_v47  ;;  %v2478_v57 = vpack.c.bf16 %v1008_v49, %v1008_v49 }
 0x10c   : > { %2038 = vst.msk [vmem:[%s3106_s4 + $0x148] sm:$0xf] %vm1955_vm1, %v2541_v48  ;;  %v2542_v58 = vpack.c.bf16 %v1264_v50, %v1264_v50  ;;  %1972 = vst.msk [vmem:[%s3106_s4 + $0x40] sm:$0xf] %vm1955_vm1, %v2475_v53  ;;  %v2476_v59 = vpack.c.bf16 %v1000_v55, %v1000_v55 }
 0x10d   : > { %2036 = vst.msk [vmem:[%s3106_s4 + $0x140] sm:$0xf] %vm1955_vm1, %v2539_v54  ;;  %v2540_v60 = vpack.c.bf16 %v1256_v56, %v1256_v56  ;;  %1975 = vst.msk [vmem:[%s3106_s4 + $0x4c] sm:$0xf] %vm1955_vm1, %v2478_v57 }
 0x10e   : > { %2039 = vst.msk [vmem:[%s3106_s4 + $0x14c] sm:$0xf] %vm1955_vm1, %v2542_v58  ;;  %1973 = vst.msk [vmem:[%s3106_s4 + $0x44] sm:$0xf] %vm1955_vm1, %v2476_v59  ;;  %v2682_v61 = vpop.f32.mrb[20].mxu0 }
 0x10f   : > { %2037 = vst.msk [vmem:[%s3106_s4 + $0x144] sm:$0xf] %vm1955_vm1, %v2540_v60  ;;  %v2746_v62 = vpop.f32.mrb[20].mxu1  ;;  %v1021_v63 = vadd.f32 %v2682_v61, %v3097_v3  ;;  %v1012_v1 = vpop.f32.mrb[21].mxu0 }
 0x110   : > { %v1277_v0 = vadd.f32 %v2746_v62, %v3097_v3  ;;  %v1268_v2 = vpop.f32.mrb[21].mxu1  ;;  %v1013_v4 = vadd.f32 %v3097_v3, %v1012_v1  ;;  %v2683_v6 = vpop.f32.mrb[22].mxu0 }
 0x111   : > { %v1269_v5 = vadd.f32 %v3097_v3, %v1268_v2  ;;  %v2747_v7 = vpop.f32.mrb[22].mxu1  ;;  %v2481_v8 = vpack.c.bf16 %v1021_v63, %v1021_v63  ;;  %v1024_v10 = vadd.f32 %v2683_v6, %v3097_v3  ;;  %v1015_v12 = vpop.f32.mrb[23].mxu0 }
 0x112   : > { %v2545_v9 = vpack.c.bf16 %v1277_v0, %v1277_v0  ;;  %v1280_v11 = vadd.f32 %v2747_v7, %v3097_v3  ;;  %v1271_v13 = vpop.f32.mrb[23].mxu1  ;;  %v2479_v14 = vpack.c.bf16 %v1013_v4, %v1013_v4  ;;  %v1016_v16 = vadd.f32 %v3097_v3, %v1015_v12 }
 0x113   : > { %v2543_v15 = vpack.c.bf16 %v1269_v5, %v1269_v5  ;;  %v1272_v17 = vadd.f32 %v3097_v3, %v1271_v13  ;;  %1978 = vst.msk [vmem:[%s3106_s4 + $0x58] sm:$0xf] %vm1955_vm1, %v2481_v8  ;;  %v2482_v18 = vpack.c.bf16 %v1024_v10, %v1024_v10 }
 0x114   : > { %2042 = vst.msk [vmem:[%s3106_s4 + $0x158] sm:$0xf] %vm1955_vm1, %v2545_v9  ;;  %v2546_v19 = vpack.c.bf16 %v1280_v11, %v1280_v11  ;;  %1976 = vst.msk [vmem:[%s3106_s4 + $0x50] sm:$0xf] %vm1955_vm1, %v2479_v14  ;;  %v2480_v20 = vpack.c.bf16 %v1016_v16, %v1016_v16 }
 0x115   : > { %2040 = vst.msk [vmem:[%s3106_s4 + $0x150] sm:$0xf] %vm1955_vm1, %v2543_v15  ;;  %v2544_v21 = vpack.c.bf16 %v1272_v17, %v1272_v17  ;;  %1979 = vst.msk [vmem:[%s3106_s4 + $0x5c] sm:$0xf] %vm1955_vm1, %v2482_v18 }
 0x116   : > { %2043 = vst.msk [vmem:[%s3106_s4 + $0x15c] sm:$0xf] %vm1955_vm1, %v2546_v19  ;;  %1977 = vst.msk [vmem:[%s3106_s4 + $0x54] sm:$0xf] %vm1955_vm1, %v2480_v20  ;;  %v2686_v22 = vpop.f32.mrb[24].mxu0 }
 0x117   : > { %2041 = vst.msk [vmem:[%s3106_s4 + $0x154] sm:$0xf] %vm1955_vm1, %v2544_v21  ;;  %v2750_v23 = vpop.f32.mrb[24].mxu1  ;;  %v1037_v24 = vadd.f32 %v2686_v22, %v3097_v3  ;;  %v1028_v26 = vpop.f32.mrb[25].mxu0 }
 0x118   : > { %v1293_v25 = vadd.f32 %v2750_v23, %v3097_v3  ;;  %v1284_v27 = vpop.f32.mrb[25].mxu1  ;;  %v1029_v28 = vadd.f32 %v3097_v3, %v1028_v26  ;;  %v2687_v30 = vpop.f32.mrb[26].mxu0 }
 0x119   : > { %v1285_v29 = vadd.f32 %v3097_v3, %v1284_v27  ;;  %v2751_v31 = vpop.f32.mrb[26].mxu1  ;;  %v2485_v32 = vpack.c.bf16 %v1037_v24, %v1037_v24  ;;  %v1040_v34 = vadd.f32 %v2687_v30, %v3097_v3  ;;  %v1031_v36 = vpop.f32.mrb[27].mxu0 }
 0x11a   : > { %v2549_v33 = vpack.c.bf16 %v1293_v25, %v1293_v25  ;;  %v1296_v35 = vadd.f32 %v2751_v31, %v3097_v3  ;;  %v1287_v37 = vpop.f32.mrb[27].mxu1  ;;  %v2483_v38 = vpack.c.bf16 %v1029_v28, %v1029_v28  ;;  %v1032_v40 = vadd.f32 %v3097_v3, %v1031_v36 }
 0x11b   : > { %v2547_v39 = vpack.c.bf16 %v1285_v29, %v1285_v29  ;;  %v1288_v41 = vadd.f32 %v3097_v3, %v1287_v37  ;;  %1982 = vst.msk [vmem:[%s3106_s4 + $0x68] sm:$0xf] %vm1955_vm1, %v2485_v32  ;;  %v2486_v42 = vpack.c.bf16 %v1040_v34, %v1040_v34 }
 0x11c   : > { %2046 = vst.msk [vmem:[%s3106_s4 + $0x168] sm:$0xf] %vm1955_vm1, %v2549_v33  ;;  %v2550_v43 = vpack.c.bf16 %v1296_v35, %v1296_v35  ;;  %1980 = vst.msk [vmem:[%s3106_s4 + $0x60] sm:$0xf] %vm1955_vm1, %v2483_v38  ;;  %v2484_v44 = vpack.c.bf16 %v1032_v40, %v1032_v40 }
 0x11d   : > { %2044 = vst.msk [vmem:[%s3106_s4 + $0x160] sm:$0xf] %vm1955_vm1, %v2547_v39  ;;  %v2548_v45 = vpack.c.bf16 %v1288_v41, %v1288_v41  ;;  %1983 = vst.msk [vmem:[%s3106_s4 + $0x6c] sm:$0xf] %vm1955_vm1, %v2486_v42 }
 0x11e   : > { %2047 = vst.msk [vmem:[%s3106_s4 + $0x16c] sm:$0xf] %vm1955_vm1, %v2550_v43  ;;  %1981 = vst.msk [vmem:[%s3106_s4 + $0x64] sm:$0xf] %vm1955_vm1, %v2484_v44  ;;  %v2690_v46 = vpop.f32.mrb[28].mxu0 }
 0x11f   : > { %2045 = vst.msk [vmem:[%s3106_s4 + $0x164] sm:$0xf] %vm1955_vm1, %v2548_v45  ;;  %v2754_v47 = vpop.f32.mrb[28].mxu1  ;;  %v1053_v48 = vadd.f32 %v2690_v46, %v3097_v3  ;;  %v1044_v50 = vpop.f32.mrb[29].mxu0 }
 0x120   : > { %v1309_v49 = vadd.f32 %v2754_v47, %v3097_v3  ;;  %v1300_v51 = vpop.f32.mrb[29].mxu1  ;;  %v1045_v52 = vadd.f32 %v3097_v3, %v1044_v50  ;;  %v2691_v54 = vpop.f32.mrb[30].mxu0 }
 0x121   : > { %v1301_v53 = vadd.f32 %v3097_v3, %v1300_v51  ;;  %v2755_v55 = vpop.f32.mrb[30].mxu1  ;;  %v2489_v56 = vpack.c.bf16 %v1053_v48, %v1053_v48  ;;  %v1056_v58 = vadd.f32 %v2691_v54, %v3097_v3  ;;  %v1047_v60 = vpop.f32.mrb[31].mxu0 }
 0x122   : > { %v2553_v57 = vpack.c.bf16 %v1309_v49, %v1309_v49  ;;  %v1312_v59 = vadd.f32 %v2755_v55, %v3097_v3  ;;  %v1303_v61 = vpop.f32.mrb[31].mxu1  ;;  %v2487_v62 = vpack.c.bf16 %v1045_v52, %v1045_v52  ;;  %v1048_v0 = vadd.f32 %v3097_v3, %v1047_v60 }
 0x123   : > { %v2551_v63 = vpack.c.bf16 %v1301_v53, %v1301_v53  ;;  %v1304_v1 = vadd.f32 %v3097_v3, %v1303_v61  ;;  %1986 = vst.msk [vmem:[%s3106_s4 + $0x78] sm:$0xf] %vm1955_vm1, %v2489_v56  ;;  %v2490_v2 = vpack.c.bf16 %v1056_v58, %v1056_v58 }
 0x124   : > { %2050 = vst.msk [vmem:[%s3106_s4 + $0x178] sm:$0xf] %vm1955_vm1, %v2553_v57  ;;  %v2554_v4 = vpack.c.bf16 %v1312_v59, %v1312_v59  ;;  %1984 = vst.msk [vmem:[%s3106_s4 + $0x70] sm:$0xf] %vm1955_vm1, %v2487_v62  ;;  %v2488_v5 = vpack.c.bf16 %v1048_v0, %v1048_v0 }
 0x125   : > { %2048 = vst.msk [vmem:[%s3106_s4 + $0x170] sm:$0xf] %vm1955_vm1, %v2551_v63  ;;  %v2552_v6 = vpack.c.bf16 %v1304_v1, %v1304_v1  ;;  %1987 = vst.msk [vmem:[%s3106_s4 + $0x7c] sm:$0xf] %vm1955_vm1, %v2490_v2 }
 0x126   : > { %2051 = vst.msk [vmem:[%s3106_s4 + $0x17c] sm:$0xf] %vm1955_vm1, %v2554_v4  ;;  %1985 = vst.msk [vmem:[%s3106_s4 + $0x74] sm:$0xf] %vm1955_vm1, %v2488_v5  ;;  %v2694_v7 = vpop.f32.mrb[32].mxu0 }
 0x127   : > { %2049 = vst.msk [vmem:[%s3106_s4 + $0x174] sm:$0xf] %vm1955_vm1, %v2552_v6  ;;  %v2758_v8 = vpop.f32.mrb[32].mxu1  ;;  %v1069_v9 = vadd.f32 %v2694_v7, %v3097_v3  ;;  %v1060_v11 = vpop.f32.mrb[33].mxu0 }
 0x128   : > { %v1325_v10 = vadd.f32 %v2758_v8, %v3097_v3  ;;  %v1316_v12 = vpop.f32.mrb[33].mxu1  ;;  %v1061_v13 = vadd.f32 %v3097_v3, %v1060_v11  ;;  %v2695_v15 = vpop.f32.mrb[34].mxu0 }
 0x129   : > { %v1317_v14 = vadd.f32 %v3097_v3, %v1316_v12  ;;  %v2759_v16 = vpop.f32.mrb[34].mxu1  ;;  %v2493_v17 = vpack.c.bf16 %v1069_v9, %v1069_v9  ;;  %v1072_v19 = vadd.f32 %v2695_v15, %v3097_v3  ;;  %v1063_v21 = vpop.f32.mrb[35].mxu0 }
 0x12a   : > { %v2557_v18 = vpack.c.bf16 %v1325_v10, %v1325_v10  ;;  %v1328_v20 = vadd.f32 %v2759_v16, %v3097_v3  ;;  %v1319_v22 = vpop.f32.mrb[35].mxu1  ;;  %v2491_v23 = vpack.c.bf16 %v1061_v13, %v1061_v13  ;;  %v1064_v25 = vadd.f32 %v3097_v3, %v1063_v21 }
 0x12b   : > { %v2555_v24 = vpack.c.bf16 %v1317_v14, %v1317_v14  ;;  %v1320_v26 = vadd.f32 %v3097_v3, %v1319_v22  ;;  %1990 = vst.msk [vmem:[%s3106_s4 + $0x88] sm:$0xf] %vm1955_vm1, %v2493_v17  ;;  %v2494_v27 = vpack.c.bf16 %v1072_v19, %v1072_v19 }
 0x12c   : > { %2054 = vst.msk [vmem:[%s3106_s4 + $0x188] sm:$0xf] %vm1955_vm1, %v2557_v18  ;;  %v2558_v28 = vpack.c.bf16 %v1328_v20, %v1328_v20  ;;  %1988 = vst.msk [vmem:[%s3106_s4 + $0x80] sm:$0xf] %vm1955_vm1, %v2491_v23  ;;  %v2492_v29 = vpack.c.bf16 %v1064_v25, %v1064_v25 }
 0x12d   : > { %2052 = vst.msk [vmem:[%s3106_s4 + $0x180] sm:$0xf] %vm1955_vm1, %v2555_v24  ;;  %v2556_v30 = vpack.c.bf16 %v1320_v26, %v1320_v26  ;;  %1991 = vst.msk [vmem:[%s3106_s4 + $0x8c] sm:$0xf] %vm1955_vm1, %v2494_v27 }
 0x12e   : > { %2055 = vst.msk [vmem:[%s3106_s4 + $0x18c] sm:$0xf] %vm1955_vm1, %v2558_v28  ;;  %1989 = vst.msk [vmem:[%s3106_s4 + $0x84] sm:$0xf] %vm1955_vm1, %v2492_v29  ;;  %v2698_v31 = vpop.f32.mrb[36].mxu0 }
 0x12f   : > { %2053 = vst.msk [vmem:[%s3106_s4 + $0x184] sm:$0xf] %vm1955_vm1, %v2556_v30  ;;  %v2762_v32 = vpop.f32.mrb[36].mxu1  ;;  %v1085_v33 = vadd.f32 %v2698_v31, %v3097_v3  ;;  %v1076_v35 = vpop.f32.mrb[37].mxu0 }
 0x130   : > { %v1341_v34 = vadd.f32 %v2762_v32, %v3097_v3  ;;  %v1332_v36 = vpop.f32.mrb[37].mxu1  ;;  %v1077_v37 = vadd.f32 %v3097_v3, %v1076_v35  ;;  %v2699_v39 = vpop.f32.mrb[38].mxu0 }
 0x131   : > { %v1333_v38 = vadd.f32 %v3097_v3, %v1332_v36  ;;  %v2763_v40 = vpop.f32.mrb[38].mxu1  ;;  %v2497_v41 = vpack.c.bf16 %v1085_v33, %v1085_v33  ;;  %v1088_v43 = vadd.f32 %v2699_v39, %v3097_v3  ;;  %v1079_v45 = vpop.f32.mrb[39].mxu0 }
 0x132   : > { %v2561_v42 = vpack.c.bf16 %v1341_v34, %v1341_v34  ;;  %v1344_v44 = vadd.f32 %v2763_v40, %v3097_v3  ;;  %v1335_v46 = vpop.f32.mrb[39].mxu1  ;;  %v2495_v47 = vpack.c.bf16 %v1077_v37, %v1077_v37  ;;  %v1080_v49 = vadd.f32 %v3097_v3, %v1079_v45 }
 0x133   : > { %v2559_v48 = vpack.c.bf16 %v1333_v38, %v1333_v38  ;;  %v1336_v50 = vadd.f32 %v3097_v3, %v1335_v46  ;;  %1994 = vst.msk [vmem:[%s3106_s4 + $0x98] sm:$0xf] %vm1955_vm1, %v2497_v41  ;;  %v2498_v51 = vpack.c.bf16 %v1088_v43, %v1088_v43 }
 0x134   : > { %2058 = vst.msk [vmem:[%s3106_s4 + $0x198] sm:$0xf] %vm1955_vm1, %v2561_v42  ;;  %v2562_v52 = vpack.c.bf16 %v1344_v44, %v1344_v44  ;;  %1992 = vst.msk [vmem:[%s3106_s4 + $0x90] sm:$0xf] %vm1955_vm1, %v2495_v47  ;;  %v2496_v53 = vpack.c.bf16 %v1080_v49, %v1080_v49 }
 0x135   : > { %2056 = vst.msk [vmem:[%s3106_s4 + $0x190] sm:$0xf] %vm1955_vm1, %v2559_v48  ;;  %v2560_v54 = vpack.c.bf16 %v1336_v50, %v1336_v50  ;;  %1995 = vst.msk [vmem:[%s3106_s4 + $0x9c] sm:$0xf] %vm1955_vm1, %v2498_v51 }
 0x136   : > { %2059 = vst.msk [vmem:[%s3106_s4 + $0x19c] sm:$0xf] %vm1955_vm1, %v2562_v52  ;;  %1993 = vst.msk [vmem:[%s3106_s4 + $0x94] sm:$0xf] %vm1955_vm1, %v2496_v53  ;;  %v2702_v55 = vpop.f32.mrb[40].mxu0 }
 0x137   : > { %2057 = vst.msk [vmem:[%s3106_s4 + $0x194] sm:$0xf] %vm1955_vm1, %v2560_v54  ;;  %v2766_v56 = vpop.f32.mrb[40].mxu1  ;;  %v1101_v57 = vadd.f32 %v2702_v55, %v3097_v3  ;;  %v1092_v59 = vpop.f32.mrb[41].mxu0 }
 0x138   : > { %v1357_v58 = vadd.f32 %v2766_v56, %v3097_v3  ;;  %v1348_v60 = vpop.f32.mrb[41].mxu1  ;;  %v1093_v61 = vadd.f32 %v3097_v3, %v1092_v59  ;;  %v2703_v63 = vpop.f32.mrb[42].mxu0 }
 0x139   : > { %v1349_v62 = vadd.f32 %v3097_v3, %v1348_v60  ;;  %v2767_v0 = vpop.f32.mrb[42].mxu1  ;;  %v2501_v1 = vpack.c.bf16 %v1101_v57, %v1101_v57  ;;  %v1104_v4 = vadd.f32 %v2703_v63, %v3097_v3  ;;  %v1095_v6 = vpop.f32.mrb[43].mxu0 }
 0x13a   : > { %v2565_v2 = vpack.c.bf16 %v1357_v58, %v1357_v58  ;;  %v1360_v5 = vadd.f32 %v2767_v0, %v3097_v3  ;;  %v1351_v7 = vpop.f32.mrb[43].mxu1  ;;  %v2499_v8 = vpack.c.bf16 %v1093_v61, %v1093_v61  ;;  %v1096_v10 = vadd.f32 %v3097_v3, %v1095_v6 }
 0x13b   : > { %v2563_v9 = vpack.c.bf16 %v1349_v62, %v1349_v62  ;;  %v1352_v11 = vadd.f32 %v3097_v3, %v1351_v7  ;;  %1998 = vst.msk [vmem:[%s3106_s4 + $0xa8] sm:$0xf] %vm1955_vm1, %v2501_v1  ;;  %v2502_v12 = vpack.c.bf16 %v1104_v4, %v1104_v4 }
 0x13c   : > { %2062 = vst.msk [vmem:[%s3106_s4 + $0x1a8] sm:$0xf] %vm1955_vm1, %v2565_v2  ;;  %v2566_v13 = vpack.c.bf16 %v1360_v5, %v1360_v5  ;;  %1996 = vst.msk [vmem:[%s3106_s4 + $0xa0] sm:$0xf] %vm1955_vm1, %v2499_v8  ;;  %v2500_v14 = vpack.c.bf16 %v1096_v10, %v1096_v10 }
 0x13d   : > { %2060 = vst.msk [vmem:[%s3106_s4 + $0x1a0] sm:$0xf] %vm1955_vm1, %v2563_v9  ;;  %v2564_v15 = vpack.c.bf16 %v1352_v11, %v1352_v11  ;;  %1999 = vst.msk [vmem:[%s3106_s4 + $0xac] sm:$0xf] %vm1955_vm1, %v2502_v12 }
 0x13e   : > { %2063 = vst.msk [vmem:[%s3106_s4 + $0x1ac] sm:$0xf] %vm1955_vm1, %v2566_v13  ;;  %1997 = vst.msk [vmem:[%s3106_s4 + $0xa4] sm:$0xf] %vm1955_vm1, %v2500_v14  ;;  %v2706_v16 = vpop.f32.mrb[44].mxu0 }
 0x13f   : > { %2061 = vst.msk [vmem:[%s3106_s4 + $0x1a4] sm:$0xf] %vm1955_vm1, %v2564_v15  ;;  %v2770_v17 = vpop.f32.mrb[44].mxu1  ;;  %v1117_v18 = vadd.f32 %v2706_v16, %v3097_v3  ;;  %v1108_v20 = vpop.f32.mrb[45].mxu0 }
 0x140   : > { %v1373_v19 = vadd.f32 %v2770_v17, %v3097_v3  ;;  %v1364_v21 = vpop.f32.mrb[45].mxu1  ;;  %v1109_v22 = vadd.f32 %v3097_v3, %v1108_v20  ;;  %v2707_v24 = vpop.f32.mrb[46].mxu0 }
 0x141   : > { %v1365_v23 = vadd.f32 %v3097_v3, %v1364_v21  ;;  %v2771_v25 = vpop.f32.mrb[46].mxu1  ;;  %v2505_v26 = vpack.c.bf16 %v1117_v18, %v1117_v18  ;;  %v1120_v28 = vadd.f32 %v2707_v24, %v3097_v3  ;;  %v1111_v30 = vpop.f32.mrb[47].mxu0 }
 0x142   : > { %v2569_v27 = vpack.c.bf16 %v1373_v19, %v1373_v19  ;;  %v1376_v29 = vadd.f32 %v2771_v25, %v3097_v3  ;;  %v1367_v31 = vpop.f32.mrb[47].mxu1  ;;  %v2503_v32 = vpack.c.bf16 %v1109_v22, %v1109_v22  ;;  %v1112_v34 = vadd.f32 %v3097_v3, %v1111_v30 }
 0x143   : > { %v2567_v33 = vpack.c.bf16 %v1365_v23, %v1365_v23  ;;  %v1368_v35 = vadd.f32 %v3097_v3, %v1367_v31  ;;  %2002 = vst.msk [vmem:[%s3106_s4 + $0xb8] sm:$0xf] %vm1955_vm1, %v2505_v26  ;;  %v2506_v36 = vpack.c.bf16 %v1120_v28, %v1120_v28 }
 0x144   : > { %2066 = vst.msk [vmem:[%s3106_s4 + $0x1b8] sm:$0xf] %vm1955_vm1, %v2569_v27  ;;  %v2570_v37 = vpack.c.bf16 %v1376_v29, %v1376_v29  ;;  %2000 = vst.msk [vmem:[%s3106_s4 + $0xb0] sm:$0xf] %vm1955_vm1, %v2503_v32  ;;  %v2504_v38 = vpack.c.bf16 %v1112_v34, %v1112_v34 }
 0x145   : > { %2064 = vst.msk [vmem:[%s3106_s4 + $0x1b0] sm:$0xf] %vm1955_vm1, %v2567_v33  ;;  %v2568_v39 = vpack.c.bf16 %v1368_v35, %v1368_v35  ;;  %2003 = vst.msk [vmem:[%s3106_s4 + $0xbc] sm:$0xf] %vm1955_vm1, %v2506_v36 }
 0x146   : > { %2067 = vst.msk [vmem:[%s3106_s4 + $0x1bc] sm:$0xf] %vm1955_vm1, %v2570_v37  ;;  %2001 = vst.msk [vmem:[%s3106_s4 + $0xb4] sm:$0xf] %vm1955_vm1, %v2504_v38  ;;  %v2710_v40 = vpop.f32.mrb[48].mxu0 }
 0x147   : > { %2065 = vst.msk [vmem:[%s3106_s4 + $0x1b4] sm:$0xf] %vm1955_vm1, %v2568_v39  ;;  %v2774_v41 = vpop.f32.mrb[48].mxu1  ;;  %v1133_v42 = vadd.f32 %v2710_v40, %v3097_v3  ;;  %v1124_v44 = vpop.f32.mrb[49].mxu0 }
 0x148   : > { %v1389_v43 = vadd.f32 %v2774_v41, %v3097_v3  ;;  %v1380_v45 = vpop.f32.mrb[49].mxu1  ;;  %v1125_v46 = vadd.f32 %v3097_v3, %v1124_v44  ;;  %v2711_v48 = vpop.f32.mrb[50].mxu0 }
 0x149   : > { %v1381_v47 = vadd.f32 %v3097_v3, %v1380_v45  ;;  %v2775_v49 = vpop.f32.mrb[50].mxu1  ;;  %v2509_v50 = vpack.c.bf16 %v1133_v42, %v1133_v42  ;;  %v1136_v52 = vadd.f32 %v2711_v48, %v3097_v3  ;;  %v1127_v54 = vpop.f32.mrb[51].mxu0 }
 0x14a   : > { %v2573_v51 = vpack.c.bf16 %v1389_v43, %v1389_v43  ;;  %v1392_v53 = vadd.f32 %v2775_v49, %v3097_v3  ;;  %v1383_v55 = vpop.f32.mrb[51].mxu1  ;;  %v2507_v56 = vpack.c.bf16 %v1125_v46, %v1125_v46  ;;  %v1128_v58 = vadd.f32 %v3097_v3, %v1127_v54 }
 0x14b   : > { %v2571_v57 = vpack.c.bf16 %v1381_v47, %v1381_v47  ;;  %v1384_v59 = vadd.f32 %v3097_v3, %v1383_v55  ;;  %2006 = vst.msk [vmem:[%s3106_s4 + $0xc8] sm:$0xf] %vm1955_vm1, %v2509_v50  ;;  %v2510_v60 = vpack.c.bf16 %v1136_v52, %v1136_v52 }
 0x14c   : > { %2070 = vst.msk [vmem:[%s3106_s4 + $0x1c8] sm:$0xf] %vm1955_vm1, %v2573_v51  ;;  %v2574_v61 = vpack.c.bf16 %v1392_v53, %v1392_v53  ;;  %2004 = vst.msk [vmem:[%s3106_s4 + $0xc0] sm:$0xf] %vm1955_vm1, %v2507_v56  ;;  %v2508_v62 = vpack.c.bf16 %v1128_v58, %v1128_v58 }
 0x14d   : > { %2068 = vst.msk [vmem:[%s3106_s4 + $0x1c0] sm:$0xf] %vm1955_vm1, %v2571_v57  ;;  %v2572_v63 = vpack.c.bf16 %v1384_v59, %v1384_v59  ;;  %2007 = vst.msk [vmem:[%s3106_s4 + $0xcc] sm:$0xf] %vm1955_vm1, %v2510_v60 }
 0x14e   : > { %2071 = vst.msk [vmem:[%s3106_s4 + $0x1cc] sm:$0xf] %vm1955_vm1, %v2574_v61  ;;  %2005 = vst.msk [vmem:[%s3106_s4 + $0xc4] sm:$0xf] %vm1955_vm1, %v2508_v62  ;;  %v2714_v0 = vpop.f32.mrb[52].mxu0 }
 0x14f   : > { %2069 = vst.msk [vmem:[%s3106_s4 + $0x1c4] sm:$0xf] %vm1955_vm1, %v2572_v63  ;;  %v2778_v1 = vpop.f32.mrb[52].mxu1  ;;  %v1149_v2 = vadd.f32 %v2714_v0, %v3097_v3  ;;  %v1140_v5 = vpop.f32.mrb[53].mxu0 }
 0x150   : > { %v1405_v4 = vadd.f32 %v2778_v1, %v3097_v3  ;;  %v1396_v6 = vpop.f32.mrb[53].mxu1  ;;  %v1141_v7 = vadd.f32 %v3097_v3, %v1140_v5  ;;  %v2715_v9 = vpop.f32.mrb[54].mxu0 }
 0x151   : > { %v1397_v8 = vadd.f32 %v3097_v3, %v1396_v6  ;;  %v2779_v10 = vpop.f32.mrb[54].mxu1  ;;  %v2513_v11 = vpack.c.bf16 %v1149_v2, %v1149_v2  ;;  %v1152_v13 = vadd.f32 %v2715_v9, %v3097_v3  ;;  %v1143_v15 = vpop.f32.mrb[55].mxu0 }
 0x152   : > { %v2577_v12 = vpack.c.bf16 %v1405_v4, %v1405_v4  ;;  %v1408_v14 = vadd.f32 %v2779_v10, %v3097_v3  ;;  %v1399_v16 = vpop.f32.mrb[55].mxu1  ;;  %v2511_v17 = vpack.c.bf16 %v1141_v7, %v1141_v7  ;;  %v1144_v19 = vadd.f32 %v3097_v3, %v1143_v15 }
 0x153   : > { %v2575_v18 = vpack.c.bf16 %v1397_v8, %v1397_v8  ;;  %v1400_v20 = vadd.f32 %v3097_v3, %v1399_v16  ;;  %2010 = vst.msk [vmem:[%s3106_s4 + $0xd8] sm:$0xf] %vm1955_vm1, %v2513_v11  ;;  %v2514_v21 = vpack.c.bf16 %v1152_v13, %v1152_v13 }
 0x154   : > { %2074 = vst.msk [vmem:[%s3106_s4 + $0x1d8] sm:$0xf] %vm1955_vm1, %v2577_v12  ;;  %v2578_v22 = vpack.c.bf16 %v1408_v14, %v1408_v14  ;;  %2008 = vst.msk [vmem:[%s3106_s4 + $0xd0] sm:$0xf] %vm1955_vm1, %v2511_v17  ;;  %v2512_v23 = vpack.c.bf16 %v1144_v19, %v1144_v19 }
 0x155   : > { %2072 = vst.msk [vmem:[%s3106_s4 + $0x1d0] sm:$0xf] %vm1955_vm1, %v2575_v18  ;;  %v2576_v24 = vpack.c.bf16 %v1400_v20, %v1400_v20  ;;  %2011 = vst.msk [vmem:[%s3106_s4 + $0xdc] sm:$0xf] %vm1955_vm1, %v2514_v21 }
 0x156   : > { %2075 = vst.msk [vmem:[%s3106_s4 + $0x1dc] sm:$0xf] %vm1955_vm1, %v2578_v22  ;;  %2009 = vst.msk [vmem:[%s3106_s4 + $0xd4] sm:$0xf] %vm1955_vm1, %v2512_v23  ;;  %v2718_v25 = vpop.f32.mrb[56].mxu0 }
 0x157   : > { %2073 = vst.msk [vmem:[%s3106_s4 + $0x1d4] sm:$0xf] %vm1955_vm1, %v2576_v24  ;;  %v2782_v26 = vpop.f32.mrb[56].mxu1  ;;  %v1165_v27 = vadd.f32 %v2718_v25, %v3097_v3  ;;  %v1156_v29 = vpop.f32.mrb[57].mxu0 }
 0x158   : > { %v1421_v28 = vadd.f32 %v2782_v26, %v3097_v3  ;;  %v1412_v30 = vpop.f32.mrb[57].mxu1  ;;  %v1157_v31 = vadd.f32 %v3097_v3, %v1156_v29  ;;  %v2719_v33 = vpop.f32.mrb[58].mxu0 }
 0x159   : > { %v1413_v32 = vadd.f32 %v3097_v3, %v1412_v30  ;;  %v2783_v34 = vpop.f32.mrb[58].mxu1  ;;  %v2517_v35 = vpack.c.bf16 %v1165_v27, %v1165_v27  ;;  %v1168_v37 = vadd.f32 %v2719_v33, %v3097_v3  ;;  %v1159_v39 = vpop.f32.mrb[59].mxu0 }
 0x15a   : > { %v2581_v36 = vpack.c.bf16 %v1421_v28, %v1421_v28  ;;  %v1424_v38 = vadd.f32 %v2783_v34, %v3097_v3  ;;  %v1415_v40 = vpop.f32.mrb[59].mxu1  ;;  %v2515_v41 = vpack.c.bf16 %v1157_v31, %v1157_v31  ;;  %v1160_v43 = vadd.f32 %v3097_v3, %v1159_v39 }
 0x15b   : > { %v2579_v42 = vpack.c.bf16 %v1413_v32, %v1413_v32  ;;  %v1416_v44 = vadd.f32 %v3097_v3, %v1415_v40  ;;  %2014 = vst.msk [vmem:[%s3106_s4 + $0xe8] sm:$0xf] %vm1955_vm1, %v2517_v35  ;;  %v2518_v45 = vpack.c.bf16 %v1168_v37, %v1168_v37 }
 0x15c   : > { %2078 = vst.msk [vmem:[%s3106_s4 + $0x1e8] sm:$0xf] %vm1955_vm1, %v2581_v36  ;;  %v2582_v46 = vpack.c.bf16 %v1424_v38, %v1424_v38  ;;  %2012 = vst.msk [vmem:[%s3106_s4 + $0xe0] sm:$0xf] %vm1955_vm1, %v2515_v41  ;;  %v2516_v47 = vpack.c.bf16 %v1160_v43, %v1160_v43 }
 0x15d   : > { %2076 = vst.msk [vmem:[%s3106_s4 + $0x1e0] sm:$0xf] %vm1955_vm1, %v2579_v42  ;;  %v2580_v48 = vpack.c.bf16 %v1416_v44, %v1416_v44  ;;  %2015 = vst.msk [vmem:[%s3106_s4 + $0xec] sm:$0xf] %vm1955_vm1, %v2518_v45 }
 0x15e   : > { %2079 = vst.msk [vmem:[%s3106_s4 + $0x1ec] sm:$0xf] %vm1955_vm1, %v2582_v46  ;;  %2013 = vst.msk [vmem:[%s3106_s4 + $0xe4] sm:$0xf] %vm1955_vm1, %v2516_v47  ;;  %v2722_v49 = vpop.f32.mrb[60].mxu0 }
 0x15f   : > { %2077 = vst.msk [vmem:[%s3106_s4 + $0x1e4] sm:$0xf] %vm1955_vm1, %v2580_v48  ;;  %v2786_v50 = vpop.f32.mrb[60].mxu1  ;;  %v1181_v51 = vadd.f32 %v2722_v49, %v3097_v3  ;;  %v1172_v53 = vpop.f32.mrb[61].mxu0 }
 0x160   : > { %v1437_v52 = vadd.f32 %v2786_v50, %v3097_v3  ;;  %v1428_v54 = vpop.f32.mrb[61].mxu1  ;;  %v1173_v55 = vadd.f32 %v3097_v3, %v1172_v53  ;;  %v2723_v57 = vpop.f32.mrb[62].mxu0 }
 0x161   : > { %v1429_v56 = vadd.f32 %v3097_v3, %v1428_v54  ;;  %v2787_v58 = vpop.f32.mrb[62].mxu1  ;;  %v2521_v59 = vpack.c.bf16 %v1181_v51, %v1181_v51  ;;  %v1184_v61 = vadd.f32 %v2723_v57, %v3097_v3  ;;  %v1175_v63 = vpop.f32.mrb[63].mxu0 }
 0x162   : > { %v2585_v60 = vpack.c.bf16 %v1437_v52, %v1437_v52  ;;  %v1440_v62 = vadd.f32 %v2787_v58, %v3097_v3  ;;  %v1431_v0 = vpop.f32.mrb[63].mxu1  ;;  %v2519_v1 = vpack.c.bf16 %v1173_v55, %v1173_v55  ;;  %v1176_v4 = vadd.f32 %v3097_v3, %v1175_v63 }
 0x163   : > { %v2583_v2 = vpack.c.bf16 %v1429_v56, %v1429_v56  ;;  %v1432_v5 = vadd.f32 %v3097_v3, %v1431_v0  ;;  %2018 = vst.msk [vmem:[%s3106_s4 + $0xf8] sm:$0xf] %vm1955_vm1, %v2521_v59  ;;  %v2522_v6 = vpack.c.bf16 %v1184_v61, %v1184_v61 }
 0x164   : > { %2082 = vst.msk [vmem:[%s3106_s4 + $0x1f8] sm:$0xf] %vm1955_vm1, %v2585_v60  ;;  %v2586_v7 = vpack.c.bf16 %v1440_v62, %v1440_v62  ;;  %2016 = vst.msk [vmem:[%s3106_s4 + $0xf0] sm:$0xf] %vm1955_vm1, %v2519_v1  ;;  %v2520_v8 = vpack.c.bf16 %v1176_v4, %v1176_v4 }
 0x165   : > { %2080 = vst.msk [vmem:[%s3106_s4 + $0x1f0] sm:$0xf] %vm1955_vm1, %v2583_v2  ;;  %v2584_v9 = vpack.c.bf16 %v1432_v5, %v1432_v5  ;;  %2019 = vst.msk [vmem:[%s3106_s4 + $0xfc] sm:$0xf] %vm1955_vm1, %v2522_v6 }
 0x166   : > { %2083 = vst.msk [vmem:[%s3106_s4 + $0x1fc] sm:$0xf] %vm1955_vm1, %v2586_v7  ;;  %2017 = vst.msk [vmem:[%s3106_s4 + $0xf4] sm:$0xf] %vm1955_vm1, %v2520_v8 }
 0x167   : > { %2081 = vst.msk [vmem:[%s3106_s4 + $0x1f4] sm:$0xf] %vm1955_vm1, %v2584_v9 }
 0x168 PF: > { %s13_s14 = sadd.s32 1, %s2907_s14   ;;  %s3503_s12 = smov %s2903_s13 }
 0x169   : > { %p10_p5 = scmp.ge.s32.totalorder %s13_s14, 10   ;;  %s3504_s13 = smov %s3506_s15 }
 0x16b   :  { %12 = sbr.rel (!%p10_p5) target bundleno = 2 (0x2), region = 68 }

// kernel: encoder3_forward.7
= control target key start
LH: loop header
LB: loop body
LE: loop exit
PB: predicated region body
PF: predicated region fallthrough
CT: control target
= control target key end

     0   :  { %s5165_s12 = smov 0   ;;  %s5167_s13 = smov 0   ;;  %s5992_s0 = inlined_call_operand.vmem [shape: bf16[2048,512], index: 0, kind: input, shape index: {}]   ;;  %s5993_s1 = inlined_call_operand.vmem [shape: bf16[512,32], index: 1, kind: input, shape index: {}]   ;;  %s5994_s2 = inlined_call_operand.vmem [shape: f32[1,32], index: 2, kind: input, shape index: {}]   ;;  %s5995_s3 = inlined_call_operand.vmem [shape: bf16[2048,32], index: 3, kind: output, shape index: {}]  }
   0x1   :  { %s5169_s14 = smov 0  }
   0x2 LB: > { %s25_s15 = sadd.s32 1, %s5138_s13  ;;  %p3867_p0 = scmp.ge.s32.totalorder %s5142_s14, 1  ;;  %s5142_s14 = sphi %s5169_s14, %s13_s14   ;;  %s5138_s13 = sphi %s5167_s13, %s5997_s13   ;;  %s5134_s12 = sphi %s5165_s12, %s5996_s12  }
   0x3   : > { %p27_p1 = scmp.ge.s32.totalorder %s25_s15, 2  ;;  %p170_p2 = scmp.lt.s32.totalorder %s5142_s14, 3 }
   0x5   : > { %s5999_s15 = smov (%p27_p1, %s25_s15), 0  ;;  %p171_p3 = pnand %p3867_p0, %p170_p2 }
   0x6   : > { %v4702_v0 = vld [vmem:[%s5993_s1] sm:$0xff] (!%p171_p3)   ;;  %v5144_v1 = vmov (!%p171_p3), 0   ;;  %v4704_v3 = vld [vmem:[%s5993_s1 + $0x8] sm:$0xff] (!%p171_p3)   ;;  %v4706_v5 = vld [vmem:[%s5993_s1 + $0x10] sm:$0xff] (!%p171_p3)   ;;  %s3868_s9 = sshll.u32 (!%p171_p3), %s5134_s12, 7  ;;  %vm3630_vm0 = vcmask (!%p171_p3), 257024  }
   0x7   : > { %174 = sbr.rel (%p171_p3) target bundleno = 796 (0x31c), region = 32  ;;  %2028 = vmatprep.subr.bf16.mxu1 (!%p171_p3), %v5144_v1  ;;  %2573 = vmatprep.subr.bf16.mxu0 (!%p171_p3), %v5144_v1  ;;  %v4703_v2 = vld [vmem:[%s5993_s1 + $0x80] sm:$0xff] (!%p171_p3)   ;;  %v4705_v4 = vld [vmem:[%s5993_s1 + $0x88] sm:$0xff] (!%p171_p3)   ;;  %v4707_v6 = vld [vmem:[%s5993_s1 + $0x90] sm:$0xff] (!%p171_p3)   ;;  %p206_p4 = scmp.lt.s32.totalorder (!%p171_p3), %s3868_s9, 255 }
   0x8   : > { %2029 = vmatpush1.bf16.msra.mxu1 (!%p171_p3), %v4702_v0  ;;  %2574 = vmatpush1.bf16.msra.mxu0 (!%p171_p3), %v4703_v2  ;;  %v4708_v7 = vld [vmem:[%s5993_s1 + $0x18] sm:$0xff] (!%p171_p3)   ;;  %v4710_v9 = vld [vmem:[%s5993_s1 + $0x20] sm:$0xff] (!%p171_p3)   ;;  %v4712_v11 = vld [vmem:[%s5993_s1 + $0x28] sm:$0xff] (!%p171_p3)  }
   0x9   : > { %2030 = vmatprep.subr.bf16.mxu1 (!%p171_p3), %v5144_v1  ;;  %2575 = vmatprep.subr.bf16.mxu0 (!%p171_p3), %v5144_v1  ;;  %v4709_v8 = vld [vmem:[%s5993_s1 + $0x98] sm:$0xff] (!%p171_p3)   ;;  %v4711_v10 = vld [vmem:[%s5993_s1 + $0xa0] sm:$0xff] (!%p171_p3)   ;;  %v4713_v12 = vld [vmem:[%s5993_s1 + $0xa8] sm:$0xff] (!%p171_p3)  }
   0xa   : > { %v4714_v13 = vld [vmem:[%s5993_s1 + $0x30] sm:$0xff] (!%p171_p3)   ;;  %v4716_v15 = vld [vmem:[%s5993_s1 + $0x38] sm:$0xff] (!%p171_p3)   ;;  %v4718_v17 = vld [vmem:[%s5993_s1 + $0x40] sm:$0xff] (!%p171_p3)  }
   0xb   : > { %v4715_v14 = vld [vmem:[%s5993_s1 + $0xb0] sm:$0xff] (!%p171_p3)   ;;  %v4717_v16 = vld [vmem:[%s5993_s1 + $0xb8] sm:$0xff] (!%p171_p3)   ;;  %v4719_v18 = vld [vmem:[%s5993_s1 + $0xc0] sm:$0xff] (!%p171_p3)  }
   0xc   : > { %2031 = vmatpush1.bf16.msra.mxu1 (!%p171_p3), %v4704_v3  ;;  %2576 = vmatpush1.bf16.msra.mxu0 (!%p171_p3), %v4705_v4  ;;  %v4720_v20 = vld [vmem:[%s5993_s1 + $0x48] sm:$0xff] (!%p171_p3)   ;;  %v4722_v23 = vld [vmem:[%s5993_s1 + $0x50] sm:$0xff] (!%p171_p3)   ;;  %v4724_v25 = vld [vmem:[%s5993_s1 + $0x58] sm:$0xff] (!%p171_p3)  }
   0xd   : > { %2032 = vmatprep.subr.bf16.mxu1 (!%p171_p3), %v5144_v1  ;;  %2577 = vmatprep.subr.bf16.mxu0 (!%p171_p3), %v5144_v1  ;;  %v4721_v22 = vld [vmem:[%s5993_s1 + $0xc8] sm:$0xff] (!%p171_p3)   ;;  %v4723_v24 = vld [vmem:[%s5993_s1 + $0xd0] sm:$0xff] (!%p171_p3)   ;;  %v4725_v26 = vld [vmem:[%s5993_s1 + $0xd8] sm:$0xff] (!%p171_p3)  }
   0xe   : > { %s6001_s9 = smov (!%p206_p4, %s3868_s9), 255  ;;  %v4726_v27 = vld [vmem:[%s5993_s1 + $0x60] sm:$0xff]   ;;  %v4728_v29 = vld [vmem:[%s5993_s1 + $0x68] sm:$0xff]   ;;  %v4730_v31 = vld [vmem:[%s5993_s1 + $0x70] sm:$0xff]  }
   0xf   : > { %s4292_s25 = sshll.u32 %s6001_s9, 4  ;;  %v4727_v28 = vld [vmem:[%s5993_s1 + $0xe0] sm:$0xff]   ;;  %v4729_v30 = vld [vmem:[%s5993_s1 + $0xe8] sm:$0xff]   ;;  %v4731_v32 = vld [vmem:[%s5993_s1 + $0xf0] sm:$0xff]   ;;  %s3872_s19 = sshll.u32 %s6001_s9, 2 }
  0x10   : > { %2033 = vmatpush1.bf16.msra.mxu1 %v4706_v5  ;;  %2578 = vmatpush1.bf16.msra.mxu0 %v4707_v6  ;;  %s5259_s30 = scalar_lea.vmem %s5992_s0, %s4292_s25  ;;  %v4732_v33 = vld [vmem:[%s5993_s1 + $0x78] sm:$0xff]   ;;  %s5447_s21 = scalar_lea.vmem %s5995_s3, %s3872_s19 }
  0x11   : > { %2034 = vmatprep.subr.bf16.mxu1 %v5144_v1  ;;  %2579 = vmatprep.subr.bf16.mxu0 %v5144_v1  ;;  %v4736_v19 = vld [vmem:[%s5259_s30 + $0x4] ss:$16 sps:$4 sm:$0xff]   ;;  %v4739_v21 = vld [vmem:[%s5259_s30 + $0xc] ss:$16 sps:$4 sm:$0xff]   ;;  %v4734_v35 = vld [vmem:[%s5259_s30] ss:$16 sps:$4 sm:$0xff]  }
  0x12   : > { %2060 = vmatprep.mubr.bf16.mxu1 %v4736_v19  ;;  %2605 = vmatprep.mubr.bf16.mxu0 %v4739_v21  ;;  %v4733_v34 = vld [vmem:[%s5993_s1 + $0xf8] sm:$0xff]   ;;  %v4740_v37 = vld [vmem:[%s5259_s30 + $0x24] ss:$16 sps:$4 sm:$0xff]   ;;  %v4744_v39 = vld [vmem:[%s5259_s30 + $0x20] ss:$16 sps:$4 sm:$0xff]  }
  0x13   : > { %v4737_v36 = vld [vmem:[%s5259_s30 + $0x8] ss:$16 sps:$4 sm:$0xff]   ;;  %v4742_v38 = vld [vmem:[%s5259_s30 + $0x2c] ss:$16 sps:$4 sm:$0xff]   ;;  %v4746_v41 = vld [vmem:[%s5259_s30 + $0x44] ss:$16 sps:$4 sm:$0xff]  }
  0x14   : > { %2035 = vmatpush1.bf16.msra.mxu1 %v4708_v7  ;;  %2580 = vmatpush1.bf16.msra.mxu0 %v4709_v8  ;;  %v4745_v40 = vld [vmem:[%s5259_s30 + $0x28] ss:$16 sps:$4 sm:$0xff]   ;;  %v4748_v42 = vld [vmem:[%s5259_s30 + $0x4c] ss:$16 sps:$4 sm:$0xff]   ;;  %v4750_v43 = vld [vmem:[%s5259_s30 + $0x40] ss:$16 sps:$4 sm:$0xff]  }
  0x15   : > { %2036 = vmatprep.subr.bf16.mxu1 %v5144_v1  ;;  %2581 = vmatprep.subr.bf16.mxu0 %v5144_v1  ;;  %v4751_v44 = vld [vmem:[%s5259_s30 + $0x48] ss:$16 sps:$4 sm:$0xff]   ;;  %v4752_v45 = vld [vmem:[%s5259_s30 + $0x64] ss:$16 sps:$4 sm:$0xff]   ;;  %v4754_v46 = vld [vmem:[%s5259_s30 + $0x6c] ss:$16 sps:$4 sm:$0xff]  }
  0x16   : > { %v4756_v47 = vld [vmem:[%s5259_s30 + $0x60] ss:$16 sps:$4 sm:$0xff]   ;;  %v4757_v48 = vld [vmem:[%s5259_s30 + $0x68] ss:$16 sps:$4 sm:$0xff]   ;;  %v4758_v49 = vld [vmem:[%s5259_s30 + $0x84] ss:$16 sps:$4 sm:$0xff]  }
  0x17   : > { %v4760_v50 = vld [vmem:[%s5259_s30 + $0x8c] ss:$16 sps:$4 sm:$0xff]   ;;  %v4762_v51 = vld [vmem:[%s5259_s30 + $0x80] ss:$16 sps:$4 sm:$0xff]   ;;  %v4763_v52 = vld [vmem:[%s5259_s30 + $0x88] ss:$16 sps:$4 sm:$0xff]  }
  0x18   : > { %2037 = vmatpush1.bf16.msra.mxu1 %v4710_v9  ;;  %2582 = vmatpush1.bf16.msra.mxu0 %v4711_v10  ;;  %v4764_v53 = vld [vmem:[%s5259_s30 + $0xa4] ss:$16 sps:$4 sm:$0xff]   ;;  %v4766_v54 = vld [vmem:[%s5259_s30 + $0xac] ss:$16 sps:$4 sm:$0xff]   ;;  %v4768_v55 = vld [vmem:[%s5259_s30 + $0xa0] ss:$16 sps:$4 sm:$0xff]  }
  0x19   : > { %2038 = vmatprep.subr.bf16.mxu1 %v5144_v1  ;;  %2583 = vmatprep.subr.bf16.mxu0 %v5144_v1  ;;  %v4769_v56 = vld [vmem:[%s5259_s30 + $0xa8] ss:$16 sps:$4 sm:$0xff]   ;;  %v4770_v57 = vld [vmem:[%s5259_s30 + $0xc4] ss:$16 sps:$4 sm:$0xff]   ;;  %v4772_v58 = vld [vmem:[%s5259_s30 + $0xcc] ss:$16 sps:$4 sm:$0xff]  }
  0x1a   : > { %v4774_v59 = vld [vmem:[%s5259_s30 + $0xc0] ss:$16 sps:$4 sm:$0xff]   ;;  %v4775_v60 = vld [vmem:[%s5259_s30 + $0xc8] ss:$16 sps:$4 sm:$0xff]   ;;  %v4776_v61 = vld [vmem:[%s5259_s30 + $0xe4] ss:$16 sps:$4 sm:$0xff]  }
  0x1b   : > { %v4778_v62 = vld [vmem:[%s5259_s30 + $0xec] ss:$16 sps:$4 sm:$0xff]   ;;  %v4780_v63 = vld [vmem:[%s5259_s30 + $0xe0] ss:$16 sps:$4 sm:$0xff]   ;;  %v4781_v0 = vld [vmem:[%s5259_s30 + $0xe8] ss:$16 sps:$4 sm:$0xff]  }
  0x1c   : > { %2039 = vmatpush1.bf16.msra.mxu1 %v4712_v11  ;;  %2584 = vmatpush1.bf16.msra.mxu0 %v4713_v12  ;;  %v4784_v2 = vld [vmem:[%s5259_s30 + $0x10c] ss:$16 sps:$4 sm:$0xff]   ;;  %v4786_v3 = vld [vmem:[%s5259_s30 + $0x100] ss:$16 sps:$4 sm:$0xff]   ;;  %v4787_v4 = vld [vmem:[%s5259_s30 + $0x108] ss:$16 sps:$4 sm:$0xff]  }
  0x1d   : > { %2040 = vmatprep.subr.bf16.mxu1 %v5144_v1  ;;  %2585 = vmatprep.subr.bf16.mxu0 %v5144_v1  ;;  %v4788_v5 = vld [vmem:[%s5259_s30 + $0x124] ss:$16 sps:$4 sm:$0xff]   ;;  %v4790_v6 = vld [vmem:[%s5259_s30 + $0x12c] ss:$16 sps:$4 sm:$0xff]   ;;  %v4792_v7 = vld [vmem:[%s5259_s30 + $0x120] ss:$16 sps:$4 sm:$0xff]  }
  0x1e   : > { %v4793_v8 = vld [vmem:[%s5259_s30 + $0x128] ss:$16 sps:$4 sm:$0xff]   ;;  %v4794_v9 = vld [vmem:[%s5259_s30 + $0x144] ss:$16 sps:$4 sm:$0xff]   ;;  %v4796_v10 = vld [vmem:[%s5259_s30 + $0x14c] ss:$16 sps:$4 sm:$0xff]  }
  0x1f   : > { %v4798_v11 = vld [vmem:[%s5259_s30 + $0x140] ss:$16 sps:$4 sm:$0xff]   ;;  %v4799_v12 = vld [vmem:[%s5259_s30 + $0x148] ss:$16 sps:$4 sm:$0xff]   ;;  %v4812_v21 = vld [vmem:[%s5259_s30 + $0x1a4] ss:$16 sps:$4 sm:$0xff]  }
  0x20   : > { %2041 = vmatpush1.bf16.msra.mxu1 %v4714_v13  ;;  %2586 = vmatpush1.bf16.msra.mxu0 %v4715_v14  ;;  %v4800_v13 = vld [vmem:[%s5259_s30 + $0x164] ss:$16 sps:$4 sm:$0xff]   ;;  %v4802_v14 = vld [vmem:[%s5259_s30 + $0x16c] ss:$16 sps:$4 sm:$0xff]   ;;  %v4810_v19 = vld [vmem:[%s5259_s30 + $0x180] ss:$16 sps:$4 sm:$0xff]  }
  0x21   : > { %2042 = vmatprep.subr.bf16.mxu1 %v5144_v1  ;;  %2587 = vmatprep.subr.bf16.mxu0 %v5144_v1 }
  0x24   : > { %2043 = vmatpush1.bf16.msra.mxu1 %v4716_v15  ;;  %2588 = vmatpush1.bf16.msra.mxu0 %v4717_v16  ;;  %v4804_v15 = vld [vmem:[%s5259_s30 + $0x160] ss:$16 sps:$4 sm:$0xff]   ;;  %v4805_v16 = vld [vmem:[%s5259_s30 + $0x168] ss:$16 sps:$4 sm:$0xff]  }
  0x25   : > { %2044 = vmatprep.subr.bf16.mxu1 %v5144_v1  ;;  %2589 = vmatprep.subr.bf16.mxu0 %v5144_v1 }
  0x28   : > { %2045 = vmatpush1.bf16.msra.mxu1 %v4718_v17  ;;  %2590 = vmatpush1.bf16.msra.mxu0 %v4719_v18  ;;  %v4806_v17 = vld [vmem:[%s5259_s30 + $0x184] ss:$16 sps:$4 sm:$0xff]   ;;  %v4808_v18 = vld [vmem:[%s5259_s30 + $0x18c] ss:$16 sps:$4 sm:$0xff]  }
  0x29   : > { %2046 = vmatprep.subr.bf16.mxu1 %v5144_v1  ;;  %2591 = vmatprep.subr.bf16.mxu0 %v5144_v1 }
  0x2c   : > { %2047 = vmatpush1.bf16.msra.mxu1 %v4720_v20  ;;  %2592 = vmatpush1.bf16.msra.mxu0 %v4721_v22  ;;  %v4811_v20 = vld [vmem:[%s5259_s30 + $0x188] ss:$16 sps:$4 sm:$0xff]   ;;  %v4814_v22 = vld [vmem:[%s5259_s30 + $0x1ac] ss:$16 sps:$4 sm:$0xff]  }
  0x2d   : > { %2048 = vmatprep.subr.bf16.mxu1 %v5144_v1  ;;  %2593 = vmatprep.subr.bf16.mxu0 %v5144_v1 }
  0x30   : > { %2049 = vmatpush1.bf16.msra.mxu1 %v4722_v23  ;;  %2594 = vmatpush1.bf16.msra.mxu0 %v4723_v24  ;;  %v4816_v23 = vld [vmem:[%s5259_s30 + $0x1a0] ss:$16 sps:$4 sm:$0xff]   ;;  %v4817_v24 = vld [vmem:[%s5259_s30 + $0x1a8] ss:$16 sps:$4 sm:$0xff]  }
  0x31   : > { %2050 = vmatprep.subr.bf16.mxu1 %v5144_v1  ;;  %2595 = vmatprep.subr.bf16.mxu0 %v5144_v1 }
  0x34   : > { %2051 = vmatpush1.bf16.msra.mxu1 %v4724_v25  ;;  %2596 = vmatpush1.bf16.msra.mxu0 %v4725_v26  ;;  %v4818_v25 = vld [vmem:[%s5259_s30 + $0x1c4] ss:$16 sps:$4 sm:$0xff]   ;;  %v4820_v26 = vld [vmem:[%s5259_s30 + $0x1cc] ss:$16 sps:$4 sm:$0xff]  }
  0x35   : > { %2052 = vmatprep.subr.bf16.mxu1 %v5144_v1  ;;  %2597 = vmatprep.subr.bf16.mxu0 %v5144_v1 }
  0x38   : > { %2053 = vmatpush1.bf16.msra.mxu1 %v4726_v27  ;;  %2598 = vmatpush1.bf16.msra.mxu0 %v4727_v28  ;;  %v4822_v27 = vld [vmem:[%s5259_s30 + $0x1c0] ss:$16 sps:$4 sm:$0xff]   ;;  %v4823_v28 = vld [vmem:[%s5259_s30 + $0x1c8] ss:$16 sps:$4 sm:$0xff]  }
  0x39   : > { %2054 = vmatprep.subr.bf16.mxu1 %v5144_v1  ;;  %2599 = vmatprep.subr.bf16.mxu0 %v5144_v1 }
  0x3c   : > { %2055 = vmatpush1.bf16.msra.mxu1 %v4728_v29  ;;  %2600 = vmatpush1.bf16.msra.mxu0 %v4729_v30  ;;  %v4824_v29 = vld [vmem:[%s5259_s30 + $0x1e4] ss:$16 sps:$4 sm:$0xff]   ;;  %v4826_v30 = vld [vmem:[%s5259_s30 + $0x1ec] ss:$16 sps:$4 sm:$0xff]  }
  0x3d   : > { %2056 = vmatprep.subr.bf16.mxu1 %v5144_v1  ;;  %2601 = vmatprep.subr.bf16.mxu0 %v5144_v1 }
  0x40   : > { %2057 = vmatpush1.bf16.msra.mxu1 %v4730_v31  ;;  %2602 = vmatpush1.bf16.msra.mxu0 %v4731_v32  ;;  %v4828_v31 = vld [vmem:[%s5259_s30 + $0x1e0] ss:$16 sps:$4 sm:$0xff]   ;;  %v4829_v32 = vld [vmem:[%s5259_s30 + $0x1e8] ss:$16 sps:$4 sm:$0xff]  }
  0x41   : > { %2058 = vmatprep.subr.bf16.mxu1 %v5144_v1  ;;  %2603 = vmatprep.subr.bf16.mxu0 %v5144_v1  ;;  %v4782_v1 = vld [vmem:[%s5259_s30 + $0x104] ss:$16 sps:$4 sm:$0xff]  }
  0x44   : > { %2059 = vmatpush1.bf16.msra.mxu1 %v4732_v33  ;;  %2604 = vmatpush1.bf16.msra.mxu0 %v4733_v34  ;;  %v4830_v33 = vld [vmem:[%s5259_s30 + $0x204] ss:$16 sps:$4 sm:$0xff]   ;;  %v4832_v34 = vld [vmem:[%s5259_s30 + $0x20c] ss:$16 sps:$4 sm:$0xff]  }
  0x47   : > { %2061 = vmatmul.mubr.bf16.vlgmr.msra.gmra.mrb[0].mxu1 %v4734_v35  ;;  %2606 = vmatmul.mubr.bf16.vlgmr.msra.gmra.mrb[0].mxu0 %v4737_v36  ;;  %v4834_v35 = vld [vmem:[%s5259_s30 + $0x200] ss:$16 sps:$4 sm:$0xff]   ;;  %v4835_v36 = vld [vmem:[%s5259_s30 + $0x208] ss:$16 sps:$4 sm:$0xff]  }
  0x48   : > { %2068 = vmatprep.mubr.bf16.mxu1 %v4740_v37  ;;  %2613 = vmatprep.mubr.bf16.mxu0 %v4742_v38  ;;  %v4836_v37 = vld [vmem:[%s5259_s30 + $0x224] ss:$16 sps:$4 sm:$0xff]   ;;  %v4838_v38 = vld [vmem:[%s5259_s30 + $0x22c] ss:$16 sps:$4 sm:$0xff]  }
  0x4f   : > { %2069 = vmatmul.mubr.bf16.gmra.mrb[4].mxu1 %v4744_v39  ;;  %2614 = vmatmul.mubr.bf16.gmra.mrb[4].mxu0 %v4745_v40  ;;  %v4840_v39 = vld [vmem:[%s5259_s30 + $0x220] ss:$16 sps:$4 sm:$0xff]   ;;  %v4841_v40 = vld [vmem:[%s5259_s30 + $0x228] ss:$16 sps:$4 sm:$0xff]  }
  0x50   : > { %2076 = vmatprep.mubr.bf16.mxu1 %v4746_v41  ;;  %2621 = vmatprep.mubr.bf16.mxu0 %v4748_v42  ;;  %v4842_v41 = vld [vmem:[%s5259_s30 + $0x244] ss:$16 sps:$4 sm:$0xff]   ;;  %v4844_v42 = vld [vmem:[%s5259_s30 + $0x24c] ss:$16 sps:$4 sm:$0xff]  }
  0x57   : > { %2077 = vmatmul.mubr.bf16.gmra.mrb[8].mxu1 %v4750_v43  ;;  %2622 = vmatmul.mubr.bf16.gmra.mrb[8].mxu0 %v4751_v44  ;;  %v4846_v43 = vld [vmem:[%s5259_s30 + $0x240] ss:$16 sps:$4 sm:$0xff]   ;;  %v4847_v44 = vld [vmem:[%s5259_s30 + $0x248] ss:$16 sps:$4 sm:$0xff]  }
  0x58   : > { %2084 = vmatprep.mubr.bf16.mxu1 %v4752_v45  ;;  %2629 = vmatprep.mubr.bf16.mxu0 %v4754_v46  ;;  %v4848_v45 = vld [vmem:[%s5259_s30 + $0x264] ss:$16 sps:$4 sm:$0xff]   ;;  %v4850_v46 = vld [vmem:[%s5259_s30 + $0x26c] ss:$16 sps:$4 sm:$0xff]  }
  0x5f   : > { %2085 = vmatmul.mubr.bf16.gmra.mrb[12].mxu1 %v4756_v47  ;;  %2630 = vmatmul.mubr.bf16.gmra.mrb[12].mxu0 %v4757_v48  ;;  %v4852_v47 = vld [vmem:[%s5259_s30 + $0x260] ss:$16 sps:$4 sm:$0xff]   ;;  %v4853_v48 = vld [vmem:[%s5259_s30 + $0x268] ss:$16 sps:$4 sm:$0xff]  }
  0x60   : > { %2092 = vmatprep.mubr.bf16.mxu1 %v4758_v49  ;;  %2637 = vmatprep.mubr.bf16.mxu0 %v4760_v50  ;;  %v4854_v49 = vld [vmem:[%s5259_s30 + $0x284] ss:$16 sps:$4 sm:$0xff]   ;;  %v4856_v50 = vld [vmem:[%s5259_s30 + $0x28c] ss:$16 sps:$4 sm:$0xff]  }
  0x67   : > { %2093 = vmatmul.mubr.bf16.gmra.mrb[16].mxu1 %v4762_v51  ;;  %2638 = vmatmul.mubr.bf16.gmra.mrb[16].mxu0 %v4763_v52  ;;  %v4858_v51 = vld [vmem:[%s5259_s30 + $0x280] ss:$16 sps:$4 sm:$0xff]   ;;  %v4859_v52 = vld [vmem:[%s5259_s30 + $0x288] ss:$16 sps:$4 sm:$0xff]  }
  0x68   : > { %2100 = vmatprep.mubr.bf16.mxu1 %v4764_v53  ;;  %2645 = vmatprep.mubr.bf16.mxu0 %v4766_v54  ;;  %v4860_v53 = vld [vmem:[%s5259_s30 + $0x2a4] ss:$16 sps:$4 sm:$0xff]   ;;  %v4862_v54 = vld [vmem:[%s5259_s30 + $0x2ac] ss:$16 sps:$4 sm:$0xff]  }
  0x6f   : > { %2101 = vmatmul.mubr.bf16.gmra.mrb[20].mxu1 %v4768_v55  ;;  %2646 = vmatmul.mubr.bf16.gmra.mrb[20].mxu0 %v4769_v56  ;;  %v4864_v55 = vld [vmem:[%s5259_s30 + $0x2a0] ss:$16 sps:$4 sm:$0xff]   ;;  %v4865_v56 = vld [vmem:[%s5259_s30 + $0x2a8] ss:$16 sps:$4 sm:$0xff]  }
  0x70   : > { %2108 = vmatprep.mubr.bf16.mxu1 %v4770_v57  ;;  %2653 = vmatprep.mubr.bf16.mxu0 %v4772_v58  ;;  %v4866_v57 = vld [vmem:[%s5259_s30 + $0x2c4] ss:$16 sps:$4 sm:$0xff]   ;;  %v4868_v58 = vld [vmem:[%s5259_s30 + $0x2cc] ss:$16 sps:$4 sm:$0xff]  }
  0x77   : > { %2109 = vmatmul.mubr.bf16.gmra.mrb[24].mxu1 %v4774_v59  ;;  %2654 = vmatmul.mubr.bf16.gmra.mrb[24].mxu0 %v4775_v60  ;;  %v4870_v59 = vld [vmem:[%s5259_s30 + $0x2c0] ss:$16 sps:$4 sm:$0xff]   ;;  %v4871_v60 = vld [vmem:[%s5259_s30 + $0x2c8] ss:$16 sps:$4 sm:$0xff]  }
  0x78   : > { %2116 = vmatprep.mubr.bf16.mxu1 %v4776_v61  ;;  %2661 = vmatprep.mubr.bf16.mxu0 %v4778_v62  ;;  %v4872_v61 = vld [vmem:[%s5259_s30 + $0x2e4] ss:$16 sps:$4 sm:$0xff]   ;;  %v4874_v62 = vld [vmem:[%s5259_s30 + $0x2ec] ss:$16 sps:$4 sm:$0xff]  }
  0x7f   : > { %2117 = vmatmul.mubr.bf16.gmra.mrb[28].mxu1 %v4780_v63  ;;  %2662 = vmatmul.mubr.bf16.gmra.mrb[28].mxu0 %v4781_v0  ;;  %v4876_v63 = vld [vmem:[%s5259_s30 + $0x2e0] ss:$16 sps:$4 sm:$0xff]   ;;  %v4877_v0 = vld [vmem:[%s5259_s30 + $0x2e8] ss:$16 sps:$4 sm:$0xff]  }
  0x80   : > { %2124 = vmatprep.mubr.bf16.mxu1 %v4782_v1  ;;  %2669 = vmatprep.mubr.bf16.mxu0 %v4784_v2  ;;  %v4878_v1 = vld [vmem:[%s5259_s30 + $0x304] ss:$16 sps:$4 sm:$0xff]   ;;  %v4880_v2 = vld [vmem:[%s5259_s30 + $0x30c] ss:$16 sps:$4 sm:$0xff]  }
  0x87   : > { %2125 = vmatmul.mubr.bf16.gmra.mrb[32].mxu1 %v4786_v3  ;;  %2670 = vmatmul.mubr.bf16.gmra.mrb[32].mxu0 %v4787_v4  ;;  %v4882_v3 = vld [vmem:[%s5259_s30 + $0x300] ss:$16 sps:$4 sm:$0xff]   ;;  %v4883_v4 = vld [vmem:[%s5259_s30 + $0x308] ss:$16 sps:$4 sm:$0xff]  }
  0x88   : > { %2132 = vmatprep.mubr.bf16.mxu1 %v4788_v5  ;;  %2677 = vmatprep.mubr.bf16.mxu0 %v4790_v6  ;;  %v4884_v5 = vld [vmem:[%s5259_s30 + $0x324] ss:$16 sps:$4 sm:$0xff]   ;;  %v4886_v6 = vld [vmem:[%s5259_s30 + $0x32c] ss:$16 sps:$4 sm:$0xff]  }
  0x8f   : > { %2133 = vmatmul.mubr.bf16.gmra.mrb[36].mxu1 %v4792_v7  ;;  %2678 = vmatmul.mubr.bf16.gmra.mrb[36].mxu0 %v4793_v8  ;;  %v4888_v7 = vld [vmem:[%s5259_s30 + $0x320] ss:$16 sps:$4 sm:$0xff]   ;;  %v4889_v8 = vld [vmem:[%s5259_s30 + $0x328] ss:$16 sps:$4 sm:$0xff]  }
  0x90   : > { %2140 = vmatprep.mubr.bf16.mxu1 %v4794_v9  ;;  %2685 = vmatprep.mubr.bf16.mxu0 %v4796_v10  ;;  %v4890_v9 = vld [vmem:[%s5259_s30 + $0x344] ss:$16 sps:$4 sm:$0xff]   ;;  %v4892_v10 = vld [vmem:[%s5259_s30 + $0x34c] ss:$16 sps:$4 sm:$0xff]  }
  0x97   : > { %2141 = vmatmul.mubr.bf16.gmra.mrb[40].mxu1 %v4798_v11  ;;  %2686 = vmatmul.mubr.bf16.gmra.mrb[40].mxu0 %v4799_v12  ;;  %v4894_v11 = vld [vmem:[%s5259_s30 + $0x340] ss:$16 sps:$4 sm:$0xff]   ;;  %v4895_v12 = vld [vmem:[%s5259_s30 + $0x348] ss:$16 sps:$4 sm:$0xff]  }
  0x98   : > { %2148 = vmatprep.mubr.bf16.mxu1 %v4800_v13  ;;  %2693 = vmatprep.mubr.bf16.mxu0 %v4802_v14  ;;  %v4896_v13 = vld [vmem:[%s5259_s30 + $0x364] ss:$16 sps:$4 sm:$0xff]   ;;  %v4898_v14 = vld [vmem:[%s5259_s30 + $0x36c] ss:$16 sps:$4 sm:$0xff]  }
  0x9f   : > { %2149 = vmatmul.mubr.bf16.gmra.mrb[44].mxu1 %v4804_v15  ;;  %2694 = vmatmul.mubr.bf16.gmra.mrb[44].mxu0 %v4805_v16  ;;  %v5435_v15 = vld [vmem:[%s5994_s2] ss:$0 sm:$0xff] }
  0xa0   : > { %2156 = vmatprep.mubr.bf16.mxu1 %v4806_v17  ;;  %2701 = vmatprep.mubr.bf16.mxu0 %v4808_v18 }
  0xa7   : > { %2157 = vmatmul.mubr.bf16.gmra.mrb[48].mxu1 %v4810_v19  ;;  %2702 = vmatmul.mubr.bf16.gmra.mrb[48].mxu0 %v4811_v20  ;;  %v4900_v20 = vld [vmem:[%s5259_s30 + $0x360] ss:$16 sps:$4 sm:$0xff]  }
  0xa8   : > { %2164 = vmatprep.mubr.bf16.mxu1 %v4812_v21  ;;  %2709 = vmatprep.mubr.bf16.mxu0 %v4814_v22 }
  0xaf   : > { %2165 = vmatmul.mubr.bf16.gmra.mrb[52].mxu1 %v4816_v23  ;;  %2710 = vmatmul.mubr.bf16.gmra.mrb[52].mxu0 %v4817_v24  ;;  %v4901_v23 = vld [vmem:[%s5259_s30 + $0x368] ss:$16 sps:$4 sm:$0xff]   ;;  %v4902_v24 = vld [vmem:[%s5259_s30 + $0x384] ss:$16 sps:$4 sm:$0xff]  }
  0xb0   : > { %2172 = vmatprep.mubr.bf16.mxu1 %v4818_v25  ;;  %2717 = vmatprep.mubr.bf16.mxu0 %v4820_v26 }
  0xb7   : > { %2173 = vmatmul.mubr.bf16.gmra.mrb[56].mxu1 %v4822_v27  ;;  %2718 = vmatmul.mubr.bf16.gmra.mrb[56].mxu0 %v4823_v28 }
  0xb8   : > { %2180 = vmatprep.mubr.bf16.mxu1 %v4824_v29  ;;  %2725 = vmatprep.mubr.bf16.mxu0 %v4826_v30  ;;  %v4904_v29 = vld [vmem:[%s5259_s30 + $0x38c] ss:$16 sps:$4 sm:$0xff]  }
  0xbf   : > { %2181 = vmatmul.mubr.bf16.gmra.mrb[60].mxu1 %v4828_v31  ;;  %2726 = vmatmul.mubr.bf16.gmra.mrb[60].mxu0 %v4829_v32 }
  0xc0   : > { %2188 = vmatprep.mubr.bf16.mxu1 %v4830_v33  ;;  %2733 = vmatprep.mubr.bf16.mxu0 %v4832_v34 }
  0xc7   : > { %2189 = vmatmul.mubr.bf16.gmra.mrb[64].mxu1 %v4834_v35  ;;  %2734 = vmatmul.mubr.bf16.gmra.mrb[64].mxu0 %v4835_v36 }
  0xc8   : > { %2196 = vmatprep.mubr.bf16.mxu1 %v4836_v37  ;;  %2741 = vmatprep.mubr.bf16.mxu0 %v4838_v38  ;;  %v4906_v38 = vld [vmem:[%s5259_s30 + $0x380] ss:$16 sps:$4 sm:$0xff]  }
  0xcf   : > { %2197 = vmatmul.mubr.bf16.gmra.mrb[68].mxu1 %v4840_v39  ;;  %2742 = vmatmul.mubr.bf16.gmra.mrb[68].mxu0 %v4841_v40 }
  0xd0   : > { %2204 = vmatprep.mubr.bf16.mxu1 %v4842_v41  ;;  %2749 = vmatprep.mubr.bf16.mxu0 %v4844_v42  ;;  %v4907_v41 = vld [vmem:[%s5259_s30 + $0x388] ss:$16 sps:$4 sm:$0xff]   ;;  %v4908_v42 = vld [vmem:[%s5259_s30 + $0x3a4] ss:$16 sps:$4 sm:$0xff]  }
  0xd7   : > { %2205 = vmatmul.mubr.bf16.gmra.mrb[72].mxu1 %v4846_v43  ;;  %2750 = vmatmul.mubr.bf16.gmra.mrb[72].mxu0 %v4847_v44 }
  0xd8   : > { %2212 = vmatprep.mubr.bf16.mxu1 %v4848_v45  ;;  %2757 = vmatprep.mubr.bf16.mxu0 %v4850_v46 }
  0xdf   : > { %2213 = vmatmul.mubr.bf16.gmra.mrb[76].mxu1 %v4852_v47  ;;  %2758 = vmatmul.mubr.bf16.gmra.mrb[76].mxu0 %v4853_v48  ;;  %v4910_v47 = vld [vmem:[%s5259_s30 + $0x3ac] ss:$16 sps:$4 sm:$0xff]  }
  0xe0   : > { %2220 = vmatprep.mubr.bf16.mxu1 %v4854_v49  ;;  %2765 = vmatprep.mubr.bf16.mxu0 %v4856_v50 }
  0xe7   : > { %2221 = vmatmul.mubr.bf16.gmra.mrb[80].mxu1 %v4858_v51  ;;  %2766 = vmatmul.mubr.bf16.gmra.mrb[80].mxu0 %v4859_v52 }
  0xe8   : > { %2228 = vmatprep.mubr.bf16.mxu1 %v4860_v53  ;;  %2773 = vmatprep.mubr.bf16.mxu0 %v4862_v54 }
  0xef   : > { %2229 = vmatmul.mubr.bf16.gmra.mrb[84].mxu1 %v4864_v55  ;;  %2774 = vmatmul.mubr.bf16.gmra.mrb[84].mxu0 %v4865_v56  ;;  %v4912_v56 = vld [vmem:[%s5259_s30 + $0x3a0] ss:$16 sps:$4 sm:$0xff]  }
  0xf0   : > { %2236 = vmatprep.mubr.bf16.mxu1 %v4866_v57  ;;  %2781 = vmatprep.mubr.bf16.mxu0 %v4868_v58 }
  0xf7   : > { %2237 = vmatmul.mubr.bf16.gmra.mrb[88].mxu1 %v4870_v59  ;;  %2782 = vmatmul.mubr.bf16.gmra.mrb[88].mxu0 %v4871_v60  ;;  %v4913_v59 = vld [vmem:[%s5259_s30 + $0x3a8] ss:$16 sps:$4 sm:$0xff]   ;;  %v4914_v60 = vld [vmem:[%s5259_s30 + $0x3c4] ss:$16 sps:$4 sm:$0xff]  }
  0xf8   : > { %2244 = vmatprep.mubr.bf16.mxu1 %v4872_v61  ;;  %2789 = vmatprep.mubr.bf16.mxu0 %v4874_v62 }
  0xff   : > { %2245 = vmatmul.mubr.bf16.gmra.mrb[92].mxu1 %v4876_v63  ;;  %2790 = vmatmul.mubr.bf16.gmra.mrb[92].mxu0 %v4877_v0 }
 0x100   : > { %2252 = vmatprep.mubr.bf16.mxu1 %v4878_v1  ;;  %2797 = vmatprep.mubr.bf16.mxu0 %v4880_v2  ;;  %v4916_v1 = vld [vmem:[%s5259_s30 + $0x3cc] ss:$16 sps:$4 sm:$0xff]  }
 0x107   : > { %2253 = vmatmul.mubr.bf16.gmra.mrb[96].mxu1 %v4882_v3  ;;  %2798 = vmatmul.mubr.bf16.gmra.mrb[96].mxu0 %v4883_v4 }
 0x108   : > { %2260 = vmatprep.mubr.bf16.mxu1 %v4884_v5  ;;  %2805 = vmatprep.mubr.bf16.mxu0 %v4886_v6 }
 0x10f   : > { %2261 = vmatmul.mubr.bf16.gmra.mrb[100].mxu1 %v4888_v7  ;;  %2806 = vmatmul.mubr.bf16.gmra.mrb[100].mxu0 %v4889_v8 }
 0x110   : > { %2268 = vmatprep.mubr.bf16.mxu1 %v4890_v9  ;;  %2813 = vmatprep.mubr.bf16.mxu0 %v4892_v10  ;;  %v4918_v10 = vld [vmem:[%s5259_s30 + $0x3c0] ss:$16 sps:$4 sm:$0xff]  }
 0x117   : > { %2269 = vmatmul.mubr.bf16.gmra.mrb[104].mxu1 %v4894_v11  ;;  %2814 = vmatmul.mubr.bf16.gmra.mrb[104].mxu0 %v4895_v12 }
 0x118   : > { %2276 = vmatprep.mubr.bf16.mxu1 %v4896_v13  ;;  %2821 = vmatprep.mubr.bf16.mxu0 %v4898_v14  ;;  %v4919_v13 = vld [vmem:[%s5259_s30 + $0x3c8] ss:$16 sps:$4 sm:$0xff]   ;;  %v4920_v14 = vld [vmem:[%s5259_s30 + $0x3e4] ss:$16 sps:$4 sm:$0xff]  }
 0x11a   : > { %v2062_v16 = vpop.f32.mrb[0].mxu1  ;;  %v2607_v18 = vpop.f32.mrb[0].mxu0 }
 0x11b   : > { %v2063_v17 = vadd.f32 %v5435_v15, %v2062_v16  ;;  %v2064_v19 = vpop.f32.mrb[1].mxu1  ;;  %v2609_v21 = vpop.f32.mrb[1].mxu0 }
 0x11c   : > { %v2065_v22 = vpop.f32.mrb[2].mxu1  ;;  %v2610_v27 = vpop.f32.mrb[2].mxu0 }
 0x11d   : > { %v2608_v25 = vadd.f32 %v2607_v18, %v2063_v17  ;;  %v2066_v26 = vadd.f32 %v5435_v15, %v2065_v22  ;;  %v2067_v28 = vpop.f32.mrb[3].mxu1  ;;  %v2612_v30 = vpop.f32.mrb[3].mxu0 }
 0x11f   : > { %v4293_v31 = vpack.c.bf16 %v2608_v25, %v2608_v25  ;;  %v2611_v32 = vadd.f32 %v2610_v27, %v2066_v26  ;;  %2277 = vmatmul.mubr.bf16.gmra.mrb[108].mxu1 %v4900_v20  ;;  %2822 = vmatmul.mubr.bf16.gmra.mrb[108].mxu0 %v4901_v23  ;;  %v4922_v20 = vld [vmem:[%s5259_s30 + $0x3ec] ss:$16 sps:$4 sm:$0xff]  }
 0x120   : > { %2284 = vmatprep.mubr.bf16.mxu1 %v4902_v24  ;;  %2829 = vmatprep.mubr.bf16.mxu0 %v4904_v29  ;;  %v4924_v29 = vld [vmem:[%s5259_s30 + $0x3e0] ss:$16 sps:$4 sm:$0xff]  }
 0x121   : > { %3631 = vst.msk [vmem:[%s5447_s21] sm:$0xf] %vm3630_vm0, %v4293_v31  ;;  %v4294_v33 = vpack.c.bf16 %v2611_v32, %v2611_v32  ;;  %v4925_v32 = vld [vmem:[%s5259_s30 + $0x3e8] ss:$16 sps:$4 sm:$0xff]  }
 0x122   : > { %v2070_v34 = vpop.f32.mrb[4].mxu1  ;;  %v2615_v36 = vpop.f32.mrb[4].mxu0 }
 0x123   : > { %3632 = vst.msk [vmem:[%s5447_s21 + $0x4] sm:$0xf] %vm3630_vm0, %v4294_v33  ;;  %v2071_v35 = vadd.f32 %v5435_v15, %v2070_v34  ;;  %v2072_v37 = vpop.f32.mrb[5].mxu1  ;;  %v2617_v39 = vpop.f32.mrb[5].mxu0  ;;  %v4926_v33 = vld [vmem:[%s5259_s30 + $0x404] ss:$16 sps:$4 sm:$0xff]  }
 0x124   : > { %v2073_v40 = vpop.f32.mrb[6].mxu1  ;;  %v2618_v45 = vpop.f32.mrb[6].mxu0 }
 0x125   : > { %v2616_v43 = vadd.f32 %v2615_v36, %v2071_v35  ;;  %v2074_v44 = vadd.f32 %v5435_v15, %v2073_v40  ;;  %v2075_v46 = vpop.f32.mrb[7].mxu1  ;;  %v2620_v48 = vpop.f32.mrb[7].mxu0 }
 0x127   : > { %v4295_v49 = vpack.c.bf16 %v2616_v43, %v2616_v43  ;;  %v2619_v50 = vadd.f32 %v2618_v45, %v2074_v44  ;;  %2285 = vmatmul.mubr.bf16.gmra.mrb[112].mxu1 %v4906_v38  ;;  %2830 = vmatmul.mubr.bf16.gmra.mrb[112].mxu0 %v4907_v41  ;;  %v4928_v38 = vld [vmem:[%s5259_s30 + $0x40c] ss:$16 sps:$4 sm:$0xff]  }
 0x128   : > { %2292 = vmatprep.mubr.bf16.mxu1 %v4908_v42  ;;  %2837 = vmatprep.mubr.bf16.mxu0 %v4910_v47  ;;  %v4930_v47 = vld [vmem:[%s5259_s30 + $0x400] ss:$16 sps:$4 sm:$0xff]  }
 0x129   : > { %3633 = vst.msk [vmem:[%s5447_s21 + $0x8] sm:$0xf] %vm3630_vm0, %v4295_v49  ;;  %v4296_v51 = vpack.c.bf16 %v2619_v50, %v2619_v50  ;;  %v4931_v50 = vld [vmem:[%s5259_s30 + $0x408] ss:$16 sps:$4 sm:$0xff]  }
 0x12a   : > { %v2078_v52 = vpop.f32.mrb[8].mxu1  ;;  %v2623_v54 = vpop.f32.mrb[8].mxu0 }
 0x12b   : > { %3634 = vst.msk [vmem:[%s5447_s21 + $0xc] sm:$0xf] %vm3630_vm0, %v4296_v51  ;;  %v2079_v53 = vadd.f32 %v5435_v15, %v2078_v52  ;;  %v2080_v55 = vpop.f32.mrb[9].mxu1  ;;  %v2625_v57 = vpop.f32.mrb[9].mxu0  ;;  %v4932_v51 = vld [vmem:[%s5259_s30 + $0x424] ss:$16 sps:$4 sm:$0xff]  }
 0x12c   : > { %v2081_v58 = vpop.f32.mrb[10].mxu1  ;;  %v2626_v63 = vpop.f32.mrb[10].mxu0 }
 0x12d   : > { %v2624_v61 = vadd.f32 %v2623_v54, %v2079_v53  ;;  %v2082_v62 = vadd.f32 %v5435_v15, %v2081_v58  ;;  %v2083_v0 = vpop.f32.mrb[11].mxu1  ;;  %v2628_v2 = vpop.f32.mrb[11].mxu0 }
 0x12f   : > { %v4297_v3 = vpack.c.bf16 %v2624_v61, %v2624_v61  ;;  %v2627_v4 = vadd.f32 %v2626_v63, %v2082_v62  ;;  %2293 = vmatmul.mubr.bf16.gmra.mrb[116].mxu1 %v4912_v56  ;;  %2838 = vmatmul.mubr.bf16.gmra.mrb[116].mxu0 %v4913_v59  ;;  %v4934_v56 = vld [vmem:[%s5259_s30 + $0x42c] ss:$16 sps:$4 sm:$0xff]  }
 0x130   : > { %2300 = vmatprep.mubr.bf16.mxu1 %v4914_v60  ;;  %2845 = vmatprep.mubr.bf16.mxu0 %v4916_v1  ;;  %v4936_v1 = vld [vmem:[%s5259_s30 + $0x420] ss:$16 sps:$4 sm:$0xff]  }
 0x131   : > { %3635 = vst.msk [vmem:[%s5447_s21 + $0x10] sm:$0xf] %vm3630_vm0, %v4297_v3  ;;  %v4298_v5 = vpack.c.bf16 %v2627_v4, %v2627_v4  ;;  %v4937_v4 = vld [vmem:[%s5259_s30 + $0x428] ss:$16 sps:$4 sm:$0xff]  }
 0x132   : > { %v2086_v6 = vpop.f32.mrb[12].mxu1  ;;  %v2631_v8 = vpop.f32.mrb[12].mxu0 }
 0x133   : > { %3636 = vst.msk [vmem:[%s5447_s21 + $0x14] sm:$0xf] %vm3630_vm0, %v4298_v5  ;;  %v2087_v7 = vadd.f32 %v5435_v15, %v2086_v6  ;;  %v2088_v9 = vpop.f32.mrb[13].mxu1  ;;  %v2633_v11 = vpop.f32.mrb[13].mxu0  ;;  %v4938_v5 = vld [vmem:[%s5259_s30 + $0x444] ss:$16 sps:$4 sm:$0xff]  }
 0x134   : > { %v2089_v12 = vpop.f32.mrb[14].mxu1  ;;  %v2634_v18 = vpop.f32.mrb[14].mxu0 }
 0x135   : > { %v2632_v16 = vadd.f32 %v2631_v8, %v2087_v7  ;;  %v2090_v17 = vadd.f32 %v5435_v15, %v2089_v12  ;;  %v2091_v19 = vpop.f32.mrb[15].mxu1  ;;  %v2636_v21 = vpop.f32.mrb[15].mxu0 }
 0x137   : > { %v4299_v22 = vpack.c.bf16 %v2632_v16, %v2632_v16  ;;  %v2635_v23 = vadd.f32 %v2634_v18, %v2090_v17  ;;  %2301 = vmatmul.mubr.bf16.gmra.mrb[120].mxu1 %v4918_v10  ;;  %2846 = vmatmul.mubr.bf16.gmra.mrb[120].mxu0 %v4919_v13  ;;  %v4940_v10 = vld [vmem:[%s5259_s30 + $0x44c] ss:$16 sps:$4 sm:$0xff]  }
 0x138   : > { %2308 = vmatprep.mubr.bf16.mxu1 %v4920_v14  ;;  %2853 = vmatprep.mubr.bf16.mxu0 %v4922_v20  ;;  %v4942_v20 = vld [vmem:[%s5259_s30 + $0x440] ss:$16 sps:$4 sm:$0xff]  }
 0x139   : > { %3637 = vst.msk [vmem:[%s5447_s21 + $0x18] sm:$0xf] %vm3630_vm0, %v4299_v22  ;;  %v4300_v24 = vpack.c.bf16 %v2635_v23, %v2635_v23  ;;  %v4943_v23 = vld [vmem:[%s5259_s30 + $0x448] ss:$16 sps:$4 sm:$0xff]  }
 0x13a   : > { %v2094_v25 = vpop.f32.mrb[16].mxu1  ;;  %v2639_v27 = vpop.f32.mrb[16].mxu0 }
 0x13b   : > { %3638 = vst.msk [vmem:[%s5447_s21 + $0x1c] sm:$0xf] %vm3630_vm0, %v4300_v24  ;;  %v2095_v26 = vadd.f32 %v5435_v15, %v2094_v25  ;;  %v2096_v28 = vpop.f32.mrb[17].mxu1  ;;  %v2641_v30 = vpop.f32.mrb[17].mxu0  ;;  %v4944_v24 = vld [vmem:[%s5259_s30 + $0x464] ss:$16 sps:$4 sm:$0xff]  }
 0x13c   : > { %v2097_v31 = vpop.f32.mrb[18].mxu1  ;;  %v2642_v36 = vpop.f32.mrb[18].mxu0 }
 0x13d   : > { %v2640_v34 = vadd.f32 %v2639_v27, %v2095_v26  ;;  %v2098_v35 = vadd.f32 %v5435_v15, %v2097_v31  ;;  %v2099_v37 = vpop.f32.mrb[19].mxu1  ;;  %v2644_v39 = vpop.f32.mrb[19].mxu0 }
 0x13f   : > { %v4301_v40 = vpack.c.bf16 %v2640_v34, %v2640_v34  ;;  %v2643_v41 = vadd.f32 %v2642_v36, %v2098_v35  ;;  %2309 = vmatmul.mubr.bf16.gmra.mrb[124].mxu1 %v4924_v29  ;;  %2854 = vmatmul.mubr.bf16.gmra.mrb[124].mxu0 %v4925_v32  ;;  %v4946_v29 = vld [vmem:[%s5259_s30 + $0x46c] ss:$16 sps:$4 sm:$0xff]  }
 0x140   : > { %2316 = vmatprep.mubr.bf16.mxu1 %v4926_v33  ;;  %2861 = vmatprep.mubr.bf16.mxu0 %v4928_v38  ;;  %v4948_v38 = vld [vmem:[%s5259_s30 + $0x460] ss:$16 sps:$4 sm:$0xff]  }
 0x141   : > { %3639 = vst.msk [vmem:[%s5447_s21 + $0x20] sm:$0xf] %vm3630_vm0, %v4301_v40  ;;  %v4302_v42 = vpack.c.bf16 %v2643_v41, %v2643_v41  ;;  %v4949_v41 = vld [vmem:[%s5259_s30 + $0x468] ss:$16 sps:$4 sm:$0xff]  }
 0x142   : > { %v2102_v43 = vpop.f32.mrb[20].mxu1  ;;  %v2647_v45 = vpop.f32.mrb[20].mxu0 }
 0x143   : > { %3640 = vst.msk [vmem:[%s5447_s21 + $0x24] sm:$0xf] %vm3630_vm0, %v4302_v42  ;;  %v2103_v44 = vadd.f32 %v5435_v15, %v2102_v43  ;;  %v2104_v46 = vpop.f32.mrb[21].mxu1  ;;  %v2649_v48 = vpop.f32.mrb[21].mxu0  ;;  %v4950_v42 = vld [vmem:[%s5259_s30 + $0x484] ss:$16 sps:$4 sm:$0xff]  }
 0x144   : > { %v2105_v49 = vpop.f32.mrb[22].mxu1  ;;  %v2650_v54 = vpop.f32.mrb[22].mxu0 }
 0x145   : > { %v2648_v52 = vadd.f32 %v2647_v45, %v2103_v44  ;;  %v2106_v53 = vadd.f32 %v5435_v15, %v2105_v49  ;;  %v2107_v55 = vpop.f32.mrb[23].mxu1  ;;  %v2652_v57 = vpop.f32.mrb[23].mxu0 }
 0x147   : > { %v4303_v58 = vpack.c.bf16 %v2648_v52, %v2648_v52  ;;  %v2651_v59 = vadd.f32 %v2650_v54, %v2106_v53  ;;  %2317 = vmatmul.mubr.bf16.gmra.mrb[128].mxu1 %v4930_v47  ;;  %2862 = vmatmul.mubr.bf16.gmra.mrb[128].mxu0 %v4931_v50  ;;  %v4952_v47 = vld [vmem:[%s5259_s30 + $0x48c] ss:$16 sps:$4 sm:$0xff]  }
 0x148   : > { %2324 = vmatprep.mubr.bf16.mxu1 %v4932_v51  ;;  %2869 = vmatprep.mubr.bf16.mxu0 %v4934_v56  ;;  %v4954_v56 = vld [vmem:[%s5259_s30 + $0x480] ss:$16 sps:$4 sm:$0xff]  }
 0x149   : > { %3641 = vst.msk [vmem:[%s5447_s21 + $0x28] sm:$0xf] %vm3630_vm0, %v4303_v58  ;;  %v4304_v60 = vpack.c.bf16 %v2651_v59, %v2651_v59  ;;  %v4955_v59 = vld [vmem:[%s5259_s30 + $0x488] ss:$16 sps:$4 sm:$0xff]  }
 0x14a   : > { %v2110_v61 = vpop.f32.mrb[24].mxu1  ;;  %v2655_v63 = vpop.f32.mrb[24].mxu0 }
 0x14b   : > { %3642 = vst.msk [vmem:[%s5447_s21 + $0x2c] sm:$0xf] %vm3630_vm0, %v4304_v60  ;;  %v2111_v62 = vadd.f32 %v5435_v15, %v2110_v61  ;;  %v2112_v0 = vpop.f32.mrb[25].mxu1  ;;  %v2657_v2 = vpop.f32.mrb[25].mxu0  ;;  %v4956_v60 = vld [vmem:[%s5259_s30 + $0x4a4] ss:$16 sps:$4 sm:$0xff]  }
 0x14c   : > { %v2113_v3 = vpop.f32.mrb[26].mxu1  ;;  %v2658_v8 = vpop.f32.mrb[26].mxu0 }
 0x14d   : > { %v2656_v6 = vadd.f32 %v2655_v63, %v2111_v62  ;;  %v2114_v7 = vadd.f32 %v5435_v15, %v2113_v3  ;;  %v2115_v9 = vpop.f32.mrb[27].mxu1  ;;  %v2660_v11 = vpop.f32.mrb[27].mxu0 }
 0x14f   : > { %v4305_v12 = vpack.c.bf16 %v2656_v6, %v2656_v6  ;;  %v2659_v13 = vadd.f32 %v2658_v8, %v2114_v7  ;;  %2325 = vmatmul.mubr.bf16.gmra.mrb[132].mxu1 %v4936_v1  ;;  %2870 = vmatmul.mubr.bf16.gmra.mrb[132].mxu0 %v4937_v4  ;;  %v4958_v1 = vld [vmem:[%s5259_s30 + $0x4ac] ss:$16 sps:$4 sm:$0xff]  }
 0x150   : > { %2332 = vmatprep.mubr.bf16.mxu1 %v4938_v5  ;;  %2877 = vmatprep.mubr.bf16.mxu0 %v4940_v10  ;;  %v4960_v10 = vld [vmem:[%s5259_s30 + $0x4a0] ss:$16 sps:$4 sm:$0xff]  }
 0x151   : > { %3643 = vst.msk [vmem:[%s5447_s21 + $0x30] sm:$0xf] %vm3630_vm0, %v4305_v12  ;;  %v4306_v14 = vpack.c.bf16 %v2659_v13, %v2659_v13  ;;  %v4961_v13 = vld [vmem:[%s5259_s30 + $0x4a8] ss:$16 sps:$4 sm:$0xff]  }
 0x152   : > { %v2118_v16 = vpop.f32.mrb[28].mxu1  ;;  %v2663_v18 = vpop.f32.mrb[28].mxu0 }
 0x153   : > { %3644 = vst.msk [vmem:[%s5447_s21 + $0x34] sm:$0xf] %vm3630_vm0, %v4306_v14  ;;  %v2119_v17 = vadd.f32 %v5435_v15, %v2118_v16  ;;  %v2120_v19 = vpop.f32.mrb[29].mxu1  ;;  %v2665_v21 = vpop.f32.mrb[29].mxu0  ;;  %v4962_v14 = vld [vmem:[%s5259_s30 + $0x4c4] ss:$16 sps:$4 sm:$0xff]  }
 0x154   : > { %v2121_v22 = vpop.f32.mrb[30].mxu1  ;;  %v2666_v27 = vpop.f32.mrb[30].mxu0 }
 0x155   : > { %v2664_v25 = vadd.f32 %v2663_v18, %v2119_v17  ;;  %v2122_v26 = vadd.f32 %v5435_v15, %v2121_v22  ;;  %v2123_v28 = vpop.f32.mrb[31].mxu1  ;;  %v2668_v30 = vpop.f32.mrb[31].mxu0 }
 0x157   : > { %v4307_v31 = vpack.c.bf16 %v2664_v25, %v2664_v25  ;;  %v2667_v32 = vadd.f32 %v2666_v27, %v2122_v26  ;;  %2333 = vmatmul.mubr.bf16.gmra.mrb[136].mxu1 %v4942_v20  ;;  %2878 = vmatmul.mubr.bf16.gmra.mrb[136].mxu0 %v4943_v23  ;;  %v4964_v20 = vld [vmem:[%s5259_s30 + $0x4cc] ss:$16 sps:$4 sm:$0xff]  }
 0x158   : > { %2340 = vmatprep.mubr.bf16.mxu1 %v4944_v24  ;;  %2885 = vmatprep.mubr.bf16.mxu0 %v4946_v29  ;;  %v4966_v29 = vld [vmem:[%s5259_s30 + $0x4c0] ss:$16 sps:$4 sm:$0xff]  }
 0x159   : > { %3645 = vst.msk [vmem:[%s5447_s21 + $0x38] sm:$0xf] %vm3630_vm0, %v4307_v31  ;;  %v4308_v33 = vpack.c.bf16 %v2667_v32, %v2667_v32  ;;  %v4967_v32 = vld [vmem:[%s5259_s30 + $0x4c8] ss:$16 sps:$4 sm:$0xff]  }
 0x15a   : > { %v2126_v34 = vpop.f32.mrb[32].mxu1  ;;  %v2671_v36 = vpop.f32.mrb[32].mxu0 }
 0x15b   : > { %3646 = vst.msk [vmem:[%s5447_s21 + $0x3c] sm:$0xf] %vm3630_vm0, %v4308_v33  ;;  %v2127_v35 = vadd.f32 %v5435_v15, %v2126_v34  ;;  %v2128_v37 = vpop.f32.mrb[33].mxu1  ;;  %v2673_v39 = vpop.f32.mrb[33].mxu0  ;;  %v4968_v33 = vld [vmem:[%s5259_s30 + $0x4e4] ss:$16 sps:$4 sm:$0xff]  }
 0x15c   : > { %v2129_v40 = vpop.f32.mrb[34].mxu1  ;;  %v2674_v45 = vpop.f32.mrb[34].mxu0 }
 0x15d   : > { %v2672_v43 = vadd.f32 %v2671_v36, %v2127_v35  ;;  %v2130_v44 = vadd.f32 %v5435_v15, %v2129_v40  ;;  %v2131_v46 = vpop.f32.mrb[35].mxu1  ;;  %v2676_v48 = vpop.f32.mrb[35].mxu0 }
 0x15f   : > { %v4309_v49 = vpack.c.bf16 %v2672_v43, %v2672_v43  ;;  %v2675_v50 = vadd.f32 %v2674_v45, %v2130_v44  ;;  %2341 = vmatmul.mubr.bf16.gmra.mrb[140].mxu1 %v4948_v38  ;;  %2886 = vmatmul.mubr.bf16.gmra.mrb[140].mxu0 %v4949_v41  ;;  %v4970_v38 = vld [vmem:[%s5259_s30 + $0x4ec] ss:$16 sps:$4 sm:$0xff]  }
 0x160   : > { %2348 = vmatprep.mubr.bf16.mxu1 %v4950_v42  ;;  %2893 = vmatprep.mubr.bf16.mxu0 %v4952_v47  ;;  %v4972_v47 = vld [vmem:[%s5259_s30 + $0x4e0] ss:$16 sps:$4 sm:$0xff]  }
 0x161   : > { %3647 = vst.msk [vmem:[%s5447_s21 + $0x40] sm:$0xf] %vm3630_vm0, %v4309_v49  ;;  %v4310_v51 = vpack.c.bf16 %v2675_v50, %v2675_v50  ;;  %v4973_v50 = vld [vmem:[%s5259_s30 + $0x4e8] ss:$16 sps:$4 sm:$0xff]  }
 0x162   : > { %v2134_v52 = vpop.f32.mrb[36].mxu1  ;;  %v2679_v54 = vpop.f32.mrb[36].mxu0 }
 0x163   : > { %3648 = vst.msk [vmem:[%s5447_s21 + $0x44] sm:$0xf] %vm3630_vm0, %v4310_v51  ;;  %v2135_v53 = vadd.f32 %v5435_v15, %v2134_v52  ;;  %v2136_v55 = vpop.f32.mrb[37].mxu1  ;;  %v2681_v57 = vpop.f32.mrb[37].mxu0  ;;  %v4974_v51 = vld [vmem:[%s5259_s30 + $0x504] ss:$16 sps:$4 sm:$0xff]  }
 0x164   : > { %v2137_v58 = vpop.f32.mrb[38].mxu1  ;;  %v2682_v63 = vpop.f32.mrb[38].mxu0 }
 0x165   : > { %v2680_v61 = vadd.f32 %v2679_v54, %v2135_v53  ;;  %v2138_v62 = vadd.f32 %v5435_v15, %v2137_v58  ;;  %v2139_v0 = vpop.f32.mrb[39].mxu1  ;;  %v2684_v2 = vpop.f32.mrb[39].mxu0 }
 0x167   : > { %v4311_v3 = vpack.c.bf16 %v2680_v61, %v2680_v61  ;;  %v2683_v4 = vadd.f32 %v2682_v63, %v2138_v62  ;;  %2349 = vmatmul.mubr.bf16.gmra.mrb[144].mxu1 %v4954_v56  ;;  %2894 = vmatmul.mubr.bf16.gmra.mrb[144].mxu0 %v4955_v59  ;;  %v4976_v56 = vld [vmem:[%s5259_s30 + $0x50c] ss:$16 sps:$4 sm:$0xff]  }
 0x168   : > { %2356 = vmatprep.mubr.bf16.mxu1 %v4956_v60  ;;  %2901 = vmatprep.mubr.bf16.mxu0 %v4958_v1  ;;  %v4978_v1 = vld [vmem:[%s5259_s30 + $0x500] ss:$16 sps:$4 sm:$0xff]  }
 0x169   : > { %3649 = vst.msk [vmem:[%s5447_s21 + $0x48] sm:$0xf] %vm3630_vm0, %v4311_v3  ;;  %v4312_v5 = vpack.c.bf16 %v2683_v4, %v2683_v4  ;;  %v4979_v4 = vld [vmem:[%s5259_s30 + $0x508] ss:$16 sps:$4 sm:$0xff]  }
 0x16a   : > { %v2142_v6 = vpop.f32.mrb[40].mxu1  ;;  %v2687_v8 = vpop.f32.mrb[40].mxu0 }
 0x16b   : > { %3650 = vst.msk [vmem:[%s5447_s21 + $0x4c] sm:$0xf] %vm3630_vm0, %v4312_v5  ;;  %v2143_v7 = vadd.f32 %v5435_v15, %v2142_v6  ;;  %v2144_v9 = vpop.f32.mrb[41].mxu1  ;;  %v2689_v11 = vpop.f32.mrb[41].mxu0  ;;  %v4980_v5 = vld [vmem:[%s5259_s30 + $0x524] ss:$16 sps:$4 sm:$0xff]  }
 0x16c   : > { %v2145_v12 = vpop.f32.mrb[42].mxu1  ;;  %v2690_v18 = vpop.f32.mrb[42].mxu0 }
 0x16d   : > { %v2688_v16 = vadd.f32 %v2687_v8, %v2143_v7  ;;  %v2146_v17 = vadd.f32 %v5435_v15, %v2145_v12  ;;  %v2147_v19 = vpop.f32.mrb[43].mxu1  ;;  %v2692_v21 = vpop.f32.mrb[43].mxu0 }
 0x16f   : > { %v4313_v22 = vpack.c.bf16 %v2688_v16, %v2688_v16  ;;  %v2691_v23 = vadd.f32 %v2690_v18, %v2146_v17  ;;  %2357 = vmatmul.mubr.bf16.gmra.mrb[148].mxu1 %v4960_v10  ;;  %2902 = vmatmul.mubr.bf16.gmra.mrb[148].mxu0 %v4961_v13  ;;  %v4982_v10 = vld [vmem:[%s5259_s30 + $0x52c] ss:$16 sps:$4 sm:$0xff]  }
 0x170   : > { %2364 = vmatprep.mubr.bf16.mxu1 %v4962_v14  ;;  %2909 = vmatprep.mubr.bf16.mxu0 %v4964_v20  ;;  %v4984_v20 = vld [vmem:[%s5259_s30 + $0x520] ss:$16 sps:$4 sm:$0xff]  }
 0x171   : > { %3651 = vst.msk [vmem:[%s5447_s21 + $0x50] sm:$0xf] %vm3630_vm0, %v4313_v22  ;;  %v4314_v24 = vpack.c.bf16 %v2691_v23, %v2691_v23  ;;  %v4985_v23 = vld [vmem:[%s5259_s30 + $0x528] ss:$16 sps:$4 sm:$0xff]  }
 0x172   : > { %v2150_v25 = vpop.f32.mrb[44].mxu1  ;;  %v2695_v27 = vpop.f32.mrb[44].mxu0 }
 0x173   : > { %3652 = vst.msk [vmem:[%s5447_s21 + $0x54] sm:$0xf] %vm3630_vm0, %v4314_v24  ;;  %v2151_v26 = vadd.f32 %v5435_v15, %v2150_v25  ;;  %v2152_v28 = vpop.f32.mrb[45].mxu1  ;;  %v2697_v30 = vpop.f32.mrb[45].mxu0  ;;  %v4986_v24 = vld [vmem:[%s5259_s30 + $0x544] ss:$16 sps:$4 sm:$0xff]  }
 0x174   : > { %v2153_v31 = vpop.f32.mrb[46].mxu1  ;;  %v2698_v36 = vpop.f32.mrb[46].mxu0 }
 0x175   : > { %v2696_v34 = vadd.f32 %v2695_v27, %v2151_v26  ;;  %v2154_v35 = vadd.f32 %v5435_v15, %v2153_v31  ;;  %v2155_v37 = vpop.f32.mrb[47].mxu1  ;;  %v2700_v39 = vpop.f32.mrb[47].mxu0 }
 0x177   : > { %v4315_v40 = vpack.c.bf16 %v2696_v34, %v2696_v34  ;;  %v2699_v41 = vadd.f32 %v2698_v36, %v2154_v35  ;;  %2365 = vmatmul.mubr.bf16.gmra.mrb[152].mxu1 %v4966_v29  ;;  %2910 = vmatmul.mubr.bf16.gmra.mrb[152].mxu0 %v4967_v32  ;;  %v4988_v29 = vld [vmem:[%s5259_s30 + $0x54c] ss:$16 sps:$4 sm:$0xff]  }
 0x178   : > { %2372 = vmatprep.mubr.bf16.mxu1 %v4968_v33  ;;  %2917 = vmatprep.mubr.bf16.mxu0 %v4970_v38  ;;  %v4990_v38 = vld [vmem:[%s5259_s30 + $0x540] ss:$16 sps:$4 sm:$0xff]  }
 0x179   : > { %3653 = vst.msk [vmem:[%s5447_s21 + $0x58] sm:$0xf] %vm3630_vm0, %v4315_v40  ;;  %v4316_v42 = vpack.c.bf16 %v2699_v41, %v2699_v41  ;;  %v4991_v41 = vld [vmem:[%s5259_s30 + $0x548] ss:$16 sps:$4 sm:$0xff]  }
 0x17a   : > { %v2158_v43 = vpop.f32.mrb[48].mxu1  ;;  %v2703_v45 = vpop.f32.mrb[48].mxu0 }
 0x17b   : > { %3654 = vst.msk [vmem:[%s5447_s21 + $0x5c] sm:$0xf] %vm3630_vm0, %v4316_v42  ;;  %v2159_v44 = vadd.f32 %v5435_v15, %v2158_v43  ;;  %v2160_v46 = vpop.f32.mrb[49].mxu1  ;;  %v2705_v48 = vpop.f32.mrb[49].mxu0  ;;  %v4992_v42 = vld [vmem:[%s5259_s30 + $0x564] ss:$16 sps:$4 sm:$0xff]  }
 0x17c   : > { %v2161_v49 = vpop.f32.mrb[50].mxu1  ;;  %v2706_v54 = vpop.f32.mrb[50].mxu0 }
 0x17d   : > { %v2704_v52 = vadd.f32 %v2703_v45, %v2159_v44  ;;  %v2162_v53 = vadd.f32 %v5435_v15, %v2161_v49  ;;  %v2163_v55 = vpop.f32.mrb[51].mxu1  ;;  %v2708_v57 = vpop.f32.mrb[51].mxu0 }
 0x17f   : > { %v4317_v58 = vpack.c.bf16 %v2704_v52, %v2704_v52  ;;  %v2707_v59 = vadd.f32 %v2706_v54, %v2162_v53  ;;  %2373 = vmatmul.mubr.bf16.gmra.mrb[156].mxu1 %v4972_v47  ;;  %2918 = vmatmul.mubr.bf16.gmra.mrb[156].mxu0 %v4973_v50  ;;  %v4994_v47 = vld [vmem:[%s5259_s30 + $0x56c] ss:$16 sps:$4 sm:$0xff]  }
 0x180   : > { %2380 = vmatprep.mubr.bf16.mxu1 %v4974_v51  ;;  %2925 = vmatprep.mubr.bf16.mxu0 %v4976_v56  ;;  %v4996_v56 = vld [vmem:[%s5259_s30 + $0x560] ss:$16 sps:$4 sm:$0xff]  }
 0x181   : > { %3655 = vst.msk [vmem:[%s5447_s21 + $0x60] sm:$0xf] %vm3630_vm0, %v4317_v58  ;;  %v4318_v60 = vpack.c.bf16 %v2707_v59, %v2707_v59  ;;  %v4997_v59 = vld [vmem:[%s5259_s30 + $0x568] ss:$16 sps:$4 sm:$0xff]  }
 0x182   : > { %v2166_v61 = vpop.f32.mrb[52].mxu1  ;;  %v2711_v63 = vpop.f32.mrb[52].mxu0 }
 0x183   : > { %3656 = vst.msk [vmem:[%s5447_s21 + $0x64] sm:$0xf] %vm3630_vm0, %v4318_v60  ;;  %v2167_v62 = vadd.f32 %v5435_v15, %v2166_v61  ;;  %v2168_v0 = vpop.f32.mrb[53].mxu1  ;;  %v2713_v2 = vpop.f32.mrb[53].mxu0  ;;  %v4998_v60 = vld [vmem:[%s5259_s30 + $0x584] ss:$16 sps:$4 sm:$0xff]  }
 0x184   : > { %v2169_v3 = vpop.f32.mrb[54].mxu1  ;;  %v2714_v8 = vpop.f32.mrb[54].mxu0 }
 0x185   : > { %v2712_v6 = vadd.f32 %v2711_v63, %v2167_v62  ;;  %v2170_v7 = vadd.f32 %v5435_v15, %v2169_v3  ;;  %v2171_v9 = vpop.f32.mrb[55].mxu1  ;;  %v2716_v11 = vpop.f32.mrb[55].mxu0 }
 0x187   : > { %v4319_v12 = vpack.c.bf16 %v2712_v6, %v2712_v6  ;;  %v2715_v13 = vadd.f32 %v2714_v8, %v2170_v7  ;;  %2381 = vmatmul.mubr.bf16.gmra.mrb[160].mxu1 %v4978_v1  ;;  %2926 = vmatmul.mubr.bf16.gmra.mrb[160].mxu0 %v4979_v4  ;;  %v5000_v1 = vld [vmem:[%s5259_s30 + $0x58c] ss:$16 sps:$4 sm:$0xff]  }
 0x188   : > { %2388 = vmatprep.mubr.bf16.mxu1 %v4980_v5  ;;  %2933 = vmatprep.mubr.bf16.mxu0 %v4982_v10  ;;  %v5002_v10 = vld [vmem:[%s5259_s30 + $0x580] ss:$16 sps:$4 sm:$0xff]  }
 0x189   : > { %3657 = vst.msk [vmem:[%s5447_s21 + $0x68] sm:$0xf] %vm3630_vm0, %v4319_v12  ;;  %v4320_v14 = vpack.c.bf16 %v2715_v13, %v2715_v13  ;;  %v5003_v13 = vld [vmem:[%s5259_s30 + $0x588] ss:$16 sps:$4 sm:$0xff]  }
 0x18a   : > { %v2174_v16 = vpop.f32.mrb[56].mxu1  ;;  %v2719_v18 = vpop.f32.mrb[56].mxu0 }
 0x18b   : > { %3658 = vst.msk [vmem:[%s5447_s21 + $0x6c] sm:$0xf] %vm3630_vm0, %v4320_v14  ;;  %v2175_v17 = vadd.f32 %v5435_v15, %v2174_v16  ;;  %v2176_v19 = vpop.f32.mrb[57].mxu1  ;;  %v2721_v21 = vpop.f32.mrb[57].mxu0  ;;  %v5004_v14 = vld [vmem:[%s5259_s30 + $0x5a4] ss:$16 sps:$4 sm:$0xff]  }
 0x18c   : > { %v2177_v22 = vpop.f32.mrb[58].mxu1  ;;  %v2722_v27 = vpop.f32.mrb[58].mxu0 }
 0x18d   : > { %v2720_v25 = vadd.f32 %v2719_v18, %v2175_v17  ;;  %v2178_v26 = vadd.f32 %v5435_v15, %v2177_v22  ;;  %v2179_v28 = vpop.f32.mrb[59].mxu1  ;;  %v2724_v30 = vpop.f32.mrb[59].mxu0 }
 0x18f   : > { %v4321_v31 = vpack.c.bf16 %v2720_v25, %v2720_v25  ;;  %v2723_v32 = vadd.f32 %v2722_v27, %v2178_v26  ;;  %2389 = vmatmul.mubr.bf16.gmra.mrb[164].mxu1 %v4984_v20  ;;  %2934 = vmatmul.mubr.bf16.gmra.mrb[164].mxu0 %v4985_v23  ;;  %v5006_v20 = vld [vmem:[%s5259_s30 + $0x5ac] ss:$16 sps:$4 sm:$0xff]  }
 0x190   : > { %2396 = vmatprep.mubr.bf16.mxu1 %v4986_v24  ;;  %2941 = vmatprep.mubr.bf16.mxu0 %v4988_v29  ;;  %v5008_v29 = vld [vmem:[%s5259_s30 + $0x5a0] ss:$16 sps:$4 sm:$0xff]  }
 0x191   : > { %3659 = vst.msk [vmem:[%s5447_s21 + $0x70] sm:$0xf] %vm3630_vm0, %v4321_v31  ;;  %v4322_v33 = vpack.c.bf16 %v2723_v32, %v2723_v32  ;;  %v5009_v32 = vld [vmem:[%s5259_s30 + $0x5a8] ss:$16 sps:$4 sm:$0xff]  }
 0x192   : > { %v2182_v34 = vpop.f32.mrb[60].mxu1  ;;  %v2727_v36 = vpop.f32.mrb[60].mxu0 }
 0x193   : > { %3660 = vst.msk [vmem:[%s5447_s21 + $0x74] sm:$0xf] %vm3630_vm0, %v4322_v33  ;;  %v2183_v35 = vadd.f32 %v5435_v15, %v2182_v34  ;;  %v2184_v37 = vpop.f32.mrb[61].mxu1  ;;  %v2729_v39 = vpop.f32.mrb[61].mxu0  ;;  %v5010_v33 = vld [vmem:[%s5259_s30 + $0x5c4] ss:$16 sps:$4 sm:$0xff]  }
 0x194   : > { %v2185_v40 = vpop.f32.mrb[62].mxu1  ;;  %v2730_v45 = vpop.f32.mrb[62].mxu0 }
 0x195   : > { %v2728_v43 = vadd.f32 %v2727_v36, %v2183_v35  ;;  %v2186_v44 = vadd.f32 %v5435_v15, %v2185_v40  ;;  %v2187_v46 = vpop.f32.mrb[63].mxu1  ;;  %v2732_v48 = vpop.f32.mrb[63].mxu0 }
 0x197   : > { %v4323_v49 = vpack.c.bf16 %v2728_v43, %v2728_v43  ;;  %v2731_v50 = vadd.f32 %v2730_v45, %v2186_v44  ;;  %2397 = vmatmul.mubr.bf16.gmra.mrb[168].mxu1 %v4990_v38  ;;  %2942 = vmatmul.mubr.bf16.gmra.mrb[168].mxu0 %v4991_v41  ;;  %v5012_v38 = vld [vmem:[%s5259_s30 + $0x5cc] ss:$16 sps:$4 sm:$0xff]  }
 0x198   : > { %2404 = vmatprep.mubr.bf16.mxu1 %v4992_v42  ;;  %2949 = vmatprep.mubr.bf16.mxu0 %v4994_v47  ;;  %v5014_v47 = vld [vmem:[%s5259_s30 + $0x5c0] ss:$16 sps:$4 sm:$0xff]  }
 0x199   : > { %3661 = vst.msk [vmem:[%s5447_s21 + $0x78] sm:$0xf] %vm3630_vm0, %v4323_v49  ;;  %v4324_v51 = vpack.c.bf16 %v2731_v50, %v2731_v50  ;;  %v5015_v50 = vld [vmem:[%s5259_s30 + $0x5c8] ss:$16 sps:$4 sm:$0xff]  }
 0x19a   : > { %v2190_v52 = vpop.f32.mrb[64].mxu1  ;;  %v2735_v54 = vpop.f32.mrb[64].mxu0 }
 0x19b   : > { %3662 = vst.msk [vmem:[%s5447_s21 + $0x7c] sm:$0xf] %vm3630_vm0, %v4324_v51  ;;  %v2191_v53 = vadd.f32 %v5435_v15, %v2190_v52  ;;  %v2192_v55 = vpop.f32.mrb[65].mxu1  ;;  %v2737_v57 = vpop.f32.mrb[65].mxu0  ;;  %v5016_v51 = vld [vmem:[%s5259_s30 + $0x5e4] ss:$16 sps:$4 sm:$0xff]  }
 0x19c   : > { %v2193_v58 = vpop.f32.mrb[66].mxu1  ;;  %v2738_v63 = vpop.f32.mrb[66].mxu0 }
 0x19d   : > { %v2736_v61 = vadd.f32 %v2735_v54, %v2191_v53  ;;  %v2194_v62 = vadd.f32 %v5435_v15, %v2193_v58  ;;  %v2195_v0 = vpop.f32.mrb[67].mxu1  ;;  %v2740_v2 = vpop.f32.mrb[67].mxu0 }
 0x19f   : > { %v4325_v3 = vpack.c.bf16 %v2736_v61, %v2736_v61  ;;  %v2739_v4 = vadd.f32 %v2738_v63, %v2194_v62  ;;  %2405 = vmatmul.mubr.bf16.gmra.mrb[172].mxu1 %v4996_v56  ;;  %2950 = vmatmul.mubr.bf16.gmra.mrb[172].mxu0 %v4997_v59  ;;  %v5018_v56 = vld [vmem:[%s5259_s30 + $0x5ec] ss:$16 sps:$4 sm:$0xff]  }
 0x1a0   : > { %2412 = vmatprep.mubr.bf16.mxu1 %v4998_v60  ;;  %2957 = vmatprep.mubr.bf16.mxu0 %v5000_v1  ;;  %v5020_v1 = vld [vmem:[%s5259_s30 + $0x5e0] ss:$16 sps:$4 sm:$0xff]  }
 0x1a1   : > { %3663 = vst.msk [vmem:[%s5447_s21 + $0x80] sm:$0xf] %vm3630_vm0, %v4325_v3  ;;  %v4326_v5 = vpack.c.bf16 %v2739_v4, %v2739_v4  ;;  %v5021_v4 = vld [vmem:[%s5259_s30 + $0x5e8] ss:$16 sps:$4 sm:$0xff]  }
 0x1a2   : > { %v2198_v6 = vpop.f32.mrb[68].mxu1  ;;  %v2743_v8 = vpop.f32.mrb[68].mxu0 }
 0x1a3   : > { %3664 = vst.msk [vmem:[%s5447_s21 + $0x84] sm:$0xf] %vm3630_vm0, %v4326_v5  ;;  %v2199_v7 = vadd.f32 %v5435_v15, %v2198_v6  ;;  %v2200_v9 = vpop.f32.mrb[69].mxu1  ;;  %v2745_v11 = vpop.f32.mrb[69].mxu0  ;;  %v5022_v5 = vld [vmem:[%s5259_s30 + $0x604] ss:$16 sps:$4 sm:$0xff]  }
 0x1a4   : > { %v2201_v12 = vpop.f32.mrb[70].mxu1  ;;  %v2746_v18 = vpop.f32.mrb[70].mxu0 }
 0x1a5   : > { %v2744_v16 = vadd.f32 %v2743_v8, %v2199_v7  ;;  %v2202_v17 = vadd.f32 %v5435_v15, %v2201_v12  ;;  %v2203_v19 = vpop.f32.mrb[71].mxu1  ;;  %v2748_v21 = vpop.f32.mrb[71].mxu0 }
 0x1a7   : > { %v4327_v22 = vpack.c.bf16 %v2744_v16, %v2744_v16  ;;  %v2747_v23 = vadd.f32 %v2746_v18, %v2202_v17  ;;  %2413 = vmatmul.mubr.bf16.gmra.mrb[176].mxu1 %v5002_v10  ;;  %2958 = vmatmul.mubr.bf16.gmra.mrb[176].mxu0 %v5003_v13  ;;  %v5024_v10 = vld [vmem:[%s5259_s30 + $0x60c] ss:$16 sps:$4 sm:$0xff]  }
 0x1a8   : > { %2420 = vmatprep.mubr.bf16.mxu1 %v5004_v14  ;;  %2965 = vmatprep.mubr.bf16.mxu0 %v5006_v20  ;;  %v5026_v20 = vld [vmem:[%s5259_s30 + $0x600] ss:$16 sps:$4 sm:$0xff]  }
 0x1a9   : > { %3665 = vst.msk [vmem:[%s5447_s21 + $0x88] sm:$0xf] %vm3630_vm0, %v4327_v22  ;;  %v4328_v24 = vpack.c.bf16 %v2747_v23, %v2747_v23  ;;  %v5027_v23 = vld [vmem:[%s5259_s30 + $0x608] ss:$16 sps:$4 sm:$0xff]  }
 0x1aa   : > { %v2206_v25 = vpop.f32.mrb[72].mxu1  ;;  %v2751_v27 = vpop.f32.mrb[72].mxu0 }
 0x1ab   : > { %3666 = vst.msk [vmem:[%s5447_s21 + $0x8c] sm:$0xf] %vm3630_vm0, %v4328_v24  ;;  %v2207_v26 = vadd.f32 %v5435_v15, %v2206_v25  ;;  %v2208_v28 = vpop.f32.mrb[73].mxu1  ;;  %v2753_v30 = vpop.f32.mrb[73].mxu0  ;;  %v5028_v24 = vld [vmem:[%s5259_s30 + $0x624] ss:$16 sps:$4 sm:$0xff]  }
 0x1ac   : > { %v2209_v31 = vpop.f32.mrb[74].mxu1  ;;  %v2754_v36 = vpop.f32.mrb[74].mxu0 }
 0x1ad   : > { %v2752_v34 = vadd.f32 %v2751_v27, %v2207_v26  ;;  %v2210_v35 = vadd.f32 %v5435_v15, %v2209_v31  ;;  %v2211_v37 = vpop.f32.mrb[75].mxu1  ;;  %v2756_v39 = vpop.f32.mrb[75].mxu0  ;;  %v5660_v26 = vld [vmem:[%s5994_s2] ss:$0 sm:$0xff] }
 0x1af   : > { %v4329_v40 = vpack.c.bf16 %v2752_v34, %v2752_v34  ;;  %v2755_v41 = vadd.f32 %v2754_v36, %v2210_v35  ;;  %2421 = vmatmul.mubr.bf16.gmra.mrb[180].mxu1 %v5008_v29  ;;  %2966 = vmatmul.mubr.bf16.gmra.mrb[180].mxu0 %v5009_v32 }
 0x1b0   : > { %2428 = vmatprep.mubr.bf16.mxu1 %v5010_v33  ;;  %2973 = vmatprep.mubr.bf16.mxu0 %v5012_v38  ;;  %v5032_v38 = vld [vmem:[%s5259_s30 + $0x620] ss:$16 sps:$4 sm:$0xff]  }
 0x1b1   : > { %3667 = vst.msk [vmem:[%s5447_s21 + $0x90] sm:$0xf] %vm3630_vm0, %v4329_v40  ;;  %v4330_v42 = vpack.c.bf16 %v2755_v41, %v2755_v41  ;;  %v5033_v41 = vld [vmem:[%s5259_s30 + $0x628] ss:$16 sps:$4 sm:$0xff]  }
 0x1b2   : > { %v2214_v43 = vpop.f32.mrb[76].mxu1  ;;  %v2759_v45 = vpop.f32.mrb[76].mxu0 }
 0x1b3   : > { %3668 = vst.msk [vmem:[%s5447_s21 + $0x94] sm:$0xf] %vm3630_vm0, %v4330_v42  ;;  %v2215_v44 = vadd.f32 %v5435_v15, %v2214_v43  ;;  %v2216_v46 = vpop.f32.mrb[77].mxu1  ;;  %v2761_v48 = vpop.f32.mrb[77].mxu0  ;;  %v5034_v42 = vld [vmem:[%s5259_s30 + $0x644] ss:$16 sps:$4 sm:$0xff]  }
 0x1b4   : > { %v2217_v49 = vpop.f32.mrb[78].mxu1  ;;  %v2762_v54 = vpop.f32.mrb[78].mxu0 }
 0x1b5   : > { %v2760_v52 = vadd.f32 %v2759_v45, %v2215_v44  ;;  %v2218_v53 = vadd.f32 %v5435_v15, %v2217_v49  ;;  %v2219_v55 = vpop.f32.mrb[79].mxu1  ;;  %v2764_v57 = vpop.f32.mrb[79].mxu0 }
 0x1b7   : > { %v4331_v58 = vpack.c.bf16 %v2760_v52, %v2760_v52  ;;  %v2763_v59 = vadd.f32 %v2762_v54, %v2218_v53  ;;  %2429 = vmatmul.mubr.bf16.gmra.mrb[184].mxu1 %v5014_v47  ;;  %2974 = vmatmul.mubr.bf16.gmra.mrb[184].mxu0 %v5015_v50  ;;  %v5036_v47 = vld [vmem:[%s5259_s30 + $0x64c] ss:$16 sps:$4 sm:$0xff]  }
 0x1b8   : > { %2436 = vmatprep.mubr.bf16.mxu1 %v5016_v51  ;;  %2981 = vmatprep.mubr.bf16.mxu0 %v5018_v56  ;;  %v5038_v56 = vld [vmem:[%s5259_s30 + $0x640] ss:$16 sps:$4 sm:$0xff]  }
 0x1b9   : > { %3669 = vst.msk [vmem:[%s5447_s21 + $0x98] sm:$0xf] %vm3630_vm0, %v4331_v58  ;;  %v4332_v60 = vpack.c.bf16 %v2763_v59, %v2763_v59  ;;  %v5039_v59 = vld [vmem:[%s5259_s30 + $0x648] ss:$16 sps:$4 sm:$0xff]  }
 0x1ba   : > { %v2222_v61 = vpop.f32.mrb[80].mxu1  ;;  %v2767_v63 = vpop.f32.mrb[80].mxu0 }
 0x1bb   : > { %3670 = vst.msk [vmem:[%s5447_s21 + $0x9c] sm:$0xf] %vm3630_vm0, %v4332_v60  ;;  %v2223_v62 = vadd.f32 %v5435_v15, %v2222_v61  ;;  %v2224_v0 = vpop.f32.mrb[81].mxu1  ;;  %v2769_v2 = vpop.f32.mrb[81].mxu0  ;;  %v5040_v60 = vld [vmem:[%s5259_s30 + $0x664] ss:$16 sps:$4 sm:$0xff]  }
 0x1bc   : > { %v2225_v3 = vpop.f32.mrb[82].mxu1  ;;  %v2770_v8 = vpop.f32.mrb[82].mxu0 }
 0x1bd   : > { %v2768_v6 = vadd.f32 %v2767_v63, %v2223_v62  ;;  %v2226_v7 = vadd.f32 %v5435_v15, %v2225_v3  ;;  %v2227_v9 = vpop.f32.mrb[83].mxu1  ;;  %v2772_v11 = vpop.f32.mrb[83].mxu0 }
 0x1bf   : > { %v4333_v12 = vpack.c.bf16 %v2768_v6, %v2768_v6  ;;  %v2771_v13 = vadd.f32 %v2770_v8, %v2226_v7  ;;  %2437 = vmatmul.mubr.bf16.gmra.mrb[188].mxu1 %v5020_v1  ;;  %2982 = vmatmul.mubr.bf16.gmra.mrb[188].mxu0 %v5021_v4  ;;  %v5042_v1 = vld [vmem:[%s5259_s30 + $0x66c] ss:$16 sps:$4 sm:$0xff]  }
 0x1c0   : > { %2444 = vmatprep.mubr.bf16.mxu1 %v5022_v5  ;;  %2989 = vmatprep.mubr.bf16.mxu0 %v5024_v10  ;;  %v5044_v10 = vld [vmem:[%s5259_s30 + $0x660] ss:$16 sps:$4 sm:$0xff]  }
 0x1c1   : > { %3671 = vst.msk [vmem:[%s5447_s21 + $0xa0] sm:$0xf] %vm3630_vm0, %v4333_v12  ;;  %v4334_v14 = vpack.c.bf16 %v2771_v13, %v2771_v13  ;;  %v5045_v13 = vld [vmem:[%s5259_s30 + $0x668] ss:$16 sps:$4 sm:$0xff]  }
 0x1c2   : > { %v2230_v16 = vpop.f32.mrb[84].mxu1  ;;  %v2775_v18 = vpop.f32.mrb[84].mxu0 }
 0x1c3   : > { %3672 = vst.msk [vmem:[%s5447_s21 + $0xa4] sm:$0xf] %vm3630_vm0, %v4334_v14  ;;  %v2231_v17 = vadd.f32 %v5435_v15, %v2230_v16  ;;  %v2232_v19 = vpop.f32.mrb[85].mxu1  ;;  %v2777_v21 = vpop.f32.mrb[85].mxu0  ;;  %v5030_v15 = vld [vmem:[%s5259_s30 + $0x62c] ss:$16 sps:$4 sm:$0xff]  }
 0x1c4   : > { %v2233_v22 = vpop.f32.mrb[86].mxu1  ;;  %v2778_v28 = vpop.f32.mrb[86].mxu0  ;;  %v5046_v14 = vld [vmem:[%s5259_s30 + $0x684] ss:$16 sps:$4 sm:$0xff]  }
 0x1c5   : > { %v2776_v25 = vadd.f32 %v2775_v18, %v2231_v17  ;;  %v2234_v27 = vadd.f32 %v5660_v26, %v2233_v22  ;;  %v2235_v29 = vpop.f32.mrb[87].mxu1  ;;  %v2780_v30 = vpop.f32.mrb[87].mxu0 }
 0x1c7   : > { %v4335_v31 = vpack.c.bf16 %v2776_v25, %v2776_v25  ;;  %v2779_v32 = vadd.f32 %v2778_v28, %v2234_v27  ;;  %2445 = vmatmul.mubr.bf16.gmra.mrb[192].mxu1 %v5026_v20  ;;  %2990 = vmatmul.mubr.bf16.gmra.mrb[192].mxu0 %v5027_v23  ;;  %v5048_v20 = vld [vmem:[%s5259_s30 + $0x68c] ss:$16 sps:$4 sm:$0xff]  }
 0x1c8   : > { %2452 = vmatprep.mubr.bf16.mxu1 %v5028_v24  ;;  %2997 = vmatprep.mubr.bf16.mxu0 %v5030_v15  ;;  %v5050_v15 = vld [vmem:[%s5259_s30 + $0x680] ss:$16 sps:$4 sm:$0xff]  }
 0x1c9   : > { %3673 = vst.msk [vmem:[%s5447_s21 + $0xa8] sm:$0xf] %vm3630_vm0, %v4335_v31  ;;  %v4336_v33 = vpack.c.bf16 %v2779_v32, %v2779_v32  ;;  %v5051_v32 = vld [vmem:[%s5259_s30 + $0x688] ss:$16 sps:$4 sm:$0xff]  }
 0x1ca   : > { %v2238_v34 = vpop.f32.mrb[88].mxu1  ;;  %v2783_v36 = vpop.f32.mrb[88].mxu0 }
 0x1cb   : > { %3674 = vst.msk [vmem:[%s5447_s21 + $0xac] sm:$0xf] %vm3630_vm0, %v4336_v33  ;;  %v2239_v35 = vadd.f32 %v5660_v26, %v2238_v34  ;;  %v2240_v37 = vpop.f32.mrb[89].mxu1  ;;  %v2785_v39 = vpop.f32.mrb[89].mxu0  ;;  %v5052_v33 = vld [vmem:[%s5259_s30 + $0x6a4] ss:$16 sps:$4 sm:$0xff]  }
 0x1cc   : > { %v2241_v40 = vpop.f32.mrb[90].mxu1  ;;  %v2786_v45 = vpop.f32.mrb[90].mxu0 }
 0x1cd   : > { %v2784_v43 = vadd.f32 %v2783_v36, %v2239_v35  ;;  %v2242_v44 = vadd.f32 %v5660_v26, %v2241_v40  ;;  %v2243_v46 = vpop.f32.mrb[91].mxu1  ;;  %v2788_v48 = vpop.f32.mrb[91].mxu0 }
 0x1cf   : > { %v4337_v49 = vpack.c.bf16 %v2784_v43, %v2784_v43  ;;  %v2787_v50 = vadd.f32 %v2786_v45, %v2242_v44  ;;  %2453 = vmatmul.mubr.bf16.gmra.mrb[196].mxu1 %v5032_v38  ;;  %2998 = vmatmul.mubr.bf16.gmra.mrb[196].mxu0 %v5033_v41  ;;  %v5054_v38 = vld [vmem:[%s5259_s30 + $0x6ac] ss:$16 sps:$4 sm:$0xff]  }
 0x1d0   : > { %2460 = vmatprep.mubr.bf16.mxu1 %v5034_v42  ;;  %3005 = vmatprep.mubr.bf16.mxu0 %v5036_v47  ;;  %v5056_v47 = vld [vmem:[%s5259_s30 + $0x6a0] ss:$16 sps:$4 sm:$0xff]  }
 0x1d1   : > { %3675 = vst.msk [vmem:[%s5447_s21 + $0xb0] sm:$0xf] %vm3630_vm0, %v4337_v49  ;;  %v4338_v51 = vpack.c.bf16 %v2787_v50, %v2787_v50  ;;  %v5057_v50 = vld [vmem:[%s5259_s30 + $0x6a8] ss:$16 sps:$4 sm:$0xff]  }
 0x1d2   : > { %v2246_v52 = vpop.f32.mrb[92].mxu1  ;;  %v2791_v54 = vpop.f32.mrb[92].mxu0 }
 0x1d3   : > { %3676 = vst.msk [vmem:[%s5447_s21 + $0xb4] sm:$0xf] %vm3630_vm0, %v4338_v51  ;;  %v2247_v53 = vadd.f32 %v5660_v26, %v2246_v52  ;;  %v2248_v55 = vpop.f32.mrb[93].mxu1  ;;  %v2793_v57 = vpop.f32.mrb[93].mxu0  ;;  %v5058_v51 = vld [vmem:[%s5259_s30 + $0x6c4] ss:$16 sps:$4 sm:$0xff]  }
 0x1d4   : > { %v2249_v58 = vpop.f32.mrb[94].mxu1  ;;  %v2794_v63 = vpop.f32.mrb[94].mxu0 }
 0x1d5   : > { %v2792_v61 = vadd.f32 %v2791_v54, %v2247_v53  ;;  %v2250_v62 = vadd.f32 %v5660_v26, %v2249_v58  ;;  %v2251_v0 = vpop.f32.mrb[95].mxu1  ;;  %v2796_v2 = vpop.f32.mrb[95].mxu0 }
 0x1d7   : > { %v4339_v3 = vpack.c.bf16 %v2792_v61, %v2792_v61  ;;  %v2795_v4 = vadd.f32 %v2794_v63, %v2250_v62  ;;  %2461 = vmatmul.mubr.bf16.gmra.mrb[200].mxu1 %v5038_v56  ;;  %3006 = vmatmul.mubr.bf16.gmra.mrb[200].mxu0 %v5039_v59  ;;  %v5060_v56 = vld [vmem:[%s5259_s30 + $0x6cc] ss:$16 sps:$4 sm:$0xff]  }
 0x1d8   : > { %2468 = vmatprep.mubr.bf16.mxu1 %v5040_v60  ;;  %3013 = vmatprep.mubr.bf16.mxu0 %v5042_v1  ;;  %v5062_v1 = vld [vmem:[%s5259_s30 + $0x6c0] ss:$16 sps:$4 sm:$0xff]  }
 0x1d9   : > { %3677 = vst.msk [vmem:[%s5447_s21 + $0xb8] sm:$0xf] %vm3630_vm0, %v4339_v3  ;;  %v4340_v5 = vpack.c.bf16 %v2795_v4, %v2795_v4  ;;  %v5063_v4 = vld [vmem:[%s5259_s30 + $0x6c8] ss:$16 sps:$4 sm:$0xff]  }
 0x1da   : > { %v2254_v6 = vpop.f32.mrb[96].mxu1  ;;  %v2799_v8 = vpop.f32.mrb[96].mxu0 }
 0x1db   : > { %3678 = vst.msk [vmem:[%s5447_s21 + $0xbc] sm:$0xf] %vm3630_vm0, %v4340_v5  ;;  %v2255_v7 = vadd.f32 %v5660_v26, %v2254_v6  ;;  %v2256_v9 = vpop.f32.mrb[97].mxu1  ;;  %v2801_v11 = vpop.f32.mrb[97].mxu0  ;;  %v5064_v5 = vld [vmem:[%s5259_s30 + $0x6e4] ss:$16 sps:$4 sm:$0xff]  }
 0x1dc   : > { %v2257_v12 = vpop.f32.mrb[98].mxu1  ;;  %v2802_v18 = vpop.f32.mrb[98].mxu0 }
 0x1dd   : > { %v2800_v16 = vadd.f32 %v2799_v8, %v2255_v7  ;;  %v2258_v17 = vadd.f32 %v5660_v26, %v2257_v12  ;;  %v2259_v19 = vpop.f32.mrb[99].mxu1  ;;  %v2804_v21 = vpop.f32.mrb[99].mxu0 }
 0x1df   : > { %v4341_v22 = vpack.c.bf16 %v2800_v16, %v2800_v16  ;;  %v2803_v23 = vadd.f32 %v2802_v18, %v2258_v17  ;;  %2469 = vmatmul.mubr.bf16.gmra.mrb[204].mxu1 %v5044_v10  ;;  %3014 = vmatmul.mubr.bf16.gmra.mrb[204].mxu0 %v5045_v13  ;;  %v5066_v10 = vld [vmem:[%s5259_s30 + $0x6ec] ss:$16 sps:$4 sm:$0xff]  }
 0x1e0   : > { %2476 = vmatprep.mubr.bf16.mxu1 %v5046_v14  ;;  %3021 = vmatprep.mubr.bf16.mxu0 %v5048_v20  ;;  %v5068_v20 = vld [vmem:[%s5259_s30 + $0x6e0] ss:$16 sps:$4 sm:$0xff]  }
 0x1e1   : > { %3679 = vst.msk [vmem:[%s5447_s21 + $0xc0] sm:$0xf] %vm3630_vm0, %v4341_v22  ;;  %v4342_v24 = vpack.c.bf16 %v2803_v23, %v2803_v23  ;;  %v5069_v23 = vld [vmem:[%s5259_s30 + $0x6e8] ss:$16 sps:$4 sm:$0xff]  }
 0x1e2   : > { %v2262_v25 = vpop.f32.mrb[100].mxu1  ;;  %v2807_v28 = vpop.f32.mrb[100].mxu0 }
 0x1e3   : > { %3680 = vst.msk [vmem:[%s5447_s21 + $0xc4] sm:$0xf] %vm3630_vm0, %v4342_v24  ;;  %v2263_v27 = vadd.f32 %v5660_v26, %v2262_v25  ;;  %v2264_v29 = vpop.f32.mrb[101].mxu1  ;;  %v2809_v30 = vpop.f32.mrb[101].mxu0  ;;  %v5070_v24 = vld [vmem:[%s5259_s30 + $0x704] ss:$16 sps:$4 sm:$0xff]  }
 0x1e4   : > { %v2265_v31 = vpop.f32.mrb[102].mxu1  ;;  %v2810_v36 = vpop.f32.mrb[102].mxu0 }
 0x1e5   : > { %v2808_v34 = vadd.f32 %v2807_v28, %v2263_v27  ;;  %v2266_v35 = vadd.f32 %v5660_v26, %v2265_v31  ;;  %v2267_v37 = vpop.f32.mrb[103].mxu1  ;;  %v2812_v39 = vpop.f32.mrb[103].mxu0 }
 0x1e7   : > { %v4343_v40 = vpack.c.bf16 %v2808_v34, %v2808_v34  ;;  %v2811_v41 = vadd.f32 %v2810_v36, %v2266_v35  ;;  %2477 = vmatmul.mubr.bf16.gmra.mrb[208].mxu1 %v5050_v15  ;;  %3022 = vmatmul.mubr.bf16.gmra.mrb[208].mxu0 %v5051_v32  ;;  %v5072_v15 = vld [vmem:[%s5259_s30 + $0x70c] ss:$16 sps:$4 sm:$0xff]  }
 0x1e8   : > { %2484 = vmatprep.mubr.bf16.mxu1 %v5052_v33  ;;  %3029 = vmatprep.mubr.bf16.mxu0 %v5054_v38  ;;  %v5074_v38 = vld [vmem:[%s5259_s30 + $0x700] ss:$16 sps:$4 sm:$0xff]  }
 0x1e9   : > { %3681 = vst.msk [vmem:[%s5447_s21 + $0xc8] sm:$0xf] %vm3630_vm0, %v4343_v40  ;;  %v4344_v42 = vpack.c.bf16 %v2811_v41, %v2811_v41  ;;  %v5075_v41 = vld [vmem:[%s5259_s30 + $0x708] ss:$16 sps:$4 sm:$0xff]  }
 0x1ea   : > { %v2270_v43 = vpop.f32.mrb[104].mxu1  ;;  %v2815_v45 = vpop.f32.mrb[104].mxu0 }
 0x1eb   : > { %3682 = vst.msk [vmem:[%s5447_s21 + $0xcc] sm:$0xf] %vm3630_vm0, %v4344_v42  ;;  %v2271_v44 = vadd.f32 %v5660_v26, %v2270_v43  ;;  %v2272_v46 = vpop.f32.mrb[105].mxu1  ;;  %v2817_v48 = vpop.f32.mrb[105].mxu0  ;;  %v5076_v42 = vld [vmem:[%s5259_s30 + $0x724] ss:$16 sps:$4 sm:$0xff]  }
 0x1ec   : > { %v2273_v49 = vpop.f32.mrb[106].mxu1  ;;  %v2818_v54 = vpop.f32.mrb[106].mxu0 }
 0x1ed   : > { %v2816_v52 = vadd.f32 %v2815_v45, %v2271_v44  ;;  %v2274_v53 = vadd.f32 %v5660_v26, %v2273_v49  ;;  %v2275_v55 = vpop.f32.mrb[107].mxu1  ;;  %v2820_v57 = vpop.f32.mrb[107].mxu0 }
 0x1ef   : > { %v4345_v58 = vpack.c.bf16 %v2816_v52, %v2816_v52  ;;  %v2819_v59 = vadd.f32 %v2818_v54, %v2274_v53  ;;  %2485 = vmatmul.mubr.bf16.gmra.mrb[212].mxu1 %v5056_v47  ;;  %3030 = vmatmul.mubr.bf16.gmra.mrb[212].mxu0 %v5057_v50  ;;  %v5078_v47 = vld [vmem:[%s5259_s30 + $0x72c] ss:$16 sps:$4 sm:$0xff]  }
 0x1f0   : > { %2492 = vmatprep.mubr.bf16.mxu1 %v5058_v51  ;;  %3037 = vmatprep.mubr.bf16.mxu0 %v5060_v56  ;;  %v5080_v56 = vld [vmem:[%s5259_s30 + $0x720] ss:$16 sps:$4 sm:$0xff]  }
 0x1f1   : > { %3683 = vst.msk [vmem:[%s5447_s21 + $0xd0] sm:$0xf] %vm3630_vm0, %v4345_v58  ;;  %v4346_v60 = vpack.c.bf16 %v2819_v59, %v2819_v59  ;;  %v5081_v59 = vld [vmem:[%s5259_s30 + $0x728] ss:$16 sps:$4 sm:$0xff]  }
 0x1f2   : > { %v2278_v61 = vpop.f32.mrb[108].mxu1  ;;  %v2823_v63 = vpop.f32.mrb[108].mxu0 }
 0x1f3   : > { %3684 = vst.msk [vmem:[%s5447_s21 + $0xd4] sm:$0xf] %vm3630_vm0, %v4346_v60  ;;  %v2279_v62 = vadd.f32 %v5660_v26, %v2278_v61  ;;  %v2280_v0 = vpop.f32.mrb[109].mxu1  ;;  %v2825_v2 = vpop.f32.mrb[109].mxu0  ;;  %v5082_v60 = vld [vmem:[%s5259_s30 + $0x744] ss:$16 sps:$4 sm:$0xff]  }
 0x1f4   : > { %v2281_v3 = vpop.f32.mrb[110].mxu1  ;;  %v2826_v8 = vpop.f32.mrb[110].mxu0 }
 0x1f5   : > { %v2824_v6 = vadd.f32 %v2823_v63, %v2279_v62  ;;  %v2282_v7 = vadd.f32 %v5660_v26, %v2281_v3  ;;  %v2283_v9 = vpop.f32.mrb[111].mxu1  ;;  %v2828_v11 = vpop.f32.mrb[111].mxu0 }
 0x1f7   : > { %v4347_v12 = vpack.c.bf16 %v2824_v6, %v2824_v6  ;;  %v2827_v13 = vadd.f32 %v2826_v8, %v2282_v7  ;;  %2493 = vmatmul.mubr.bf16.gmra.mrb[216].mxu1 %v5062_v1  ;;  %3038 = vmatmul.mubr.bf16.gmra.mrb[216].mxu0 %v5063_v4  ;;  %v5084_v1 = vld [vmem:[%s5259_s30 + $0x74c] ss:$16 sps:$4 sm:$0xff]  }
 0x1f8   : > { %2500 = vmatprep.mubr.bf16.mxu1 %v5064_v5  ;;  %3045 = vmatprep.mubr.bf16.mxu0 %v5066_v10  ;;  %v5086_v10 = vld [vmem:[%s5259_s30 + $0x740] ss:$16 sps:$4 sm:$0xff]  }
 0x1f9   : > { %3685 = vst.msk [vmem:[%s5447_s21 + $0xd8] sm:$0xf] %vm3630_vm0, %v4347_v12  ;;  %v4348_v14 = vpack.c.bf16 %v2827_v13, %v2827_v13  ;;  %v5087_v13 = vld [vmem:[%s5259_s30 + $0x748] ss:$16 sps:$4 sm:$0xff]  }
 0x1fa   : > { %v2286_v16 = vpop.f32.mrb[112].mxu1  ;;  %v2831_v18 = vpop.f32.mrb[112].mxu0 }
 0x1fb   : > { %3686 = vst.msk [vmem:[%s5447_s21 + $0xdc] sm:$0xf] %vm3630_vm0, %v4348_v14  ;;  %v2287_v17 = vadd.f32 %v5660_v26, %v2286_v16  ;;  %v2288_v19 = vpop.f32.mrb[113].mxu1  ;;  %v2833_v21 = vpop.f32.mrb[113].mxu0  ;;  %v5088_v14 = vld [vmem:[%s5259_s30 + $0x764] ss:$16 sps:$4 sm:$0xff]  }
 0x1fc   : > { %v2289_v22 = vpop.f32.mrb[114].mxu1  ;;  %v2834_v28 = vpop.f32.mrb[114].mxu0 }
 0x1fd   : > { %v2832_v25 = vadd.f32 %v2831_v18, %v2287_v17  ;;  %v2290_v27 = vadd.f32 %v5660_v26, %v2289_v22  ;;  %v2291_v29 = vpop.f32.mrb[115].mxu1  ;;  %v2836_v30 = vpop.f32.mrb[115].mxu0 }
 0x1ff   : > { %v4349_v31 = vpack.c.bf16 %v2832_v25, %v2832_v25  ;;  %v2835_v32 = vadd.f32 %v2834_v28, %v2290_v27  ;;  %2501 = vmatmul.mubr.bf16.gmra.mrb[220].mxu1 %v5068_v20  ;;  %3046 = vmatmul.mubr.bf16.gmra.mrb[220].mxu0 %v5069_v23  ;;  %v5090_v20 = vld [vmem:[%s5259_s30 + $0x76c] ss:$16 sps:$4 sm:$0xff]  }
 0x200   : > { %2508 = vmatprep.mubr.bf16.mxu1 %v5070_v24  ;;  %3053 = vmatprep.mubr.bf16.mxu0 %v5072_v15  ;;  %v5092_v15 = vld [vmem:[%s5259_s30 + $0x760] ss:$16 sps:$4 sm:$0xff]  }
 0x201   : > { %3687 = vst.msk [vmem:[%s5447_s21 + $0xe0] sm:$0xf] %vm3630_vm0, %v4349_v31  ;;  %v4350_v33 = vpack.c.bf16 %v2835_v32, %v2835_v32  ;;  %v5093_v32 = vld [vmem:[%s5259_s30 + $0x768] ss:$16 sps:$4 sm:$0xff]  }
 0x202   : > { %v2294_v34 = vpop.f32.mrb[116].mxu1  ;;  %v2839_v36 = vpop.f32.mrb[116].mxu0 }
 0x203   : > { %3688 = vst.msk [vmem:[%s5447_s21 + $0xe4] sm:$0xf] %vm3630_vm0, %v4350_v33  ;;  %v2295_v35 = vadd.f32 %v5660_v26, %v2294_v34  ;;  %v2296_v37 = vpop.f32.mrb[117].mxu1  ;;  %v2841_v39 = vpop.f32.mrb[117].mxu0  ;;  %v5094_v33 = vld [vmem:[%s5259_s30 + $0x784] ss:$16 sps:$4 sm:$0xff]  }
 0x204   : > { %v2297_v40 = vpop.f32.mrb[118].mxu1  ;;  %v2842_v45 = vpop.f32.mrb[118].mxu0 }
 0x205   : > { %v2840_v43 = vadd.f32 %v2839_v36, %v2295_v35  ;;  %v2298_v44 = vadd.f32 %v5660_v26, %v2297_v40  ;;  %v2299_v46 = vpop.f32.mrb[119].mxu1  ;;  %v2844_v48 = vpop.f32.mrb[119].mxu0 }
 0x207   : > { %v4351_v49 = vpack.c.bf16 %v2840_v43, %v2840_v43  ;;  %v2843_v50 = vadd.f32 %v2842_v45, %v2298_v44  ;;  %2509 = vmatmul.mubr.bf16.gmra.mrb[224].mxu1 %v5074_v38  ;;  %3054 = vmatmul.mubr.bf16.gmra.mrb[224].mxu0 %v5075_v41  ;;  %v5096_v38 = vld [vmem:[%s5259_s30 + $0x78c] ss:$16 sps:$4 sm:$0xff]  }
 0x208   : > { %2516 = vmatprep.mubr.bf16.mxu1 %v5076_v42  ;;  %3061 = vmatprep.mubr.bf16.mxu0 %v5078_v47  ;;  %v5098_v47 = vld [vmem:[%s5259_s30 + $0x780] ss:$16 sps:$4 sm:$0xff]  }
 0x209   : > { %3689 = vst.msk [vmem:[%s5447_s21 + $0xe8] sm:$0xf] %vm3630_vm0, %v4351_v49  ;;  %v4352_v51 = vpack.c.bf16 %v2843_v50, %v2843_v50  ;;  %v5099_v50 = vld [vmem:[%s5259_s30 + $0x788] ss:$16 sps:$4 sm:$0xff]  }
 0x20a   : > { %v2302_v52 = vpop.f32.mrb[120].mxu1  ;;  %v2847_v54 = vpop.f32.mrb[120].mxu0 }
 0x20b   : > { %3690 = vst.msk [vmem:[%s5447_s21 + $0xec] sm:$0xf] %vm3630_vm0, %v4352_v51  ;;  %v2303_v53 = vadd.f32 %v5660_v26, %v2302_v52  ;;  %v2304_v55 = vpop.f32.mrb[121].mxu1  ;;  %v2849_v57 = vpop.f32.mrb[121].mxu0  ;;  %v5100_v51 = vld [vmem:[%s5259_s30 + $0x7a4] ss:$16 sps:$4 sm:$0xff]  }
 0x20c   : > { %v2305_v58 = vpop.f32.mrb[122].mxu1  ;;  %v2850_v63 = vpop.f32.mrb[122].mxu0 }
 0x20d   : > { %v2848_v61 = vadd.f32 %v2847_v54, %v2303_v53  ;;  %v2306_v62 = vadd.f32 %v5660_v26, %v2305_v58  ;;  %v2307_v0 = vpop.f32.mrb[123].mxu1  ;;  %v2852_v2 = vpop.f32.mrb[123].mxu0 }
 0x20f   : > { %v4353_v3 = vpack.c.bf16 %v2848_v61, %v2848_v61  ;;  %v2851_v4 = vadd.f32 %v2850_v63, %v2306_v62  ;;  %2517 = vmatmul.mubr.bf16.gmra.mrb[228].mxu1 %v5080_v56  ;;  %3062 = vmatmul.mubr.bf16.gmra.mrb[228].mxu0 %v5081_v59  ;;  %v5102_v56 = vld [vmem:[%s5259_s30 + $0x7ac] ss:$16 sps:$4 sm:$0xff]  }
 0x210   : > { %2524 = vmatprep.mubr.bf16.mxu1 %v5082_v60  ;;  %3069 = vmatprep.mubr.bf16.mxu0 %v5084_v1  ;;  %v5104_v1 = vld [vmem:[%s5259_s30 + $0x7a0] ss:$16 sps:$4 sm:$0xff]  }
 0x211   : > { %3691 = vst.msk [vmem:[%s5447_s21 + $0xf0] sm:$0xf] %vm3630_vm0, %v4353_v3  ;;  %v4354_v5 = vpack.c.bf16 %v2851_v4, %v2851_v4  ;;  %v5105_v4 = vld [vmem:[%s5259_s30 + $0x7a8] ss:$16 sps:$4 sm:$0xff]  }
 0x212   : > { %v2310_v6 = vpop.f32.mrb[124].mxu1  ;;  %v2855_v8 = vpop.f32.mrb[124].mxu0 }
 0x213   : > { %3692 = vst.msk [vmem:[%s5447_s21 + $0xf4] sm:$0xf] %vm3630_vm0, %v4354_v5  ;;  %v2311_v7 = vadd.f32 %v5660_v26, %v2310_v6  ;;  %v2312_v9 = vpop.f32.mrb[125].mxu1  ;;  %v2857_v11 = vpop.f32.mrb[125].mxu0  ;;  %v5106_v5 = vld [vmem:[%s5259_s30 + $0x7c4] ss:$16 sps:$4 sm:$0xff]  }
 0x214   : > { %v2313_v12 = vpop.f32.mrb[126].mxu1  ;;  %v2858_v18 = vpop.f32.mrb[126].mxu0 }
 0x215   : > { %v2856_v16 = vadd.f32 %v2855_v8, %v2311_v7  ;;  %v2314_v17 = vadd.f32 %v5660_v26, %v2313_v12  ;;  %v2315_v19 = vpop.f32.mrb[127].mxu1  ;;  %v2860_v21 = vpop.f32.mrb[127].mxu0 }
 0x217   : > { %v4355_v22 = vpack.c.bf16 %v2856_v16, %v2856_v16  ;;  %v2859_v23 = vadd.f32 %v2858_v18, %v2314_v17  ;;  %2525 = vmatmul.mubr.bf16.gmra.mrb[232].mxu1 %v5086_v10  ;;  %3070 = vmatmul.mubr.bf16.gmra.mrb[232].mxu0 %v5087_v13  ;;  %v5108_v10 = vld [vmem:[%s5259_s30 + $0x7cc] ss:$16 sps:$4 sm:$0xff]  }
 0x218   : > { %2532 = vmatprep.mubr.bf16.mxu1 %v5088_v14  ;;  %3077 = vmatprep.mubr.bf16.mxu0 %v5090_v20  ;;  %v5110_v20 = vld [vmem:[%s5259_s30 + $0x7c0] ss:$16 sps:$4 sm:$0xff]  }
 0x219   : > { %3693 = vst.msk [vmem:[%s5447_s21 + $0xf8] sm:$0xf] %vm3630_vm0, %v4355_v22  ;;  %v4356_v24 = vpack.c.bf16 %v2859_v23, %v2859_v23  ;;  %v5111_v23 = vld [vmem:[%s5259_s30 + $0x7c8] ss:$16 sps:$4 sm:$0xff]  }
 0x21a   : > { %v2318_v25 = vpop.f32.mrb[128].mxu1  ;;  %v2863_v28 = vpop.f32.mrb[128].mxu0 }
 0x21b   : > { %3694 = vst.msk [vmem:[%s5447_s21 + $0xfc] sm:$0xf] %vm3630_vm0, %v4356_v24  ;;  %v2319_v27 = vadd.f32 %v5660_v26, %v2318_v25  ;;  %v2320_v29 = vpop.f32.mrb[129].mxu1  ;;  %v2865_v30 = vpop.f32.mrb[129].mxu0  ;;  %v5112_v24 = vld [vmem:[%s5259_s30 + $0x7e4] ss:$16 sps:$4 sm:$0xff]  }
 0x21c   : > { %v2321_v31 = vpop.f32.mrb[130].mxu1  ;;  %v2866_v36 = vpop.f32.mrb[130].mxu0 }
 0x21d   : > { %v2864_v34 = vadd.f32 %v2863_v28, %v2319_v27  ;;  %v2322_v35 = vadd.f32 %v5660_v26, %v2321_v31  ;;  %v2323_v37 = vpop.f32.mrb[131].mxu1  ;;  %v2868_v39 = vpop.f32.mrb[131].mxu0 }
 0x21f   : > { %v4357_v40 = vpack.c.bf16 %v2864_v34, %v2864_v34  ;;  %v2867_v41 = vadd.f32 %v2866_v36, %v2322_v35  ;;  %2533 = vmatmul.mubr.bf16.gmra.mrb[236].mxu1 %v5092_v15  ;;  %3078 = vmatmul.mubr.bf16.gmra.mrb[236].mxu0 %v5093_v32  ;;  %v5114_v15 = vld [vmem:[%s5259_s30 + $0x7ec] ss:$16 sps:$4 sm:$0xff]  }
 0x220   : > { %2540 = vmatprep.mubr.bf16.mxu1 %v5094_v33  ;;  %3085 = vmatprep.mubr.bf16.mxu0 %v5096_v38  ;;  %v5116_v38 = vld [vmem:[%s5259_s30 + $0x7e0] ss:$16 sps:$4 sm:$0xff]  }
 0x221   : > { %3695 = vst.msk [vmem:[%s5447_s21 + $0x100] sm:$0xf] %vm3630_vm0, %v4357_v40  ;;  %v4358_v42 = vpack.c.bf16 %v2867_v41, %v2867_v41  ;;  %v5117_v41 = vld [vmem:[%s5259_s30 + $0x7e8] ss:$16 sps:$4 sm:$0xff]  }
 0x222   : > { %v2326_v43 = vpop.f32.mrb[132].mxu1  ;;  %v2871_v45 = vpop.f32.mrb[132].mxu0 }
 0x223   : > { %3696 = vst.msk [vmem:[%s5447_s21 + $0x104] sm:$0xf] %vm3630_vm0, %v4358_v42  ;;  %v2327_v44 = vadd.f32 %v5660_v26, %v2326_v43  ;;  %v2328_v46 = vpop.f32.mrb[133].mxu1  ;;  %v2873_v48 = vpop.f32.mrb[133].mxu0 }
 0x224   : > { %v2329_v49 = vpop.f32.mrb[134].mxu1  ;;  %v2874_v54 = vpop.f32.mrb[134].mxu0 }
 0x225   : > { %v2872_v52 = vadd.f32 %v2871_v45, %v2327_v44  ;;  %v2330_v53 = vadd.f32 %v5660_v26, %v2329_v49  ;;  %v2331_v55 = vpop.f32.mrb[135].mxu1  ;;  %v2876_v57 = vpop.f32.mrb[135].mxu0 }
 0x227   : > { %v4359_v58 = vpack.c.bf16 %v2872_v52, %v2872_v52  ;;  %v2875_v59 = vadd.f32 %v2874_v54, %v2330_v53  ;;  %2541 = vmatmul.mubr.bf16.gmra.mrb[240].mxu1 %v5098_v47  ;;  %3086 = vmatmul.mubr.bf16.gmra.mrb[240].mxu0 %v5099_v50 }
 0x228   : > { %2548 = vmatprep.mubr.bf16.mxu1 %v5100_v51  ;;  %3093 = vmatprep.mubr.bf16.mxu0 %v5102_v56 }
 0x229   : > { %3697 = vst.msk [vmem:[%s5447_s21 + $0x108] sm:$0xf] %vm3630_vm0, %v4359_v58  ;;  %v4360_v60 = vpack.c.bf16 %v2875_v59, %v2875_v59 }
 0x22a   : > { %v2334_v61 = vpop.f32.mrb[136].mxu1  ;;  %v2879_v63 = vpop.f32.mrb[136].mxu0 }
 0x22b   : > { %3698 = vst.msk [vmem:[%s5447_s21 + $0x10c] sm:$0xf] %vm3630_vm0, %v4360_v60  ;;  %v2335_v62 = vadd.f32 %v5660_v26, %v2334_v61  ;;  %v2336_v0 = vpop.f32.mrb[137].mxu1  ;;  %v2881_v2 = vpop.f32.mrb[137].mxu0 }
 0x22c   : > { %v2337_v3 = vpop.f32.mrb[138].mxu1  ;;  %v2882_v8 = vpop.f32.mrb[138].mxu0 }
 0x22d   : > { %v2880_v6 = vadd.f32 %v2879_v63, %v2335_v62  ;;  %v2338_v7 = vadd.f32 %v5660_v26, %v2337_v3  ;;  %v2339_v9 = vpop.f32.mrb[139].mxu1  ;;  %v2884_v11 = vpop.f32.mrb[139].mxu0 }
 0x22f   : > { %v4361_v12 = vpack.c.bf16 %v2880_v6, %v2880_v6  ;;  %v2883_v13 = vadd.f32 %v2882_v8, %v2338_v7  ;;  %2549 = vmatmul.mubr.bf16.gmra.mrb[244].mxu1 %v5104_v1  ;;  %3094 = vmatmul.mubr.bf16.gmra.mrb[244].mxu0 %v5105_v4 }
 0x230   : > { %2556 = vmatprep.mubr.bf16.mxu1 %v5106_v5  ;;  %3101 = vmatprep.mubr.bf16.mxu0 %v5108_v10 }
 0x231   : > { %3699 = vst.msk [vmem:[%s5447_s21 + $0x110] sm:$0xf] %vm3630_vm0, %v4361_v12  ;;  %v4362_v14 = vpack.c.bf16 %v2883_v13, %v2883_v13 }
 0x232   : > { %v2342_v16 = vpop.f32.mrb[140].mxu1  ;;  %v2887_v18 = vpop.f32.mrb[140].mxu0 }
 0x233   : > { %3700 = vst.msk [vmem:[%s5447_s21 + $0x114] sm:$0xf] %vm3630_vm0, %v4362_v14  ;;  %v2343_v17 = vadd.f32 %v5660_v26, %v2342_v16  ;;  %v2344_v19 = vpop.f32.mrb[141].mxu1  ;;  %v2889_v21 = vpop.f32.mrb[141].mxu0 }
 0x234   : > { %v2345_v22 = vpop.f32.mrb[142].mxu1  ;;  %v2890_v28 = vpop.f32.mrb[142].mxu0 }
 0x235   : > { %v2888_v25 = vadd.f32 %v2887_v18, %v2343_v17  ;;  %v2346_v27 = vadd.f32 %v5660_v26, %v2345_v22  ;;  %v2347_v29 = vpop.f32.mrb[143].mxu1  ;;  %v2892_v30 = vpop.f32.mrb[143].mxu0 }
 0x237   : > { %v4363_v31 = vpack.c.bf16 %v2888_v25, %v2888_v25  ;;  %v2891_v32 = vadd.f32 %v2890_v28, %v2346_v27  ;;  %2557 = vmatmul.mubr.bf16.gmra.mrb[248].mxu1 %v5110_v20  ;;  %3102 = vmatmul.mubr.bf16.gmra.mrb[248].mxu0 %v5111_v23 }
 0x238   : > { %2564 = vmatprep.mubr.bf16.mxu1 %v5112_v24  ;;  %3109 = vmatprep.mubr.bf16.mxu0 %v5114_v15 }
 0x239   : > { %3701 = vst.msk [vmem:[%s5447_s21 + $0x118] sm:$0xf] %vm3630_vm0, %v4363_v31  ;;  %v4364_v33 = vpack.c.bf16 %v2891_v32, %v2891_v32 }
 0x23a   : > { %v2350_v34 = vpop.f32.mrb[144].mxu1  ;;  %v2895_v36 = vpop.f32.mrb[144].mxu0 }
 0x23b   : > { %3702 = vst.msk [vmem:[%s5447_s21 + $0x11c] sm:$0xf] %vm3630_vm0, %v4364_v33  ;;  %v2351_v35 = vadd.f32 %v5660_v26, %v2350_v34  ;;  %v2352_v37 = vpop.f32.mrb[145].mxu1  ;;  %v2897_v39 = vpop.f32.mrb[145].mxu0 }
 0x23c   : > { %v2353_v40 = vpop.f32.mrb[146].mxu1  ;;  %v2898_v44 = vpop.f32.mrb[146].mxu0 }
 0x23d   : > { %v2896_v42 = vadd.f32 %v2895_v36, %v2351_v35  ;;  %v2354_v43 = vadd.f32 %v5660_v26, %v2353_v40  ;;  %v2355_v45 = vpop.f32.mrb[147].mxu1  ;;  %v2900_v46 = vpop.f32.mrb[147].mxu0 }
 0x23f   : > { %v4365_v47 = vpack.c.bf16 %v2896_v42, %v2896_v42  ;;  %v2899_v48 = vadd.f32 %v2898_v44, %v2354_v43  ;;  %2565 = vmatmul.mubr.bf16.gmra.mrb[252].mxu1 %v5116_v38  ;;  %3110 = vmatmul.mubr.bf16.gmra.mrb[252].mxu0 %v5117_v41 }
 0x241   : > { %3703 = vst.msk [vmem:[%s5447_s21 + $0x120] sm:$0xf] %vm3630_vm0, %v4365_v47  ;;  %v4366_v49 = vpack.c.bf16 %v2899_v48, %v2899_v48 }
 0x242   : > { %v2358_v50 = vpop.f32.mrb[148].mxu1  ;;  %v2903_v52 = vpop.f32.mrb[148].mxu0 }
 0x243   : > { %3704 = vst.msk [vmem:[%s5447_s21 + $0x124] sm:$0xf] %vm3630_vm0, %v4366_v49  ;;  %v2359_v51 = vadd.f32 %v5660_v26, %v2358_v50  ;;  %v2360_v53 = vpop.f32.mrb[149].mxu1  ;;  %v2905_v54 = vpop.f32.mrb[149].mxu0 }
 0x244   : > { %v2361_v55 = vpop.f32.mrb[150].mxu1  ;;  %v2906_v58 = vpop.f32.mrb[150].mxu0 }
 0x245   : > { %v2904_v56 = vadd.f32 %v2903_v52, %v2359_v51  ;;  %v2362_v57 = vadd.f32 %v5660_v26, %v2361_v55  ;;  %v2363_v59 = vpop.f32.mrb[151].mxu1  ;;  %v2908_v60 = vpop.f32.mrb[151].mxu0 }
 0x247   : > { %v4367_v61 = vpack.c.bf16 %v2904_v56, %v2904_v56  ;;  %v2907_v62 = vadd.f32 %v2906_v58, %v2362_v57 }
 0x249   : > { %3705 = vst.msk [vmem:[%s5447_s21 + $0x128] sm:$0xf] %vm3630_vm0, %v4367_v61  ;;  %v4368_v63 = vpack.c.bf16 %v2907_v62, %v2907_v62 }
 0x24a   : > { %v2366_v0 = vpop.f32.mrb[152].mxu1  ;;  %v2911_v2 = vpop.f32.mrb[152].mxu0 }
 0x24b   : > { %3706 = vst.msk [vmem:[%s5447_s21 + $0x12c] sm:$0xf] %vm3630_vm0, %v4368_v63  ;;  %v2367_v1 = vadd.f32 %v5660_v26, %v2366_v0  ;;  %v2368_v3 = vpop.f32.mrb[153].mxu1  ;;  %v2913_v4 = vpop.f32.mrb[153].mxu0 }
 0x24c   : > { %v2369_v5 = vpop.f32.mrb[154].mxu1  ;;  %v2914_v8 = vpop.f32.mrb[154].mxu0 }
 0x24d   : > { %v2912_v6 = vadd.f32 %v2911_v2, %v2367_v1  ;;  %v2370_v7 = vadd.f32 %v5660_v26, %v2369_v5  ;;  %v2371_v9 = vpop.f32.mrb[155].mxu1  ;;  %v2916_v10 = vpop.f32.mrb[155].mxu0 }
 0x24f   : > { %v4369_v11 = vpack.c.bf16 %v2912_v6, %v2912_v6  ;;  %v2915_v12 = vadd.f32 %v2914_v8, %v2370_v7 }
 0x251   : > { %3707 = vst.msk [vmem:[%s5447_s21 + $0x130] sm:$0xf] %vm3630_vm0, %v4369_v11  ;;  %v4370_v13 = vpack.c.bf16 %v2915_v12, %v2915_v12 }
 0x252   : > { %v2374_v14 = vpop.f32.mrb[156].mxu1  ;;  %v2919_v17 = vpop.f32.mrb[156].mxu0 }
 0x253   : > { %3708 = vst.msk [vmem:[%s5447_s21 + $0x134] sm:$0xf] %vm3630_vm0, %v4370_v13  ;;  %v2375_v16 = vadd.f32 %v5660_v26, %v2374_v14  ;;  %v2376_v18 = vpop.f32.mrb[157].mxu1  ;;  %v2921_v19 = vpop.f32.mrb[157].mxu0 }
 0x254   : > { %v2377_v20 = vpop.f32.mrb[158].mxu1  ;;  %v2922_v23 = vpop.f32.mrb[158].mxu0 }
 0x255   : > { %v2920_v21 = vadd.f32 %v2919_v17, %v2375_v16  ;;  %v2378_v22 = vadd.f32 %v5660_v26, %v2377_v20  ;;  %v2379_v24 = vpop.f32.mrb[159].mxu1  ;;  %v2924_v25 = vpop.f32.mrb[159].mxu0 }
 0x257   : > { %v4371_v27 = vpack.c.bf16 %v2920_v21, %v2920_v21  ;;  %v2923_v28 = vadd.f32 %v2922_v23, %v2378_v22 }
 0x259   : > { %3709 = vst.msk [vmem:[%s5447_s21 + $0x138] sm:$0xf] %vm3630_vm0, %v4371_v27  ;;  %v4372_v29 = vpack.c.bf16 %v2923_v28, %v2923_v28 }
 0x25a   : > { %v2382_v15 = vpop.f32.mrb[160].mxu1  ;;  %v2927_v31 = vpop.f32.mrb[160].mxu0 }
 0x25b   : > { %3710 = vst.msk [vmem:[%s5447_s21 + $0x13c] sm:$0xf] %vm3630_vm0, %v4372_v29  ;;  %v2383_v30 = vadd.f32 %v5660_v26, %v2382_v15  ;;  %v2384_v32 = vpop.f32.mrb[161].mxu1  ;;  %v2929_v33 = vpop.f32.mrb[161].mxu0 }
 0x25c   : > { %v2385_v34 = vpop.f32.mrb[162].mxu1  ;;  %v2930_v37 = vpop.f32.mrb[162].mxu0 }
 0x25d   : > { %v2928_v35 = vadd.f32 %v2927_v31, %v2383_v30  ;;  %v2386_v36 = vadd.f32 %v5660_v26, %v2385_v34  ;;  %v2387_v38 = vpop.f32.mrb[163].mxu1  ;;  %v2932_v39 = vpop.f32.mrb[163].mxu0 }
 0x25f   : > { %v4373_v40 = vpack.c.bf16 %v2928_v35, %v2928_v35  ;;  %v2931_v41 = vadd.f32 %v2930_v37, %v2386_v36 }
 0x261   : > { %3711 = vst.msk [vmem:[%s5447_s21 + $0x140] sm:$0xf] %vm3630_vm0, %v4373_v40  ;;  %v4374_v42 = vpack.c.bf16 %v2931_v41, %v2931_v41 }
 0x262   : > { %v2390_v43 = vpop.f32.mrb[164].mxu1  ;;  %v2935_v45 = vpop.f32.mrb[164].mxu0 }
 0x263   : > { %3712 = vst.msk [vmem:[%s5447_s21 + $0x144] sm:$0xf] %vm3630_vm0, %v4374_v42  ;;  %v2391_v44 = vadd.f32 %v5660_v26, %v2390_v43  ;;  %v2392_v46 = vpop.f32.mrb[165].mxu1  ;;  %v2937_v47 = vpop.f32.mrb[165].mxu0 }
 0x264   : > { %v2393_v48 = vpop.f32.mrb[166].mxu1  ;;  %v2938_v51 = vpop.f32.mrb[166].mxu0 }
 0x265   : > { %v2936_v49 = vadd.f32 %v2935_v45, %v2391_v44  ;;  %v2394_v50 = vadd.f32 %v5660_v26, %v2393_v48  ;;  %v2395_v52 = vpop.f32.mrb[167].mxu1  ;;  %v2940_v53 = vpop.f32.mrb[167].mxu0 }
 0x267   : > { %v4375_v54 = vpack.c.bf16 %v2936_v49, %v2936_v49  ;;  %v2939_v55 = vadd.f32 %v2938_v51, %v2394_v50  ;;  %v5873_v51 = vld [vmem:[%s5994_s2] ss:$0 sm:$0xff] }
 0x269   : > { %3713 = vst.msk [vmem:[%s5447_s21 + $0x148] sm:$0xf] %vm3630_vm0, %v4375_v54  ;;  %v4376_v56 = vpack.c.bf16 %v2939_v55, %v2939_v55 }
 0x26a   : > { %v2398_v57 = vpop.f32.mrb[168].mxu1  ;;  %v2943_v59 = vpop.f32.mrb[168].mxu0 }
 0x26b   : > { %3714 = vst.msk [vmem:[%s5447_s21 + $0x14c] sm:$0xf] %vm3630_vm0, %v4376_v56  ;;  %v2399_v58 = vadd.f32 %v5660_v26, %v2398_v57  ;;  %v2400_v60 = vpop.f32.mrb[169].mxu1  ;;  %v2945_v61 = vpop.f32.mrb[169].mxu0 }
 0x26c   : > { %v2401_v62 = vpop.f32.mrb[170].mxu1  ;;  %v2946_v1 = vpop.f32.mrb[170].mxu0 }
 0x26d   : > { %v2944_v63 = vadd.f32 %v2943_v59, %v2399_v58  ;;  %v2402_v0 = vadd.f32 %v5660_v26, %v2401_v62  ;;  %v2403_v2 = vpop.f32.mrb[171].mxu1  ;;  %v2948_v3 = vpop.f32.mrb[171].mxu0 }
 0x26f   : > { %v4377_v4 = vpack.c.bf16 %v2944_v63, %v2944_v63  ;;  %v2947_v5 = vadd.f32 %v2946_v1, %v2402_v0 }
 0x271   : > { %3715 = vst.msk [vmem:[%s5447_s21 + $0x150] sm:$0xf] %vm3630_vm0, %v4377_v4  ;;  %v4378_v6 = vpack.c.bf16 %v2947_v5, %v2947_v5 }
 0x272   : > { %v2406_v7 = vpop.f32.mrb[172].mxu1  ;;  %v2951_v9 = vpop.f32.mrb[172].mxu0 }
 0x273   : > { %3716 = vst.msk [vmem:[%s5447_s21 + $0x154] sm:$0xf] %vm3630_vm0, %v4378_v6  ;;  %v2407_v8 = vadd.f32 %v5660_v26, %v2406_v7  ;;  %v2408_v10 = vpop.f32.mrb[173].mxu1  ;;  %v2953_v11 = vpop.f32.mrb[173].mxu0 }
 0x274   : > { %v2409_v12 = vpop.f32.mrb[174].mxu1  ;;  %v2954_v16 = vpop.f32.mrb[174].mxu0 }
 0x275   : > { %v2952_v13 = vadd.f32 %v2951_v9, %v2407_v8  ;;  %v2410_v14 = vadd.f32 %v5660_v26, %v2409_v12  ;;  %v2411_v17 = vpop.f32.mrb[175].mxu1  ;;  %v2956_v18 = vpop.f32.mrb[175].mxu0 }
 0x277   : > { %v4379_v19 = vpack.c.bf16 %v2952_v13, %v2952_v13  ;;  %v2955_v20 = vadd.f32 %v2954_v16, %v2410_v14 }
 0x279   : > { %3717 = vst.msk [vmem:[%s5447_s21 + $0x158] sm:$0xf] %vm3630_vm0, %v4379_v19  ;;  %v4380_v21 = vpack.c.bf16 %v2955_v20, %v2955_v20 }
 0x27a   : > { %v2414_v22 = vpop.f32.mrb[176].mxu1  ;;  %v2959_v24 = vpop.f32.mrb[176].mxu0 }
 0x27b   : > { %3718 = vst.msk [vmem:[%s5447_s21 + $0x15c] sm:$0xf] %vm3630_vm0, %v4380_v21  ;;  %v2415_v23 = vadd.f32 %v5660_v26, %v2414_v22  ;;  %v2416_v25 = vpop.f32.mrb[177].mxu1  ;;  %v2961_v27 = vpop.f32.mrb[177].mxu0 }
 0x27c   : > { %v2417_v28 = vpop.f32.mrb[178].mxu1  ;;  %v2962_v30 = vpop.f32.mrb[178].mxu0 }
 0x27d   : > { %v2960_v29 = vadd.f32 %v2959_v24, %v2415_v23  ;;  %v2418_v15 = vadd.f32 %v5660_v26, %v2417_v28  ;;  %v2419_v31 = vpop.f32.mrb[179].mxu1  ;;  %v2964_v32 = vpop.f32.mrb[179].mxu0 }
 0x27f   : > { %v4381_v33 = vpack.c.bf16 %v2960_v29, %v2960_v29  ;;  %v2963_v34 = vadd.f32 %v2962_v30, %v2418_v15 }
 0x281   : > { %3719 = vst.msk [vmem:[%s5447_s21 + $0x160] sm:$0xf] %vm3630_vm0, %v4381_v33  ;;  %v4382_v35 = vpack.c.bf16 %v2963_v34, %v2963_v34 }
 0x282   : > { %v2422_v36 = vpop.f32.mrb[180].mxu1  ;;  %v2967_v38 = vpop.f32.mrb[180].mxu0 }
 0x283   : > { %3720 = vst.msk [vmem:[%s5447_s21 + $0x164] sm:$0xf] %vm3630_vm0, %v4382_v35  ;;  %v2423_v37 = vadd.f32 %v5660_v26, %v2422_v36  ;;  %v2424_v39 = vpop.f32.mrb[181].mxu1  ;;  %v2969_v40 = vpop.f32.mrb[181].mxu0 }
 0x284   : > { %v2425_v41 = vpop.f32.mrb[182].mxu1  ;;  %v2970_v44 = vpop.f32.mrb[182].mxu0 }
 0x285   : > { %v2968_v42 = vadd.f32 %v2967_v38, %v2423_v37  ;;  %v2426_v43 = vadd.f32 %v5660_v26, %v2425_v41  ;;  %v2427_v45 = vpop.f32.mrb[183].mxu1  ;;  %v2972_v46 = vpop.f32.mrb[183].mxu0 }
 0x287   : > { %v4383_v47 = vpack.c.bf16 %v2968_v42, %v2968_v42  ;;  %v2971_v48 = vadd.f32 %v2970_v44, %v2426_v43 }
 0x289   : > { %3721 = vst.msk [vmem:[%s5447_s21 + $0x168] sm:$0xf] %vm3630_vm0, %v4383_v47  ;;  %v4384_v49 = vpack.c.bf16 %v2971_v48, %v2971_v48 }
 0x28a   : > { %v2430_v50 = vpop.f32.mrb[184].mxu1  ;;  %v2975_v52 = vpop.f32.mrb[184].mxu0 }
 0x28b   : > { %3722 = vst.msk [vmem:[%s5447_s21 + $0x16c] sm:$0xf] %vm3630_vm0, %v4384_v49  ;;  %v2431_v26 = vadd.f32 %v5873_v51, %v2430_v50  ;;  %v2432_v53 = vpop.f32.mrb[185].mxu1  ;;  %v2977_v54 = vpop.f32.mrb[185].mxu0 }
 0x28c   : > { %v2433_v55 = vpop.f32.mrb[186].mxu1  ;;  %v2978_v58 = vpop.f32.mrb[186].mxu0 }
 0x28d   : > { %v2976_v56 = vadd.f32 %v2975_v52, %v2431_v26  ;;  %v2434_v57 = vadd.f32 %v5873_v51, %v2433_v55  ;;  %v2435_v59 = vpop.f32.mrb[187].mxu1  ;;  %v2980_v60 = vpop.f32.mrb[187].mxu0 }
 0x28f   : > { %v4385_v61 = vpack.c.bf16 %v2976_v56, %v2976_v56  ;;  %v2979_v62 = vadd.f32 %v2978_v58, %v2434_v57 }
 0x291   : > { %3723 = vst.msk [vmem:[%s5447_s21 + $0x170] sm:$0xf] %vm3630_vm0, %v4385_v61  ;;  %v4386_v63 = vpack.c.bf16 %v2979_v62, %v2979_v62 }
 0x292   : > { %v2438_v0 = vpop.f32.mrb[188].mxu1  ;;  %v2983_v2 = vpop.f32.mrb[188].mxu0 }
 0x293   : > { %3724 = vst.msk [vmem:[%s5447_s21 + $0x174] sm:$0xf] %vm3630_vm0, %v4386_v63  ;;  %v2439_v1 = vadd.f32 %v5873_v51, %v2438_v0  ;;  %v2440_v3 = vpop.f32.mrb[189].mxu1  ;;  %v2985_v4 = vpop.f32.mrb[189].mxu0 }
 0x294   : > { %v2441_v5 = vpop.f32.mrb[190].mxu1  ;;  %v2986_v8 = vpop.f32.mrb[190].mxu0 }
 0x295   : > { %v2984_v6 = vadd.f32 %v2983_v2, %v2439_v1  ;;  %v2442_v7 = vadd.f32 %v5873_v51, %v2441_v5  ;;  %v2443_v9 = vpop.f32.mrb[191].mxu1  ;;  %v2988_v10 = vpop.f32.mrb[191].mxu0 }
 0x297   : > { %v4387_v11 = vpack.c.bf16 %v2984_v6, %v2984_v6  ;;  %v2987_v12 = vadd.f32 %v2986_v8, %v2442_v7 }
 0x299   : > { %3725 = vst.msk [vmem:[%s5447_s21 + $0x178] sm:$0xf] %vm3630_vm0, %v4387_v11  ;;  %v4388_v13 = vpack.c.bf16 %v2987_v12, %v2987_v12 }
 0x29a   : > { %v2446_v14 = vpop.f32.mrb[192].mxu1  ;;  %v2991_v17 = vpop.f32.mrb[192].mxu0 }
 0x29b   : > { %3726 = vst.msk [vmem:[%s5447_s21 + $0x17c] sm:$0xf] %vm3630_vm0, %v4388_v13  ;;  %v2447_v16 = vadd.f32 %v5873_v51, %v2446_v14  ;;  %v2448_v18 = vpop.f32.mrb[193].mxu1  ;;  %v2993_v19 = vpop.f32.mrb[193].mxu0 }
 0x29c   : > { %v2449_v20 = vpop.f32.mrb[194].mxu1  ;;  %v2994_v23 = vpop.f32.mrb[194].mxu0 }
 0x29d   : > { %v2992_v21 = vadd.f32 %v2991_v17, %v2447_v16  ;;  %v2450_v22 = vadd.f32 %v5873_v51, %v2449_v20  ;;  %v2451_v24 = vpop.f32.mrb[195].mxu1  ;;  %v2996_v25 = vpop.f32.mrb[195].mxu0 }
 0x29f   : > { %v4389_v27 = vpack.c.bf16 %v2992_v21, %v2992_v21  ;;  %v2995_v28 = vadd.f32 %v2994_v23, %v2450_v22 }
 0x2a1   : > { %3727 = vst.msk [vmem:[%s5447_s21 + $0x180] sm:$0xf] %vm3630_vm0, %v4389_v27  ;;  %v4390_v29 = vpack.c.bf16 %v2995_v28, %v2995_v28 }
 0x2a2   : > { %v2454_v15 = vpop.f32.mrb[196].mxu1  ;;  %v2999_v31 = vpop.f32.mrb[196].mxu0 }
 0x2a3   : > { %3728 = vst.msk [vmem:[%s5447_s21 + $0x184] sm:$0xf] %vm3630_vm0, %v4390_v29  ;;  %v2455_v30 = vadd.f32 %v5873_v51, %v2454_v15  ;;  %v2456_v32 = vpop.f32.mrb[197].mxu1  ;;  %v3001_v33 = vpop.f32.mrb[197].mxu0 }
 0x2a4   : > { %v2457_v34 = vpop.f32.mrb[198].mxu1  ;;  %v3002_v37 = vpop.f32.mrb[198].mxu0 }
 0x2a5   : > { %v3000_v35 = vadd.f32 %v2999_v31, %v2455_v30  ;;  %v2458_v36 = vadd.f32 %v5873_v51, %v2457_v34  ;;  %v2459_v38 = vpop.f32.mrb[199].mxu1  ;;  %v3004_v39 = vpop.f32.mrb[199].mxu0 }
 0x2a7   : > { %v4391_v40 = vpack.c.bf16 %v3000_v35, %v3000_v35  ;;  %v3003_v41 = vadd.f32 %v3002_v37, %v2458_v36 }
 0x2a9   : > { %3729 = vst.msk [vmem:[%s5447_s21 + $0x188] sm:$0xf] %vm3630_vm0, %v4391_v40  ;;  %v4392_v42 = vpack.c.bf16 %v3003_v41, %v3003_v41 }
 0x2aa   : > { %v2462_v43 = vpop.f32.mrb[200].mxu1  ;;  %v3007_v45 = vpop.f32.mrb[200].mxu0 }
 0x2ab   : > { %3730 = vst.msk [vmem:[%s5447_s21 + $0x18c] sm:$0xf] %vm3630_vm0, %v4392_v42  ;;  %v2463_v44 = vadd.f32 %v5873_v51, %v2462_v43  ;;  %v2464_v46 = vpop.f32.mrb[201].mxu1  ;;  %v3009_v47 = vpop.f32.mrb[201].mxu0 }
 0x2ac   : > { %v2465_v48 = vpop.f32.mrb[202].mxu1  ;;  %v3010_v26 = vpop.f32.mrb[202].mxu0 }
 0x2ad   : > { %v3008_v49 = vadd.f32 %v3007_v45, %v2463_v44  ;;  %v2466_v50 = vadd.f32 %v5873_v51, %v2465_v48  ;;  %v2467_v52 = vpop.f32.mrb[203].mxu1  ;;  %v3012_v53 = vpop.f32.mrb[203].mxu0 }
 0x2af   : > { %v4393_v54 = vpack.c.bf16 %v3008_v49, %v3008_v49  ;;  %v3011_v55 = vadd.f32 %v3010_v26, %v2466_v50 }
 0x2b1   : > { %3731 = vst.msk [vmem:[%s5447_s21 + $0x190] sm:$0xf] %vm3630_vm0, %v4393_v54  ;;  %v4394_v56 = vpack.c.bf16 %v3011_v55, %v3011_v55 }
 0x2b2   : > { %v2470_v57 = vpop.f32.mrb[204].mxu1  ;;  %v3015_v59 = vpop.f32.mrb[204].mxu0 }
 0x2b3   : > { %3732 = vst.msk [vmem:[%s5447_s21 + $0x194] sm:$0xf] %vm3630_vm0, %v4394_v56  ;;  %v2471_v58 = vadd.f32 %v5873_v51, %v2470_v57  ;;  %v2472_v60 = vpop.f32.mrb[205].mxu1  ;;  %v3017_v61 = vpop.f32.mrb[205].mxu0 }
 0x2b4   : > { %v2473_v62 = vpop.f32.mrb[206].mxu1  ;;  %v3018_v1 = vpop.f32.mrb[206].mxu0 }
 0x2b5   : > { %v3016_v63 = vadd.f32 %v3015_v59, %v2471_v58  ;;  %v2474_v0 = vadd.f32 %v5873_v51, %v2473_v62  ;;  %v2475_v2 = vpop.f32.mrb[207].mxu1  ;;  %v3020_v3 = vpop.f32.mrb[207].mxu0 }
 0x2b7   : > { %v4395_v4 = vpack.c.bf16 %v3016_v63, %v3016_v63  ;;  %v3019_v5 = vadd.f32 %v3018_v1, %v2474_v0 }
 0x2b9   : > { %3733 = vst.msk [vmem:[%s5447_s21 + $0x198] sm:$0xf] %vm3630_vm0, %v4395_v4  ;;  %v4396_v6 = vpack.c.bf16 %v3019_v5, %v3019_v5 }
 0x2ba   : > { %v2478_v7 = vpop.f32.mrb[208].mxu1  ;;  %v3023_v9 = vpop.f32.mrb[208].mxu0 }
 0x2bb   : > { %3734 = vst.msk [vmem:[%s5447_s21 + $0x19c] sm:$0xf] %vm3630_vm0, %v4396_v6  ;;  %v2479_v8 = vadd.f32 %v5873_v51, %v2478_v7  ;;  %v2480_v10 = vpop.f32.mrb[209].mxu1  ;;  %v3025_v11 = vpop.f32.mrb[209].mxu0 }
 0x2bc   : > { %v2481_v12 = vpop.f32.mrb[210].mxu1  ;;  %v3026_v16 = vpop.f32.mrb[210].mxu0 }
 0x2bd   : > { %v3024_v13 = vadd.f32 %v3023_v9, %v2479_v8  ;;  %v2482_v14 = vadd.f32 %v5873_v51, %v2481_v12  ;;  %v2483_v17 = vpop.f32.mrb[211].mxu1  ;;  %v3028_v18 = vpop.f32.mrb[211].mxu0 }
 0x2bf   : > { %v4397_v19 = vpack.c.bf16 %v3024_v13, %v3024_v13  ;;  %v3027_v20 = vadd.f32 %v3026_v16, %v2482_v14 }
 0x2c1   : > { %3735 = vst.msk [vmem:[%s5447_s21 + $0x1a0] sm:$0xf] %vm3630_vm0, %v4397_v19  ;;  %v4398_v21 = vpack.c.bf16 %v3027_v20, %v3027_v20 }
 0x2c2   : > { %v2486_v22 = vpop.f32.mrb[212].mxu1  ;;  %v3031_v24 = vpop.f32.mrb[212].mxu0 }
 0x2c3   : > { %3736 = vst.msk [vmem:[%s5447_s21 + $0x1a4] sm:$0xf] %vm3630_vm0, %v4398_v21  ;;  %v2487_v23 = vadd.f32 %v5873_v51, %v2486_v22  ;;  %v2488_v25 = vpop.f32.mrb[213].mxu1  ;;  %v3033_v27 = vpop.f32.mrb[213].mxu0 }
 0x2c4   : > { %v2489_v28 = vpop.f32.mrb[214].mxu1  ;;  %v3034_v30 = vpop.f32.mrb[214].mxu0 }
 0x2c5   : > { %v3032_v29 = vadd.f32 %v3031_v24, %v2487_v23  ;;  %v2490_v15 = vadd.f32 %v5873_v51, %v2489_v28  ;;  %v2491_v31 = vpop.f32.mrb[215].mxu1  ;;  %v3036_v32 = vpop.f32.mrb[215].mxu0 }
 0x2c7   : > { %v4399_v33 = vpack.c.bf16 %v3032_v29, %v3032_v29  ;;  %v3035_v34 = vadd.f32 %v3034_v30, %v2490_v15 }
 0x2c9   : > { %3737 = vst.msk [vmem:[%s5447_s21 + $0x1a8] sm:$0xf] %vm3630_vm0, %v4399_v33  ;;  %v4400_v35 = vpack.c.bf16 %v3035_v34, %v3035_v34 }
 0x2ca   : > { %v2494_v36 = vpop.f32.mrb[216].mxu1  ;;  %v3039_v38 = vpop.f32.mrb[216].mxu0 }
 0x2cb   : > { %3738 = vst.msk [vmem:[%s5447_s21 + $0x1ac] sm:$0xf] %vm3630_vm0, %v4400_v35  ;;  %v2495_v37 = vadd.f32 %v5873_v51, %v2494_v36  ;;  %v2496_v39 = vpop.f32.mrb[217].mxu1  ;;  %v3041_v40 = vpop.f32.mrb[217].mxu0 }
 0x2cc   : > { %v2497_v41 = vpop.f32.mrb[218].mxu1  ;;  %v3042_v44 = vpop.f32.mrb[218].mxu0 }
 0x2cd   : > { %v3040_v42 = vadd.f32 %v3039_v38, %v2495_v37  ;;  %v2498_v43 = vadd.f32 %v5873_v51, %v2497_v41  ;;  %v2499_v45 = vpop.f32.mrb[219].mxu1  ;;  %v3044_v46 = vpop.f32.mrb[219].mxu0 }
 0x2cf   : > { %v4401_v47 = vpack.c.bf16 %v3040_v42, %v3040_v42  ;;  %v3043_v48 = vadd.f32 %v3042_v44, %v2498_v43 }
 0x2d1   : > { %3739 = vst.msk [vmem:[%s5447_s21 + $0x1b0] sm:$0xf] %vm3630_vm0, %v4401_v47  ;;  %v4402_v49 = vpack.c.bf16 %v3043_v48, %v3043_v48 }
 0x2d2   : > { %v2502_v50 = vpop.f32.mrb[220].mxu1  ;;  %v3047_v52 = vpop.f32.mrb[220].mxu0 }
 0x2d3   : > { %3740 = vst.msk [vmem:[%s5447_s21 + $0x1b4] sm:$0xf] %vm3630_vm0, %v4402_v49  ;;  %v2503_v26 = vadd.f32 %v5873_v51, %v2502_v50  ;;  %v2504_v53 = vpop.f32.mrb[221].mxu1  ;;  %v3049_v54 = vpop.f32.mrb[221].mxu0 }
 0x2d4   : > { %v2505_v55 = vpop.f32.mrb[222].mxu1  ;;  %v3050_v58 = vpop.f32.mrb[222].mxu0 }
 0x2d5   : > { %v3048_v56 = vadd.f32 %v3047_v52, %v2503_v26  ;;  %v2506_v57 = vadd.f32 %v5873_v51, %v2505_v55  ;;  %v2507_v59 = vpop.f32.mrb[223].mxu1  ;;  %v3052_v60 = vpop.f32.mrb[223].mxu0 }
 0x2d7   : > { %v4403_v61 = vpack.c.bf16 %v3048_v56, %v3048_v56  ;;  %v3051_v62 = vadd.f32 %v3050_v58, %v2506_v57 }
 0x2d9   : > { %3741 = vst.msk [vmem:[%s5447_s21 + $0x1b8] sm:$0xf] %vm3630_vm0, %v4403_v61  ;;  %v4404_v63 = vpack.c.bf16 %v3051_v62, %v3051_v62 }
 0x2da   : > { %v2510_v0 = vpop.f32.mrb[224].mxu1  ;;  %v3055_v2 = vpop.f32.mrb[224].mxu0 }
 0x2db   : > { %3742 = vst.msk [vmem:[%s5447_s21 + $0x1bc] sm:$0xf] %vm3630_vm0, %v4404_v63  ;;  %v2511_v1 = vadd.f32 %v5873_v51, %v2510_v0  ;;  %v2512_v3 = vpop.f32.mrb[225].mxu1  ;;  %v3057_v4 = vpop.f32.mrb[225].mxu0 }
 0x2dc   : > { %v2513_v5 = vpop.f32.mrb[226].mxu1  ;;  %v3058_v8 = vpop.f32.mrb[226].mxu0 }
 0x2dd   : > { %v3056_v6 = vadd.f32 %v3055_v2, %v2511_v1  ;;  %v2514_v7 = vadd.f32 %v5873_v51, %v2513_v5  ;;  %v2515_v9 = vpop.f32.mrb[227].mxu1  ;;  %v3060_v10 = vpop.f32.mrb[227].mxu0 }
 0x2df   : > { %v4405_v11 = vpack.c.bf16 %v3056_v6, %v3056_v6  ;;  %v3059_v12 = vadd.f32 %v3058_v8, %v2514_v7 }
 0x2e1   : > { %3743 = vst.msk [vmem:[%s5447_s21 + $0x1c0] sm:$0xf] %vm3630_vm0, %v4405_v11  ;;  %v4406_v13 = vpack.c.bf16 %v3059_v12, %v3059_v12 }
 0x2e2   : > { %v2518_v14 = vpop.f32.mrb[228].mxu1  ;;  %v3063_v17 = vpop.f32.mrb[228].mxu0 }
 0x2e3   : > { %3744 = vst.msk [vmem:[%s5447_s21 + $0x1c4] sm:$0xf] %vm3630_vm0, %v4406_v13  ;;  %v2519_v16 = vadd.f32 %v5873_v51, %v2518_v14  ;;  %v2520_v18 = vpop.f32.mrb[229].mxu1  ;;  %v3065_v19 = vpop.f32.mrb[229].mxu0 }
 0x2e4   : > { %v2521_v20 = vpop.f32.mrb[230].mxu1  ;;  %v3066_v23 = vpop.f32.mrb[230].mxu0 }
 0x2e5   : > { %v3064_v21 = vadd.f32 %v3063_v17, %v2519_v16  ;;  %v2522_v22 = vadd.f32 %v5873_v51, %v2521_v20  ;;  %v2523_v24 = vpop.f32.mrb[231].mxu1  ;;  %v3068_v25 = vpop.f32.mrb[231].mxu0 }
 0x2e7   : > { %v4407_v27 = vpack.c.bf16 %v3064_v21, %v3064_v21  ;;  %v3067_v28 = vadd.f32 %v3066_v23, %v2522_v22 }
 0x2e9   : > { %3745 = vst.msk [vmem:[%s5447_s21 + $0x1c8] sm:$0xf] %vm3630_vm0, %v4407_v27  ;;  %v4408_v29 = vpack.c.bf16 %v3067_v28, %v3067_v28 }
 0x2ea   : > { %v2526_v15 = vpop.f32.mrb[232].mxu1  ;;  %v3071_v31 = vpop.f32.mrb[232].mxu0 }
 0x2eb   : > { %3746 = vst.msk [vmem:[%s5447_s21 + $0x1cc] sm:$0xf] %vm3630_vm0, %v4408_v29  ;;  %v2527_v30 = vadd.f32 %v5873_v51, %v2526_v15  ;;  %v2528_v32 = vpop.f32.mrb[233].mxu1  ;;  %v3073_v33 = vpop.f32.mrb[233].mxu0 }
 0x2ec   : > { %v2529_v34 = vpop.f32.mrb[234].mxu1  ;;  %v3074_v37 = vpop.f32.mrb[234].mxu0 }
 0x2ed   : > { %v3072_v35 = vadd.f32 %v3071_v31, %v2527_v30  ;;  %v2530_v36 = vadd.f32 %v5873_v51, %v2529_v34  ;;  %v2531_v38 = vpop.f32.mrb[235].mxu1  ;;  %v3076_v39 = vpop.f32.mrb[235].mxu0 }
 0x2ef   : > { %v4409_v40 = vpack.c.bf16 %v3072_v35, %v3072_v35  ;;  %v3075_v41 = vadd.f32 %v3074_v37, %v2530_v36 }
 0x2f1   : > { %3747 = vst.msk [vmem:[%s5447_s21 + $0x1d0] sm:$0xf] %vm3630_vm0, %v4409_v40  ;;  %v4410_v42 = vpack.c.bf16 %v3075_v41, %v3075_v41 }
 0x2f2   : > { %v2534_v43 = vpop.f32.mrb[236].mxu1  ;;  %v3079_v45 = vpop.f32.mrb[236].mxu0 }
 0x2f3   : > { %3748 = vst.msk [vmem:[%s5447_s21 + $0x1d4] sm:$0xf] %vm3630_vm0, %v4410_v42  ;;  %v2535_v44 = vadd.f32 %v5873_v51, %v2534_v43  ;;  %v2536_v46 = vpop.f32.mrb[237].mxu1  ;;  %v3081_v47 = vpop.f32.mrb[237].mxu0 }
 0x2f4   : > { %v2537_v48 = vpop.f32.mrb[238].mxu1  ;;  %v3082_v26 = vpop.f32.mrb[238].mxu0 }
 0x2f5   : > { %v3080_v49 = vadd.f32 %v3079_v45, %v2535_v44  ;;  %v2538_v50 = vadd.f32 %v5873_v51, %v2537_v48  ;;  %v2539_v52 = vpop.f32.mrb[239].mxu1  ;;  %v3084_v53 = vpop.f32.mrb[239].mxu0 }
 0x2f7   : > { %v4411_v54 = vpack.c.bf16 %v3080_v49, %v3080_v49  ;;  %v3083_v55 = vadd.f32 %v3082_v26, %v2538_v50 }
 0x2f9   : > { %3749 = vst.msk [vmem:[%s5447_s21 + $0x1d8] sm:$0xf] %vm3630_vm0, %v4411_v54  ;;  %v4412_v56 = vpack.c.bf16 %v3083_v55, %v3083_v55 }
 0x2fa   : > { %v2542_v57 = vpop.f32.mrb[240].mxu1  ;;  %v3087_v59 = vpop.f32.mrb[240].mxu0 }
 0x2fb   : > { %3750 = vst.msk [vmem:[%s5447_s21 + $0x1dc] sm:$0xf] %vm3630_vm0, %v4412_v56  ;;  %v2543_v58 = vadd.f32 %v5873_v51, %v2542_v57  ;;  %v2544_v60 = vpop.f32.mrb[241].mxu1  ;;  %v3089_v61 = vpop.f32.mrb[241].mxu0 }
 0x2fc   : > { %v2545_v62 = vpop.f32.mrb[242].mxu1  ;;  %v3090_v1 = vpop.f32.mrb[242].mxu0 }
 0x2fd   : > { %v3088_v63 = vadd.f32 %v3087_v59, %v2543_v58  ;;  %v2546_v0 = vadd.f32 %v5873_v51, %v2545_v62  ;;  %v2547_v2 = vpop.f32.mrb[243].mxu1  ;;  %v3092_v3 = vpop.f32.mrb[243].mxu0 }
 0x2ff   : > { %v4413_v4 = vpack.c.bf16 %v3088_v63, %v3088_v63  ;;  %v3091_v5 = vadd.f32 %v3090_v1, %v2546_v0 }
 0x301   : > { %3751 = vst.msk [vmem:[%s5447_s21 + $0x1e0] sm:$0xf] %vm3630_vm0, %v4413_v4  ;;  %v4414_v6 = vpack.c.bf16 %v3091_v5, %v3091_v5 }
 0x302   : > { %v2550_v7 = vpop.f32.mrb[244].mxu1  ;;  %v3095_v9 = vpop.f32.mrb[244].mxu0 }
 0x303   : > { %3752 = vst.msk [vmem:[%s5447_s21 + $0x1e4] sm:$0xf] %vm3630_vm0, %v4414_v6  ;;  %v2551_v8 = vadd.f32 %v5873_v51, %v2550_v7  ;;  %v2552_v10 = vpop.f32.mrb[245].mxu1  ;;  %v3097_v11 = vpop.f32.mrb[245].mxu0 }
 0x304   : > { %v2553_v12 = vpop.f32.mrb[246].mxu1  ;;  %v3098_v16 = vpop.f32.mrb[246].mxu0 }
 0x305   : > { %v3096_v13 = vadd.f32 %v3095_v9, %v2551_v8  ;;  %v2554_v14 = vadd.f32 %v5873_v51, %v2553_v12  ;;  %v2555_v17 = vpop.f32.mrb[247].mxu1  ;;  %v3100_v18 = vpop.f32.mrb[247].mxu0 }
 0x307   : > { %v4415_v19 = vpack.c.bf16 %v3096_v13, %v3096_v13  ;;  %v3099_v20 = vadd.f32 %v3098_v16, %v2554_v14 }
 0x309   : > { %3753 = vst.msk [vmem:[%s5447_s21 + $0x1e8] sm:$0xf] %vm3630_vm0, %v4415_v19  ;;  %v4416_v21 = vpack.c.bf16 %v3099_v20, %v3099_v20 }
 0x30a   : > { %v2558_v22 = vpop.f32.mrb[248].mxu1  ;;  %v3103_v24 = vpop.f32.mrb[248].mxu0 }
 0x30b   : > { %3754 = vst.msk [vmem:[%s5447_s21 + $0x1ec] sm:$0xf] %vm3630_vm0, %v4416_v21  ;;  %v2559_v23 = vadd.f32 %v5873_v51, %v2558_v22  ;;  %v2560_v25 = vpop.f32.mrb[249].mxu1  ;;  %v3105_v27 = vpop.f32.mrb[249].mxu0 }
 0x30c   : > { %v2561_v28 = vpop.f32.mrb[250].mxu1  ;;  %v3106_v30 = vpop.f32.mrb[250].mxu0 }
 0x30d   : > { %v3104_v29 = vadd.f32 %v3103_v24, %v2559_v23  ;;  %v2562_v15 = vadd.f32 %v5873_v51, %v2561_v28  ;;  %v2563_v31 = vpop.f32.mrb[251].mxu1  ;;  %v3108_v32 = vpop.f32.mrb[251].mxu0 }
 0x30f   : > { %v4417_v33 = vpack.c.bf16 %v3104_v29, %v3104_v29  ;;  %v3107_v34 = vadd.f32 %v3106_v30, %v2562_v15 }
 0x311   : > { %3755 = vst.msk [vmem:[%s5447_s21 + $0x1f0] sm:$0xf] %vm3630_vm0, %v4417_v33  ;;  %v4418_v35 = vpack.c.bf16 %v3107_v34, %v3107_v34 }
 0x312   : > { %v2566_v36 = vpop.f32.mrb[252].mxu1  ;;  %v3111_v38 = vpop.f32.mrb[252].mxu0 }
 0x313   : > { %3756 = vst.msk [vmem:[%s5447_s21 + $0x1f4] sm:$0xf] %vm3630_vm0, %v4418_v35  ;;  %v2567_v37 = vadd.f32 %v5873_v51, %v2566_v36  ;;  %v2568_v39 = vpop.f32.mrb[253].mxu1  ;;  %v3113_v40 = vpop.f32.mrb[253].mxu0 }
 0x314   : > { %v2569_v41 = vpop.f32.mrb[254].mxu1  ;;  %v3114_v44 = vpop.f32.mrb[254].mxu0 }
 0x315   : > { %v3112_v42 = vadd.f32 %v3111_v38, %v2567_v37  ;;  %v2570_v43 = vadd.f32 %v5873_v51, %v2569_v41  ;;  %v2571_v45 = vpop.f32.mrb[255].mxu1  ;;  %v3116_v46 = vpop.f32.mrb[255].mxu0 }
 0x317   : > { %v4419_v47 = vpack.c.bf16 %v3112_v42, %v3112_v42  ;;  %v3115_v48 = vadd.f32 %v3114_v44, %v2570_v43 }
 0x319   : > { %3757 = vst.msk [vmem:[%s5447_s21 + $0x1f8] sm:$0xf] %vm3630_vm0, %v4419_v47  ;;  %v4420_v49 = vpack.c.bf16 %v3115_v48, %v3115_v48 }
 0x31b   : > { %3758 = vst.msk [vmem:[%s5447_s21 + $0x1fc] sm:$0xf] %vm3630_vm0, %v4420_v49 }
 0x31c PF: > { %s13_s14 = sadd.s32 1, %s5142_s14   ;;  %s5996_s12 = smov %s5138_s13 }
 0x31d   : > { %p10_p5 = scmp.ge.s32.totalorder %s13_s14, 4   ;;  %s5997_s13 = smov %s5999_s15 }
 0x31f   :  { %12 = sbr.rel (!%p10_p5) target bundleno = 2 (0x2), region = 68 }

// kernel: encoder3_forward.8
= control target key start
LH: loop header
LB: loop body
LE: loop exit
PB: predicated region body
PF: predicated region fallthrough
CT: control target
= control target key end

     0   :  { %s2057_s12 = smov 0   ;;  %s2059_s13 = smov 0   ;;  %s2362_s0 = inlined_call_operand.vmem [shape: bf16[512,512], index: 0, kind: input, shape index: {}]   ;;  %s2363_s1 = inlined_call_operand.vmem [shape: bf16[512,64], index: 1, kind: input, shape index: {}]   ;;  %s2364_s2 = inlined_call_operand.vmem [shape: f32[1,64], index: 2, kind: input, shape index: {}]   ;;  %s2365_s3 = inlined_call_operand.vmem [shape: bf16[512,64], index: 3, kind: output, shape index: {}]  }
   0x1   :  { %s2061_s14 = smov 0  }
   0x2 LB: > { %s25_s15 = sadd.s32 1, %s2031_s13  ;;  %p1467_p0 = scmp.ge.s32.totalorder %s2035_s14, 1  ;;  %s2035_s14 = sphi %s2061_s14, %s13_s14   ;;  %s2031_s13 = sphi %s2059_s13, %s2367_s13   ;;  %s2027_s12 = sphi %s2057_s12, %s2366_s12  }
   0x3   : > { %p27_p1 = scmp.ge.s32.totalorder %s25_s15, 2  ;;  %p170_p2 = scmp.lt.s32.totalorder %s2035_s14, 3 }
   0x5   : > { %s2369_s15 = smov (%p27_p1, %s25_s15), 0  ;;  %p171_p3 = pnand %p1467_p0, %p170_p2 }
   0x6   : > { %v1885_v0 = vld [vmem:[%s2363_s1 + $0x40] sm:$0xff] (!%p171_p3)   ;;  %v1889_v4 = vld [vmem:[%s2363_s1 + $0x48] sm:$0xff] (!%p171_p3)   ;;  %v1893_v8 = vld [vmem:[%s2363_s1 + $0x50] sm:$0xff] (!%p171_p3)   ;;  %s1468_s25 = sshll.u32 (!%p171_p3), %s2027_s12, 5  ;;  %vm1326_vm0 = vcmask (!%p171_p3), 519168  }
   0x7   : > { %174 = sbr.rel (%p171_p3) target bundleno = 384 (0x180), region = 32  ;;  %v1886_v1 = vld [vmem:[%s2363_s1 + $0xc0] sm:$0xff] (!%p171_p3)   ;;  %1637 = vmatprep.subr.bf16.mxu0 (!%p171_p3), %v1885_v0  ;;  %v1890_v5 = vld [vmem:[%s2363_s1 + $0xc8] sm:$0xff] (!%p171_p3)   ;;  %v1894_v9 = vld [vmem:[%s2363_s1 + $0xd0] sm:$0xff] (!%p171_p3)   ;;  %p206_p4 = scmp.lt.s32.totalorder (!%p171_p3), %s1468_s25, 63 }
   0x8   : > { %v1887_v2 = vld [vmem:[%s2363_s1] sm:$0xff] (!%p171_p3)   ;;  %1749 = vmatprep.subr.bf16.mxu1 (!%p171_p3), %v1886_v1  ;;  %v1891_v6 = vld [vmem:[%s2363_s1 + $0x8] sm:$0xff] (!%p171_p3)   ;;  %v1895_v10 = vld [vmem:[%s2363_s1 + $0x10] sm:$0xff] (!%p171_p3)  }
   0x9   : > { %v1888_v3 = vld [vmem:[%s2363_s1 + $0x80] sm:$0xff] (!%p171_p3)   ;;  %1638 = vmatpush3.bf16.msra.mxu0 (!%p171_p3), %v1887_v2  ;;  %v1892_v7 = vld [vmem:[%s2363_s1 + $0x88] sm:$0xff] (!%p171_p3)   ;;  %v1896_v11 = vld [vmem:[%s2363_s1 + $0x90] sm:$0xff] (!%p171_p3)  }
   0xa   : > { %1750 = vmatpush3.bf16.msra.mxu1 (!%p171_p3), %v1888_v3  ;;  %1639 = vmatprep.subr.bf16.mxu0 (!%p171_p3), %v1889_v4  ;;  %v1897_v12 = vld [vmem:[%s2363_s1 + $0x58] sm:$0xff] (!%p171_p3)   ;;  %v1901_v16 = vld [vmem:[%s2363_s1 + $0x60] sm:$0xff] (!%p171_p3)   ;;  %v1905_v20 = vld [vmem:[%s2363_s1 + $0x68] sm:$0xff] (!%p171_p3)  }
   0xb   : > { %1751 = vmatprep.subr.bf16.mxu1 (!%p171_p3), %v1890_v5  ;;  %v1898_v13 = vld [vmem:[%s2363_s1 + $0xd8] sm:$0xff] (!%p171_p3)   ;;  %v1902_v17 = vld [vmem:[%s2363_s1 + $0xe0] sm:$0xff] (!%p171_p3)   ;;  %v1906_v21 = vld [vmem:[%s2363_s1 + $0xe8] sm:$0xff] (!%p171_p3)  }
   0xc   : > { %v1899_v14 = vld [vmem:[%s2363_s1 + $0x18] sm:$0xff] (!%p171_p3)   ;;  %v1903_v18 = vld [vmem:[%s2363_s1 + $0x20] sm:$0xff] (!%p171_p3)   ;;  %v1907_v22 = vld [vmem:[%s2363_s1 + $0x28] sm:$0xff] (!%p171_p3)  }
   0xd   : > { %1640 = vmatpush3.bf16.msra.mxu0 (!%p171_p3), %v1891_v6  ;;  %v1900_v15 = vld [vmem:[%s2363_s1 + $0x98] sm:$0xff] (!%p171_p3)   ;;  %v1904_v19 = vld [vmem:[%s2363_s1 + $0xa0] sm:$0xff] (!%p171_p3)   ;;  %v1908_v23 = vld [vmem:[%s2363_s1 + $0xa8] sm:$0xff] (!%p171_p3)  }
   0xe   : > { %1752 = vmatpush3.bf16.msra.mxu1 %v1892_v7  ;;  %1641 = vmatprep.subr.bf16.mxu0 %v1893_v8  ;;  %s2371_s25 = smov (!%p206_p4, %s1468_s25), 63  ;;  %v1909_v24 = vld [vmem:[%s2363_s1 + $0x70] sm:$0xff]   ;;  %v1913_v28 = vld [vmem:[%s2363_s1 + $0x78] sm:$0xff]  }
   0xf   : > { %1753 = vmatprep.subr.bf16.mxu1 %v1894_v9  ;;  %v1910_v25 = vld [vmem:[%s2363_s1 + $0xf0] sm:$0xff]   ;;  %s1604_s24 = sshll.u32 %s2371_s25, 4  ;;  %v1914_v29 = vld [vmem:[%s2363_s1 + $0xf8] sm:$0xff]   ;;  %s1472_s17 = sshll.u32 %s2371_s25, 2 }
  0x10   : > { %v1911_v26 = vld [vmem:[%s2363_s1 + $0x30] sm:$0xff]   ;;  %s2174_s12 = scalar_lea.vmem %s2362_s0, %s1604_s24  ;;  %v1915_v30 = vld [vmem:[%s2363_s1 + $0x38] sm:$0xff]   ;;  %s2257_s20 = scalar_lea.vmem %s2365_s3, %s1472_s17 }
  0x11   : > { %1642 = vmatpush3.bf16.msra.mxu0 %v1895_v10  ;;  %v1912_v27 = vld [vmem:[%s2363_s1 + $0xb0] sm:$0xff]   ;;  %v1916_v31 = vld [vmem:[%s2363_s1 + $0xb8] sm:$0xff]  }
  0x12   : > { %1754 = vmatpush3.bf16.msra.mxu1 %v1896_v11  ;;  %1643 = vmatprep.subr.bf16.mxu0 %v1897_v12  ;;  %v1917_v32 = vld [vmem:[%s2174_s12] ss:$16 sps:$4 sm:$0xff]   ;;  %v1919_v33 = vld [vmem:[%s2174_s12 + $0x4] ss:$16 sps:$4 sm:$0xff]   ;;  %v1920_v34 = vld [vmem:[%s2174_s12 + $0x8] ss:$16 sps:$4 sm:$0xff]  }
  0x13   : > { %1755 = vmatprep.subr.bf16.mxu1 %v1898_v13  ;;  %v1922_v35 = vld [vmem:[%s2174_s12 + $0xc] ss:$16 sps:$4 sm:$0xff]   ;;  %908 = vmatprep.mubr.bf16.mxu0 %v1919_v33  ;;  %v1923_v36 = vld [vmem:[%s2174_s12 + $0x24] ss:$16 sps:$4 sm:$0xff]   ;;  %v1927_v38 = vld [vmem:[%s2174_s12 + $0x20] ss:$16 sps:$4 sm:$0xff]  }
  0x14   : > { %1069 = vmatprep.mubr.bf16.mxu1 %v1922_v35  ;;  %v1925_v37 = vld [vmem:[%s2174_s12 + $0x2c] ss:$16 sps:$4 sm:$0xff]   ;;  %v1928_v39 = vld [vmem:[%s2174_s12 + $0x28] ss:$16 sps:$4 sm:$0xff]   ;;  %v1929_v40 = vld [vmem:[%s2174_s12 + $0x44] ss:$16 sps:$4 sm:$0xff]  }
  0x15   : > { %1644 = vmatpush3.bf16.msra.mxu0 %v1899_v14  ;;  %v1931_v41 = vld [vmem:[%s2174_s12 + $0x4c] ss:$16 sps:$4 sm:$0xff]   ;;  %v1933_v42 = vld [vmem:[%s2174_s12 + $0x40] ss:$16 sps:$4 sm:$0xff]   ;;  %v1934_v43 = vld [vmem:[%s2174_s12 + $0x48] ss:$16 sps:$4 sm:$0xff]  }
  0x16   : > { %1756 = vmatpush3.bf16.msra.mxu1 %v1900_v15  ;;  %1645 = vmatprep.subr.bf16.mxu0 %v1901_v16  ;;  %v1935_v44 = vld [vmem:[%s2174_s12 + $0x64] ss:$16 sps:$4 sm:$0xff]   ;;  %v1937_v45 = vld [vmem:[%s2174_s12 + $0x6c] ss:$16 sps:$4 sm:$0xff]   ;;  %v1939_v46 = vld [vmem:[%s2174_s12 + $0x60] ss:$16 sps:$4 sm:$0xff]  }
  0x17   : > { %1757 = vmatprep.subr.bf16.mxu1 %v1902_v17  ;;  %v1940_v47 = vld [vmem:[%s2174_s12 + $0x68] ss:$16 sps:$4 sm:$0xff]   ;;  %v1941_v48 = vld [vmem:[%s2174_s12 + $0x84] ss:$16 sps:$4 sm:$0xff]   ;;  %v1943_v49 = vld [vmem:[%s2174_s12 + $0x8c] ss:$16 sps:$4 sm:$0xff]  }
  0x18   : > { %v1945_v50 = vld [vmem:[%s2174_s12 + $0x80] ss:$16 sps:$4 sm:$0xff]   ;;  %v1946_v51 = vld [vmem:[%s2174_s12 + $0x88] ss:$16 sps:$4 sm:$0xff]   ;;  %v1947_v52 = vld [vmem:[%s2174_s12 + $0xa4] ss:$16 sps:$4 sm:$0xff]  }
  0x19   : > { %1646 = vmatpush3.bf16.msra.mxu0 %v1903_v18  ;;  %v1949_v53 = vld [vmem:[%s2174_s12 + $0xac] ss:$16 sps:$4 sm:$0xff]   ;;  %v1951_v54 = vld [vmem:[%s2174_s12 + $0xa0] ss:$16 sps:$4 sm:$0xff]   ;;  %v1952_v55 = vld [vmem:[%s2174_s12 + $0xa8] ss:$16 sps:$4 sm:$0xff]  }
  0x1a   : > { %1758 = vmatpush3.bf16.msra.mxu1 %v1904_v19  ;;  %1647 = vmatprep.subr.bf16.mxu0 %v1905_v20  ;;  %v1953_v56 = vld [vmem:[%s2174_s12 + $0xc4] ss:$16 sps:$4 sm:$0xff]   ;;  %v1955_v57 = vld [vmem:[%s2174_s12 + $0xcc] ss:$16 sps:$4 sm:$0xff]   ;;  %v1957_v58 = vld [vmem:[%s2174_s12 + $0xc0] ss:$16 sps:$4 sm:$0xff]  }
  0x1b   : > { %1759 = vmatprep.subr.bf16.mxu1 %v1906_v21  ;;  %v1958_v59 = vld [vmem:[%s2174_s12 + $0xc8] ss:$16 sps:$4 sm:$0xff]   ;;  %v1959_v60 = vld [vmem:[%s2174_s12 + $0xe4] ss:$16 sps:$4 sm:$0xff]   ;;  %v1961_v61 = vld [vmem:[%s2174_s12 + $0xec] ss:$16 sps:$4 sm:$0xff]  }
  0x1c   : > { %v1963_v62 = vld [vmem:[%s2174_s12 + $0xe0] ss:$16 sps:$4 sm:$0xff]   ;;  %v1964_v63 = vld [vmem:[%s2174_s12 + $0xe8] ss:$16 sps:$4 sm:$0xff]   ;;  %v1965_v0 = vld [vmem:[%s2174_s12 + $0x104] ss:$16 sps:$4 sm:$0xff]  }
  0x1d   : > { %1648 = vmatpush3.bf16.msra.mxu0 %v1907_v22  ;;  %v1967_v1 = vld [vmem:[%s2174_s12 + $0x10c] ss:$16 sps:$4 sm:$0xff]   ;;  %v1969_v2 = vld [vmem:[%s2174_s12 + $0x100] ss:$16 sps:$4 sm:$0xff]   ;;  %v1970_v3 = vld [vmem:[%s2174_s12 + $0x108] ss:$16 sps:$4 sm:$0xff]  }
  0x1e   : > { %1760 = vmatpush3.bf16.msra.mxu1 %v1908_v23  ;;  %1649 = vmatprep.subr.bf16.mxu0 %v1909_v24  ;;  %v1971_v4 = vld [vmem:[%s2174_s12 + $0x124] ss:$16 sps:$4 sm:$0xff]   ;;  %v1973_v5 = vld [vmem:[%s2174_s12 + $0x12c] ss:$16 sps:$4 sm:$0xff]   ;;  %v1975_v6 = vld [vmem:[%s2174_s12 + $0x120] ss:$16 sps:$4 sm:$0xff]  }
  0x1f   : > { %1761 = vmatprep.subr.bf16.mxu1 %v1910_v25  ;;  %v1976_v7 = vld [vmem:[%s2174_s12 + $0x128] ss:$16 sps:$4 sm:$0xff]   ;;  %v1977_v8 = vld [vmem:[%s2174_s12 + $0x144] ss:$16 sps:$4 sm:$0xff]   ;;  %v1979_v9 = vld [vmem:[%s2174_s12 + $0x14c] ss:$16 sps:$4 sm:$0xff]  }
  0x20   : > { %v1981_v10 = vld [vmem:[%s2174_s12 + $0x140] ss:$16 sps:$4 sm:$0xff]   ;;  %v1982_v11 = vld [vmem:[%s2174_s12 + $0x148] ss:$16 sps:$4 sm:$0xff]   ;;  %v1983_v12 = vld [vmem:[%s2174_s12 + $0x164] ss:$16 sps:$4 sm:$0xff]  }
  0x21   : > { %1650 = vmatpush3.bf16.msra.mxu0 %v1911_v26  ;;  %v1985_v13 = vld [vmem:[%s2174_s12 + $0x16c] ss:$16 sps:$4 sm:$0xff]   ;;  %v1987_v14 = vld [vmem:[%s2174_s12 + $0x160] ss:$16 sps:$4 sm:$0xff]   ;;  %v1988_v15 = vld [vmem:[%s2174_s12 + $0x168] ss:$16 sps:$4 sm:$0xff]  }
  0x22   : > { %1762 = vmatpush3.bf16.msra.mxu1 %v1912_v27  ;;  %1651 = vmatprep.subr.bf16.mxu0 %v1913_v28  ;;  %v1989_v16 = vld [vmem:[%s2174_s12 + $0x184] ss:$16 sps:$4 sm:$0xff]   ;;  %v1991_v17 = vld [vmem:[%s2174_s12 + $0x18c] ss:$16 sps:$4 sm:$0xff]   ;;  %v1993_v18 = vld [vmem:[%s2174_s12 + $0x180] ss:$16 sps:$4 sm:$0xff]  }
  0x23   : > { %1763 = vmatprep.subr.bf16.mxu1 %v1914_v29  ;;  %v1994_v19 = vld [vmem:[%s2174_s12 + $0x188] ss:$16 sps:$4 sm:$0xff]   ;;  %v1995_v20 = vld [vmem:[%s2174_s12 + $0x1a4] ss:$16 sps:$4 sm:$0xff]   ;;  %v1997_v21 = vld [vmem:[%s2174_s12 + $0x1ac] ss:$16 sps:$4 sm:$0xff]  }
  0x24   : > { %v1999_v22 = vld [vmem:[%s2174_s12 + $0x1a0] ss:$16 sps:$4 sm:$0xff]   ;;  %v2000_v23 = vld [vmem:[%s2174_s12 + $0x1a8] ss:$16 sps:$4 sm:$0xff]   ;;  %v2001_v24 = vld [vmem:[%s2174_s12 + $0x1c4] ss:$16 sps:$4 sm:$0xff]  }
  0x25   : > { %1652 = vmatpush3.bf16.msra.mxu0 %v1915_v30  ;;  %v2003_v25 = vld [vmem:[%s2174_s12 + $0x1cc] ss:$16 sps:$4 sm:$0xff]   ;;  %v2005_v26 = vld [vmem:[%s2174_s12 + $0x1c0] ss:$16 sps:$4 sm:$0xff]   ;;  %v2006_v27 = vld [vmem:[%s2174_s12 + $0x1c8] ss:$16 sps:$4 sm:$0xff]  }
  0x26   : > { %1764 = vmatpush3.bf16.msra.mxu1 %v1916_v31  ;;  %v2007_v28 = vld [vmem:[%s2174_s12 + $0x1e4] ss:$16 sps:$4 sm:$0xff]   ;;  %v2009_v29 = vld [vmem:[%s2174_s12 + $0x1ec] ss:$16 sps:$4 sm:$0xff]   ;;  %v2011_v30 = vld [vmem:[%s2174_s12 + $0x1e0] ss:$16 sps:$4 sm:$0xff]  }
  0x27   : > { %v2012_v31 = vld [vmem:[%s2174_s12 + $0x1e8] ss:$16 sps:$4 sm:$0xff]  }
  0x28   : > { %909 = vmatmul.mubr.bf16.vlgmr.msra.gmra.mrb[0].mxu0 %v1917_v32 }
  0x29   : > { %1070 = vmatmul.mubr.bf16.vlgmr.msra.gmra.mrb[0].mxu1 %v1920_v34  ;;  %916 = vmatprep.mubr.bf16.mxu0 %v1923_v36  ;;  %v2249_v34 = vld [vmem:[%s2364_s2] ss:$0 sm:$0xff] }
  0x2a   : > { %1077 = vmatprep.mubr.bf16.mxu1 %v1925_v37 }
  0x30   : > { %917 = vmatmul.mubr.bf16.gmra.mrb[4].mxu0 %v1927_v38 }
  0x31   : > { %1078 = vmatmul.mubr.bf16.gmra.mrb[4].mxu1 %v1928_v39  ;;  %924 = vmatprep.mubr.bf16.mxu0 %v1929_v40 }
  0x32   : > { %1085 = vmatprep.mubr.bf16.mxu1 %v1931_v41 }
  0x38   : > { %925 = vmatmul.mubr.bf16.gmra.mrb[8].mxu0 %v1933_v42 }
  0x39   : > { %1086 = vmatmul.mubr.bf16.gmra.mrb[8].mxu1 %v1934_v43  ;;  %932 = vmatprep.mubr.bf16.mxu0 %v1935_v44 }
  0x3a   : > { %1093 = vmatprep.mubr.bf16.mxu1 %v1937_v45 }
  0x40   : > { %933 = vmatmul.mubr.bf16.gmra.mrb[12].mxu0 %v1939_v46 }
  0x41   : > { %1094 = vmatmul.mubr.bf16.gmra.mrb[12].mxu1 %v1940_v47  ;;  %940 = vmatprep.mubr.bf16.mxu0 %v1941_v48 }
  0x42   : > { %1101 = vmatprep.mubr.bf16.mxu1 %v1943_v49 }
  0x48   : > { %941 = vmatmul.mubr.bf16.gmra.mrb[16].mxu0 %v1945_v50 }
  0x49   : > { %1102 = vmatmul.mubr.bf16.gmra.mrb[16].mxu1 %v1946_v51  ;;  %948 = vmatprep.mubr.bf16.mxu0 %v1947_v52 }
  0x4a   : > { %1109 = vmatprep.mubr.bf16.mxu1 %v1949_v53 }
  0x50   : > { %949 = vmatmul.mubr.bf16.gmra.mrb[20].mxu0 %v1951_v54 }
  0x51   : > { %1110 = vmatmul.mubr.bf16.gmra.mrb[20].mxu1 %v1952_v55  ;;  %956 = vmatprep.mubr.bf16.mxu0 %v1953_v56 }
  0x52   : > { %1117 = vmatprep.mubr.bf16.mxu1 %v1955_v57 }
  0x58   : > { %957 = vmatmul.mubr.bf16.gmra.mrb[24].mxu0 %v1957_v58 }
  0x59   : > { %1118 = vmatmul.mubr.bf16.gmra.mrb[24].mxu1 %v1958_v59  ;;  %964 = vmatprep.mubr.bf16.mxu0 %v1959_v60 }
  0x5a   : > { %1125 = vmatprep.mubr.bf16.mxu1 %v1961_v61 }
  0x60   : > { %965 = vmatmul.mubr.bf16.gmra.mrb[28].mxu0 %v1963_v62 }
  0x61   : > { %1126 = vmatmul.mubr.bf16.gmra.mrb[28].mxu1 %v1964_v63  ;;  %972 = vmatprep.mubr.bf16.mxu0 %v1965_v0 }
  0x62   : > { %1133 = vmatprep.mubr.bf16.mxu1 %v1967_v1 }
  0x68   : > { %973 = vmatmul.mubr.bf16.gmra.mrb[32].mxu0 %v1969_v2 }
  0x69   : > { %1134 = vmatmul.mubr.bf16.gmra.mrb[32].mxu1 %v1970_v3  ;;  %980 = vmatprep.mubr.bf16.mxu0 %v1971_v4 }
  0x6a   : > { %1141 = vmatprep.mubr.bf16.mxu1 %v1973_v5 }
  0x70   : > { %981 = vmatmul.mubr.bf16.gmra.mrb[36].mxu0 %v1975_v6 }
  0x71   : > { %1142 = vmatmul.mubr.bf16.gmra.mrb[36].mxu1 %v1976_v7  ;;  %988 = vmatprep.mubr.bf16.mxu0 %v1977_v8 }
  0x72   : > { %1149 = vmatprep.mubr.bf16.mxu1 %v1979_v9 }
  0x78   : > { %989 = vmatmul.mubr.bf16.gmra.mrb[40].mxu0 %v1981_v10 }
  0x79   : > { %1150 = vmatmul.mubr.bf16.gmra.mrb[40].mxu1 %v1982_v11  ;;  %996 = vmatprep.mubr.bf16.mxu0 %v1983_v12 }
  0x7a   : > { %1157 = vmatprep.mubr.bf16.mxu1 %v1985_v13 }
  0x80   : > { %997 = vmatmul.mubr.bf16.gmra.mrb[44].mxu0 %v1987_v14 }
  0x81   : > { %1158 = vmatmul.mubr.bf16.gmra.mrb[44].mxu1 %v1988_v15  ;;  %1004 = vmatprep.mubr.bf16.mxu0 %v1989_v16 }
  0x82   : > { %1165 = vmatprep.mubr.bf16.mxu1 %v1991_v17 }
  0x88   : > { %1005 = vmatmul.mubr.bf16.gmra.mrb[48].mxu0 %v1993_v18 }
  0x89   : > { %1166 = vmatmul.mubr.bf16.gmra.mrb[48].mxu1 %v1994_v19  ;;  %1012 = vmatprep.mubr.bf16.mxu0 %v1995_v20 }
  0x8a   : > { %1173 = vmatprep.mubr.bf16.mxu1 %v1997_v21 }
  0x90   : > { %1013 = vmatmul.mubr.bf16.gmra.mrb[52].mxu0 %v1999_v22 }
  0x91   : > { %1174 = vmatmul.mubr.bf16.gmra.mrb[52].mxu1 %v2000_v23  ;;  %1020 = vmatprep.mubr.bf16.mxu0 %v2001_v24 }
  0x92   : > { %1181 = vmatprep.mubr.bf16.mxu1 %v2003_v25 }
  0x98   : > { %1021 = vmatmul.mubr.bf16.gmra.mrb[56].mxu0 %v2005_v26 }
  0x99   : > { %1182 = vmatmul.mubr.bf16.gmra.mrb[56].mxu1 %v2006_v27  ;;  %1028 = vmatprep.mubr.bf16.mxu0 %v2007_v28 }
  0x9a   : > { %1189 = vmatprep.mubr.bf16.mxu1 %v2009_v29 }
  0xa0   : > { %1029 = vmatmul.mubr.bf16.gmra.mrb[60].mxu0 %v2011_v30 }
  0xa1   : > { %1190 = vmatmul.mubr.bf16.gmra.mrb[60].mxu1 %v2012_v31 }
  0xfb   : > { %v1653_v32 = vpop.f32.mrb[0].mxu0 }
  0xfc   : > { %v1765_v33 = vpop.f32.mrb[0].mxu1  ;;  %v1654_v35 = vpop.f32.mrb[1].mxu0 }
  0xfd   : > { %v1655_v36 = vadd.f32 %v1654_v35, %v1653_v32  ;;  %v1766_v37 = vpop.f32.mrb[1].mxu1  ;;  %v1656_v38 = vpop.f32.mrb[2].mxu0 }
  0xfe   : > { %v1767_v39 = vadd.f32 %v1766_v37, %v1765_v33  ;;  %v1768_v40 = vpop.f32.mrb[2].mxu1  ;;  %v1657_v41 = vpop.f32.mrb[3].mxu0 }
  0xff   : > { %v911_v42 = vadd.f32 %v1655_v36, %v2249_v34  ;;  %v1658_v43 = vadd.f32 %v1657_v41, %v1656_v38  ;;  %v1769_v44 = vpop.f32.mrb[3].mxu1 }
 0x100   : > { %v1770_v45 = vadd.f32 %v1769_v44, %v1768_v40 }
 0x101   : > { %v1072_v46 = vadd.f32 %v1767_v39, %v911_v42  ;;  %v914_v47 = vadd.f32 %v1658_v43, %v2249_v34 }
 0x103   : > { %v1605_v48 = vpack.c.bf16 %v1072_v46, %v1072_v46  ;;  %v1075_v49 = vadd.f32 %v1770_v45, %v914_v47  ;;  %v1659_v50 = vpop.f32.mrb[4].mxu0 }
 0x104   : > { %v1771_v51 = vpop.f32.mrb[4].mxu1  ;;  %v1660_v52 = vpop.f32.mrb[5].mxu0 }
 0x105   : > { %1327 = vst.msk [vmem:[%s2257_s20] sm:$0xf] %vm1326_vm0, %v1605_v48  ;;  %v1606_v53 = vpack.c.bf16 %v1075_v49, %v1075_v49  ;;  %v1661_v54 = vadd.f32 %v1660_v52, %v1659_v50  ;;  %v1772_v55 = vpop.f32.mrb[5].mxu1  ;;  %v1662_v56 = vpop.f32.mrb[6].mxu0 }
 0x106   : > { %v1773_v57 = vadd.f32 %v1772_v55, %v1771_v51  ;;  %v1774_v58 = vpop.f32.mrb[6].mxu1  ;;  %v1663_v59 = vpop.f32.mrb[7].mxu0 }
 0x107   : > { %1328 = vst.msk [vmem:[%s2257_s20 + $0x4] sm:$0xf] %vm1326_vm0, %v1606_v53  ;;  %v919_v60 = vadd.f32 %v1661_v54, %v2249_v34  ;;  %v1664_v61 = vadd.f32 %v1663_v59, %v1662_v56  ;;  %v1775_v62 = vpop.f32.mrb[7].mxu1 }
 0x108   : > { %v1776_v63 = vadd.f32 %v1775_v62, %v1774_v58 }
 0x109   : > { %v1080_v0 = vadd.f32 %v1773_v57, %v919_v60  ;;  %v922_v1 = vadd.f32 %v1664_v61, %v2249_v34 }
 0x10b   : > { %v1607_v2 = vpack.c.bf16 %v1080_v0, %v1080_v0  ;;  %v1083_v3 = vadd.f32 %v1776_v63, %v922_v1  ;;  %v1665_v4 = vpop.f32.mrb[8].mxu0 }
 0x10c   : > { %v1777_v5 = vpop.f32.mrb[8].mxu1  ;;  %v1666_v6 = vpop.f32.mrb[9].mxu0 }
 0x10d   : > { %1329 = vst.msk [vmem:[%s2257_s20 + $0x8] sm:$0xf] %vm1326_vm0, %v1607_v2  ;;  %v1608_v7 = vpack.c.bf16 %v1083_v3, %v1083_v3  ;;  %v1667_v8 = vadd.f32 %v1666_v6, %v1665_v4  ;;  %v1778_v9 = vpop.f32.mrb[9].mxu1  ;;  %v1668_v10 = vpop.f32.mrb[10].mxu0 }
 0x10e   : > { %v1779_v11 = vadd.f32 %v1778_v9, %v1777_v5  ;;  %v1780_v12 = vpop.f32.mrb[10].mxu1  ;;  %v1669_v13 = vpop.f32.mrb[11].mxu0 }
 0x10f   : > { %1330 = vst.msk [vmem:[%s2257_s20 + $0xc] sm:$0xf] %vm1326_vm0, %v1608_v7  ;;  %v927_v14 = vadd.f32 %v1667_v8, %v2249_v34  ;;  %v1670_v15 = vadd.f32 %v1669_v13, %v1668_v10  ;;  %v1781_v16 = vpop.f32.mrb[11].mxu1 }
 0x110   : > { %v1782_v17 = vadd.f32 %v1781_v16, %v1780_v12 }
 0x111   : > { %v1088_v18 = vadd.f32 %v1779_v11, %v927_v14  ;;  %v930_v19 = vadd.f32 %v1670_v15, %v2249_v34 }
 0x113   : > { %v1609_v20 = vpack.c.bf16 %v1088_v18, %v1088_v18  ;;  %v1091_v21 = vadd.f32 %v1782_v17, %v930_v19  ;;  %v1671_v22 = vpop.f32.mrb[12].mxu0 }
 0x114   : > { %v1783_v23 = vpop.f32.mrb[12].mxu1  ;;  %v1672_v24 = vpop.f32.mrb[13].mxu0 }
 0x115   : > { %1331 = vst.msk [vmem:[%s2257_s20 + $0x10] sm:$0xf] %vm1326_vm0, %v1609_v20  ;;  %v1610_v25 = vpack.c.bf16 %v1091_v21, %v1091_v21  ;;  %v1673_v26 = vadd.f32 %v1672_v24, %v1671_v22  ;;  %v1784_v27 = vpop.f32.mrb[13].mxu1  ;;  %v1674_v28 = vpop.f32.mrb[14].mxu0 }
 0x116   : > { %v1785_v29 = vadd.f32 %v1784_v27, %v1783_v23  ;;  %v1786_v30 = vpop.f32.mrb[14].mxu1  ;;  %v1675_v31 = vpop.f32.mrb[15].mxu0 }
 0x117   : > { %1332 = vst.msk [vmem:[%s2257_s20 + $0x14] sm:$0xf] %vm1326_vm0, %v1610_v25  ;;  %v935_v32 = vadd.f32 %v1673_v26, %v2249_v34  ;;  %v1676_v33 = vadd.f32 %v1675_v31, %v1674_v28  ;;  %v1787_v35 = vpop.f32.mrb[15].mxu1 }
 0x118   : > { %v1788_v36 = vadd.f32 %v1787_v35, %v1786_v30 }
 0x119   : > { %v1096_v37 = vadd.f32 %v1785_v29, %v935_v32  ;;  %v938_v38 = vadd.f32 %v1676_v33, %v2249_v34 }
 0x11b   : > { %v1611_v39 = vpack.c.bf16 %v1096_v37, %v1096_v37  ;;  %v1099_v40 = vadd.f32 %v1788_v36, %v938_v38  ;;  %v1677_v41 = vpop.f32.mrb[16].mxu0 }
 0x11c   : > { %v1789_v42 = vpop.f32.mrb[16].mxu1  ;;  %v1678_v43 = vpop.f32.mrb[17].mxu0 }
 0x11d   : > { %1333 = vst.msk [vmem:[%s2257_s20 + $0x18] sm:$0xf] %vm1326_vm0, %v1611_v39  ;;  %v1612_v44 = vpack.c.bf16 %v1099_v40, %v1099_v40  ;;  %v1679_v45 = vadd.f32 %v1678_v43, %v1677_v41  ;;  %v1790_v46 = vpop.f32.mrb[17].mxu1  ;;  %v1680_v47 = vpop.f32.mrb[18].mxu0 }
 0x11e   : > { %v1791_v48 = vadd.f32 %v1790_v46, %v1789_v42  ;;  %v1792_v49 = vpop.f32.mrb[18].mxu1  ;;  %v1681_v50 = vpop.f32.mrb[19].mxu0 }
 0x11f   : > { %1334 = vst.msk [vmem:[%s2257_s20 + $0x1c] sm:$0xf] %vm1326_vm0, %v1612_v44  ;;  %v943_v51 = vadd.f32 %v1679_v45, %v2249_v34  ;;  %v1682_v52 = vadd.f32 %v1681_v50, %v1680_v47  ;;  %v1793_v53 = vpop.f32.mrb[19].mxu1 }
 0x120   : > { %v1794_v54 = vadd.f32 %v1793_v53, %v1792_v49 }
 0x121   : > { %v1104_v55 = vadd.f32 %v1791_v48, %v943_v51  ;;  %v946_v56 = vadd.f32 %v1682_v52, %v2249_v34 }
 0x123   : > { %v1613_v57 = vpack.c.bf16 %v1104_v55, %v1104_v55  ;;  %v1107_v58 = vadd.f32 %v1794_v54, %v946_v56  ;;  %v1683_v59 = vpop.f32.mrb[20].mxu0 }
 0x124   : > { %v1795_v60 = vpop.f32.mrb[20].mxu1  ;;  %v1684_v61 = vpop.f32.mrb[21].mxu0 }
 0x125   : > { %1335 = vst.msk [vmem:[%s2257_s20 + $0x20] sm:$0xf] %vm1326_vm0, %v1613_v57  ;;  %v1614_v62 = vpack.c.bf16 %v1107_v58, %v1107_v58  ;;  %v1685_v63 = vadd.f32 %v1684_v61, %v1683_v59  ;;  %v1796_v0 = vpop.f32.mrb[21].mxu1  ;;  %v1686_v1 = vpop.f32.mrb[22].mxu0 }
 0x126   : > { %v1797_v2 = vadd.f32 %v1796_v0, %v1795_v60  ;;  %v1798_v3 = vpop.f32.mrb[22].mxu1  ;;  %v1687_v4 = vpop.f32.mrb[23].mxu0 }
 0x127   : > { %1336 = vst.msk [vmem:[%s2257_s20 + $0x24] sm:$0xf] %vm1326_vm0, %v1614_v62  ;;  %v951_v5 = vadd.f32 %v1685_v63, %v2249_v34  ;;  %v1688_v6 = vadd.f32 %v1687_v4, %v1686_v1  ;;  %v1799_v7 = vpop.f32.mrb[23].mxu1 }
 0x128   : > { %v1800_v8 = vadd.f32 %v1799_v7, %v1798_v3 }
 0x129   : > { %v1112_v9 = vadd.f32 %v1797_v2, %v951_v5  ;;  %v954_v10 = vadd.f32 %v1688_v6, %v2249_v34 }
 0x12b   : > { %v1615_v11 = vpack.c.bf16 %v1112_v9, %v1112_v9  ;;  %v1115_v12 = vadd.f32 %v1800_v8, %v954_v10  ;;  %v1689_v13 = vpop.f32.mrb[24].mxu0 }
 0x12c   : > { %v1801_v14 = vpop.f32.mrb[24].mxu1  ;;  %v1690_v15 = vpop.f32.mrb[25].mxu0 }
 0x12d   : > { %1337 = vst.msk [vmem:[%s2257_s20 + $0x28] sm:$0xf] %vm1326_vm0, %v1615_v11  ;;  %v1616_v16 = vpack.c.bf16 %v1115_v12, %v1115_v12  ;;  %v1691_v17 = vadd.f32 %v1690_v15, %v1689_v13  ;;  %v1802_v18 = vpop.f32.mrb[25].mxu1  ;;  %v1692_v19 = vpop.f32.mrb[26].mxu0 }
 0x12e   : > { %v1803_v20 = vadd.f32 %v1802_v18, %v1801_v14  ;;  %v1804_v21 = vpop.f32.mrb[26].mxu1  ;;  %v1693_v22 = vpop.f32.mrb[27].mxu0 }
 0x12f   : > { %1338 = vst.msk [vmem:[%s2257_s20 + $0x2c] sm:$0xf] %vm1326_vm0, %v1616_v16  ;;  %v959_v23 = vadd.f32 %v1691_v17, %v2249_v34  ;;  %v1694_v24 = vadd.f32 %v1693_v22, %v1692_v19  ;;  %v1805_v25 = vpop.f32.mrb[27].mxu1 }
 0x130   : > { %v1806_v26 = vadd.f32 %v1805_v25, %v1804_v21 }
 0x131   : > { %v1120_v27 = vadd.f32 %v1803_v20, %v959_v23  ;;  %v962_v28 = vadd.f32 %v1694_v24, %v2249_v34 }
 0x133   : > { %v1617_v29 = vpack.c.bf16 %v1120_v27, %v1120_v27  ;;  %v1123_v30 = vadd.f32 %v1806_v26, %v962_v28  ;;  %v1695_v31 = vpop.f32.mrb[28].mxu0 }
 0x134   : > { %v1807_v32 = vpop.f32.mrb[28].mxu1  ;;  %v1696_v33 = vpop.f32.mrb[29].mxu0 }
 0x135   : > { %1339 = vst.msk [vmem:[%s2257_s20 + $0x30] sm:$0xf] %vm1326_vm0, %v1617_v29  ;;  %v1618_v35 = vpack.c.bf16 %v1123_v30, %v1123_v30  ;;  %v1697_v36 = vadd.f32 %v1696_v33, %v1695_v31  ;;  %v1808_v37 = vpop.f32.mrb[29].mxu1  ;;  %v1698_v38 = vpop.f32.mrb[30].mxu0 }
 0x136   : > { %v1809_v39 = vadd.f32 %v1808_v37, %v1807_v32  ;;  %v1810_v40 = vpop.f32.mrb[30].mxu1  ;;  %v1699_v41 = vpop.f32.mrb[31].mxu0 }
 0x137   : > { %1340 = vst.msk [vmem:[%s2257_s20 + $0x34] sm:$0xf] %vm1326_vm0, %v1618_v35  ;;  %v967_v42 = vadd.f32 %v1697_v36, %v2249_v34  ;;  %v1700_v43 = vadd.f32 %v1699_v41, %v1698_v38  ;;  %v1811_v44 = vpop.f32.mrb[31].mxu1 }
 0x138   : > { %v1812_v45 = vadd.f32 %v1811_v44, %v1810_v40 }
 0x139   : > { %v1128_v46 = vadd.f32 %v1809_v39, %v967_v42  ;;  %v970_v47 = vadd.f32 %v1700_v43, %v2249_v34 }
 0x13b   : > { %v1619_v48 = vpack.c.bf16 %v1128_v46, %v1128_v46  ;;  %v1131_v49 = vadd.f32 %v1812_v45, %v970_v47  ;;  %v1701_v50 = vpop.f32.mrb[32].mxu0 }
 0x13c   : > { %v1813_v51 = vpop.f32.mrb[32].mxu1  ;;  %v1702_v52 = vpop.f32.mrb[33].mxu0 }
 0x13d   : > { %1341 = vst.msk [vmem:[%s2257_s20 + $0x38] sm:$0xf] %vm1326_vm0, %v1619_v48  ;;  %v1620_v53 = vpack.c.bf16 %v1131_v49, %v1131_v49  ;;  %v1703_v54 = vadd.f32 %v1702_v52, %v1701_v50  ;;  %v1814_v55 = vpop.f32.mrb[33].mxu1  ;;  %v1704_v56 = vpop.f32.mrb[34].mxu0 }
 0x13e   : > { %v1815_v57 = vadd.f32 %v1814_v55, %v1813_v51  ;;  %v1816_v58 = vpop.f32.mrb[34].mxu1  ;;  %v1705_v59 = vpop.f32.mrb[35].mxu0 }
 0x13f   : > { %1342 = vst.msk [vmem:[%s2257_s20 + $0x3c] sm:$0xf] %vm1326_vm0, %v1620_v53  ;;  %v975_v60 = vadd.f32 %v1703_v54, %v2249_v34  ;;  %v1706_v61 = vadd.f32 %v1705_v59, %v1704_v56  ;;  %v1817_v62 = vpop.f32.mrb[35].mxu1 }
 0x140   : > { %v1818_v63 = vadd.f32 %v1817_v62, %v1816_v58 }
 0x141   : > { %v1136_v0 = vadd.f32 %v1815_v57, %v975_v60  ;;  %v978_v1 = vadd.f32 %v1706_v61, %v2249_v34 }
 0x143   : > { %v1621_v2 = vpack.c.bf16 %v1136_v0, %v1136_v0  ;;  %v1139_v3 = vadd.f32 %v1818_v63, %v978_v1  ;;  %v1707_v4 = vpop.f32.mrb[36].mxu0 }
 0x144   : > { %v1819_v5 = vpop.f32.mrb[36].mxu1  ;;  %v1708_v6 = vpop.f32.mrb[37].mxu0 }
 0x145   : > { %1343 = vst.msk [vmem:[%s2257_s20 + $0x40] sm:$0xf] %vm1326_vm0, %v1621_v2  ;;  %v1622_v7 = vpack.c.bf16 %v1139_v3, %v1139_v3  ;;  %v1709_v8 = vadd.f32 %v1708_v6, %v1707_v4  ;;  %v1820_v9 = vpop.f32.mrb[37].mxu1  ;;  %v1710_v10 = vpop.f32.mrb[38].mxu0 }
 0x146   : > { %v1821_v11 = vadd.f32 %v1820_v9, %v1819_v5  ;;  %v1822_v12 = vpop.f32.mrb[38].mxu1  ;;  %v1711_v13 = vpop.f32.mrb[39].mxu0 }
 0x147   : > { %1344 = vst.msk [vmem:[%s2257_s20 + $0x44] sm:$0xf] %vm1326_vm0, %v1622_v7  ;;  %v983_v14 = vadd.f32 %v1709_v8, %v2249_v34  ;;  %v1712_v15 = vadd.f32 %v1711_v13, %v1710_v10  ;;  %v1823_v16 = vpop.f32.mrb[39].mxu1 }
 0x148   : > { %v1824_v17 = vadd.f32 %v1823_v16, %v1822_v12 }
 0x149   : > { %v1144_v18 = vadd.f32 %v1821_v11, %v983_v14  ;;  %v986_v19 = vadd.f32 %v1712_v15, %v2249_v34 }
 0x14b   : > { %v1623_v20 = vpack.c.bf16 %v1144_v18, %v1144_v18  ;;  %v1147_v21 = vadd.f32 %v1824_v17, %v986_v19  ;;  %v1713_v22 = vpop.f32.mrb[40].mxu0 }
 0x14c   : > { %v1825_v23 = vpop.f32.mrb[40].mxu1  ;;  %v1714_v24 = vpop.f32.mrb[41].mxu0 }
 0x14d   : > { %1345 = vst.msk [vmem:[%s2257_s20 + $0x48] sm:$0xf] %vm1326_vm0, %v1623_v20  ;;  %v1624_v25 = vpack.c.bf16 %v1147_v21, %v1147_v21  ;;  %v1715_v26 = vadd.f32 %v1714_v24, %v1713_v22  ;;  %v1826_v27 = vpop.f32.mrb[41].mxu1  ;;  %v1716_v28 = vpop.f32.mrb[42].mxu0 }
 0x14e   : > { %v1827_v29 = vadd.f32 %v1826_v27, %v1825_v23  ;;  %v1828_v30 = vpop.f32.mrb[42].mxu1  ;;  %v1717_v31 = vpop.f32.mrb[43].mxu0 }
 0x14f   : > { %1346 = vst.msk [vmem:[%s2257_s20 + $0x4c] sm:$0xf] %vm1326_vm0, %v1624_v25  ;;  %v991_v32 = vadd.f32 %v1715_v26, %v2249_v34  ;;  %v1718_v33 = vadd.f32 %v1717_v31, %v1716_v28  ;;  %v1829_v35 = vpop.f32.mrb[43].mxu1 }
 0x150   : > { %v1830_v36 = vadd.f32 %v1829_v35, %v1828_v30 }
 0x151   : > { %v1152_v37 = vadd.f32 %v1827_v29, %v991_v32  ;;  %v994_v38 = vadd.f32 %v1718_v33, %v2249_v34 }
 0x153   : > { %v1625_v39 = vpack.c.bf16 %v1152_v37, %v1152_v37  ;;  %v1155_v40 = vadd.f32 %v1830_v36, %v994_v38  ;;  %v1719_v41 = vpop.f32.mrb[44].mxu0 }
 0x154   : > { %v1831_v42 = vpop.f32.mrb[44].mxu1  ;;  %v1720_v43 = vpop.f32.mrb[45].mxu0 }
 0x155   : > { %1347 = vst.msk [vmem:[%s2257_s20 + $0x50] sm:$0xf] %vm1326_vm0, %v1625_v39  ;;  %v1626_v44 = vpack.c.bf16 %v1155_v40, %v1155_v40  ;;  %v1721_v45 = vadd.f32 %v1720_v43, %v1719_v41  ;;  %v1832_v46 = vpop.f32.mrb[45].mxu1  ;;  %v1722_v47 = vpop.f32.mrb[46].mxu0 }
 0x156   : > { %v1833_v48 = vadd.f32 %v1832_v46, %v1831_v42  ;;  %v1834_v49 = vpop.f32.mrb[46].mxu1  ;;  %v1723_v50 = vpop.f32.mrb[47].mxu0 }
 0x157   : > { %1348 = vst.msk [vmem:[%s2257_s20 + $0x54] sm:$0xf] %vm1326_vm0, %v1626_v44  ;;  %v999_v51 = vadd.f32 %v1721_v45, %v2249_v34  ;;  %v1724_v52 = vadd.f32 %v1723_v50, %v1722_v47  ;;  %v1835_v53 = vpop.f32.mrb[47].mxu1 }
 0x158   : > { %v1836_v54 = vadd.f32 %v1835_v53, %v1834_v49 }
 0x159   : > { %v1160_v55 = vadd.f32 %v1833_v48, %v999_v51  ;;  %v1002_v56 = vadd.f32 %v1724_v52, %v2249_v34 }
 0x15b   : > { %v1627_v57 = vpack.c.bf16 %v1160_v55, %v1160_v55  ;;  %v1163_v58 = vadd.f32 %v1836_v54, %v1002_v56  ;;  %v1725_v59 = vpop.f32.mrb[48].mxu0 }
 0x15c   : > { %v1837_v60 = vpop.f32.mrb[48].mxu1  ;;  %v1726_v61 = vpop.f32.mrb[49].mxu0 }
 0x15d   : > { %1349 = vst.msk [vmem:[%s2257_s20 + $0x58] sm:$0xf] %vm1326_vm0, %v1627_v57  ;;  %v1628_v62 = vpack.c.bf16 %v1163_v58, %v1163_v58  ;;  %v1727_v63 = vadd.f32 %v1726_v61, %v1725_v59  ;;  %v1838_v0 = vpop.f32.mrb[49].mxu1  ;;  %v1728_v1 = vpop.f32.mrb[50].mxu0 }
 0x15e   : > { %v1839_v2 = vadd.f32 %v1838_v0, %v1837_v60  ;;  %v1840_v3 = vpop.f32.mrb[50].mxu1  ;;  %v1729_v4 = vpop.f32.mrb[51].mxu0 }
 0x15f   : > { %1350 = vst.msk [vmem:[%s2257_s20 + $0x5c] sm:$0xf] %vm1326_vm0, %v1628_v62  ;;  %v1007_v5 = vadd.f32 %v1727_v63, %v2249_v34  ;;  %v1730_v6 = vadd.f32 %v1729_v4, %v1728_v1  ;;  %v1841_v7 = vpop.f32.mrb[51].mxu1 }
 0x160   : > { %v1842_v8 = vadd.f32 %v1841_v7, %v1840_v3 }
 0x161   : > { %v1168_v9 = vadd.f32 %v1839_v2, %v1007_v5  ;;  %v1010_v10 = vadd.f32 %v1730_v6, %v2249_v34 }
 0x163   : > { %v1629_v11 = vpack.c.bf16 %v1168_v9, %v1168_v9  ;;  %v1171_v12 = vadd.f32 %v1842_v8, %v1010_v10  ;;  %v1731_v13 = vpop.f32.mrb[52].mxu0 }
 0x164   : > { %v1843_v14 = vpop.f32.mrb[52].mxu1  ;;  %v1732_v15 = vpop.f32.mrb[53].mxu0 }
 0x165   : > { %1351 = vst.msk [vmem:[%s2257_s20 + $0x60] sm:$0xf] %vm1326_vm0, %v1629_v11  ;;  %v1630_v16 = vpack.c.bf16 %v1171_v12, %v1171_v12  ;;  %v1733_v17 = vadd.f32 %v1732_v15, %v1731_v13  ;;  %v1844_v18 = vpop.f32.mrb[53].mxu1  ;;  %v1734_v19 = vpop.f32.mrb[54].mxu0 }
 0x166   : > { %v1845_v20 = vadd.f32 %v1844_v18, %v1843_v14  ;;  %v1846_v21 = vpop.f32.mrb[54].mxu1  ;;  %v1735_v22 = vpop.f32.mrb[55].mxu0 }
 0x167   : > { %1352 = vst.msk [vmem:[%s2257_s20 + $0x64] sm:$0xf] %vm1326_vm0, %v1630_v16  ;;  %v1015_v23 = vadd.f32 %v1733_v17, %v2249_v34  ;;  %v1736_v24 = vadd.f32 %v1735_v22, %v1734_v19  ;;  %v1847_v25 = vpop.f32.mrb[55].mxu1 }
 0x168   : > { %v1848_v26 = vadd.f32 %v1847_v25, %v1846_v21 }
 0x169   : > { %v1176_v27 = vadd.f32 %v1845_v20, %v1015_v23  ;;  %v1018_v28 = vadd.f32 %v1736_v24, %v2249_v34 }
 0x16b   : > { %v1631_v29 = vpack.c.bf16 %v1176_v27, %v1176_v27  ;;  %v1179_v30 = vadd.f32 %v1848_v26, %v1018_v28  ;;  %v1737_v31 = vpop.f32.mrb[56].mxu0 }
 0x16c   : > { %v1849_v32 = vpop.f32.mrb[56].mxu1  ;;  %v1738_v33 = vpop.f32.mrb[57].mxu0 }
 0x16d   : > { %1353 = vst.msk [vmem:[%s2257_s20 + $0x68] sm:$0xf] %vm1326_vm0, %v1631_v29  ;;  %v1632_v35 = vpack.c.bf16 %v1179_v30, %v1179_v30  ;;  %v1739_v36 = vadd.f32 %v1738_v33, %v1737_v31  ;;  %v1850_v37 = vpop.f32.mrb[57].mxu1  ;;  %v1740_v38 = vpop.f32.mrb[58].mxu0 }
 0x16e   : > { %v1851_v39 = vadd.f32 %v1850_v37, %v1849_v32  ;;  %v1852_v40 = vpop.f32.mrb[58].mxu1  ;;  %v1741_v41 = vpop.f32.mrb[59].mxu0 }
 0x16f   : > { %1354 = vst.msk [vmem:[%s2257_s20 + $0x6c] sm:$0xf] %vm1326_vm0, %v1632_v35  ;;  %v1023_v42 = vadd.f32 %v1739_v36, %v2249_v34  ;;  %v1742_v43 = vadd.f32 %v1741_v41, %v1740_v38  ;;  %v1853_v44 = vpop.f32.mrb[59].mxu1 }
 0x170   : > { %v1854_v45 = vadd.f32 %v1853_v44, %v1852_v40 }
 0x171   : > { %v1184_v46 = vadd.f32 %v1851_v39, %v1023_v42  ;;  %v1026_v47 = vadd.f32 %v1742_v43, %v2249_v34 }
 0x173   : > { %v1633_v48 = vpack.c.bf16 %v1184_v46, %v1184_v46  ;;  %v1187_v49 = vadd.f32 %v1854_v45, %v1026_v47  ;;  %v1743_v50 = vpop.f32.mrb[60].mxu0 }
 0x174   : > { %v1855_v51 = vpop.f32.mrb[60].mxu1  ;;  %v1744_v52 = vpop.f32.mrb[61].mxu0 }
 0x175   : > { %1355 = vst.msk [vmem:[%s2257_s20 + $0x70] sm:$0xf] %vm1326_vm0, %v1633_v48  ;;  %v1634_v53 = vpack.c.bf16 %v1187_v49, %v1187_v49  ;;  %v1745_v54 = vadd.f32 %v1744_v52, %v1743_v50  ;;  %v1856_v55 = vpop.f32.mrb[61].mxu1  ;;  %v1746_v56 = vpop.f32.mrb[62].mxu0 }
 0x176   : > { %v1857_v57 = vadd.f32 %v1856_v55, %v1855_v51  ;;  %v1858_v58 = vpop.f32.mrb[62].mxu1  ;;  %v1747_v59 = vpop.f32.mrb[63].mxu0 }
 0x177   : > { %1356 = vst.msk [vmem:[%s2257_s20 + $0x74] sm:$0xf] %vm1326_vm0, %v1634_v53  ;;  %v1031_v60 = vadd.f32 %v1745_v54, %v2249_v34  ;;  %v1748_v61 = vadd.f32 %v1747_v59, %v1746_v56  ;;  %v1859_v62 = vpop.f32.mrb[63].mxu1 }
 0x178   : > { %v1860_v63 = vadd.f32 %v1859_v62, %v1858_v58 }
 0x179   : > { %v1192_v0 = vadd.f32 %v1857_v57, %v1031_v60  ;;  %v1034_v1 = vadd.f32 %v1748_v61, %v2249_v34 }
 0x17b   : > { %v1635_v2 = vpack.c.bf16 %v1192_v0, %v1192_v0  ;;  %v1195_v3 = vadd.f32 %v1860_v63, %v1034_v1 }
 0x17d   : > { %1357 = vst.msk [vmem:[%s2257_s20 + $0x78] sm:$0xf] %vm1326_vm0, %v1635_v2  ;;  %v1636_v4 = vpack.c.bf16 %v1195_v3, %v1195_v3 }
 0x17f   : > { %1358 = vst.msk [vmem:[%s2257_s20 + $0x7c] sm:$0xf] %vm1326_vm0, %v1636_v4 }
 0x180 PF: > { %s13_s14 = sadd.s32 1, %s2035_s14   ;;  %s2366_s12 = smov %s2031_s13 }
 0x181   : > { %p10_p5 = scmp.ge.s32.totalorder %s13_s14, 4   ;;  %s2367_s13 = smov %s2369_s15 }
 0x183   :  { %12 = sbr.rel (!%p10_p5) target bundleno = 2 (0x2), region = 68 }

// kernel: encoder3_forward.9
= control target key start
LH: loop header
LB: loop body
LE: loop exit
PB: predicated region body
PF: predicated region fallthrough
CT: control target
= control target key end

     0   :  { %vm1370_vm0 = vcmask 519168   ;;  %s2409_s1 = inlined_call_operand.vmem [shape: bf16[1024,64], index: 1, kind: input, shape index: {}]   ;;  %s2410_s0 = inlined_call_operand.vmem [shape: bf16[128,1024], index: 0, kind: input, shape index: {}]   ;;  %s2411_s2 = inlined_call_operand.vmem [shape: f32[1,64], index: 2, kind: input, shape index: {}]   ;;  %s2412_s3 = inlined_call_operand.vmem [shape: bf16[128,64], index: 3, kind: output, shape index: {}]  }
   0x1   :  { %v1808_v0 = vld [vmem:[%s2409_s1 + $0x40] sm:$0xff]   ;;  %v1812_v4 = vld [vmem:[%s2409_s1 + $0x48] sm:$0xff]   ;;  %v1816_v8 = vld [vmem:[%s2409_s1 + $0x50] sm:$0xff]  }
   0x2   :  { %v1809_v1 = vld [vmem:[%s2409_s1 + $0xc0] sm:$0xff]   ;;  %1552 = vmatprep.subr.bf16.mxu0 %v1808_v0  ;;  %v1813_v5 = vld [vmem:[%s2409_s1 + $0xc8] sm:$0xff]   ;;  %v1817_v9 = vld [vmem:[%s2409_s1 + $0xd0] sm:$0xff]  }
   0x3   :  { %v1810_v2 = vld [vmem:[%s2409_s1] sm:$0xff]   ;;  %1616 = vmatprep.subr.bf16.mxu1 %v1809_v1  ;;  %v1814_v6 = vld [vmem:[%s2409_s1 + $0x8] sm:$0xff]   ;;  %v1818_v10 = vld [vmem:[%s2409_s1 + $0x10] sm:$0xff]  }
   0x4   :  { %v1811_v3 = vld [vmem:[%s2409_s1 + $0x80] sm:$0xff]   ;;  %1553 = vmatpush3.bf16.msra.mxu0 %v1810_v2  ;;  %v1815_v7 = vld [vmem:[%s2409_s1 + $0x88] sm:$0xff]   ;;  %v1819_v11 = vld [vmem:[%s2409_s1 + $0x90] sm:$0xff]  }
   0x5   :  { %1617 = vmatpush3.bf16.msra.mxu1 %v1811_v3  ;;  %1554 = vmatprep.subr.bf16.mxu0 %v1812_v4  ;;  %v1820_v12 = vld [vmem:[%s2409_s1 + $0x58] sm:$0xff]   ;;  %v1824_v16 = vld [vmem:[%s2409_s1 + $0x60] sm:$0xff]   ;;  %v1828_v20 = vld [vmem:[%s2409_s1 + $0x68] sm:$0xff]  }
   0x6   :  { %1618 = vmatprep.subr.bf16.mxu1 %v1813_v5  ;;  %v1821_v13 = vld [vmem:[%s2409_s1 + $0xd8] sm:$0xff]   ;;  %v1825_v17 = vld [vmem:[%s2409_s1 + $0xe0] sm:$0xff]   ;;  %v1829_v21 = vld [vmem:[%s2409_s1 + $0xe8] sm:$0xff]  }
   0x7   :  { %v1822_v14 = vld [vmem:[%s2409_s1 + $0x18] sm:$0xff]   ;;  %v1826_v18 = vld [vmem:[%s2409_s1 + $0x20] sm:$0xff]   ;;  %v1830_v22 = vld [vmem:[%s2409_s1 + $0x28] sm:$0xff]  }
   0x8   :  { %1555 = vmatpush3.bf16.msra.mxu0 %v1814_v6  ;;  %v1823_v15 = vld [vmem:[%s2409_s1 + $0x98] sm:$0xff]   ;;  %v1827_v19 = vld [vmem:[%s2409_s1 + $0xa0] sm:$0xff]   ;;  %v1831_v23 = vld [vmem:[%s2409_s1 + $0xa8] sm:$0xff]  }
   0x9   :  { %1619 = vmatpush3.bf16.msra.mxu1 %v1815_v7  ;;  %1556 = vmatprep.subr.bf16.mxu0 %v1816_v8  ;;  %v1832_v24 = vld [vmem:[%s2409_s1 + $0x70] sm:$0xff]   ;;  %v1836_v28 = vld [vmem:[%s2409_s1 + $0x78] sm:$0xff]   ;;  %v15_v32 = vld [vmem:[%s2410_s0] sm:$0xff] }
   0xa   :  { %1620 = vmatprep.subr.bf16.mxu1 %v1817_v9  ;;  %v1833_v25 = vld [vmem:[%s2409_s1 + $0xf0] sm:$0xff]   ;;  %v1837_v29 = vld [vmem:[%s2409_s1 + $0xf8] sm:$0xff]   ;;  %v19_v33 = vld [vmem:[%s2410_s0 + $0x20] sm:$0xff] }
   0xb   :  { %v1834_v26 = vld [vmem:[%s2409_s1 + $0x30] sm:$0xff]   ;;  %v1838_v30 = vld [vmem:[%s2409_s1 + $0x38] sm:$0xff]   ;;  %v16_v34 = vld [vmem:[%s2410_s0 + $0x8] sm:$0xff]  ;;  %v1392_v35 = vcombine.low %v15_v32, %v19_v33  ;;  %v1393_v36 = vcombine.high %v15_v32, %v19_v33 }
   0xc   :  { %1557 = vmatpush3.bf16.msra.mxu0 %v1818_v10  ;;  %v1835_v27 = vld [vmem:[%s2409_s1 + $0xb0] sm:$0xff]   ;;  %v1839_v31 = vld [vmem:[%s2409_s1 + $0xb8] sm:$0xff]   ;;  %v20_v37 = vld [vmem:[%s2410_s0 + $0x28] sm:$0xff] }
   0xd   :  { %1621 = vmatpush3.bf16.msra.mxu1 %v1819_v11  ;;  %1558 = vmatprep.subr.bf16.mxu0 %v1820_v12  ;;  %v1394_v38 = vcombine.low %v16_v34, %v20_v37  ;;  %v1395_v39 = vcombine.high %v16_v34, %v20_v37  ;;  %v1840_v40 = vld [vmem:[%s2409_s1 + $0x140] sm:$0xff]   ;;  %v24_v47 = vld [vmem:[%s2410_s0 + $0x48] sm:$0xff]  ;;  %v1848_v62 = vld [vmem:[%s2409_s1 + $0x150] sm:$0xff]  }
   0xe   :  { %1622 = vmatprep.subr.bf16.mxu1 %v1821_v13  ;;  %950 = vmatprep.mubr.bf16.mxu0 %v1393_v36  ;;  %v1841_v41 = vld [vmem:[%s2409_s1 + $0x100] sm:$0xff]   ;;  %v28_v48 = vld [vmem:[%s2410_s0 + $0x68] sm:$0xff]  ;;  %v1849_v63 = vld [vmem:[%s2409_s1 + $0x110] sm:$0xff]  }
   0xf   :  { %1047 = vmatprep.mubr.bf16.mxu1 %v1395_v39  ;;  %v1842_v42 = vld [vmem:[%s2409_s1 + $0x1c0] sm:$0xff]   ;;  %v1403_v49 = vcombine.high %v24_v47, %v28_v48  ;;  %v1844_v50 = vld [vmem:[%s2409_s1 + $0x148] sm:$0xff]   ;;  %v1402_v53 = vcombine.low %v24_v47, %v28_v48  ;;  %v1850_v0 = vld [vmem:[%s2409_s1 + $0x1d0] sm:$0xff]  }
  0x10   :  { %1559 = vmatpush3.bf16.msra.mxu0 %v1822_v14  ;;  %v1843_v43 = vld [vmem:[%s2409_s1 + $0x180] sm:$0xff]   ;;  %v1845_v52 = vld [vmem:[%s2409_s1 + $0x108] sm:$0xff]   ;;  %v1851_v1 = vld [vmem:[%s2409_s1 + $0x190] sm:$0xff]  }
  0x11   :  { %1623 = vmatpush3.bf16.msra.mxu1 %v1823_v15  ;;  %1560 = vmatprep.subr.bf16.mxu0 %v1824_v16  ;;  %v23_v44 = vld [vmem:[%s2410_s0 + $0x40] sm:$0xff]  ;;  %v1846_v54 = vld [vmem:[%s2409_s1 + $0x1c8] sm:$0xff]   ;;  %v1852_v10 = vld [vmem:[%s2409_s1 + $0x158] sm:$0xff]  }
  0x12   :  { %1624 = vmatprep.subr.bf16.mxu1 %v1825_v17  ;;  %v27_v45 = vld [vmem:[%s2410_s0 + $0x60] sm:$0xff]  ;;  %v1847_v55 = vld [vmem:[%s2409_s1 + $0x188] sm:$0xff]   ;;  %v1853_v11 = vld [vmem:[%s2409_s1 + $0x118] sm:$0xff]  }
  0x13   :  { %v1401_v46 = vcombine.high %v23_v44, %v27_v45  ;;  %v1400_v51 = vcombine.low %v23_v44, %v27_v45  ;;  %v31_v56 = vld [vmem:[%s2410_s0 + $0x80] sm:$0xff]  ;;  %v32_v58 = vld [vmem:[%s2410_s0 + $0x88] sm:$0xff]  ;;  %v1854_v12 = vld [vmem:[%s2409_s1 + $0x1d8] sm:$0xff]  }
  0x14   :  { %1561 = vmatpush3.bf16.msra.mxu0 %v1826_v18  ;;  %v35_v57 = vld [vmem:[%s2410_s0 + $0xa0] sm:$0xff]  ;;  %v36_v59 = vld [vmem:[%s2410_s0 + $0xa8] sm:$0xff]  ;;  %v1855_v13 = vld [vmem:[%s2409_s1 + $0x198] sm:$0xff]  }
  0x15   :  { %1625 = vmatpush3.bf16.msra.mxu1 %v1827_v19  ;;  %1562 = vmatprep.subr.bf16.mxu0 %v1828_v20  ;;  %v1409_v60 = vcombine.high %v31_v56, %v35_v57  ;;  %v1411_v61 = vcombine.high %v32_v58, %v36_v59  ;;  %v1408_v2 = vcombine.low %v31_v56, %v35_v57  ;;  %v39_v3 = vld [vmem:[%s2410_s0 + $0xc0] sm:$0xff]  ;;  %v40_v5 = vld [vmem:[%s2410_s0 + $0xc8] sm:$0xff]  ;;  %v1865_v39 = vld [vmem:[%s2409_s1 + $0x130] sm:$0xff]  }
  0x16   :  { %1626 = vmatprep.subr.bf16.mxu1 %v1829_v21  ;;  %v43_v4 = vld [vmem:[%s2410_s0 + $0xe0] sm:$0xff]  ;;  %v1410_v6 = vcombine.low %v32_v58, %v36_v59  ;;  %v44_v8 = vld [vmem:[%s2410_s0 + $0xe8] sm:$0xff]  ;;  %v1869_v48 = vld [vmem:[%s2409_s1 + $0x138] sm:$0xff]  }
  0x17   :  { %v1417_v7 = vcombine.high %v39_v3, %v43_v4  ;;  %v1419_v9 = vcombine.high %v40_v5, %v44_v8  ;;  %v47_v14 = vld [vmem:[%s2410_s0 + $0x100] sm:$0xff]  ;;  %v48_v16 = vld [vmem:[%s2410_s0 + $0x108] sm:$0xff]  ;;  %v1416_v19 = vcombine.low %v39_v3, %v43_v4  ;;  %v1418_v21 = vcombine.low %v40_v5, %v44_v8  ;;  %v26_v8 = vld [vmem:[%s2410_s0 + $0x58] sm:$0xff] }
  0x18   :  { %1563 = vmatpush3.bf16.msra.mxu0 %v1830_v22  ;;  %v51_v15 = vld [vmem:[%s2410_s0 + $0x120] sm:$0xff]  ;;  %v52_v17 = vld [vmem:[%s2410_s0 + $0x128] sm:$0xff] }
  0x19   :  { %1627 = vmatpush3.bf16.msra.mxu1 %v1831_v23  ;;  %1564 = vmatprep.subr.bf16.mxu0 %v1832_v24  ;;  %v1856_v18 = vld [vmem:[%s2409_s1 + $0x160] sm:$0xff]   ;;  %v1425_v22 = vcombine.high %v47_v14, %v51_v15  ;;  %v1427_v24 = vcombine.high %v48_v16, %v52_v17  ;;  %v1862_v32 = vld [vmem:[%s2409_s1 + $0x1e8] sm:$0xff]   ;;  %v1424_v34 = vcombine.low %v47_v14, %v51_v15  ;;  %v33_v14 = vld [vmem:[%s2410_s0 + $0x90] sm:$0xff] }
  0x1a   :  { %1628 = vmatprep.subr.bf16.mxu1 %v1833_v25  ;;  %v1857_v20 = vld [vmem:[%s2409_s1 + $0x120] sm:$0xff]   ;;  %v1863_v33 = vld [vmem:[%s2409_s1 + $0x1a8] sm:$0xff]   ;;  %v37_v15 = vld [vmem:[%s2410_s0 + $0xb0] sm:$0xff] }
  0x1b   :  { %v1858_v23 = vld [vmem:[%s2409_s1 + $0x1e0] sm:$0xff]   ;;  %v64_v44 = vld [vmem:[%s2410_s0 + $0x188] sm:$0xff] }
  0x1c   :  { %1565 = vmatpush3.bf16.msra.mxu0 %v1834_v26  ;;  %v1859_v25 = vld [vmem:[%s2409_s1 + $0x1a0] sm:$0xff]   ;;  %v68_v45 = vld [vmem:[%s2410_s0 + $0x1a8] sm:$0xff] }
  0x1d   :  { %1629 = vmatpush3.bf16.msra.mxu1 %v1835_v27  ;;  %1566 = vmatprep.subr.bf16.mxu0 %v1836_v28  ;;  %v55_v26 = vld [vmem:[%s2410_s0 + $0x140] sm:$0xff]  ;;  %v1860_v28 = vld [vmem:[%s2409_s1 + $0x168] sm:$0xff]   ;;  %v1442_v59 = vcombine.low %v64_v44, %v68_v45 }
  0x1e   :  { %1630 = vmatprep.subr.bf16.mxu1 %v1837_v29  ;;  %v59_v27 = vld [vmem:[%s2410_s0 + $0x160] sm:$0xff]  ;;  %v56_v29 = vld [vmem:[%s2410_s0 + $0x148] sm:$0xff] }
  0x1f   :  { %v1433_v36 = vcombine.high %v55_v26, %v59_v27  ;;  %v1432_v47 = vcombine.low %v55_v26, %v59_v27  ;;  %v72_v56 = vld [vmem:[%s2410_s0 + $0x1c8] sm:$0xff]  ;;  %v1412_v26 = vcombine.low %v33_v14, %v37_v15 }
  0x20   :  { %1567 = vmatpush3.bf16.msra.mxu0 %v1838_v30  ;;  %v60_v30 = vld [vmem:[%s2410_s0 + $0x168] sm:$0xff] }
  0x21   :  { %1631 = vmatpush3.bf16.msra.mxu1 %v1839_v31  ;;  %1680 = vmatprep.subr.bf16.mxu0 %v1840_v40  ;;  %v1861_v31 = vld [vmem:[%s2409_s1 + $0x128] sm:$0xff]   ;;  %v1435_v37 = vcombine.high %v56_v29, %v60_v30  ;;  %v1866_v40 = vld [vmem:[%s2409_s1 + $0x1f0] sm:$0xff]  }
  0x22   :  { %1744 = vmatprep.subr.bf16.mxu1 %v1842_v42  ;;  %v67_v42 = vld [vmem:[%s2410_s0 + $0x1a0] sm:$0xff]  ;;  %v76_v57 = vld [vmem:[%s2410_s0 + $0x1e8] sm:$0xff] }
  0x23   :  { %951 = vmatmul.mubr.bf16.vlgmr.msra.gmra.mrb[0].mxu0 %v1392_v35  ;;  %v1426_v35 = vcombine.low %v48_v16, %v52_v17  ;;  %v1450_v3 = vcombine.low %v72_v56, %v76_v57  ;;  %v34_v16 = vld [vmem:[%s2410_s0 + $0x98] sm:$0xff] }
  0x24   :  { %1048 = vmatmul.mubr.bf16.vlgmr.msra.gmra.mrb[0].mxu1 %v1394_v38  ;;  %1681 = vmatpush3.bf16.msra.mxu0 %v1841_v41  ;;  %v1864_v38 = vld [vmem:[%s2409_s1 + $0x170] sm:$0xff]   ;;  %v63_v41 = vld [vmem:[%s2410_s0 + $0x180] sm:$0xff]  ;;  %v38_v17 = vld [vmem:[%s2410_s0 + $0xb8] sm:$0xff] }
  0x25   :  { %1745 = vmatpush3.bf16.msra.mxu1 %v1843_v43  ;;  %958 = vmatprep.mubr.bf16.mxu0 %v1401_v46  ;;  %v1867_v43 = vld [vmem:[%s2409_s1 + $0x1b0] sm:$0xff]   ;;  %v1868_v46 = vld [vmem:[%s2409_s1 + $0x178] sm:$0xff]   ;;  %v1440_v58 = vcombine.low %v63_v41, %v67_v42  ;;  %v1414_v27 = vcombine.low %v34_v16, %v38_v17 }
  0x26   :  { %1055 = vmatprep.mubr.bf16.mxu1 %v1403_v49  ;;  %1682 = vmatprep.subr.bf16.mxu0 %v1844_v50  ;;  %v1434_v49 = vcombine.low %v56_v29, %v60_v30  ;;  %v1441_v50 = vcombine.high %v63_v41, %v67_v42  ;;  %v49_v30 = vld [vmem:[%s2410_s0 + $0x110] sm:$0xff]  ;;  %v62_v41 = vld [vmem:[%s2410_s0 + $0x178] sm:$0xff] }
  0x27   :  { %1746 = vmatprep.subr.bf16.mxu1 %v1846_v54  ;;  %v71_v54 = vld [vmem:[%s2410_s0 + $0x1c0] sm:$0xff] }
  0x28   :  { %1683 = vmatpush3.bf16.msra.mxu0 %v1845_v52  ;;  %v1443_v52 = vcombine.high %v64_v44, %v68_v45 }
  0x29   :  { %1747 = vmatpush3.bf16.msra.mxu1 %v1847_v55  ;;  %1684 = vmatprep.subr.bf16.mxu0 %v1848_v62  ;;  %v75_v55 = vld [vmem:[%s2410_s0 + $0x1e0] sm:$0xff]  ;;  %v17_v62 = vld [vmem:[%s2410_s0 + $0x10] sm:$0xff] }
  0x2a   :  { %1748 = vmatprep.subr.bf16.mxu1 %v1850_v0  ;;  %v18_v0 = vld [vmem:[%s2410_s0 + $0x18] sm:$0xff] }
  0x2b   :  { %959 = vmatmul.mubr.bf16.gmra.mrb[4].mxu0 %v1400_v51  ;;  %v1870_v51 = vld [vmem:[%s2409_s1 + $0x1f8] sm:$0xff]  }
  0x2c   :  { %1056 = vmatmul.mubr.bf16.gmra.mrb[4].mxu1 %v1402_v53  ;;  %966 = vmatprep.mubr.bf16.mxu0 %v1409_v60  ;;  %v1871_v53 = vld [vmem:[%s2409_s1 + $0x1b8] sm:$0xff]   ;;  %v1449_v60 = vcombine.high %v71_v54, %v75_v55 }
  0x2d   :  { %1063 = vmatprep.mubr.bf16.mxu1 %v1411_v61  ;;  %1685 = vmatpush3.bf16.msra.mxu0 %v1849_v63  ;;  %v1451_v61 = vcombine.high %v72_v56, %v76_v57  ;;  %v21_v63 = vld [vmem:[%s2410_s0 + $0x30] sm:$0xff]  ;;  %v74_v56 = vld [vmem:[%s2410_s0 + $0x1d8] sm:$0xff] }
  0x2e   :  { %1749 = vmatpush3.bf16.msra.mxu1 %v1851_v1  ;;  %1686 = vmatprep.subr.bf16.mxu0 %v1852_v10  ;;  %v22_v1 = vld [vmem:[%s2410_s0 + $0x38] sm:$0xff]  ;;  %v1397_v4 = vcombine.high %v17_v62, %v21_v63  ;;  %v1396_v10 = vcombine.low %v17_v62, %v21_v63 }
  0x2f   :  { %1750 = vmatprep.subr.bf16.mxu1 %v1854_v12  ;;  %v1399_v5 = vcombine.high %v18_v0, %v22_v1  ;;  %v78_v57 = vld [vmem:[%s2410_s0 + $0x1f8] sm:$0xff] }
  0x30   :  { %v1454_v63 = vcombine.low %v74_v56, %v78_v57 }
  0x31   :  { %1687 = vmatpush3.bf16.msra.mxu0 %v1853_v11  ;;  %v1398_v11 = vcombine.low %v18_v0, %v22_v1 }
  0x32   :  { %1751 = vmatpush3.bf16.msra.mxu1 %v1855_v13  ;;  %1688 = vmatprep.subr.bf16.mxu0 %v1856_v18 }
  0x33   :  { %967 = vmatmul.mubr.bf16.gmra.mrb[8].mxu0 %v1408_v2  ;;  %1752 = vmatprep.subr.bf16.mxu1 %v1858_v23  ;;  %v1448_v2 = vcombine.low %v71_v54, %v75_v55  ;;  %v45_v23 = vld [vmem:[%s2410_s0 + $0xf0] sm:$0xff] }
  0x34   :  { %1064 = vmatmul.mubr.bf16.gmra.mrb[8].mxu1 %v1410_v6  ;;  %974 = vmatprep.mubr.bf16.mxu0 %v1417_v7  ;;  %v25_v6 = vld [vmem:[%s2410_s0 + $0x50] sm:$0xff] }
  0x35   :  { %1071 = vmatprep.mubr.bf16.mxu1 %v1419_v9  ;;  %1689 = vmatpush3.bf16.msra.mxu0 %v1857_v20  ;;  %v29_v7 = vld [vmem:[%s2410_s0 + $0x70] sm:$0xff]  ;;  %v30_v9 = vld [vmem:[%s2410_s0 + $0x78] sm:$0xff]  ;;  %v1413_v20 = vcombine.high %v33_v14, %v37_v15 }
  0x36   :  { %1753 = vmatpush3.bf16.msra.mxu1 %v1859_v25  ;;  %1690 = vmatprep.subr.bf16.mxu0 %v1860_v28  ;;  %v1405_v12 = vcombine.high %v25_v6, %v29_v7  ;;  %v1407_v13 = vcombine.high %v26_v8, %v30_v9  ;;  %v1404_v18 = vcombine.low %v25_v6, %v29_v7  ;;  %v46_v25 = vld [vmem:[%s2410_s0 + $0xf8] sm:$0xff]  ;;  %v73_v54 = vld [vmem:[%s2410_s0 + $0x1d0] sm:$0xff] }
  0x37   :  { %1754 = vmatprep.subr.bf16.mxu1 %v1862_v32  ;;  %v50_v32 = vld [vmem:[%s2410_s0 + $0x118] sm:$0xff]  ;;  %v77_v55 = vld [vmem:[%s2410_s0 + $0x1f0] sm:$0xff] }
  0x38   :  { %v1452_v62 = vcombine.low %v73_v54, %v77_v55 }
  0x39   :  { %1691 = vmatpush3.bf16.msra.mxu0 %v1861_v31  ;;  %v53_v31 = vld [vmem:[%s2410_s0 + $0x130] sm:$0xff] }
  0x3a   :  { %1755 = vmatpush3.bf16.msra.mxu1 %v1863_v33  ;;  %1692 = vmatprep.subr.bf16.mxu0 %v1864_v38  ;;  %v54_v33 = vld [vmem:[%s2410_s0 + $0x138] sm:$0xff]  ;;  %v57_v38 = vld [vmem:[%s2410_s0 + $0x150] sm:$0xff]  ;;  %v1428_v42 = vcombine.low %v49_v30, %v53_v31 }
  0x3b   :  { %975 = vmatmul.mubr.bf16.gmra.mrb[12].mxu0 %v1416_v19  ;;  %1756 = vmatprep.subr.bf16.mxu1 %v1866_v40  ;;  %v1406_v19 = vcombine.low %v26_v8, %v30_v9  ;;  %v58_v40 = vld [vmem:[%s2410_s0 + $0x158] sm:$0xff] }
  0x3c   :  { %1072 = vmatmul.mubr.bf16.gmra.mrb[12].mxu1 %v1418_v21  ;;  %982 = vmatprep.mubr.bf16.mxu0 %v1425_v22  ;;  %v1415_v21 = vcombine.high %v34_v16, %v38_v17  ;;  %v41_v22 = vld [vmem:[%s2410_s0 + $0xd0] sm:$0xff]  ;;  %v1439_v45 = vcombine.high %v58_v40, %v62_v41 }
  0x3d   :  { %1079 = vmatprep.mubr.bf16.mxu1 %v1427_v24  ;;  %1693 = vmatpush3.bf16.msra.mxu0 %v1865_v39  ;;  %v42_v24 = vld [vmem:[%s2410_s0 + $0xd8] sm:$0xff]  ;;  %v1421_v28 = vcombine.high %v41_v22, %v45_v23  ;;  %v61_v39 = vld [vmem:[%s2410_s0 + $0x170] sm:$0xff] }
  0x3e   :  { %1757 = vmatpush3.bf16.msra.mxu1 %v1867_v43  ;;  %1694 = vmatprep.subr.bf16.mxu0 %v1868_v46  ;;  %v1423_v29 = vcombine.high %v42_v24, %v46_v25  ;;  %v1430_v43 = vcombine.low %v50_v32, %v54_v33  ;;  %v1437_v44 = vcombine.high %v57_v38, %v61_v39  ;;  %v65_v46 = vld [vmem:[%s2410_s0 + $0x190] sm:$0xff] }
  0x3f   :  { %1758 = vmatprep.subr.bf16.mxu1 %v1870_v51  ;;  %v1438_v51 = vcombine.low %v58_v40, %v62_v41 }
  0x41   :  { %1695 = vmatpush3.bf16.msra.mxu0 %v1869_v48  ;;  %v66_v48 = vld [vmem:[%s2410_s0 + $0x198] sm:$0xff] }
  0x42   :  { %1759 = vmatpush3.bf16.msra.mxu1 %v1871_v53 }
  0x43   :  { %983 = vmatmul.mubr.bf16.gmra.mrb[16].mxu0 %v1424_v34  ;;  %v1420_v34 = vcombine.low %v41_v22, %v45_v23 }
  0x44   :  { %1080 = vmatmul.mubr.bf16.gmra.mrb[16].mxu1 %v1426_v35  ;;  %990 = vmatprep.mubr.bf16.mxu0 %v1433_v36  ;;  %v1422_v35 = vcombine.low %v42_v24, %v46_v25  ;;  %v1429_v36 = vcombine.high %v49_v30, %v53_v31 }
  0x45   :  { %1087 = vmatprep.mubr.bf16.mxu1 %v1435_v37  ;;  %v1431_v37 = vcombine.high %v50_v32, %v54_v33 }
  0x4b   :  { %991 = vmatmul.mubr.bf16.gmra.mrb[20].mxu0 %v1432_v47  ;;  %v69_v47 = vld [vmem:[%s2410_s0 + $0x1b0] sm:$0xff] }
  0x4c   :  { %1088 = vmatmul.mubr.bf16.gmra.mrb[20].mxu1 %v1434_v49  ;;  %998 = vmatprep.mubr.bf16.mxu0 %v1441_v50  ;;  %v70_v49 = vld [vmem:[%s2410_s0 + $0x1b8] sm:$0xff]  ;;  %v1436_v50 = vcombine.low %v57_v38, %v61_v39 }
  0x4d   :  { %1095 = vmatprep.mubr.bf16.mxu1 %v1443_v52  ;;  %v1445_v52 = vcombine.high %v65_v46, %v69_v47  ;;  %v1447_v53 = vcombine.high %v66_v48, %v70_v49 }
  0x53   :  { %999 = vmatmul.mubr.bf16.gmra.mrb[24].mxu0 %v1440_v58  ;;  %v1444_v58 = vcombine.low %v65_v46, %v69_v47 }
  0x54   :  { %1096 = vmatmul.mubr.bf16.gmra.mrb[24].mxu1 %v1442_v59  ;;  %1006 = vmatprep.mubr.bf16.mxu0 %v1449_v60  ;;  %v1446_v59 = vcombine.low %v66_v48, %v70_v49  ;;  %v1453_v60 = vcombine.high %v73_v54, %v77_v55 }
  0x55   :  { %1103 = vmatprep.mubr.bf16.mxu1 %v1451_v61  ;;  %v1455_v61 = vcombine.high %v74_v56, %v78_v57 }
  0x5b   :  { %1007 = vmatmul.mubr.bf16.gmra.mrb[28].mxu0 %v1448_v2  ;;  %v2279_v2 = vld [vmem:[%s2411_s2] ss:$0 sm:$0xff] }
  0x5c   :  { %1104 = vmatmul.mubr.bf16.gmra.mrb[28].mxu1 %v1450_v3  ;;  %1144 = vmatprep.mubr.bf16.mxu0 %v1397_v4 }
  0x5d   :  { %1241 = vmatprep.mubr.bf16.mxu1 %v1399_v5 }
  0x63   :  { %1145 = vmatmul.mubr.bf16.vlgmr.msra.gmra.mrb[32].mxu0 %v1396_v10 }
  0x64   :  { %1242 = vmatmul.mubr.bf16.vlgmr.msra.gmra.mrb[32].mxu1 %v1398_v11  ;;  %1152 = vmatprep.mubr.bf16.mxu0 %v1405_v12 }
  0x65   :  { %1249 = vmatprep.mubr.bf16.mxu1 %v1407_v13 }
  0x6b   :  { %1153 = vmatmul.mubr.bf16.gmra.mrb[36].mxu0 %v1404_v18 }
  0x6c   :  { %1250 = vmatmul.mubr.bf16.gmra.mrb[36].mxu1 %v1406_v19  ;;  %1160 = vmatprep.mubr.bf16.mxu0 %v1413_v20 }
  0x6d   :  { %1257 = vmatprep.mubr.bf16.mxu1 %v1415_v21 }
  0x73   :  { %1161 = vmatmul.mubr.bf16.gmra.mrb[40].mxu0 %v1412_v26 }
  0x74   :  { %1258 = vmatmul.mubr.bf16.gmra.mrb[40].mxu1 %v1414_v27  ;;  %1168 = vmatprep.mubr.bf16.mxu0 %v1421_v28 }
  0x75   :  { %1265 = vmatprep.mubr.bf16.mxu1 %v1423_v29 }
  0x7b   :  { %1169 = vmatmul.mubr.bf16.gmra.mrb[44].mxu0 %v1420_v34 }
  0x7c   :  { %1266 = vmatmul.mubr.bf16.gmra.mrb[44].mxu1 %v1422_v35  ;;  %1176 = vmatprep.mubr.bf16.mxu0 %v1429_v36 }
  0x7d   :  { %1273 = vmatprep.mubr.bf16.mxu1 %v1431_v37 }
  0x83   :  { %1177 = vmatmul.mubr.bf16.gmra.mrb[48].mxu0 %v1428_v42 }
  0x84   :  { %1274 = vmatmul.mubr.bf16.gmra.mrb[48].mxu1 %v1430_v43  ;;  %1184 = vmatprep.mubr.bf16.mxu0 %v1437_v44 }
  0x85   :  { %1281 = vmatprep.mubr.bf16.mxu1 %v1439_v45 }
  0x8b   :  { %1185 = vmatmul.mubr.bf16.gmra.mrb[52].mxu0 %v1436_v50 }
  0x8c   :  { %1282 = vmatmul.mubr.bf16.gmra.mrb[52].mxu1 %v1438_v51  ;;  %1192 = vmatprep.mubr.bf16.mxu0 %v1445_v52 }
  0x8d   :  { %1289 = vmatprep.mubr.bf16.mxu1 %v1447_v53 }
  0x93   :  { %1193 = vmatmul.mubr.bf16.gmra.mrb[56].mxu0 %v1444_v58 }
  0x94   :  { %1290 = vmatmul.mubr.bf16.gmra.mrb[56].mxu1 %v1446_v59  ;;  %1200 = vmatprep.mubr.bf16.mxu0 %v1453_v60 }
  0x95   :  { %1297 = vmatprep.mubr.bf16.mxu1 %v1455_v61 }
  0x9b   :  { %1201 = vmatmul.mubr.bf16.gmra.mrb[60].mxu0 %v1452_v62 }
  0x9c   :  { %1298 = vmatmul.mubr.bf16.gmra.mrb[60].mxu1 %v1454_v63 }
  0xf6   :  { %v1568_v0 = vpop.f32.mrb[0].mxu0 }
  0xf7   :  { %v1632_v1 = vpop.f32.mrb[0].mxu1  ;;  %v1569_v3 = vpop.f32.mrb[1].mxu0 }
  0xf8   :  { %v1570_v4 = vadd.f32 %v1569_v3, %v1568_v0  ;;  %v1633_v5 = vpop.f32.mrb[1].mxu1  ;;  %v1571_v6 = vpop.f32.mrb[2].mxu0 }
  0xf9   :  { %v1634_v7 = vadd.f32 %v1633_v5, %v1632_v1  ;;  %v1635_v8 = vpop.f32.mrb[2].mxu1  ;;  %v1572_v9 = vpop.f32.mrb[3].mxu0 }
  0xfa   :  { %v953_v10 = vadd.f32 %v1570_v4, %v2279_v2  ;;  %v1573_v11 = vadd.f32 %v1572_v9, %v1571_v6  ;;  %v1636_v12 = vpop.f32.mrb[3].mxu1 }
  0xfb   :  { %v1637_v13 = vadd.f32 %v1636_v12, %v1635_v8 }
  0xfc   :  { %v2282_v14 = vadd.f32 %v1634_v7, %v953_v10  ;;  %v956_v15 = vadd.f32 %v1573_v11, %v2279_v2 }
  0xfe   :  { %v2285_v16 = vadd.f32 %v1637_v13, %v956_v15  ;;  %v1574_v17 = vpop.f32.mrb[4].mxu0 }
  0xff   :  { %v1638_v18 = vpop.f32.mrb[4].mxu1  ;;  %v1575_v19 = vpop.f32.mrb[5].mxu0 }
 0x100   :  { %v1576_v20 = vadd.f32 %v1575_v19, %v1574_v17  ;;  %v1639_v21 = vpop.f32.mrb[5].mxu1  ;;  %v1577_v22 = vpop.f32.mrb[6].mxu0 }
 0x101   :  { %v1640_v23 = vadd.f32 %v1639_v21, %v1638_v18  ;;  %v1641_v24 = vpop.f32.mrb[6].mxu1  ;;  %v1578_v25 = vpop.f32.mrb[7].mxu0 }
 0x102   :  { %v961_v26 = vadd.f32 %v1576_v20, %v2279_v2  ;;  %v1579_v27 = vadd.f32 %v1578_v25, %v1577_v22  ;;  %v1642_v28 = vpop.f32.mrb[7].mxu1 }
 0x103   :  { %v1643_v29 = vadd.f32 %v1642_v28, %v1641_v24 }
 0x104   :  { %v2288_v30 = vadd.f32 %v1640_v23, %v961_v26  ;;  %v964_v31 = vadd.f32 %v1579_v27, %v2279_v2 }
 0x106   :  { %v2291_v32 = vadd.f32 %v1643_v29, %v964_v31  ;;  %v1580_v33 = vpop.f32.mrb[8].mxu0 }
 0x107   :  { %v1644_v34 = vpop.f32.mrb[8].mxu1  ;;  %v1581_v35 = vpop.f32.mrb[9].mxu0 }
 0x108   :  { %v1582_v36 = vadd.f32 %v1581_v35, %v1580_v33  ;;  %v1645_v37 = vpop.f32.mrb[9].mxu1  ;;  %v1583_v38 = vpop.f32.mrb[10].mxu0 }
 0x109   :  { %v1646_v39 = vadd.f32 %v1645_v37, %v1644_v34  ;;  %v1647_v40 = vpop.f32.mrb[10].mxu1  ;;  %v1584_v41 = vpop.f32.mrb[11].mxu0 }
 0x10a   :  { %v969_v42 = vadd.f32 %v1582_v36, %v2279_v2  ;;  %v1585_v43 = vadd.f32 %v1584_v41, %v1583_v38  ;;  %v1648_v44 = vpop.f32.mrb[11].mxu1 }
 0x10b   :  { %v1649_v45 = vadd.f32 %v1648_v44, %v1647_v40 }
 0x10c   :  { %v2294_v46 = vadd.f32 %v1646_v39, %v969_v42  ;;  %v972_v47 = vadd.f32 %v1585_v43, %v2279_v2 }
 0x10e   :  { %v2297_v48 = vadd.f32 %v1649_v45, %v972_v47  ;;  %v1586_v49 = vpop.f32.mrb[12].mxu0 }
 0x10f   :  { %v1650_v50 = vpop.f32.mrb[12].mxu1  ;;  %v1587_v51 = vpop.f32.mrb[13].mxu0 }
 0x110   :  { %v1588_v52 = vadd.f32 %v1587_v51, %v1586_v49  ;;  %v1651_v53 = vpop.f32.mrb[13].mxu1  ;;  %v1589_v54 = vpop.f32.mrb[14].mxu0 }
 0x111   :  { %v1652_v55 = vadd.f32 %v1651_v53, %v1650_v50  ;;  %v1653_v56 = vpop.f32.mrb[14].mxu1  ;;  %v1590_v57 = vpop.f32.mrb[15].mxu0 }
 0x112   :  { %v977_v58 = vadd.f32 %v1588_v52, %v2279_v2  ;;  %v1591_v59 = vadd.f32 %v1590_v57, %v1589_v54  ;;  %v1654_v60 = vpop.f32.mrb[15].mxu1 }
 0x113   :  { %v1655_v61 = vadd.f32 %v1654_v60, %v1653_v56 }
 0x114   :  { %v2300_v62 = vadd.f32 %v1652_v55, %v977_v58  ;;  %v980_v63 = vadd.f32 %v1591_v59, %v2279_v2 }
 0x116   :  { %v2303_v0 = vadd.f32 %v1655_v61, %v980_v63  ;;  %v1592_v1 = vpop.f32.mrb[16].mxu0 }
 0x117   :  { %v1656_v3 = vpop.f32.mrb[16].mxu1  ;;  %v1593_v4 = vpop.f32.mrb[17].mxu0 }
 0x118   :  { %v1594_v5 = vadd.f32 %v1593_v4, %v1592_v1  ;;  %v1657_v6 = vpop.f32.mrb[17].mxu1  ;;  %v1595_v7 = vpop.f32.mrb[18].mxu0 }
 0x119   :  { %v1658_v8 = vadd.f32 %v1657_v6, %v1656_v3  ;;  %v1659_v9 = vpop.f32.mrb[18].mxu1  ;;  %v1596_v10 = vpop.f32.mrb[19].mxu0 }
 0x11a   :  { %v985_v11 = vadd.f32 %v1594_v5, %v2279_v2  ;;  %v1597_v12 = vadd.f32 %v1596_v10, %v1595_v7  ;;  %v1660_v13 = vpop.f32.mrb[19].mxu1 }
 0x11b   :  { %v1661_v15 = vadd.f32 %v1660_v13, %v1659_v9 }
 0x11c   :  { %v2306_v17 = vadd.f32 %v1658_v8, %v985_v11  ;;  %v988_v18 = vadd.f32 %v1597_v12, %v2279_v2 }
 0x11e   :  { %v2309_v19 = vadd.f32 %v1661_v15, %v988_v18  ;;  %v1598_v20 = vpop.f32.mrb[20].mxu0 }
 0x11f   :  { %v1662_v21 = vpop.f32.mrb[20].mxu1  ;;  %v1599_v22 = vpop.f32.mrb[21].mxu0 }
 0x120   :  { %v1600_v23 = vadd.f32 %v1599_v22, %v1598_v20  ;;  %v1663_v24 = vpop.f32.mrb[21].mxu1  ;;  %v1601_v25 = vpop.f32.mrb[22].mxu0 }
 0x121   :  { %v1664_v26 = vadd.f32 %v1663_v24, %v1662_v21  ;;  %v1665_v27 = vpop.f32.mrb[22].mxu1  ;;  %v1602_v28 = vpop.f32.mrb[23].mxu0 }
 0x122   :  { %v993_v29 = vadd.f32 %v1600_v23, %v2279_v2  ;;  %v1603_v31 = vadd.f32 %v1602_v28, %v1601_v25  ;;  %v1666_v33 = vpop.f32.mrb[23].mxu1 }
 0x123   :  { %v1667_v34 = vadd.f32 %v1666_v33, %v1665_v27 }
 0x124   :  { %v2312_v35 = vadd.f32 %v1664_v26, %v993_v29  ;;  %v996_v36 = vadd.f32 %v1603_v31, %v2279_v2 }
 0x126   :  { %v2315_v37 = vadd.f32 %v1667_v34, %v996_v36  ;;  %v1604_v38 = vpop.f32.mrb[24].mxu0 }
 0x127   :  { %v1668_v39 = vpop.f32.mrb[24].mxu1  ;;  %v1605_v40 = vpop.f32.mrb[25].mxu0 }
 0x128   :  { %v1606_v41 = vadd.f32 %v1605_v40, %v1604_v38  ;;  %v1669_v42 = vpop.f32.mrb[25].mxu1  ;;  %v1607_v43 = vpop.f32.mrb[26].mxu0 }
 0x129   :  { %v1670_v44 = vadd.f32 %v1669_v42, %v1668_v39  ;;  %v1671_v45 = vpop.f32.mrb[26].mxu1  ;;  %v1608_v47 = vpop.f32.mrb[27].mxu0 }
 0x12a   :  { %v1001_v49 = vadd.f32 %v1606_v41, %v2279_v2  ;;  %v1609_v50 = vadd.f32 %v1608_v47, %v1607_v43  ;;  %v1672_v51 = vpop.f32.mrb[27].mxu1 }
 0x12b   :  { %v1673_v52 = vadd.f32 %v1672_v51, %v1671_v45 }
 0x12c   :  { %v2318_v53 = vadd.f32 %v1670_v44, %v1001_v49  ;;  %v1004_v54 = vadd.f32 %v1609_v50, %v2279_v2 }
 0x12e   :  { %v2321_v55 = vadd.f32 %v1673_v52, %v1004_v54  ;;  %v1610_v56 = vpop.f32.mrb[28].mxu0 }
 0x12f   :  { %v1674_v57 = vpop.f32.mrb[28].mxu1  ;;  %v1611_v58 = vpop.f32.mrb[29].mxu0 }
 0x130   :  { %v1612_v59 = vadd.f32 %v1611_v58, %v1610_v56  ;;  %v1675_v60 = vpop.f32.mrb[29].mxu1  ;;  %v1613_v61 = vpop.f32.mrb[30].mxu0 }
 0x131   :  { %v1676_v63 = vadd.f32 %v1675_v60, %v1674_v57  ;;  %v1677_v1 = vpop.f32.mrb[30].mxu1  ;;  %v1614_v3 = vpop.f32.mrb[31].mxu0 }
 0x132   :  { %v1009_v4 = vadd.f32 %v1612_v59, %v2279_v2  ;;  %v1615_v5 = vadd.f32 %v1614_v3, %v1613_v61  ;;  %v1678_v6 = vpop.f32.mrb[31].mxu1 }
 0x133   :  { %v1679_v7 = vadd.f32 %v1678_v6, %v1677_v1 }
 0x134   :  { %v2324_v8 = vadd.f32 %v1676_v63, %v1009_v4  ;;  %v1012_v9 = vadd.f32 %v1615_v5, %v2279_v2 }
 0x136   :  { %v2327_v10 = vadd.f32 %v1679_v7, %v1012_v9  ;;  %v1696_v11 = vpop.f32.mrb[32].mxu0 }
 0x137   :  { %v1760_v12 = vpop.f32.mrb[32].mxu1  ;;  %v1697_v13 = vpop.f32.mrb[33].mxu0 }
 0x138   :  { %v1698_v15 = vadd.f32 %v1697_v13, %v1696_v11  ;;  %v1761_v18 = vpop.f32.mrb[33].mxu1  ;;  %v1699_v20 = vpop.f32.mrb[34].mxu0 }
 0x139   :  { %v1762_v21 = vadd.f32 %v1761_v18, %v1760_v12  ;;  %v1763_v22 = vpop.f32.mrb[34].mxu1  ;;  %v1700_v23 = vpop.f32.mrb[35].mxu0 }
 0x13a   :  { %v1147_v24 = vadd.f32 %v1698_v15, %v2282_v14  ;;  %v1701_v25 = vadd.f32 %v1700_v23, %v1699_v20  ;;  %v1764_v26 = vpop.f32.mrb[35].mxu1 }
 0x13b   :  { %v1765_v27 = vadd.f32 %v1764_v26, %v1763_v22 }
 0x13c   :  { %v1244_v28 = vadd.f32 %v1762_v21, %v1147_v24  ;;  %v1150_v29 = vadd.f32 %v1701_v25, %v2285_v16 }
 0x13e   :  { %v1536_v2 = vpack.c.bf16 %v1244_v28, %v1244_v28  ;;  %v1247_v31 = vadd.f32 %v1765_v27, %v1150_v29  ;;  %v1702_v33 = vpop.f32.mrb[36].mxu0 }
 0x13f   :  { %v1766_v34 = vpop.f32.mrb[36].mxu1  ;;  %v1703_v36 = vpop.f32.mrb[37].mxu0 }
 0x140   :  { %1371 = vst.msk [vmem:[%s2412_s3] sm:$0xf] %vm1370_vm0, %v1536_v2  ;;  %v1537_v38 = vpack.c.bf16 %v1247_v31, %v1247_v31  ;;  %v1704_v39 = vadd.f32 %v1703_v36, %v1702_v33  ;;  %v1767_v14 = vpop.f32.mrb[37].mxu1  ;;  %v1705_v40 = vpop.f32.mrb[38].mxu0 }
 0x141   :  { %v1768_v41 = vadd.f32 %v1767_v14, %v1766_v34  ;;  %v1769_v42 = vpop.f32.mrb[38].mxu1  ;;  %v1706_v43 = vpop.f32.mrb[39].mxu0 }
 0x142   :  { %1372 = vst.msk [vmem:[%s2412_s3 + $0x4] sm:$0xf] %vm1370_vm0, %v1537_v38  ;;  %v1155_v16 = vadd.f32 %v1704_v39, %v2288_v30  ;;  %v1707_v44 = vadd.f32 %v1706_v43, %v1705_v40  ;;  %v1770_v45 = vpop.f32.mrb[39].mxu1 }
 0x143   :  { %v1771_v47 = vadd.f32 %v1770_v45, %v1769_v42 }
 0x144   :  { %v1252_v49 = vadd.f32 %v1768_v41, %v1155_v16  ;;  %v1158_v50 = vadd.f32 %v1707_v44, %v2291_v32 }
 0x146   :  { %v1538_v51 = vpack.c.bf16 %v1252_v49, %v1252_v49  ;;  %v1255_v52 = vadd.f32 %v1771_v47, %v1158_v50  ;;  %v1708_v54 = vpop.f32.mrb[40].mxu0 }
 0x147   :  { %v1772_v56 = vpop.f32.mrb[40].mxu1  ;;  %v1709_v57 = vpop.f32.mrb[41].mxu0 }
 0x148   :  { %1373 = vst.msk [vmem:[%s2412_s3 + $0x8] sm:$0xf] %vm1370_vm0, %v1538_v51  ;;  %v1539_v58 = vpack.c.bf16 %v1255_v52, %v1255_v52  ;;  %v1710_v59 = vadd.f32 %v1709_v57, %v1708_v54  ;;  %v1773_v60 = vpop.f32.mrb[41].mxu1  ;;  %v1711_v30 = vpop.f32.mrb[42].mxu0 }
 0x149   :  { %v1774_v61 = vadd.f32 %v1773_v60, %v1772_v56  ;;  %v1775_v63 = vpop.f32.mrb[42].mxu1  ;;  %v1712_v1 = vpop.f32.mrb[43].mxu0 }
 0x14a   :  { %1374 = vst.msk [vmem:[%s2412_s3 + $0xc] sm:$0xf] %vm1370_vm0, %v1539_v58  ;;  %v1163_v32 = vadd.f32 %v1710_v59, %v2294_v46  ;;  %v1713_v3 = vadd.f32 %v1712_v1, %v1711_v30  ;;  %v1776_v4 = vpop.f32.mrb[43].mxu1 }
 0x14b   :  { %v1777_v5 = vadd.f32 %v1776_v4, %v1775_v63 }
 0x14c   :  { %v1260_v6 = vadd.f32 %v1774_v61, %v1163_v32  ;;  %v1166_v7 = vadd.f32 %v1713_v3, %v2297_v48 }
 0x14e   :  { %v1540_v9 = vpack.c.bf16 %v1260_v6, %v1260_v6  ;;  %v1263_v11 = vadd.f32 %v1777_v5, %v1166_v7  ;;  %v1714_v12 = vpop.f32.mrb[44].mxu0 }
 0x14f   :  { %v1778_v13 = vpop.f32.mrb[44].mxu1  ;;  %v1715_v15 = vpop.f32.mrb[45].mxu0 }
 0x150   :  { %1375 = vst.msk [vmem:[%s2412_s3 + $0x10] sm:$0xf] %vm1370_vm0, %v1540_v9  ;;  %v1541_v18 = vpack.c.bf16 %v1263_v11, %v1263_v11  ;;  %v1716_v20 = vadd.f32 %v1715_v15, %v1714_v12  ;;  %v1779_v21 = vpop.f32.mrb[45].mxu1  ;;  %v1717_v46 = vpop.f32.mrb[46].mxu0 }
 0x151   :  { %v1780_v22 = vadd.f32 %v1779_v21, %v1778_v13  ;;  %v1781_v23 = vpop.f32.mrb[46].mxu1  ;;  %v1718_v24 = vpop.f32.mrb[47].mxu0 }
 0x152   :  { %1376 = vst.msk [vmem:[%s2412_s3 + $0x14] sm:$0xf] %vm1370_vm0, %v1541_v18  ;;  %v1171_v48 = vadd.f32 %v1716_v20, %v2300_v62  ;;  %v1719_v25 = vadd.f32 %v1718_v24, %v1717_v46  ;;  %v1782_v26 = vpop.f32.mrb[47].mxu1 }
 0x153   :  { %v1783_v27 = vadd.f32 %v1782_v26, %v1781_v23 }
 0x154   :  { %v1268_v28 = vadd.f32 %v1780_v22, %v1171_v48  ;;  %v1174_v29 = vadd.f32 %v1719_v25, %v2303_v0 }
 0x156   :  { %v1542_v2 = vpack.c.bf16 %v1268_v28, %v1268_v28  ;;  %v1271_v31 = vadd.f32 %v1783_v27, %v1174_v29  ;;  %v1720_v33 = vpop.f32.mrb[48].mxu0 }
 0x157   :  { %v1784_v34 = vpop.f32.mrb[48].mxu1  ;;  %v1721_v36 = vpop.f32.mrb[49].mxu0 }
 0x158   :  { %1377 = vst.msk [vmem:[%s2412_s3 + $0x18] sm:$0xf] %vm1370_vm0, %v1542_v2  ;;  %v1543_v38 = vpack.c.bf16 %v1271_v31, %v1271_v31  ;;  %v1722_v39 = vadd.f32 %v1721_v36, %v1720_v33  ;;  %v1785_v14 = vpop.f32.mrb[49].mxu1  ;;  %v1723_v62 = vpop.f32.mrb[50].mxu0 }
 0x159   :  { %v1786_v40 = vadd.f32 %v1785_v14, %v1784_v34  ;;  %v1787_v41 = vpop.f32.mrb[50].mxu1  ;;  %v1724_v42 = vpop.f32.mrb[51].mxu0 }
 0x15a   :  { %1378 = vst.msk [vmem:[%s2412_s3 + $0x1c] sm:$0xf] %vm1370_vm0, %v1543_v38  ;;  %v1179_v0 = vadd.f32 %v1722_v39, %v2306_v17  ;;  %v1725_v43 = vadd.f32 %v1724_v42, %v1723_v62  ;;  %v1788_v16 = vpop.f32.mrb[51].mxu1 }
 0x15b   :  { %v1789_v44 = vadd.f32 %v1788_v16, %v1787_v41 }
 0x15c   :  { %v1276_v45 = vadd.f32 %v1786_v40, %v1179_v0  ;;  %v1182_v47 = vadd.f32 %v1725_v43, %v2309_v19 }
 0x15e   :  { %v1544_v49 = vpack.c.bf16 %v1276_v45, %v1276_v45  ;;  %v1279_v50 = vadd.f32 %v1789_v44, %v1182_v47  ;;  %v1726_v51 = vpop.f32.mrb[52].mxu0 }
 0x15f   :  { %v1790_v52 = vpop.f32.mrb[52].mxu1  ;;  %v1727_v54 = vpop.f32.mrb[53].mxu0 }
 0x160   :  { %1379 = vst.msk [vmem:[%s2412_s3 + $0x20] sm:$0xf] %vm1370_vm0, %v1544_v49  ;;  %v1545_v56 = vpack.c.bf16 %v1279_v50, %v1279_v50  ;;  %v1728_v57 = vadd.f32 %v1727_v54, %v1726_v51  ;;  %v1791_v58 = vpop.f32.mrb[53].mxu1  ;;  %v1729_v17 = vpop.f32.mrb[54].mxu0 }
 0x161   :  { %v1792_v59 = vadd.f32 %v1791_v58, %v1790_v52  ;;  %v1793_v60 = vpop.f32.mrb[54].mxu1  ;;  %v1730_v30 = vpop.f32.mrb[55].mxu0 }
 0x162   :  { %1380 = vst.msk [vmem:[%s2412_s3 + $0x24] sm:$0xf] %vm1370_vm0, %v1545_v56  ;;  %v1187_v19 = vadd.f32 %v1728_v57, %v2312_v35  ;;  %v1731_v61 = vadd.f32 %v1730_v30, %v1729_v17  ;;  %v1794_v63 = vpop.f32.mrb[55].mxu1 }
 0x163   :  { %v1795_v1 = vadd.f32 %v1794_v63, %v1793_v60 }
 0x164   :  { %v1284_v32 = vadd.f32 %v1792_v59, %v1187_v19  ;;  %v1190_v3 = vadd.f32 %v1731_v61, %v2315_v37 }
 0x166   :  { %v1546_v4 = vpack.c.bf16 %v1284_v32, %v1284_v32  ;;  %v1287_v5 = vadd.f32 %v1795_v1, %v1190_v3  ;;  %v1732_v6 = vpop.f32.mrb[56].mxu0 }
 0x167   :  { %v1796_v7 = vpop.f32.mrb[56].mxu1  ;;  %v1733_v9 = vpop.f32.mrb[57].mxu0 }
 0x168   :  { %1381 = vst.msk [vmem:[%s2412_s3 + $0x28] sm:$0xf] %vm1370_vm0, %v1546_v4  ;;  %v1547_v11 = vpack.c.bf16 %v1287_v5, %v1287_v5  ;;  %v1734_v12 = vadd.f32 %v1733_v9, %v1732_v6  ;;  %v1797_v13 = vpop.f32.mrb[57].mxu1  ;;  %v1735_v35 = vpop.f32.mrb[58].mxu0 }
 0x169   :  { %v1798_v15 = vadd.f32 %v1797_v13, %v1796_v7  ;;  %v1799_v18 = vpop.f32.mrb[58].mxu1  ;;  %v1736_v20 = vpop.f32.mrb[59].mxu0 }
 0x16a   :  { %1382 = vst.msk [vmem:[%s2412_s3 + $0x2c] sm:$0xf] %vm1370_vm0, %v1547_v11  ;;  %v1195_v37 = vadd.f32 %v1734_v12, %v2318_v53  ;;  %v1737_v21 = vadd.f32 %v1736_v20, %v1735_v35  ;;  %v1800_v46 = vpop.f32.mrb[59].mxu1 }
 0x16b   :  { %v1801_v22 = vadd.f32 %v1800_v46, %v1799_v18 }
 0x16c   :  { %v1292_v23 = vadd.f32 %v1798_v15, %v1195_v37  ;;  %v1198_v24 = vadd.f32 %v1737_v21, %v2321_v55 }
 0x16e   :  { %v1548_v48 = vpack.c.bf16 %v1292_v23, %v1292_v23  ;;  %v1295_v25 = vadd.f32 %v1801_v22, %v1198_v24  ;;  %v1738_v26 = vpop.f32.mrb[60].mxu0 }
 0x16f   :  { %v1802_v27 = vpop.f32.mrb[60].mxu1  ;;  %v1739_v28 = vpop.f32.mrb[61].mxu0 }
 0x170   :  { %1383 = vst.msk [vmem:[%s2412_s3 + $0x30] sm:$0xf] %vm1370_vm0, %v1548_v48  ;;  %v1549_v29 = vpack.c.bf16 %v1295_v25, %v1295_v25  ;;  %v1740_v2 = vadd.f32 %v1739_v28, %v1738_v26  ;;  %v1803_v31 = vpop.f32.mrb[61].mxu1  ;;  %v1741_v53 = vpop.f32.mrb[62].mxu0 }
 0x171   :  { %v1804_v33 = vadd.f32 %v1803_v31, %v1802_v27  ;;  %v1805_v34 = vpop.f32.mrb[62].mxu1  ;;  %v1742_v36 = vpop.f32.mrb[63].mxu0 }
 0x172   :  { %1384 = vst.msk [vmem:[%s2412_s3 + $0x34] sm:$0xf] %vm1370_vm0, %v1549_v29  ;;  %v1203_v55 = vadd.f32 %v1740_v2, %v2324_v8  ;;  %v1743_v38 = vadd.f32 %v1742_v36, %v1741_v53  ;;  %v1806_v39 = vpop.f32.mrb[63].mxu1 }
 0x173   :  { %v1807_v14 = vadd.f32 %v1806_v39, %v1805_v34 }
 0x174   :  { %v1300_v62 = vadd.f32 %v1804_v33, %v1203_v55  ;;  %v1206_v40 = vadd.f32 %v1743_v38, %v2327_v10 }
 0x176   :  { %v1550_v41 = vpack.c.bf16 %v1300_v62, %v1300_v62  ;;  %v1303_v42 = vadd.f32 %v1807_v14, %v1206_v40 }
 0x178   :  { %1385 = vst.msk [vmem:[%s2412_s3 + $0x38] sm:$0xf] %vm1370_vm0, %v1550_v41  ;;  %v1551_v0 = vpack.c.bf16 %v1303_v42, %v1303_v42 }
 0x17a   :  { %1386 = vst.msk [vmem:[%s2412_s3 + $0x3c] sm:$0xf] %vm1370_vm0, %v1551_v0 }

// kernel: encoder3_forward.10
= control target key start
LH: loop header
LB: loop body
LE: loop exit
PB: predicated region body
PF: predicated region fallthrough
CT: control target
= control target key end

     0   :  { %vm842_vm0 = vcmask 519168   ;;  %s1395_s1 = inlined_call_operand.vmem [shape: bf16[1024,64], index: 1, kind: input, shape index: {}]   ;;  %s1396_s0 = inlined_call_operand.vmem [shape: bf16[32,1024], index: 0, kind: input, shape index: {}]   ;;  %s1397_s2 = inlined_call_operand.vmem [shape: f32[1,64], index: 2, kind: input, shape index: {}]   ;;  %s1398_s3 = inlined_call_operand.vmem [shape: bf16[32,64], index: 3, kind: output, shape index: {}]  }
   0x1   :  { %v1052_v0 = vld [vmem:[%s1395_s1 + $0x40] sm:$0xff]   ;;  %v1056_v4 = vld [vmem:[%s1395_s1 + $0x48] sm:$0xff]   ;;  %v1060_v8 = vld [vmem:[%s1395_s1 + $0x50] sm:$0xff]  }
   0x2   :  { %v1053_v1 = vld [vmem:[%s1395_s1 + $0xc0] sm:$0xff]   ;;  %940 = vmatprep.subr.bf16.mxu0 %v1052_v0  ;;  %v1057_v5 = vld [vmem:[%s1395_s1 + $0xc8] sm:$0xff]   ;;  %v1061_v9 = vld [vmem:[%s1395_s1 + $0xd0] sm:$0xff]  }
   0x3   :  { %v1054_v2 = vld [vmem:[%s1395_s1] sm:$0xff]   ;;  %968 = vmatprep.subr.bf16.mxu1 %v1053_v1  ;;  %v1058_v6 = vld [vmem:[%s1395_s1 + $0x8] sm:$0xff]   ;;  %v1062_v10 = vld [vmem:[%s1395_s1 + $0x10] sm:$0xff]  }
   0x4   :  { %v1055_v3 = vld [vmem:[%s1395_s1 + $0x80] sm:$0xff]   ;;  %941 = vmatpush3.bf16.msra.mxu0 %v1054_v2  ;;  %v1059_v7 = vld [vmem:[%s1395_s1 + $0x88] sm:$0xff]   ;;  %v1063_v11 = vld [vmem:[%s1395_s1 + $0x90] sm:$0xff]  }
   0x5   :  { %969 = vmatpush3.bf16.msra.mxu1 %v1055_v3  ;;  %942 = vmatprep.subr.bf16.mxu0 %v1056_v4  ;;  %v1064_v12 = vld [vmem:[%s1395_s1 + $0x58] sm:$0xff]   ;;  %v1068_v16 = vld [vmem:[%s1395_s1 + $0x60] sm:$0xff]   ;;  %v1072_v20 = vld [vmem:[%s1395_s1 + $0x68] sm:$0xff]  }
   0x6   :  { %970 = vmatprep.subr.bf16.mxu1 %v1057_v5  ;;  %v1065_v13 = vld [vmem:[%s1395_s1 + $0xd8] sm:$0xff]   ;;  %v1069_v17 = vld [vmem:[%s1395_s1 + $0xe0] sm:$0xff]   ;;  %v1073_v21 = vld [vmem:[%s1395_s1 + $0xe8] sm:$0xff]  }
   0x7   :  { %v1066_v14 = vld [vmem:[%s1395_s1 + $0x18] sm:$0xff]   ;;  %v1070_v18 = vld [vmem:[%s1395_s1 + $0x20] sm:$0xff]   ;;  %v1074_v22 = vld [vmem:[%s1395_s1 + $0x28] sm:$0xff]  }
   0x8   :  { %943 = vmatpush3.bf16.msra.mxu0 %v1058_v6  ;;  %v1067_v15 = vld [vmem:[%s1395_s1 + $0x98] sm:$0xff]   ;;  %v1071_v19 = vld [vmem:[%s1395_s1 + $0xa0] sm:$0xff]   ;;  %v1075_v23 = vld [vmem:[%s1395_s1 + $0xa8] sm:$0xff]  }
   0x9   :  { %971 = vmatpush3.bf16.msra.mxu1 %v1059_v7  ;;  %944 = vmatprep.subr.bf16.mxu0 %v1060_v8  ;;  %v1076_v24 = vld [vmem:[%s1395_s1 + $0x70] sm:$0xff]   ;;  %v1080_v28 = vld [vmem:[%s1395_s1 + $0x78] sm:$0xff]   ;;  %v15_v32 = vld [vmem:[%s1396_s0] sm:$0xff] }
   0xa   :  { %972 = vmatprep.subr.bf16.mxu1 %v1061_v9  ;;  %v1077_v25 = vld [vmem:[%s1395_s1 + $0xf0] sm:$0xff]   ;;  %v1081_v29 = vld [vmem:[%s1395_s1 + $0xf8] sm:$0xff]   ;;  %v19_v33 = vld [vmem:[%s1396_s0 + $0x20] sm:$0xff] }
   0xb   :  { %v1078_v26 = vld [vmem:[%s1395_s1 + $0x30] sm:$0xff]   ;;  %v1082_v30 = vld [vmem:[%s1395_s1 + $0x38] sm:$0xff]   ;;  %v16_v34 = vld [vmem:[%s1396_s0 + $0x8] sm:$0xff]  ;;  %v852_v35 = vcombine.low %v15_v32, %v19_v33  ;;  %v853_v36 = vcombine.high %v15_v32, %v19_v33 }
   0xc   :  { %945 = vmatpush3.bf16.msra.mxu0 %v1062_v10  ;;  %v1079_v27 = vld [vmem:[%s1395_s1 + $0xb0] sm:$0xff]   ;;  %v1083_v31 = vld [vmem:[%s1395_s1 + $0xb8] sm:$0xff]   ;;  %v20_v37 = vld [vmem:[%s1396_s0 + $0x28] sm:$0xff] }
   0xd   :  { %973 = vmatpush3.bf16.msra.mxu1 %v1063_v11  ;;  %946 = vmatprep.subr.bf16.mxu0 %v1064_v12  ;;  %v854_v38 = vcombine.low %v16_v34, %v20_v37  ;;  %v855_v39 = vcombine.high %v16_v34, %v20_v37  ;;  %v1084_v40 = vld [vmem:[%s1395_s1 + $0x140] sm:$0xff]   ;;  %v1088_v44 = vld [vmem:[%s1395_s1 + $0x148] sm:$0xff]   ;;  %v1092_v48 = vld [vmem:[%s1395_s1 + $0x150] sm:$0xff]  }
   0xe   :  { %974 = vmatprep.subr.bf16.mxu1 %v1065_v13  ;;  %662 = vmatprep.mubr.bf16.mxu0 %v853_v36  ;;  %v1085_v41 = vld [vmem:[%s1395_s1 + $0x1c0] sm:$0xff]   ;;  %v1089_v45 = vld [vmem:[%s1395_s1 + $0x1c8] sm:$0xff]   ;;  %v1093_v49 = vld [vmem:[%s1395_s1 + $0x1d0] sm:$0xff]  }
   0xf   :  { %711 = vmatprep.mubr.bf16.mxu1 %v855_v39  ;;  %v1086_v42 = vld [vmem:[%s1395_s1 + $0x100] sm:$0xff]   ;;  %v1090_v46 = vld [vmem:[%s1395_s1 + $0x108] sm:$0xff]   ;;  %v1094_v50 = vld [vmem:[%s1395_s1 + $0x110] sm:$0xff]  }
  0x10   :  { %947 = vmatpush3.bf16.msra.mxu0 %v1066_v14  ;;  %v1087_v43 = vld [vmem:[%s1395_s1 + $0x180] sm:$0xff]   ;;  %v1091_v47 = vld [vmem:[%s1395_s1 + $0x188] sm:$0xff]   ;;  %v1095_v51 = vld [vmem:[%s1395_s1 + $0x190] sm:$0xff]  }
  0x11   :  { %975 = vmatpush3.bf16.msra.mxu1 %v1067_v15  ;;  %948 = vmatprep.subr.bf16.mxu0 %v1068_v16  ;;  %v1096_v52 = vld [vmem:[%s1395_s1 + $0x158] sm:$0xff]   ;;  %v1100_v56 = vld [vmem:[%s1395_s1 + $0x160] sm:$0xff]   ;;  %v1104_v63 = vld [vmem:[%s1395_s1 + $0x168] sm:$0xff]  }
  0x12   :  { %976 = vmatprep.subr.bf16.mxu1 %v1069_v17  ;;  %v1097_v53 = vld [vmem:[%s1395_s1 + $0x1d8] sm:$0xff]   ;;  %v1101_v57 = vld [vmem:[%s1395_s1 + $0x1e0] sm:$0xff]   ;;  %v1105_v1 = vld [vmem:[%s1395_s1 + $0x1e8] sm:$0xff]  }
  0x13   :  { %v1098_v54 = vld [vmem:[%s1395_s1 + $0x118] sm:$0xff]   ;;  %v1102_v58 = vld [vmem:[%s1395_s1 + $0x120] sm:$0xff]   ;;  %v1106_v2 = vld [vmem:[%s1395_s1 + $0x128] sm:$0xff]  }
  0x14   :  { %949 = vmatpush3.bf16.msra.mxu0 %v1070_v18  ;;  %v1099_v55 = vld [vmem:[%s1395_s1 + $0x198] sm:$0xff]   ;;  %v1103_v59 = vld [vmem:[%s1395_s1 + $0x1a0] sm:$0xff]   ;;  %v1107_v3 = vld [vmem:[%s1395_s1 + $0x1a8] sm:$0xff]  }
  0x15   :  { %977 = vmatpush3.bf16.msra.mxu1 %v1071_v19  ;;  %950 = vmatprep.subr.bf16.mxu0 %v1072_v20  ;;  %v23_v60 = vld [vmem:[%s1396_s0 + $0x40] sm:$0xff]  ;;  %v24_v4 = vld [vmem:[%s1396_s0 + $0x48] sm:$0xff]  ;;  %v1108_v8 = vld [vmem:[%s1395_s1 + $0x170] sm:$0xff]  }
  0x16   :  { %978 = vmatprep.subr.bf16.mxu1 %v1073_v21  ;;  %v27_v61 = vld [vmem:[%s1396_s0 + $0x60] sm:$0xff]  ;;  %v28_v5 = vld [vmem:[%s1396_s0 + $0x68] sm:$0xff]  ;;  %v1109_v9 = vld [vmem:[%s1395_s1 + $0x1f0] sm:$0xff]  }
  0x17   :  { %v861_v62 = vcombine.high %v23_v60, %v27_v61  ;;  %v860_v0 = vcombine.low %v23_v60, %v27_v61  ;;  %v863_v6 = vcombine.high %v24_v4, %v28_v5  ;;  %v862_v7 = vcombine.low %v24_v4, %v28_v5  ;;  %v1110_v10 = vld [vmem:[%s1395_s1 + $0x130] sm:$0xff]   ;;  %v1112_v12 = vld [vmem:[%s1395_s1 + $0x178] sm:$0xff]   ;;  %v851_v34 = vld [vmem:[%s1397_s2] ss:$0 sm:$0xff] }
  0x18   :  { %951 = vmatpush3.bf16.msra.mxu0 %v1074_v22  ;;  %v1111_v11 = vld [vmem:[%s1395_s1 + $0x1b0] sm:$0xff]   ;;  %v1113_v13 = vld [vmem:[%s1395_s1 + $0x1f8] sm:$0xff]  }
  0x19   :  { %979 = vmatpush3.bf16.msra.mxu1 %v1075_v23  ;;  %952 = vmatprep.subr.bf16.mxu0 %v1076_v24  ;;  %v1114_v14 = vld [vmem:[%s1395_s1 + $0x138] sm:$0xff]   ;;  %v17_v16 = vld [vmem:[%s1396_s0 + $0x10] sm:$0xff] }
  0x1a   :  { %980 = vmatprep.subr.bf16.mxu1 %v1077_v25  ;;  %v1115_v15 = vld [vmem:[%s1395_s1 + $0x1b8] sm:$0xff]   ;;  %v21_v17 = vld [vmem:[%s1396_s0 + $0x30] sm:$0xff] }
  0x1b   :  { %v18_v18 = vld [vmem:[%s1396_s0 + $0x18] sm:$0xff]  ;;  %v856_v20 = vcombine.low %v17_v16, %v21_v17  ;;  %v857_v21 = vcombine.high %v17_v16, %v21_v17  ;;  %v25_v24 = vld [vmem:[%s1396_s0 + $0x50] sm:$0xff] }
  0x1c   :  { %953 = vmatpush3.bf16.msra.mxu0 %v1078_v26  ;;  %v22_v19 = vld [vmem:[%s1396_s0 + $0x38] sm:$0xff]  ;;  %v29_v25 = vld [vmem:[%s1396_s0 + $0x70] sm:$0xff] }
  0x1d   :  { %981 = vmatpush3.bf16.msra.mxu1 %v1079_v27  ;;  %954 = vmatprep.subr.bf16.mxu0 %v1080_v28  ;;  %v858_v22 = vcombine.low %v18_v18, %v22_v19  ;;  %v859_v23 = vcombine.high %v18_v18, %v22_v19  ;;  %v26_v26 = vld [vmem:[%s1396_s0 + $0x58] sm:$0xff]  ;;  %v865_v27 = vcombine.high %v25_v24, %v29_v25 }
  0x1e   :  { %982 = vmatprep.subr.bf16.mxu1 %v1081_v29  ;;  %v30_v28 = vld [vmem:[%s1396_s0 + $0x78] sm:$0xff] }
  0x1f   :  { %v867_v29 = vcombine.high %v26_v26, %v30_v28 }
  0x20   :  { %955 = vmatpush3.bf16.msra.mxu0 %v1082_v30  ;;  %v864_v30 = vcombine.low %v25_v24, %v29_v25 }
  0x21   :  { %983 = vmatpush3.bf16.msra.mxu1 %v1083_v31  ;;  %996 = vmatprep.subr.bf16.mxu0 %v1084_v40  ;;  %v866_v31 = vcombine.low %v26_v26, %v30_v28 }
  0x22   :  { %1024 = vmatprep.subr.bf16.mxu1 %v1085_v41 }
  0x23   :  { %663 = vmatmul.mubr.bf16.vlgmr.msra.gmra.mrb[0].mxu0 %v852_v35 }
  0x24   :  { %712 = vmatmul.mubr.bf16.vlgmr.msra.gmra.mrb[0].mxu1 %v854_v38  ;;  %997 = vmatpush3.bf16.msra.mxu0 %v1086_v42 }
  0x25   :  { %1025 = vmatpush3.bf16.msra.mxu1 %v1087_v43  ;;  %998 = vmatprep.subr.bf16.mxu0 %v1088_v44 }
  0x26   :  { %1026 = vmatprep.subr.bf16.mxu1 %v1089_v45  ;;  %670 = vmatprep.mubr.bf16.mxu0 %v861_v62 }
  0x27   :  { %719 = vmatprep.mubr.bf16.mxu1 %v863_v6 }
  0x28   :  { %999 = vmatpush3.bf16.msra.mxu0 %v1090_v46 }
  0x29   :  { %1027 = vmatpush3.bf16.msra.mxu1 %v1091_v47  ;;  %1000 = vmatprep.subr.bf16.mxu0 %v1092_v48 }
  0x2a   :  { %1028 = vmatprep.subr.bf16.mxu1 %v1093_v49 }
  0x2b   :  { %671 = vmatmul.mubr.bf16.gmra.mrb[4].mxu0 %v860_v0 }
  0x2c   :  { %1001 = vmatpush3.bf16.msra.mxu0 %v1094_v50  ;;  %720 = vmatmul.mubr.bf16.gmra.mrb[4].mxu1 %v862_v7 }
  0x2d   :  { %1029 = vmatpush3.bf16.msra.mxu1 %v1095_v51  ;;  %1002 = vmatprep.subr.bf16.mxu0 %v1096_v52 }
  0x2e   :  { %1030 = vmatprep.subr.bf16.mxu1 %v1097_v53  ;;  %760 = vmatprep.mubr.bf16.mxu0 %v857_v21 }
  0x2f   :  { %809 = vmatprep.mubr.bf16.mxu1 %v859_v23 }
  0x30   :  { %1003 = vmatpush3.bf16.msra.mxu0 %v1098_v54 }
  0x31   :  { %1031 = vmatpush3.bf16.msra.mxu1 %v1099_v55  ;;  %1004 = vmatprep.subr.bf16.mxu0 %v1100_v56 }
  0x32   :  { %1032 = vmatprep.subr.bf16.mxu1 %v1101_v57 }
  0x34   :  { %1005 = vmatpush3.bf16.msra.mxu0 %v1102_v58 }
  0x35   :  { %1033 = vmatpush3.bf16.msra.mxu1 %v1103_v59  ;;  %1006 = vmatprep.subr.bf16.mxu0 %v1104_v63 }
  0x36   :  { %1034 = vmatprep.subr.bf16.mxu1 %v1105_v1 }
  0x38   :  { %1007 = vmatpush3.bf16.msra.mxu0 %v1106_v2 }
  0x39   :  { %1035 = vmatpush3.bf16.msra.mxu1 %v1107_v3  ;;  %1008 = vmatprep.subr.bf16.mxu0 %v1108_v8 }
  0x3a   :  { %1036 = vmatprep.subr.bf16.mxu1 %v1109_v9 }
  0x3c   :  { %1009 = vmatpush3.bf16.msra.mxu0 %v1110_v10 }
  0x3d   :  { %1037 = vmatpush3.bf16.msra.mxu1 %v1111_v11  ;;  %1010 = vmatprep.subr.bf16.mxu0 %v1112_v12 }
  0x3e   :  { %1038 = vmatprep.subr.bf16.mxu1 %v1113_v13 }
  0x40   :  { %1011 = vmatpush3.bf16.msra.mxu0 %v1114_v14 }
  0x41   :  { %1039 = vmatpush3.bf16.msra.mxu1 %v1115_v15 }
  0x43   :  { %761 = vmatmul.mubr.bf16.vlgmr.msra.gmra.mrb[8].mxu0 %v856_v20 }
  0x44   :  { %810 = vmatmul.mubr.bf16.vlgmr.msra.gmra.mrb[8].mxu1 %v858_v22  ;;  %768 = vmatprep.mubr.bf16.mxu0 %v865_v27 }
  0x45   :  { %817 = vmatprep.mubr.bf16.mxu1 %v867_v29 }
  0x4b   :  { %769 = vmatmul.mubr.bf16.gmra.mrb[12].mxu0 %v864_v30 }
  0x4c   :  { %818 = vmatmul.mubr.bf16.gmra.mrb[12].mxu1 %v866_v31 }
  0xf6   :  { %v956_v32 = vpop.f32.mrb[0].mxu0 }
  0xf7   :  { %v984_v33 = vpop.f32.mrb[0].mxu1  ;;  %v957_v35 = vpop.f32.mrb[1].mxu0 }
  0xf8   :  { %v958_v36 = vadd.f32 %v957_v35, %v956_v32  ;;  %v985_v37 = vpop.f32.mrb[1].mxu1  ;;  %v959_v38 = vpop.f32.mrb[2].mxu0 }
  0xf9   :  { %v986_v39 = vadd.f32 %v985_v37, %v984_v33  ;;  %v987_v40 = vpop.f32.mrb[2].mxu1  ;;  %v960_v41 = vpop.f32.mrb[3].mxu0 }
  0xfa   :  { %v665_v42 = vadd.f32 %v958_v36, %v851_v34  ;;  %v961_v43 = vadd.f32 %v960_v41, %v959_v38  ;;  %v988_v44 = vpop.f32.mrb[3].mxu1 }
  0xfb   :  { %v989_v45 = vadd.f32 %v988_v44, %v987_v40 }
  0xfc   :  { %v714_v46 = vadd.f32 %v986_v39, %v665_v42  ;;  %v668_v47 = vadd.f32 %v961_v43, %v851_v34 }
  0xfe   :  { %v717_v48 = vadd.f32 %v989_v45, %v668_v47  ;;  %v962_v49 = vpop.f32.mrb[4].mxu0 }
  0xff   :  { %v963_v50 = vpop.f32.mrb[5].mxu0  ;;  %v990_v56 = vpop.f32.mrb[4].mxu1 }
 0x100   :  { %v964_v51 = vadd.f32 %v963_v50, %v962_v49  ;;  %v965_v52 = vpop.f32.mrb[6].mxu0  ;;  %v991_v57 = vpop.f32.mrb[5].mxu1 }
 0x101   :  { %v966_v53 = vpop.f32.mrb[7].mxu0  ;;  %v992_v59 = vadd.f32 %v991_v57, %v990_v56  ;;  %v993_v60 = vpop.f32.mrb[6].mxu1 }
 0x102   :  { %v967_v54 = vadd.f32 %v966_v53, %v965_v52  ;;  %v673_v55 = vadd.f32 %v964_v51, %v851_v34  ;;  %v994_v61 = vpop.f32.mrb[7].mxu1 }
 0x103   :  { %v995_v63 = vadd.f32 %v994_v61, %v993_v60 }
 0x104   :  { %v676_v58 = vadd.f32 %v967_v54, %v851_v34  ;;  %v722_v62 = vadd.f32 %v992_v59, %v673_v55 }
 0x106   :  { %v725_v0 = vadd.f32 %v995_v63, %v676_v58 }
 0x116   :  { %v1012_v1 = vpop.f32.mrb[8].mxu0 }
 0x117   :  { %v1040_v2 = vpop.f32.mrb[8].mxu1  ;;  %v1013_v3 = vpop.f32.mrb[9].mxu0 }
 0x118   :  { %v1041_v4 = vpop.f32.mrb[9].mxu1  ;;  %v1014_v5 = vadd.f32 %v1013_v3, %v1012_v1  ;;  %v1015_v7 = vpop.f32.mrb[10].mxu0 }
 0x119   :  { %v1042_v6 = vadd.f32 %v1041_v4, %v1040_v2  ;;  %v1043_v8 = vpop.f32.mrb[10].mxu1  ;;  %v1016_v9 = vpop.f32.mrb[11].mxu0 }
 0x11a   :  { %v1044_v10 = vpop.f32.mrb[11].mxu1  ;;  %v763_v11 = vadd.f32 %v1014_v5, %v714_v46  ;;  %v1017_v12 = vadd.f32 %v1016_v9, %v1015_v7 }
 0x11b   :  { %v1045_v13 = vadd.f32 %v1044_v10, %v1043_v8 }
 0x11c   :  { %v812_v14 = vadd.f32 %v1042_v6, %v763_v11  ;;  %v766_v15 = vadd.f32 %v1017_v12, %v717_v48 }
 0x11e   :  { %v936_v16 = vpack.c.bf16 %v812_v14, %v812_v14  ;;  %v815_v17 = vadd.f32 %v1045_v13, %v766_v15  ;;  %v1018_v18 = vpop.f32.mrb[12].mxu0 }
 0x11f   :  { %v1046_v19 = vpop.f32.mrb[12].mxu1  ;;  %v1019_v20 = vpop.f32.mrb[13].mxu0 }
 0x120   :  { %v1047_v21 = vpop.f32.mrb[13].mxu1  ;;  %843 = vst.msk [vmem:[%s1398_s3] sm:$0xf] %vm842_vm0, %v936_v16  ;;  %v937_v22 = vpack.c.bf16 %v815_v17, %v815_v17  ;;  %v1020_v23 = vadd.f32 %v1019_v20, %v1018_v18  ;;  %v1021_v25 = vpop.f32.mrb[14].mxu0 }
 0x121   :  { %v1048_v24 = vadd.f32 %v1047_v21, %v1046_v19  ;;  %v1049_v26 = vpop.f32.mrb[14].mxu1  ;;  %v1022_v27 = vpop.f32.mrb[15].mxu0 }
 0x122   :  { %v1050_v28 = vpop.f32.mrb[15].mxu1  ;;  %844 = vst.msk [vmem:[%s1398_s3 + $0x4] sm:$0xf] %vm842_vm0, %v937_v22  ;;  %v771_v29 = vadd.f32 %v1020_v23, %v722_v62  ;;  %v1023_v30 = vadd.f32 %v1022_v27, %v1021_v25 }
 0x123   :  { %v1051_v31 = vadd.f32 %v1050_v28, %v1049_v26 }
 0x124   :  { %v820_v32 = vadd.f32 %v1048_v24, %v771_v29  ;;  %v774_v33 = vadd.f32 %v1023_v30, %v725_v0 }
 0x126   :  { %v938_v34 = vpack.c.bf16 %v820_v32, %v820_v32  ;;  %v823_v35 = vadd.f32 %v1051_v31, %v774_v33 }
 0x128   :  { %845 = vst.msk [vmem:[%s1398_s3 + $0x8] sm:$0xf] %vm842_vm0, %v938_v34  ;;  %v939_v36 = vpack.c.bf16 %v823_v35, %v823_v35 }
 0x12a   :  { %846 = vst.msk [vmem:[%s1398_s3 + $0xc] sm:$0xf] %vm842_vm0, %v939_v36 }

// kernel: encoder3_forward.11
= control target key start
LH: loop header
LB: loop body
LE: loop exit
PB: predicated region body
PF: predicated region fallthrough
CT: control target
= control target key end

     0   :  { %s4367_s1 = inlined_call_operand.vmem [shape: bf16[1024,512], index: 1, kind: input, shape index: {}]   ;;  %s4368_s0 = inlined_call_operand.vmem [shape: bf16[8,1024], index: 0, kind: input, shape index: {}]   ;;  %s4369_s3 = inlined_call_operand.vmem [shape: bf16[512,256], index: 3, kind: input, shape index: {}]   ;;  %s4370_s2 = inlined_call_operand.vmem [shape: f32[1,512], index: 2, kind: input, shape index: {}]   ;;  %s4371_s4 = inlined_call_operand.vmem [shape: f32[1,256], index: 4, kind: input, shape index: {}]   ;;  %s4372_s5 = inlined_call_operand.vmem [shape: f32[8,256], index: 5, kind: output, shape index: {}]  }
   0x1   :  { %v2798_v0 = vld [vmem:[%s4367_s1 + $0x4] ss:$16 sps:$4 sm:$0xff]   ;;  %v2802_v2 = vld [vmem:[%s4367_s1] ss:$16 sps:$4 sm:$0xff]   ;;  %v21_v48 = vld [vmem:[%s4368_s0 + $0x8] sm:$0xff] }
   0x2   :  { %v2800_v1 = vld [vmem:[%s4367_s1 + $0x204] ss:$16 sps:$4 sm:$0xff]   ;;  %1610 = vmatprep.subr.bf16.mxu1 %v2798_v0  ;;  %v2803_v3 = vld [vmem:[%s4367_s1 + $0x200] ss:$16 sps:$4 sm:$0xff]   ;;  %v3468_v51 = vcombine.high %v21_v48, %v21_v48 }
   0x3   :  { %1651 = vmatprep.subr.bf16.mxu0 %v2800_v1  ;;  %v2804_v4 = vld [vmem:[%s4367_s1 + $0x24] ss:$16 sps:$4 sm:$0xff]   ;;  %1611 = vmatpush1.bf16.msra.mxu1 %v2802_v2  ;;  %v2808_v6 = vld [vmem:[%s4367_s1 + $0x20] ss:$16 sps:$4 sm:$0xff]  }
   0x4   :  { %1652 = vmatpush1.bf16.msra.mxu0 %v2803_v3  ;;  %v2806_v5 = vld [vmem:[%s4367_s1 + $0x224] ss:$16 sps:$4 sm:$0xff]   ;;  %1612 = vmatprep.subr.bf16.mxu1 %v2804_v4  ;;  %v2809_v7 = vld [vmem:[%s4367_s1 + $0x220] ss:$16 sps:$4 sm:$0xff]  }
   0x5   :  { %1653 = vmatprep.subr.bf16.mxu0 %v2806_v5  ;;  %v2810_v8 = vld [vmem:[%s4367_s1 + $0x44] ss:$16 sps:$4 sm:$0xff]   ;;  %v2814_v10 = vld [vmem:[%s4367_s1 + $0x40] ss:$16 sps:$4 sm:$0xff]   ;;  %1683 = vmatprep.mubr.bf16.mxu0 %v3468_v51  ;;  %v2903_v5 = vld [vmem:[%s4367_s1 + $0xc] ss:$16 sps:$4 sm:$0xff]  }
   0x6   :  { %v2812_v9 = vld [vmem:[%s4367_s1 + $0x244] ss:$16 sps:$4 sm:$0xff]   ;;  %v2815_v11 = vld [vmem:[%s4367_s1 + $0x240] ss:$16 sps:$4 sm:$0xff]  }
   0x7   :  { %1613 = vmatpush1.bf16.msra.mxu1 %v2808_v6  ;;  %v2816_v12 = vld [vmem:[%s4367_s1 + $0x64] ss:$16 sps:$4 sm:$0xff]   ;;  %v2820_v14 = vld [vmem:[%s4367_s1 + $0x60] ss:$16 sps:$4 sm:$0xff]  }
   0x8   :  { %1654 = vmatpush1.bf16.msra.mxu0 %v2809_v7  ;;  %1614 = vmatprep.subr.bf16.mxu1 %v2810_v8  ;;  %v2818_v13 = vld [vmem:[%s4367_s1 + $0x264] ss:$16 sps:$4 sm:$0xff]   ;;  %v2821_v15 = vld [vmem:[%s4367_s1 + $0x260] ss:$16 sps:$4 sm:$0xff]   ;;  %v3528_v7 = vcombine.low %v21_v48, %v21_v48 }
   0x9   :  { %1655 = vmatprep.subr.bf16.mxu0 %v2812_v9  ;;  %v2822_v16 = vld [vmem:[%s4367_s1 + $0x84] ss:$16 sps:$4 sm:$0xff]   ;;  %v2826_v18 = vld [vmem:[%s4367_s1 + $0x80] ss:$16 sps:$4 sm:$0xff]   ;;  %v2901_v9 = vld [vmem:[%s4367_s1 + $0x8] ss:$16 sps:$4 sm:$0xff]  }
   0xa   :  { %v2824_v17 = vld [vmem:[%s4367_s1 + $0x284] ss:$16 sps:$4 sm:$0xff]   ;;  %v2827_v19 = vld [vmem:[%s4367_s1 + $0x280] ss:$16 sps:$4 sm:$0xff]  }
   0xb   :  { %1615 = vmatpush1.bf16.msra.mxu1 %v2814_v10  ;;  %v2828_v20 = vld [vmem:[%s4367_s1 + $0xa4] ss:$16 sps:$4 sm:$0xff]   ;;  %v2832_v22 = vld [vmem:[%s4367_s1 + $0xa0] ss:$16 sps:$4 sm:$0xff]  }
   0xc   :  { %1656 = vmatpush1.bf16.msra.mxu0 %v2815_v11  ;;  %1616 = vmatprep.subr.bf16.mxu1 %v2816_v12  ;;  %v2830_v21 = vld [vmem:[%s4367_s1 + $0x2a4] ss:$16 sps:$4 sm:$0xff]   ;;  %v2833_v23 = vld [vmem:[%s4367_s1 + $0x2a0] ss:$16 sps:$4 sm:$0xff]   ;;  %v2909_v11 = vld [vmem:[%s4367_s1 + $0x2c] ss:$16 sps:$4 sm:$0xff]  }
   0xd   :  { %1657 = vmatprep.subr.bf16.mxu0 %v2818_v13  ;;  %v2834_v24 = vld [vmem:[%s4367_s1 + $0xc4] ss:$16 sps:$4 sm:$0xff]   ;;  %v2838_v26 = vld [vmem:[%s4367_s1 + $0xc0] ss:$16 sps:$4 sm:$0xff]   ;;  %v2907_v13 = vld [vmem:[%s4367_s1 + $0x28] ss:$16 sps:$4 sm:$0xff]  }
   0xe   :  { %v2836_v25 = vld [vmem:[%s4367_s1 + $0x2c4] ss:$16 sps:$4 sm:$0xff]   ;;  %v2839_v27 = vld [vmem:[%s4367_s1 + $0x2c0] ss:$16 sps:$4 sm:$0xff]  }
   0xf   :  { %1617 = vmatpush1.bf16.msra.mxu1 %v2820_v14  ;;  %v2840_v28 = vld [vmem:[%s4367_s1 + $0xe4] ss:$16 sps:$4 sm:$0xff]   ;;  %v2844_v30 = vld [vmem:[%s4367_s1 + $0xe0] ss:$16 sps:$4 sm:$0xff]  }
  0x10   :  { %1658 = vmatpush1.bf16.msra.mxu0 %v2821_v15  ;;  %1618 = vmatprep.subr.bf16.mxu1 %v2822_v16  ;;  %v2842_v29 = vld [vmem:[%s4367_s1 + $0x2e4] ss:$16 sps:$4 sm:$0xff]   ;;  %v2845_v31 = vld [vmem:[%s4367_s1 + $0x2e0] ss:$16 sps:$4 sm:$0xff]   ;;  %v2915_v15 = vld [vmem:[%s4367_s1 + $0x4c] ss:$16 sps:$4 sm:$0xff]  }
  0x11   :  { %1659 = vmatprep.subr.bf16.mxu0 %v2824_v17  ;;  %v2846_v32 = vld [vmem:[%s4367_s1 + $0x104] ss:$16 sps:$4 sm:$0xff]   ;;  %v2850_v34 = vld [vmem:[%s4367_s1 + $0x100] ss:$16 sps:$4 sm:$0xff]   ;;  %v2913_v17 = vld [vmem:[%s4367_s1 + $0x48] ss:$16 sps:$4 sm:$0xff]  }
  0x12   :  { %v2848_v33 = vld [vmem:[%s4367_s1 + $0x304] ss:$16 sps:$4 sm:$0xff]   ;;  %v2851_v35 = vld [vmem:[%s4367_s1 + $0x300] ss:$16 sps:$4 sm:$0xff]  }
  0x13   :  { %1619 = vmatpush1.bf16.msra.mxu1 %v2826_v18  ;;  %v2852_v36 = vld [vmem:[%s4367_s1 + $0x124] ss:$16 sps:$4 sm:$0xff]   ;;  %v2856_v38 = vld [vmem:[%s4367_s1 + $0x120] ss:$16 sps:$4 sm:$0xff]  }
  0x14   :  { %1660 = vmatpush1.bf16.msra.mxu0 %v2827_v19  ;;  %1620 = vmatprep.subr.bf16.mxu1 %v2828_v20  ;;  %v2854_v37 = vld [vmem:[%s4367_s1 + $0x324] ss:$16 sps:$4 sm:$0xff]   ;;  %v2857_v39 = vld [vmem:[%s4367_s1 + $0x320] ss:$16 sps:$4 sm:$0xff]   ;;  %v2921_v19 = vld [vmem:[%s4367_s1 + $0x6c] ss:$16 sps:$4 sm:$0xff]  }
  0x15   :  { %1661 = vmatprep.subr.bf16.mxu0 %v2830_v21  ;;  %v2858_v40 = vld [vmem:[%s4367_s1 + $0x144] ss:$16 sps:$4 sm:$0xff]   ;;  %v2862_v42 = vld [vmem:[%s4367_s1 + $0x140] ss:$16 sps:$4 sm:$0xff]   ;;  %v2919_v21 = vld [vmem:[%s4367_s1 + $0x68] ss:$16 sps:$4 sm:$0xff]  }
  0x16   :  { %v2860_v41 = vld [vmem:[%s4367_s1 + $0x344] ss:$16 sps:$4 sm:$0xff]   ;;  %v2863_v43 = vld [vmem:[%s4367_s1 + $0x340] ss:$16 sps:$4 sm:$0xff]  }
  0x17   :  { %1621 = vmatpush1.bf16.msra.mxu1 %v2832_v22  ;;  %v2864_v44 = vld [vmem:[%s4367_s1 + $0x164] ss:$16 sps:$4 sm:$0xff]   ;;  %v2868_v49 = vld [vmem:[%s4367_s1 + $0x160] ss:$16 sps:$4 sm:$0xff]  }
  0x18   :  { %1662 = vmatpush1.bf16.msra.mxu0 %v2833_v23  ;;  %1622 = vmatprep.subr.bf16.mxu1 %v2834_v24  ;;  %v2866_v45 = vld [vmem:[%s4367_s1 + $0x364] ss:$16 sps:$4 sm:$0xff]   ;;  %v2869_v50 = vld [vmem:[%s4367_s1 + $0x360] ss:$16 sps:$4 sm:$0xff]   ;;  %v2927_v23 = vld [vmem:[%s4367_s1 + $0x8c] ss:$16 sps:$4 sm:$0xff]  }
  0x19   :  { %1663 = vmatprep.subr.bf16.mxu0 %v2836_v25  ;;  %v20_v46 = vld [vmem:[%s4368_s0] sm:$0xff]  ;;  %v2925_v25 = vld [vmem:[%s4367_s1 + $0x88] ss:$16 sps:$4 sm:$0xff]  }
  0x1a   :  { %v3457_v47 = vcombine.high %v20_v46, %v20_v46  ;;  %v2870_v52 = vld [vmem:[%s4367_s1 + $0x184] ss:$16 sps:$4 sm:$0xff]   ;;  %v2874_v54 = vld [vmem:[%s4367_s1 + $0x180] ss:$16 sps:$4 sm:$0xff]   ;;  %v3526_v6 = vcombine.low %v20_v46, %v20_v46 }
  0x1b   :  { %1623 = vmatpush1.bf16.msra.mxu1 %v2838_v26  ;;  %v2872_v53 = vld [vmem:[%s4367_s1 + $0x384] ss:$16 sps:$4 sm:$0xff]   ;;  %v2875_v55 = vld [vmem:[%s4367_s1 + $0x380] ss:$16 sps:$4 sm:$0xff]  }
  0x1c   :  { %1664 = vmatpush1.bf16.msra.mxu0 %v2839_v27  ;;  %1624 = vmatprep.subr.bf16.mxu1 %v2840_v28  ;;  %v2876_v56 = vld [vmem:[%s4367_s1 + $0x1a4] ss:$16 sps:$4 sm:$0xff]   ;;  %v2880_v58 = vld [vmem:[%s4367_s1 + $0x1a0] ss:$16 sps:$4 sm:$0xff]   ;;  %v2933_v27 = vld [vmem:[%s4367_s1 + $0xac] ss:$16 sps:$4 sm:$0xff]  }
  0x1d   :  { %1665 = vmatprep.subr.bf16.mxu0 %v2842_v29  ;;  %1642 = vmatprep.mubr.bf16.mxu1 %v3457_v47  ;;  %v2878_v57 = vld [vmem:[%s4367_s1 + $0x3a4] ss:$16 sps:$4 sm:$0xff]   ;;  %v2881_v59 = vld [vmem:[%s4367_s1 + $0x3a0] ss:$16 sps:$4 sm:$0xff]   ;;  %v2931_v29 = vld [vmem:[%s4367_s1 + $0xa8] ss:$16 sps:$4 sm:$0xff]  }
  0x1e   :  { %v2882_v60 = vld [vmem:[%s4367_s1 + $0x1c4] ss:$16 sps:$4 sm:$0xff]   ;;  %v2886_v62 = vld [vmem:[%s4367_s1 + $0x1c0] ss:$16 sps:$4 sm:$0xff]  }
  0x1f   :  { %1625 = vmatpush1.bf16.msra.mxu1 %v2844_v30  ;;  %v2884_v61 = vld [vmem:[%s4367_s1 + $0x3c4] ss:$16 sps:$4 sm:$0xff]   ;;  %v2887_v63 = vld [vmem:[%s4367_s1 + $0x3c0] ss:$16 sps:$4 sm:$0xff]  }
  0x20   :  { %1666 = vmatpush1.bf16.msra.mxu0 %v2845_v31  ;;  %1626 = vmatprep.subr.bf16.mxu1 %v2846_v32  ;;  %v2888_v0 = vld [vmem:[%s4367_s1 + $0x1e4] ss:$16 sps:$4 sm:$0xff]   ;;  %v2892_v2 = vld [vmem:[%s4367_s1 + $0x1e0] ss:$16 sps:$4 sm:$0xff]   ;;  %v2939_v31 = vld [vmem:[%s4367_s1 + $0xcc] ss:$16 sps:$4 sm:$0xff]  }
  0x21   :  { %1667 = vmatprep.subr.bf16.mxu0 %v2848_v33  ;;  %v2890_v1 = vld [vmem:[%s4367_s1 + $0x3e4] ss:$16 sps:$4 sm:$0xff]   ;;  %v2893_v3 = vld [vmem:[%s4367_s1 + $0x3e0] ss:$16 sps:$4 sm:$0xff]  }
  0x22   :  { %v2900_v4 = vld [vmem:[%s4367_s1 + $0x404] ss:$16 sps:$4 sm:$0xff]   ;;  %v2898_v8 = vld [vmem:[%s4367_s1 + $0x400] ss:$16 sps:$4 sm:$0xff]  }
  0x23   :  { %1627 = vmatpush1.bf16.msra.mxu1 %v2850_v34  ;;  %v2906_v10 = vld [vmem:[%s4367_s1 + $0x424] ss:$16 sps:$4 sm:$0xff]   ;;  %v2904_v12 = vld [vmem:[%s4367_s1 + $0x420] ss:$16 sps:$4 sm:$0xff]  }
  0x24   :  { %1668 = vmatpush1.bf16.msra.mxu0 %v2851_v35  ;;  %1628 = vmatprep.subr.bf16.mxu1 %v2852_v36  ;;  %v2912_v14 = vld [vmem:[%s4367_s1 + $0x444] ss:$16 sps:$4 sm:$0xff]   ;;  %v2910_v16 = vld [vmem:[%s4367_s1 + $0x440] ss:$16 sps:$4 sm:$0xff]   ;;  %v2937_v35 = vld [vmem:[%s4367_s1 + $0xc8] ss:$16 sps:$4 sm:$0xff]  }
  0x25   :  { %1669 = vmatprep.subr.bf16.mxu0 %v2854_v37  ;;  %v2918_v18 = vld [vmem:[%s4367_s1 + $0x464] ss:$16 sps:$4 sm:$0xff]   ;;  %v2916_v20 = vld [vmem:[%s4367_s1 + $0x460] ss:$16 sps:$4 sm:$0xff]   ;;  %v2945_v37 = vld [vmem:[%s4367_s1 + $0xec] ss:$16 sps:$4 sm:$0xff]  }
  0x26   :  { %v2924_v22 = vld [vmem:[%s4367_s1 + $0x484] ss:$16 sps:$4 sm:$0xff]   ;;  %v2922_v24 = vld [vmem:[%s4367_s1 + $0x480] ss:$16 sps:$4 sm:$0xff]  }
  0x27   :  { %1629 = vmatpush1.bf16.msra.mxu1 %v2856_v38  ;;  %v2930_v26 = vld [vmem:[%s4367_s1 + $0x4a4] ss:$16 sps:$4 sm:$0xff]   ;;  %v2928_v28 = vld [vmem:[%s4367_s1 + $0x4a0] ss:$16 sps:$4 sm:$0xff]  }
  0x28   :  { %1670 = vmatpush1.bf16.msra.mxu0 %v2857_v39  ;;  %1630 = vmatprep.subr.bf16.mxu1 %v2858_v40  ;;  %v2936_v30 = vld [vmem:[%s4367_s1 + $0x4c4] ss:$16 sps:$4 sm:$0xff]   ;;  %v2934_v33 = vld [vmem:[%s4367_s1 + $0x4c0] ss:$16 sps:$4 sm:$0xff]   ;;  %v2943_v39 = vld [vmem:[%s4367_s1 + $0xe8] ss:$16 sps:$4 sm:$0xff]  }
  0x29   :  { %1671 = vmatprep.subr.bf16.mxu0 %v2860_v41  ;;  %v3608_v32 = vld [vmem:[%s4368_s0 + $0x10] sm:$0xff]  ;;  %v2951_v41 = vld [vmem:[%s4367_s1 + $0x10c] ss:$16 sps:$4 sm:$0xff]  }
  0x2a   :  { %v3615_v34 = vcombine.high %v3608_v32, %v3608_v32  ;;  %v2942_v36 = vld [vmem:[%s4367_s1 + $0x4e4] ss:$16 sps:$4 sm:$0xff]   ;;  %v2940_v38 = vld [vmem:[%s4367_s1 + $0x4e0] ss:$16 sps:$4 sm:$0xff]  }
  0x2b   :  { %1631 = vmatpush1.bf16.msra.mxu1 %v2862_v42  ;;  %v2948_v40 = vld [vmem:[%s4367_s1 + $0x504] ss:$16 sps:$4 sm:$0xff]   ;;  %v2946_v42 = vld [vmem:[%s4367_s1 + $0x500] ss:$16 sps:$4 sm:$0xff]  }
  0x2c   :  { %1672 = vmatpush1.bf16.msra.mxu0 %v2863_v43  ;;  %1632 = vmatprep.subr.bf16.mxu1 %v2864_v44  ;;  %v2949_v43 = vld [vmem:[%s4367_s1 + $0x108] ss:$16 sps:$4 sm:$0xff]   ;;  %v2954_v44 = vld [vmem:[%s4367_s1 + $0x524] ss:$16 sps:$4 sm:$0xff]   ;;  %v2952_v46 = vld [vmem:[%s4367_s1 + $0x520] ss:$16 sps:$4 sm:$0xff]  }
  0x2d   :  { %1673 = vmatprep.subr.bf16.mxu0 %v2866_v45  ;;  %v2957_v45 = vld [vmem:[%s4367_s1 + $0x12c] ss:$16 sps:$4 sm:$0xff]   ;;  %v2960_v48 = vld [vmem:[%s4367_s1 + $0x544] ss:$16 sps:$4 sm:$0xff]  }
  0x2f   :  { %1633 = vmatpush1.bf16.msra.mxu1 %v2868_v49  ;;  %v2963_v49 = vld [vmem:[%s4367_s1 + $0x14c] ss:$16 sps:$4 sm:$0xff]  }
  0x30   :  { %1674 = vmatpush1.bf16.msra.mxu0 %v2869_v50  ;;  %1634 = vmatprep.subr.bf16.mxu1 %v2870_v52  ;;  %v2958_v50 = vld [vmem:[%s4367_s1 + $0x540] ss:$16 sps:$4 sm:$0xff]   ;;  %v2961_v52 = vld [vmem:[%s4367_s1 + $0x148] ss:$16 sps:$4 sm:$0xff]  }
  0x31   :  { %1675 = vmatprep.subr.bf16.mxu0 %v2872_v53  ;;  %v2966_v53 = vld [vmem:[%s4367_s1 + $0x564] ss:$16 sps:$4 sm:$0xff]  }
  0x33   :  { %1635 = vmatpush1.bf16.msra.mxu1 %v2874_v54  ;;  %v2969_v54 = vld [vmem:[%s4367_s1 + $0x16c] ss:$16 sps:$4 sm:$0xff]  }
  0x34   :  { %1676 = vmatpush1.bf16.msra.mxu0 %v2875_v55  ;;  %1636 = vmatprep.subr.bf16.mxu1 %v2876_v56  ;;  %v2964_v55 = vld [vmem:[%s4367_s1 + $0x560] ss:$16 sps:$4 sm:$0xff]   ;;  %v2967_v56 = vld [vmem:[%s4367_s1 + $0x168] ss:$16 sps:$4 sm:$0xff]  }
  0x35   :  { %1677 = vmatprep.subr.bf16.mxu0 %v2878_v57  ;;  %v2972_v57 = vld [vmem:[%s4367_s1 + $0x584] ss:$16 sps:$4 sm:$0xff]  }
  0x37   :  { %1637 = vmatpush1.bf16.msra.mxu1 %v2880_v58  ;;  %v2975_v58 = vld [vmem:[%s4367_s1 + $0x18c] ss:$16 sps:$4 sm:$0xff]  }
  0x38   :  { %1678 = vmatpush1.bf16.msra.mxu0 %v2881_v59  ;;  %1638 = vmatprep.subr.bf16.mxu1 %v2882_v60  ;;  %v2970_v59 = vld [vmem:[%s4367_s1 + $0x580] ss:$16 sps:$4 sm:$0xff]   ;;  %v2973_v60 = vld [vmem:[%s4367_s1 + $0x188] ss:$16 sps:$4 sm:$0xff]  }
  0x39   :  { %1679 = vmatprep.subr.bf16.mxu0 %v2884_v61  ;;  %v2978_v61 = vld [vmem:[%s4367_s1 + $0x5a4] ss:$16 sps:$4 sm:$0xff]  }
  0x3b   :  { %1639 = vmatpush1.bf16.msra.mxu1 %v2886_v62  ;;  %v2981_v62 = vld [vmem:[%s4367_s1 + $0x1ac] ss:$16 sps:$4 sm:$0xff]  }
  0x3c   :  { %1680 = vmatpush1.bf16.msra.mxu0 %v2887_v63  ;;  %1640 = vmatprep.subr.bf16.mxu1 %v2888_v0  ;;  %v2976_v63 = vld [vmem:[%s4367_s1 + $0x5a0] ss:$16 sps:$4 sm:$0xff]   ;;  %v2979_v0 = vld [vmem:[%s4367_s1 + $0x1a8] ss:$16 sps:$4 sm:$0xff]  }
  0x3d   :  { %1681 = vmatprep.subr.bf16.mxu0 %v2890_v1  ;;  %v2984_v1 = vld [vmem:[%s4367_s1 + $0x5c4] ss:$16 sps:$4 sm:$0xff]  }
  0x3f   :  { %1641 = vmatpush1.bf16.msra.mxu1 %v2892_v2  ;;  %v2987_v2 = vld [vmem:[%s4367_s1 + $0x1cc] ss:$16 sps:$4 sm:$0xff]  }
  0x40   :  { %1682 = vmatpush1.bf16.msra.mxu0 %v2893_v3  ;;  %1774 = vmatprep.subr.bf16.mxu1 %v2903_v5  ;;  %v2982_v3 = vld [vmem:[%s4367_s1 + $0x5c0] ss:$16 sps:$4 sm:$0xff]   ;;  %v2990_v5 = vld [vmem:[%s4367_s1 + $0x5e4] ss:$16 sps:$4 sm:$0xff]  }
  0x41   :  { %1692 = vmatprep.subr.bf16.mxu0 %v2900_v4  ;;  %v2985_v4 = vld [vmem:[%s4367_s1 + $0x1c8] ss:$16 sps:$4 sm:$0xff]  }
  0x42   :  { %1643 = vmatmul.mubr.bf16.vlgmr.msra.gmra.mrb[0].mxu1 %v3526_v6 }
  0x43   :  { %1684 = vmatmul.mubr.bf16.vlgmr.msra.gmra.mrb[0].mxu0 %v3528_v7  ;;  %1775 = vmatpush1.bf16.msra.mxu1 %v2901_v9  ;;  %v2988_v9 = vld [vmem:[%s4367_s1 + $0x5e0] ss:$16 sps:$4 sm:$0xff]  }
  0x44   :  { %1693 = vmatpush1.bf16.msra.mxu0 %v2898_v8  ;;  %1776 = vmatprep.subr.bf16.mxu1 %v2909_v11  ;;  %v2993_v8 = vld [vmem:[%s4367_s1 + $0x1ec] ss:$16 sps:$4 sm:$0xff]   ;;  %v2998_v11 = vld [vmem:[%s4367_s1 + $0x604] ss:$16 sps:$4 sm:$0xff]  }
  0x45   :  { %1694 = vmatprep.subr.bf16.mxu0 %v2906_v10  ;;  %1806 = vmatprep.mubr.bf16.mxu1 %v3457_v47  ;;  %v2955_v47 = vld [vmem:[%s4367_s1 + $0x128] ss:$16 sps:$4 sm:$0xff]  }
  0x46   :  { %1724 = vmatprep.mubr.bf16.mxu0 %v3615_v34  ;;  %v2991_v10 = vld [vmem:[%s4367_s1 + $0x1e8] ss:$16 sps:$4 sm:$0xff]  }
  0x47   :  { %1777 = vmatpush1.bf16.msra.mxu1 %v2907_v13  ;;  %v3737_v13 = vcombine.low %v3608_v32, %v3608_v32  ;;  %v3028_v32 = vld [vmem:[%s4367_s1 + $0x6a4] ss:$16 sps:$4 sm:$0xff]  }
  0x48   :  { %1695 = vmatpush1.bf16.msra.mxu0 %v2904_v12  ;;  %1778 = vmatprep.subr.bf16.mxu1 %v2915_v15  ;;  %v3001_v12 = vld [vmem:[%s4367_s1 + $0x20c] ss:$16 sps:$4 sm:$0xff]   ;;  %v2999_v15 = vld [vmem:[%s4367_s1 + $0x208] ss:$16 sps:$4 sm:$0xff]  }
  0x49   :  { %1696 = vmatprep.subr.bf16.mxu0 %v2912_v14  ;;  %v2996_v14 = vld [vmem:[%s4367_s1 + $0x600] ss:$16 sps:$4 sm:$0xff]  }
  0x4b   :  { %1779 = vmatpush1.bf16.msra.mxu1 %v2913_v17  ;;  %v3007_v17 = vld [vmem:[%s4367_s1 + $0x22c] ss:$16 sps:$4 sm:$0xff]  }
  0x4c   :  { %1697 = vmatpush1.bf16.msra.mxu0 %v2910_v16  ;;  %1780 = vmatprep.subr.bf16.mxu1 %v2921_v19  ;;  %v3004_v16 = vld [vmem:[%s4367_s1 + $0x624] ss:$16 sps:$4 sm:$0xff]  }
  0x4d   :  { %1698 = vmatprep.subr.bf16.mxu0 %v2918_v18  ;;  %v3754_v18 = vld [vmem:[%s4368_s0 + $0x18] sm:$0xff] }
  0x4e   :  { %v3758_v19 = vcombine.high %v3754_v18, %v3754_v18 }
  0x4f   :  { %1781 = vmatpush1.bf16.msra.mxu1 %v2919_v21  ;;  %v3005_v21 = vld [vmem:[%s4367_s1 + $0x228] ss:$16 sps:$4 sm:$0xff]  }
  0x50   :  { %1699 = vmatpush1.bf16.msra.mxu0 %v2916_v20  ;;  %1782 = vmatprep.subr.bf16.mxu1 %v2927_v23  ;;  %v3002_v20 = vld [vmem:[%s4367_s1 + $0x620] ss:$16 sps:$4 sm:$0xff]  }
  0x51   :  { %1700 = vmatprep.subr.bf16.mxu0 %v2924_v22  ;;  %v3010_v22 = vld [vmem:[%s4367_s1 + $0x644] ss:$16 sps:$4 sm:$0xff]   ;;  %v3008_v23 = vld [vmem:[%s4367_s1 + $0x640] ss:$16 sps:$4 sm:$0xff]  }
  0x53   :  { %1783 = vmatpush1.bf16.msra.mxu1 %v2925_v25  ;;  %v3016_v25 = vld [vmem:[%s4367_s1 + $0x664] ss:$16 sps:$4 sm:$0xff]  }
  0x54   :  { %1701 = vmatpush1.bf16.msra.mxu0 %v2922_v24  ;;  %1784 = vmatprep.subr.bf16.mxu1 %v2933_v27  ;;  %v3011_v24 = vld [vmem:[%s4367_s1 + $0x248] ss:$16 sps:$4 sm:$0xff]  }
  0x55   :  { %1702 = vmatprep.subr.bf16.mxu0 %v2930_v26  ;;  %v3014_v26 = vld [vmem:[%s4367_s1 + $0x660] ss:$16 sps:$4 sm:$0xff]   ;;  %v3017_v27 = vld [vmem:[%s4367_s1 + $0x268] ss:$16 sps:$4 sm:$0xff]  }
  0x57   :  { %1785 = vmatpush1.bf16.msra.mxu1 %v2931_v29  ;;  %v3025_v29 = vld [vmem:[%s4367_s1 + $0x28c] ss:$16 sps:$4 sm:$0xff]  }
  0x58   :  { %1703 = vmatpush1.bf16.msra.mxu0 %v2928_v28  ;;  %1786 = vmatprep.subr.bf16.mxu1 %v2939_v31  ;;  %v3022_v28 = vld [vmem:[%s4367_s1 + $0x684] ss:$16 sps:$4 sm:$0xff]   ;;  %v3023_v31 = vld [vmem:[%s4367_s1 + $0x288] ss:$16 sps:$4 sm:$0xff]  }
  0x59   :  { %1704 = vmatprep.subr.bf16.mxu0 %v2936_v30  ;;  %v3020_v30 = vld [vmem:[%s4367_s1 + $0x680] ss:$16 sps:$4 sm:$0xff]  }
  0x5b   :  { %1787 = vmatpush1.bf16.msra.mxu1 %v2937_v35  ;;  %v3026_v35 = vld [vmem:[%s4367_s1 + $0x6a0] ss:$16 sps:$4 sm:$0xff]  }
  0x5c   :  { %1705 = vmatpush1.bf16.msra.mxu0 %v2934_v33  ;;  %1788 = vmatprep.subr.bf16.mxu1 %v2945_v37  ;;  %v3031_v33 = vld [vmem:[%s4367_s1 + $0x2ac] ss:$16 sps:$4 sm:$0xff]   ;;  %v3034_v37 = vld [vmem:[%s4367_s1 + $0x6c4] ss:$16 sps:$4 sm:$0xff]  }
  0x5d   :  { %1706 = vmatprep.subr.bf16.mxu0 %v2942_v36  ;;  %v3029_v36 = vld [vmem:[%s4367_s1 + $0x2a8] ss:$16 sps:$4 sm:$0xff]  }
  0x5f   :  { %1789 = vmatpush1.bf16.msra.mxu1 %v2943_v39  ;;  %v3032_v39 = vld [vmem:[%s4367_s1 + $0x6c0] ss:$16 sps:$4 sm:$0xff]  }
  0x60   :  { %1707 = vmatpush1.bf16.msra.mxu0 %v2940_v38  ;;  %1790 = vmatprep.subr.bf16.mxu1 %v2951_v41  ;;  %v3037_v38 = vld [vmem:[%s4367_s1 + $0x2cc] ss:$16 sps:$4 sm:$0xff]   ;;  %v3040_v41 = vld [vmem:[%s4367_s1 + $0x6e4] ss:$16 sps:$4 sm:$0xff]  }
  0x61   :  { %1708 = vmatprep.subr.bf16.mxu0 %v2948_v40  ;;  %v3035_v40 = vld [vmem:[%s4367_s1 + $0x2c8] ss:$16 sps:$4 sm:$0xff]  }
  0x63   :  { %1791 = vmatpush1.bf16.msra.mxu1 %v2949_v43  ;;  %v3038_v43 = vld [vmem:[%s4367_s1 + $0x6e0] ss:$16 sps:$4 sm:$0xff]  }
  0x64   :  { %1709 = vmatpush1.bf16.msra.mxu0 %v2946_v42  ;;  %1792 = vmatprep.subr.bf16.mxu1 %v2957_v45  ;;  %v3043_v42 = vld [vmem:[%s4367_s1 + $0x2ec] ss:$16 sps:$4 sm:$0xff]   ;;  %v3046_v45 = vld [vmem:[%s4367_s1 + $0x704] ss:$16 sps:$4 sm:$0xff]  }
  0x65   :  { %1710 = vmatprep.subr.bf16.mxu0 %v2954_v44  ;;  %v3041_v44 = vld [vmem:[%s4367_s1 + $0x2e8] ss:$16 sps:$4 sm:$0xff]  }
  0x67   :  { %1793 = vmatpush1.bf16.msra.mxu1 %v2955_v47  ;;  %v3044_v47 = vld [vmem:[%s4367_s1 + $0x700] ss:$16 sps:$4 sm:$0xff]  }
  0x68   :  { %1711 = vmatpush1.bf16.msra.mxu0 %v2952_v46  ;;  %1794 = vmatprep.subr.bf16.mxu1 %v2963_v49  ;;  %v3049_v46 = vld [vmem:[%s4367_s1 + $0x30c] ss:$16 sps:$4 sm:$0xff]   ;;  %v3052_v49 = vld [vmem:[%s4367_s1 + $0x724] ss:$16 sps:$4 sm:$0xff]  }
  0x69   :  { %1712 = vmatprep.subr.bf16.mxu0 %v2960_v48  ;;  %v3047_v48 = vld [vmem:[%s4367_s1 + $0x308] ss:$16 sps:$4 sm:$0xff]  }
  0x6b   :  { %1795 = vmatpush1.bf16.msra.mxu1 %v2961_v52  ;;  %v3050_v52 = vld [vmem:[%s4367_s1 + $0x720] ss:$16 sps:$4 sm:$0xff]  }
  0x6c   :  { %1713 = vmatpush1.bf16.msra.mxu0 %v2958_v50  ;;  %1796 = vmatprep.subr.bf16.mxu1 %v2969_v54  ;;  %v3055_v50 = vld [vmem:[%s4367_s1 + $0x32c] ss:$16 sps:$4 sm:$0xff]   ;;  %v3058_v54 = vld [vmem:[%s4367_s1 + $0x744] ss:$16 sps:$4 sm:$0xff]  }
  0x6d   :  { %1714 = vmatprep.subr.bf16.mxu0 %v2966_v53  ;;  %v3053_v53 = vld [vmem:[%s4367_s1 + $0x328] ss:$16 sps:$4 sm:$0xff]  }
  0x6f   :  { %1797 = vmatpush1.bf16.msra.mxu1 %v2967_v56  ;;  %v3056_v56 = vld [vmem:[%s4367_s1 + $0x740] ss:$16 sps:$4 sm:$0xff]  }
  0x70   :  { %1715 = vmatpush1.bf16.msra.mxu0 %v2964_v55  ;;  %1798 = vmatprep.subr.bf16.mxu1 %v2975_v58  ;;  %v3061_v55 = vld [vmem:[%s4367_s1 + $0x34c] ss:$16 sps:$4 sm:$0xff]   ;;  %v3064_v58 = vld [vmem:[%s4367_s1 + $0x764] ss:$16 sps:$4 sm:$0xff]  }
  0x71   :  { %1716 = vmatprep.subr.bf16.mxu0 %v2972_v57  ;;  %v3059_v57 = vld [vmem:[%s4367_s1 + $0x348] ss:$16 sps:$4 sm:$0xff]  }
  0x73   :  { %1799 = vmatpush1.bf16.msra.mxu1 %v2973_v60  ;;  %v3062_v60 = vld [vmem:[%s4367_s1 + $0x760] ss:$16 sps:$4 sm:$0xff]  }
  0x74   :  { %1717 = vmatpush1.bf16.msra.mxu0 %v2970_v59  ;;  %1800 = vmatprep.subr.bf16.mxu1 %v2981_v62  ;;  %v3067_v59 = vld [vmem:[%s4367_s1 + $0x36c] ss:$16 sps:$4 sm:$0xff]   ;;  %v3070_v62 = vld [vmem:[%s4367_s1 + $0x784] ss:$16 sps:$4 sm:$0xff]  }
  0x75   :  { %1718 = vmatprep.subr.bf16.mxu0 %v2978_v61  ;;  %v3065_v61 = vld [vmem:[%s4367_s1 + $0x368] ss:$16 sps:$4 sm:$0xff]  }
  0x77   :  { %1801 = vmatpush1.bf16.msra.mxu1 %v2979_v0  ;;  %v3068_v0 = vld [vmem:[%s4367_s1 + $0x780] ss:$16 sps:$4 sm:$0xff]  }
  0x78   :  { %1719 = vmatpush1.bf16.msra.mxu0 %v2976_v63  ;;  %1802 = vmatprep.subr.bf16.mxu1 %v2987_v2  ;;  %v3073_v63 = vld [vmem:[%s4367_s1 + $0x38c] ss:$16 sps:$4 sm:$0xff]   ;;  %v3076_v2 = vld [vmem:[%s4367_s1 + $0x7a4] ss:$16 sps:$4 sm:$0xff]  }
  0x79   :  { %1720 = vmatprep.subr.bf16.mxu0 %v2984_v1  ;;  %v3071_v1 = vld [vmem:[%s4367_s1 + $0x388] ss:$16 sps:$4 sm:$0xff]  }
  0x7b   :  { %1803 = vmatpush1.bf16.msra.mxu1 %v2985_v4  ;;  %v3074_v4 = vld [vmem:[%s4367_s1 + $0x7a0] ss:$16 sps:$4 sm:$0xff]  }
  0x7c   :  { %1721 = vmatpush1.bf16.msra.mxu0 %v2982_v3  ;;  %1804 = vmatprep.subr.bf16.mxu1 %v2993_v8  ;;  %v3079_v3 = vld [vmem:[%s4367_s1 + $0x3ac] ss:$16 sps:$4 sm:$0xff]   ;;  %v3082_v8 = vld [vmem:[%s4367_s1 + $0x7c4] ss:$16 sps:$4 sm:$0xff]  }
  0x7d   :  { %1722 = vmatprep.subr.bf16.mxu0 %v2990_v5  ;;  %v3077_v5 = vld [vmem:[%s4367_s1 + $0x3a8] ss:$16 sps:$4 sm:$0xff]  }
  0x7f   :  { %1805 = vmatpush1.bf16.msra.mxu1 %v2991_v10  ;;  %v3080_v10 = vld [vmem:[%s4367_s1 + $0x7c0] ss:$16 sps:$4 sm:$0xff]  }
  0x80   :  { %1723 = vmatpush1.bf16.msra.mxu0 %v2988_v9  ;;  %1815 = vmatprep.subr.bf16.mxu1 %v3001_v12  ;;  %v3085_v9 = vld [vmem:[%s4367_s1 + $0x3cc] ss:$16 sps:$4 sm:$0xff]   ;;  %v3088_v12 = vld [vmem:[%s4367_s1 + $0x7e4] ss:$16 sps:$4 sm:$0xff]  }
  0x81   :  { %1733 = vmatprep.subr.bf16.mxu0 %v2998_v11  ;;  %v3083_v11 = vld [vmem:[%s4367_s1 + $0x3c8] ss:$16 sps:$4 sm:$0xff]  }
  0x82   :  { %1807 = vmatmul.mubr.bf16.vlgmr.msra.gmra.mrb[4].mxu1 %v3526_v6  ;;  %v3013_v6 = vld [vmem:[%s4367_s1 + $0x24c] ss:$16 sps:$4 sm:$0xff]  }
  0x83   :  { %1725 = vmatmul.mubr.bf16.vlgmr.msra.gmra.mrb[0].mxu0 %v3737_v13  ;;  %1816 = vmatpush1.bf16.msra.mxu1 %v2999_v15  ;;  %v3086_v15 = vld [vmem:[%s4367_s1 + $0x7e0] ss:$16 sps:$4 sm:$0xff]  }
  0x84   :  { %1734 = vmatpush1.bf16.msra.mxu0 %v2996_v14  ;;  %1817 = vmatprep.subr.bf16.mxu1 %v3007_v17  ;;  %v3091_v14 = vld [vmem:[%s4367_s1 + $0x3ec] ss:$16 sps:$4 sm:$0xff]  }
  0x85   :  { %1735 = vmatprep.subr.bf16.mxu0 %v3004_v16  ;;  %1765 = vmatprep.mubr.bf16.mxu0 %v3758_v19  ;;  %v3089_v16 = vld [vmem:[%s4367_s1 + $0x3e8] ss:$16 sps:$4 sm:$0xff]   ;;  %v3096_v17 = vld [vmem:[%s4367_s1 + $0x40c] ss:$16 sps:$4 sm:$0xff]  }
  0x86   :  { %1847 = vmatprep.mubr.bf16.mxu1 %v3468_v51  ;;  %v3019_v51 = vld [vmem:[%s4367_s1 + $0x26c] ss:$16 sps:$4 sm:$0xff]  }
  0x87   :  { %1818 = vmatpush1.bf16.msra.mxu1 %v3005_v21  ;;  %v3094_v21 = vld [vmem:[%s4367_s1 + $0x408] ss:$16 sps:$4 sm:$0xff]  }
  0x88   :  { %1736 = vmatpush1.bf16.msra.mxu0 %v3002_v20  ;;  %1819 = vmatprep.subr.bf16.mxu1 %v3013_v6  ;;  %v3943_v20 = vcombine.low %v3754_v18, %v3754_v18  ;;  %v3097_v18 = vld [vmem:[%s4367_s1 + $0x428] ss:$16 sps:$4 sm:$0xff]   ;;  %v3102_v6 = vld [vmem:[%s4367_s1 + $0x44c] ss:$16 sps:$4 sm:$0xff]  }
  0x89   :  { %1737 = vmatprep.subr.bf16.mxu0 %v3010_v22  ;;  %v3099_v22 = vld [vmem:[%s4367_s1 + $0x42c] ss:$16 sps:$4 sm:$0xff]  }
  0x8b   :  { %1820 = vmatpush1.bf16.msra.mxu1 %v3011_v24  ;;  %v3195_v24 = vld [vmem:[%s4369_s3 + $0x14] ss:$8 sps:$4 sm:$0xff]  }
  0x8c   :  { %1738 = vmatpush1.bf16.msra.mxu0 %v3008_v23  ;;  %1821 = vmatprep.subr.bf16.mxu1 %v3019_v51  ;;  %v3190_v23 = vld [vmem:[%s4369_s3] ss:$8 sps:$4 sm:$0xff]   ;;  %v3193_v51 = vld [vmem:[%s4369_s3 + $0x10] ss:$8 sps:$4 sm:$0xff]  }
  0x8d   :  { %1739 = vmatprep.subr.bf16.mxu0 %v3016_v25  ;;  %v3100_v25 = vld [vmem:[%s4367_s1 + $0x448] ss:$16 sps:$4 sm:$0xff]  }
  0x8f   :  { %1822 = vmatpush1.bf16.msra.mxu1 %v3017_v27  ;;  %v3103_v27 = vld [vmem:[%s4367_s1 + $0x468] ss:$16 sps:$4 sm:$0xff]  }
  0x90   :  { %1740 = vmatpush1.bf16.msra.mxu0 %v3014_v26  ;;  %1823 = vmatprep.subr.bf16.mxu1 %v3025_v29  ;;  %v3198_v26 = vld [vmem:[%s4369_s3 + $0x24] ss:$8 sps:$4 sm:$0xff]   ;;  %v3196_v29 = vld [vmem:[%s4369_s3 + $0x20] ss:$8 sps:$4 sm:$0xff]  }
  0x91   :  { %1741 = vmatprep.subr.bf16.mxu0 %v3022_v28  ;;  %v3108_v28 = vld [vmem:[%s4367_s1 + $0x48c] ss:$16 sps:$4 sm:$0xff]  }
  0x93   :  { %1824 = vmatpush1.bf16.msra.mxu1 %v3023_v31  ;;  %v3106_v31 = vld [vmem:[%s4367_s1 + $0x488] ss:$16 sps:$4 sm:$0xff]  }
  0x94   :  { %1742 = vmatpush1.bf16.msra.mxu0 %v3020_v30  ;;  %1825 = vmatprep.subr.bf16.mxu1 %v3031_v33  ;;  %v3201_v30 = vld [vmem:[%s4369_s3 + $0x34] ss:$8 sps:$4 sm:$0xff]   ;;  %v3199_v33 = vld [vmem:[%s4369_s3 + $0x30] ss:$8 sps:$4 sm:$0xff]  }
  0x95   :  { %1743 = vmatprep.subr.bf16.mxu0 %v3028_v32  ;;  %v3111_v32 = vld [vmem:[%s4367_s1 + $0x4ac] ss:$16 sps:$4 sm:$0xff]  }
  0x97   :  { %1826 = vmatpush1.bf16.msra.mxu1 %v3029_v36  ;;  %v3109_v36 = vld [vmem:[%s4367_s1 + $0x4a8] ss:$16 sps:$4 sm:$0xff]  }
  0x98   :  { %1744 = vmatpush1.bf16.msra.mxu0 %v3026_v35  ;;  %1827 = vmatprep.subr.bf16.mxu1 %v3037_v38  ;;  %v3204_v35 = vld [vmem:[%s4369_s3 + $0x44] ss:$8 sps:$4 sm:$0xff]   ;;  %v3202_v38 = vld [vmem:[%s4369_s3 + $0x40] ss:$8 sps:$4 sm:$0xff]  }
  0x99   :  { %1745 = vmatprep.subr.bf16.mxu0 %v3034_v37  ;;  %v3114_v37 = vld [vmem:[%s4367_s1 + $0x4cc] ss:$16 sps:$4 sm:$0xff]  }
  0x9b   :  { %1828 = vmatpush1.bf16.msra.mxu1 %v3035_v40  ;;  %v3112_v40 = vld [vmem:[%s4367_s1 + $0x4c8] ss:$16 sps:$4 sm:$0xff]  }
  0x9c   :  { %1746 = vmatpush1.bf16.msra.mxu0 %v3032_v39  ;;  %1829 = vmatprep.subr.bf16.mxu1 %v3043_v42  ;;  %v3207_v39 = vld [vmem:[%s4369_s3 + $0x54] ss:$8 sps:$4 sm:$0xff]  }
  0x9d   :  { %1747 = vmatprep.subr.bf16.mxu0 %v3040_v41  ;;  %v3205_v41 = vld [vmem:[%s4369_s3 + $0x50] ss:$8 sps:$4 sm:$0xff]   ;;  %v3117_v42 = vld [vmem:[%s4367_s1 + $0x4ec] ss:$16 sps:$4 sm:$0xff]  }
  0x9f   :  { %1830 = vmatpush1.bf16.msra.mxu1 %v3041_v44  ;;  %v3115_v44 = vld [vmem:[%s4367_s1 + $0x4e8] ss:$16 sps:$4 sm:$0xff]  }
  0xa0   :  { %1748 = vmatpush1.bf16.msra.mxu0 %v3038_v43  ;;  %1831 = vmatprep.subr.bf16.mxu1 %v3049_v46  ;;  %v3210_v43 = vld [vmem:[%s4369_s3 + $0x64] ss:$8 sps:$4 sm:$0xff]  }
  0xa1   :  { %1749 = vmatprep.subr.bf16.mxu0 %v3046_v45  ;;  %v3208_v45 = vld [vmem:[%s4369_s3 + $0x60] ss:$8 sps:$4 sm:$0xff]   ;;  %v3120_v46 = vld [vmem:[%s4367_s1 + $0x50c] ss:$16 sps:$4 sm:$0xff]  }
  0xa3   :  { %1832 = vmatpush1.bf16.msra.mxu1 %v3047_v48  ;;  %v3118_v48 = vld [vmem:[%s4367_s1 + $0x508] ss:$16 sps:$4 sm:$0xff]  }
  0xa4   :  { %1750 = vmatpush1.bf16.msra.mxu0 %v3044_v47  ;;  %1833 = vmatprep.subr.bf16.mxu1 %v3055_v50  ;;  %v3213_v47 = vld [vmem:[%s4369_s3 + $0x74] ss:$8 sps:$4 sm:$0xff]  }
  0xa5   :  { %1751 = vmatprep.subr.bf16.mxu0 %v3052_v49  ;;  %v3211_v49 = vld [vmem:[%s4369_s3 + $0x70] ss:$8 sps:$4 sm:$0xff]   ;;  %v3123_v50 = vld [vmem:[%s4367_s1 + $0x52c] ss:$16 sps:$4 sm:$0xff]  }
  0xa7   :  { %1834 = vmatpush1.bf16.msra.mxu1 %v3053_v53  ;;  %v3121_v53 = vld [vmem:[%s4367_s1 + $0x528] ss:$16 sps:$4 sm:$0xff]  }
  0xa8   :  { %1752 = vmatpush1.bf16.msra.mxu0 %v3050_v52  ;;  %1835 = vmatprep.subr.bf16.mxu1 %v3061_v55  ;;  %v3216_v52 = vld [vmem:[%s4369_s3 + $0x84] ss:$8 sps:$4 sm:$0xff]  }
  0xa9   :  { %1753 = vmatprep.subr.bf16.mxu0 %v3058_v54  ;;  %v3214_v54 = vld [vmem:[%s4369_s3 + $0x80] ss:$8 sps:$4 sm:$0xff]   ;;  %v3126_v55 = vld [vmem:[%s4367_s1 + $0x54c] ss:$16 sps:$4 sm:$0xff]  }
  0xab   :  { %1836 = vmatpush1.bf16.msra.mxu1 %v3059_v57  ;;  %v3124_v57 = vld [vmem:[%s4367_s1 + $0x548] ss:$16 sps:$4 sm:$0xff]  }
  0xac   :  { %1754 = vmatpush1.bf16.msra.mxu0 %v3056_v56  ;;  %1837 = vmatprep.subr.bf16.mxu1 %v3067_v59  ;;  %v3219_v56 = vld [vmem:[%s4369_s3 + $0x94] ss:$8 sps:$4 sm:$0xff]  }
  0xad   :  { %1755 = vmatprep.subr.bf16.mxu0 %v3064_v58  ;;  %v3217_v58 = vld [vmem:[%s4369_s3 + $0x90] ss:$8 sps:$4 sm:$0xff]   ;;  %v3129_v59 = vld [vmem:[%s4367_s1 + $0x56c] ss:$16 sps:$4 sm:$0xff]  }
  0xaf   :  { %1838 = vmatpush1.bf16.msra.mxu1 %v3065_v61  ;;  %v3127_v61 = vld [vmem:[%s4367_s1 + $0x568] ss:$16 sps:$4 sm:$0xff]  }
  0xb0   :  { %1756 = vmatpush1.bf16.msra.mxu0 %v3062_v60  ;;  %1839 = vmatprep.subr.bf16.mxu1 %v3073_v63  ;;  %v3222_v60 = vld [vmem:[%s4369_s3 + $0xa4] ss:$8 sps:$4 sm:$0xff]  }
  0xb1   :  { %1757 = vmatprep.subr.bf16.mxu0 %v3070_v62  ;;  %v3220_v62 = vld [vmem:[%s4369_s3 + $0xa0] ss:$8 sps:$4 sm:$0xff]   ;;  %v3132_v63 = vld [vmem:[%s4367_s1 + $0x58c] ss:$16 sps:$4 sm:$0xff]  }
  0xb3   :  { %1840 = vmatpush1.bf16.msra.mxu1 %v3071_v1  ;;  %v3130_v1 = vld [vmem:[%s4367_s1 + $0x588] ss:$16 sps:$4 sm:$0xff]  }
  0xb4   :  { %1758 = vmatpush1.bf16.msra.mxu0 %v3068_v0  ;;  %1841 = vmatprep.subr.bf16.mxu1 %v3079_v3  ;;  %v3225_v0 = vld [vmem:[%s4369_s3 + $0xb4] ss:$8 sps:$4 sm:$0xff]  }
  0xb5   :  { %1759 = vmatprep.subr.bf16.mxu0 %v3076_v2  ;;  %v3223_v2 = vld [vmem:[%s4369_s3 + $0xb0] ss:$8 sps:$4 sm:$0xff]   ;;  %v3135_v3 = vld [vmem:[%s4367_s1 + $0x5ac] ss:$16 sps:$4 sm:$0xff]  }
  0xb7   :  { %1842 = vmatpush1.bf16.msra.mxu1 %v3077_v5  ;;  %v3133_v5 = vld [vmem:[%s4367_s1 + $0x5a8] ss:$16 sps:$4 sm:$0xff]  }
  0xb8   :  { %1760 = vmatpush1.bf16.msra.mxu0 %v3074_v4  ;;  %1843 = vmatprep.subr.bf16.mxu1 %v3085_v9  ;;  %v3228_v4 = vld [vmem:[%s4369_s3 + $0xc4] ss:$8 sps:$4 sm:$0xff]  }
  0xb9   :  { %1761 = vmatprep.subr.bf16.mxu0 %v3082_v8  ;;  %v3226_v8 = vld [vmem:[%s4369_s3 + $0xc0] ss:$8 sps:$4 sm:$0xff]   ;;  %v3138_v9 = vld [vmem:[%s4367_s1 + $0x5cc] ss:$16 sps:$4 sm:$0xff]  }
  0xbb   :  { %1844 = vmatpush1.bf16.msra.mxu1 %v3083_v11  ;;  %v3136_v11 = vld [vmem:[%s4367_s1 + $0x5c8] ss:$16 sps:$4 sm:$0xff]  }
  0xbc   :  { %1762 = vmatpush1.bf16.msra.mxu0 %v3080_v10  ;;  %1845 = vmatprep.subr.bf16.mxu1 %v3091_v14  ;;  %v3231_v10 = vld [vmem:[%s4369_s3 + $0xd4] ss:$8 sps:$4 sm:$0xff]  }
  0xbd   :  { %1763 = vmatprep.subr.bf16.mxu0 %v3088_v12  ;;  %v3229_v12 = vld [vmem:[%s4369_s3 + $0xd0] ss:$8 sps:$4 sm:$0xff]   ;;  %v3141_v14 = vld [vmem:[%s4367_s1 + $0x5ec] ss:$16 sps:$4 sm:$0xff]  }
  0xbf   :  { %1846 = vmatpush1.bf16.msra.mxu1 %v3089_v16  ;;  %v3144_v16 = vld [vmem:[%s4367_s1 + $0x60c] ss:$16 sps:$4 sm:$0xff]  }
  0xc0   :  { %1764 = vmatpush1.bf16.msra.mxu0 %v3086_v15  ;;  %1856 = vmatprep.subr.bf16.mxu1 %v3096_v17  ;;  %v3139_v15 = vld [vmem:[%s4367_s1 + $0x5e8] ss:$16 sps:$4 sm:$0xff]  }
  0xc1   :  { %v3142_v17 = vld [vmem:[%s4367_s1 + $0x608] ss:$16 sps:$4 sm:$0xff]  }
  0xc2   :  { %1848 = vmatmul.mubr.bf16.vlgmr.msra.gmra.mrb[4].mxu1 %v3528_v7  ;;  %v3192_v7 = vld [vmem:[%s4369_s3 + $0x4] ss:$8 sps:$4 sm:$0xff]  }
  0xc3   :  { %1766 = vmatmul.mubr.bf16.vlgmr.msra.gmra.mrb[0].mxu0 %v3943_v20  ;;  %1857 = vmatpush1.bf16.msra.mxu1 %v3094_v21  ;;  %v3147_v21 = vld [vmem:[%s4367_s1 + $0x62c] ss:$16 sps:$4 sm:$0xff]  }
  0xc4   :  { %1888 = vmatprep.mubr.bf16.mxu1 %v3615_v34  ;;  %1858 = vmatprep.subr.bf16.mxu1 %v3099_v22  ;;  %v3105_v34 = vld [vmem:[%s4367_s1 + $0x46c] ss:$16 sps:$4 sm:$0xff]   ;;  %v3145_v22 = vld [vmem:[%s4367_s1 + $0x628] ss:$16 sps:$4 sm:$0xff]  }
  0xc5   :  { %2350 = vmatprep.subr.bf16.mxu0 %v3192_v7  ;;  %v3154_v7 = vld [vmem:[%s4367_s1 + $0x688] ss:$16 sps:$4 sm:$0xff]  }
  0xc6   :  { %2351 = vmatpush1.bf16.msra.mxu0 %v3190_v23  ;;  %v3156_v23 = vld [vmem:[%s4367_s1 + $0x68c] ss:$16 sps:$4 sm:$0xff]  }
  0xc7   :  { %1859 = vmatpush1.bf16.msra.mxu1 %v3097_v18  ;;  %2352 = vmatprep.subr.bf16.mxu0 %v3195_v24  ;;  %v3150_v18 = vld [vmem:[%s4367_s1 + $0x64c] ss:$16 sps:$4 sm:$0xff]  }
  0xc8   :  { %1860 = vmatprep.subr.bf16.mxu1 %v3102_v6  ;;  %v3148_v6 = vld [vmem:[%s4367_s1 + $0x648] ss:$16 sps:$4 sm:$0xff]   ;;  %v3159_v24 = vld [vmem:[%s4367_s1 + $0x6ac] ss:$16 sps:$4 sm:$0xff]  }
  0xca   :  { %2353 = vmatpush1.bf16.msra.mxu0 %v3193_v51 }
  0xcb   :  { %1861 = vmatpush1.bf16.msra.mxu1 %v3100_v25  ;;  %2354 = vmatprep.subr.bf16.mxu0 %v3198_v26  ;;  %v3157_v25 = vld [vmem:[%s4367_s1 + $0x6a8] ss:$16 sps:$4 sm:$0xff]   ;;  %v3234_v26 = vld [vmem:[%s4369_s3 + $0xe4] ss:$8 sps:$4 sm:$0xff]  }
  0xcc   :  { %1862 = vmatprep.subr.bf16.mxu1 %v3105_v34  ;;  %v3162_v34 = vld [vmem:[%s4367_s1 + $0x6cc] ss:$16 sps:$4 sm:$0xff]  }
  0xce   :  { %2355 = vmatpush1.bf16.msra.mxu0 %v3196_v29 }
  0xcf   :  { %1863 = vmatpush1.bf16.msra.mxu1 %v3103_v27  ;;  %2356 = vmatprep.subr.bf16.mxu0 %v3201_v30  ;;  %v3160_v30 = vld [vmem:[%s4367_s1 + $0x6c8] ss:$16 sps:$4 sm:$0xff]  }
  0xd0   :  { %1864 = vmatprep.subr.bf16.mxu1 %v3108_v28  ;;  %v3232_v28 = vld [vmem:[%s4369_s3 + $0xe0] ss:$8 sps:$4 sm:$0xff]  }
  0xd2   :  { %2357 = vmatpush1.bf16.msra.mxu0 %v3199_v33  ;;  %v3237_v33 = vld [vmem:[%s4369_s3 + $0xf4] ss:$8 sps:$4 sm:$0xff]  }
  0xd3   :  { %1865 = vmatpush1.bf16.msra.mxu1 %v3106_v31  ;;  %2358 = vmatprep.subr.bf16.mxu0 %v3204_v35  ;;  %v3235_v35 = vld [vmem:[%s4369_s3 + $0xf0] ss:$8 sps:$4 sm:$0xff]  }
  0xd4   :  { %1866 = vmatprep.subr.bf16.mxu1 %v3111_v32  ;;  %v3165_v32 = vld [vmem:[%s4367_s1 + $0x6ec] ss:$16 sps:$4 sm:$0xff]  }
  0xd6   :  { %2359 = vmatpush1.bf16.msra.mxu0 %v3202_v38  ;;  %v3166_v38 = vld [vmem:[%s4367_s1 + $0x708] ss:$16 sps:$4 sm:$0xff]  }
  0xd7   :  { %1867 = vmatpush1.bf16.msra.mxu1 %v3109_v36  ;;  %2360 = vmatprep.subr.bf16.mxu0 %v3207_v39  ;;  %v3163_v36 = vld [vmem:[%s4367_s1 + $0x6e8] ss:$16 sps:$4 sm:$0xff]   ;;  %v3240_v39 = vld [vmem:[%s4369_s3 + $0x104] ss:$8 sps:$4 sm:$0xff]  }
  0xd8   :  { %1868 = vmatprep.subr.bf16.mxu1 %v3114_v37  ;;  %v3168_v37 = vld [vmem:[%s4367_s1 + $0x70c] ss:$16 sps:$4 sm:$0xff]  }
  0xda   :  { %2361 = vmatpush1.bf16.msra.mxu0 %v3205_v41  ;;  %v3169_v41 = vld [vmem:[%s4367_s1 + $0x728] ss:$16 sps:$4 sm:$0xff]  }
  0xdb   :  { %1869 = vmatpush1.bf16.msra.mxu1 %v3112_v40  ;;  %2362 = vmatprep.subr.bf16.mxu0 %v3210_v43  ;;  %v3171_v40 = vld [vmem:[%s4367_s1 + $0x72c] ss:$16 sps:$4 sm:$0xff]   ;;  %v3172_v43 = vld [vmem:[%s4367_s1 + $0x748] ss:$16 sps:$4 sm:$0xff]  }
  0xdc   :  { %1870 = vmatprep.subr.bf16.mxu1 %v3117_v42  ;;  %v3174_v42 = vld [vmem:[%s4367_s1 + $0x74c] ss:$16 sps:$4 sm:$0xff]  }
  0xde   :  { %2363 = vmatpush1.bf16.msra.mxu0 %v3208_v45  ;;  %v3175_v45 = vld [vmem:[%s4367_s1 + $0x768] ss:$16 sps:$4 sm:$0xff]  }
  0xdf   :  { %1871 = vmatpush1.bf16.msra.mxu1 %v3115_v44  ;;  %2364 = vmatprep.subr.bf16.mxu0 %v3213_v47  ;;  %v3177_v44 = vld [vmem:[%s4367_s1 + $0x76c] ss:$16 sps:$4 sm:$0xff]   ;;  %v3178_v47 = vld [vmem:[%s4367_s1 + $0x788] ss:$16 sps:$4 sm:$0xff]  }
  0xe0   :  { %1872 = vmatprep.subr.bf16.mxu1 %v3120_v46  ;;  %v3180_v46 = vld [vmem:[%s4367_s1 + $0x78c] ss:$16 sps:$4 sm:$0xff]  }
  0xe2   :  { %2365 = vmatpush1.bf16.msra.mxu0 %v3211_v49  ;;  %v3181_v49 = vld [vmem:[%s4367_s1 + $0x7a8] ss:$16 sps:$4 sm:$0xff]  }
  0xe3   :  { %1873 = vmatpush1.bf16.msra.mxu1 %v3118_v48  ;;  %2366 = vmatprep.subr.bf16.mxu0 %v3216_v52  ;;  %v3183_v48 = vld [vmem:[%s4367_s1 + $0x7ac] ss:$16 sps:$4 sm:$0xff]   ;;  %v3184_v52 = vld [vmem:[%s4367_s1 + $0x7c8] ss:$16 sps:$4 sm:$0xff]  }
  0xe4   :  { %1874 = vmatprep.subr.bf16.mxu1 %v3123_v50  ;;  %v3186_v50 = vld [vmem:[%s4367_s1 + $0x7cc] ss:$16 sps:$4 sm:$0xff]  }
  0xe6   :  { %2367 = vmatpush1.bf16.msra.mxu0 %v3214_v54  ;;  %v3187_v54 = vld [vmem:[%s4367_s1 + $0x7e8] ss:$16 sps:$4 sm:$0xff]  }
  0xe7   :  { %1875 = vmatpush1.bf16.msra.mxu1 %v3121_v53  ;;  %2368 = vmatprep.subr.bf16.mxu0 %v3219_v56  ;;  %v3189_v53 = vld [vmem:[%s4367_s1 + $0x7ec] ss:$16 sps:$4 sm:$0xff]  }
  0xe8   :  { %1876 = vmatprep.subr.bf16.mxu1 %v3126_v55  ;;  %v282_v55 = vlaneseq }
  0xea   :  { %2369 = vmatpush1.bf16.msra.mxu0 %v3217_v58  ;;  %v4241_v56 = vshrl.u32 %v282_v55, 7  ;;  %v4247_v58 = vld [vmem:[%s4370_s2] sm:$0xf] }
  0xeb   :  { %1877 = vmatpush1.bf16.msra.mxu1 %v3124_v57  ;;  %2370 = vmatprep.subr.bf16.mxu0 %v3222_v60 }
  0xec   :  { %1878 = vmatprep.subr.bf16.mxu1 %v3129_v59  ;;  %v284_v57 = vsub.s32 0, %v4241_v56  ;;  %v288_v59 = vsub.s32 1, %v4241_v56 }
  0xee   :  { %2371 = vmatpush1.bf16.msra.mxu0 %v3220_v62  ;;  %v285_v60 = vrot.slane %v4247_v58, %v284_v57 }
  0xef   :  { %1879 = vmatpush1.bf16.msra.mxu1 %v3127_v61  ;;  %2372 = vmatprep.subr.bf16.mxu0 %v3225_v0 }
  0xf0   :  { %1880 = vmatprep.subr.bf16.mxu1 %v3132_v63 }
  0xf2   :  { %2373 = vmatpush1.bf16.msra.mxu0 %v3223_v2 }
  0xf3   :  { %1881 = vmatpush1.bf16.msra.mxu1 %v3130_v1  ;;  %2374 = vmatprep.subr.bf16.mxu0 %v3228_v4 }
  0xf4   :  { %1882 = vmatprep.subr.bf16.mxu1 %v3135_v3 }
  0xf6   :  { %2375 = vmatpush1.bf16.msra.mxu0 %v3226_v8 }
  0xf7   :  { %1883 = vmatpush1.bf16.msra.mxu1 %v3133_v5  ;;  %2376 = vmatprep.subr.bf16.mxu0 %v3231_v10 }
  0xf8   :  { %1884 = vmatprep.subr.bf16.mxu1 %v3138_v9 }
  0xfa   :  { %2377 = vmatpush1.bf16.msra.mxu0 %v3229_v12  ;;  %v3238_v12 = vld [vmem:[%s4369_s3 + $0x100] ss:$8 sps:$4 sm:$0xff]  }
  0xfb   :  { %1885 = vmatpush1.bf16.msra.mxu1 %v3136_v11  ;;  %2378 = vmatprep.subr.bf16.mxu0 %v3234_v26  ;;  %v3262_v26 = vld [vmem:[%s4369_s3 + $0x180] ss:$8 sps:$4 sm:$0xff]  }
  0xfc   :  { %1886 = vmatprep.subr.bf16.mxu1 %v3141_v14 }
  0xfe   :  { %2379 = vmatpush1.bf16.msra.mxu0 %v3232_v28  ;;  %v3265_v28 = vld [vmem:[%s4369_s3 + $0x190] ss:$8 sps:$4 sm:$0xff]  }
  0xff   :  { %1887 = vmatpush1.bf16.msra.mxu1 %v3139_v15  ;;  %2380 = vmatprep.subr.bf16.mxu0 %v3237_v33  ;;  %v3243_v15 = vld [vmem:[%s4369_s3 + $0x114] ss:$8 sps:$4 sm:$0xff]   ;;  %v3276_v33 = vld [vmem:[%s4369_s3 + $0x1c4] ss:$8 sps:$4 sm:$0xff]  }
 0x100   :  { %1897 = vmatprep.subr.bf16.mxu1 %v3144_v16  ;;  %v3241_v16 = vld [vmem:[%s4369_s3 + $0x110] ss:$8 sps:$4 sm:$0xff]  }
 0x102   :  { %1889 = vmatmul.mubr.bf16.vlgmr.msra.gmra.mrb[4].mxu1 %v3737_v13  ;;  %v3153_v13 = vld [vmem:[%s4367_s1 + $0x66c] ss:$16 sps:$4 sm:$0xff]   ;;  %2381 = vmatpush1.bf16.msra.mxu0 %v3235_v35  ;;  %v3274_v35 = vld [vmem:[%s4369_s3 + $0x1c0] ss:$8 sps:$4 sm:$0xff]  }
 0x103   :  { %1898 = vmatpush1.bf16.msra.mxu1 %v3142_v17  ;;  %1929 = vmatprep.mubr.bf16.mxu1 %v3758_v19  ;;  %v3151_v19 = vld [vmem:[%s4367_s1 + $0x668] ss:$16 sps:$4 sm:$0xff]   ;;  %v3246_v17 = vld [vmem:[%s4369_s3 + $0x124] ss:$8 sps:$4 sm:$0xff]  }
 0x104   :  { %1899 = vmatprep.subr.bf16.mxu1 %v3147_v21  ;;  %2391 = vmatprep.subr.bf16.mxu0 %v3240_v39  ;;  %v3244_v21 = vld [vmem:[%s4369_s3 + $0x120] ss:$8 sps:$4 sm:$0xff]  }
 0x105   :  { %v3280_v39 = vld [vmem:[%s4369_s3 + $0x1e0] ss:$8 sps:$4 sm:$0xff]  }
 0x107   :  { %1900 = vmatpush1.bf16.msra.mxu1 %v3145_v22  ;;  %v3249_v22 = vld [vmem:[%s4369_s3 + $0x134] ss:$8 sps:$4 sm:$0xff]  }
 0x108   :  { %1901 = vmatprep.subr.bf16.mxu1 %v3150_v18  ;;  %v3247_v18 = vld [vmem:[%s4369_s3 + $0x130] ss:$8 sps:$4 sm:$0xff]  }
 0x10b   :  { %1902 = vmatpush1.bf16.msra.mxu1 %v3148_v6  ;;  %v3252_v6 = vld [vmem:[%s4369_s3 + $0x144] ss:$8 sps:$4 sm:$0xff]  }
 0x10c   :  { %1903 = vmatprep.subr.bf16.mxu1 %v3153_v13  ;;  %v3250_v13 = vld [vmem:[%s4369_s3 + $0x140] ss:$8 sps:$4 sm:$0xff]  }
 0x10f   :  { %1904 = vmatpush1.bf16.msra.mxu1 %v3151_v19  ;;  %v3255_v19 = vld [vmem:[%s4369_s3 + $0x154] ss:$8 sps:$4 sm:$0xff]  }
 0x110   :  { %1905 = vmatprep.subr.bf16.mxu1 %v3156_v23  ;;  %v3253_v23 = vld [vmem:[%s4369_s3 + $0x150] ss:$8 sps:$4 sm:$0xff]  }
 0x113   :  { %1906 = vmatpush1.bf16.msra.mxu1 %v3154_v7  ;;  %v3258_v7 = vld [vmem:[%s4369_s3 + $0x164] ss:$8 sps:$4 sm:$0xff]  }
 0x114   :  { %1907 = vmatprep.subr.bf16.mxu1 %v3159_v24  ;;  %v3256_v24 = vld [vmem:[%s4369_s3 + $0x160] ss:$8 sps:$4 sm:$0xff]  }
 0x115   :  { %v4166_v51 = vpop.f32.mrb[0].mxu1 }
 0x116   :  { %v1646_v27 = vpop.f32.mrb[1].mxu1  ;;  %v1645_v61 = vadd.f32 %v4166_v51, %v285_v60  ;;  %v3264_v51 = vld [vmem:[%s4369_s3 + $0x184] ss:$8 sps:$4 sm:$0xff]  }
 0x117   :  { %v1648_v29 = vpop.f32.mrb[2].mxu1  ;;  %1908 = vmatpush1.bf16.msra.mxu1 %v3157_v25  ;;  %v3261_v25 = vld [vmem:[%s4369_s3 + $0x174] ss:$8 sps:$4 sm:$0xff]  }
 0x118   :  { %v1649_v31 = vpop.f32.mrb[3].mxu1  ;;  %1909 = vmatprep.subr.bf16.mxu1 %v3162_v34  ;;  %v3259_v34 = vld [vmem:[%s4369_s3 + $0x170] ss:$8 sps:$4 sm:$0xff]   ;;  %v3270_v29 = vld [vmem:[%s4369_s3 + $0x1a4] ss:$8 sps:$4 sm:$0xff]  }
 0x119   :  { %v3273_v31 = vld [vmem:[%s4369_s3 + $0x1b4] ss:$8 sps:$4 sm:$0xff]  }
 0x11b   :  { %1910 = vmatpush1.bf16.msra.mxu1 %v3160_v30  ;;  %v3268_v30 = vld [vmem:[%s4369_s3 + $0x1a0] ss:$8 sps:$4 sm:$0xff]  }
 0x11c   :  { %1911 = vmatprep.subr.bf16.mxu1 %v3165_v32  ;;  %v3271_v32 = vld [vmem:[%s4369_s3 + $0x1b0] ss:$8 sps:$4 sm:$0xff]  }
 0x11f   :  { %1912 = vmatpush1.bf16.msra.mxu1 %v3163_v36  ;;  %v3279_v36 = vld [vmem:[%s4369_s3 + $0x1d4] ss:$8 sps:$4 sm:$0xff]  }
 0x120   :  { %1913 = vmatprep.subr.bf16.mxu1 %v3168_v37  ;;  %v3277_v37 = vld [vmem:[%s4369_s3 + $0x1d0] ss:$8 sps:$4 sm:$0xff]  }
 0x123   :  { %1914 = vmatpush1.bf16.msra.mxu1 %v3166_v38  ;;  %v3282_v38 = vld [vmem:[%s4369_s3 + $0x1e4] ss:$8 sps:$4 sm:$0xff]  }
 0x124   :  { %1915 = vmatprep.subr.bf16.mxu1 %v3171_v40  ;;  %v3285_v40 = vld [vmem:[%s4369_s3 + $0x1f4] ss:$8 sps:$4 sm:$0xff]  }
 0x127   :  { %1916 = vmatpush1.bf16.msra.mxu1 %v3169_v41  ;;  %v3283_v41 = vld [vmem:[%s4369_s3 + $0x1f0] ss:$8 sps:$4 sm:$0xff]  }
 0x128   :  { %1917 = vmatprep.subr.bf16.mxu1 %v3174_v42  ;;  %v292_v42 = vsub.s32 2, %v4241_v56 }
 0x12b   :  { %1918 = vmatpush1.bf16.msra.mxu1 %v3172_v43  ;;  %v296_v43 = vsub.s32 3, %v4241_v56 }
 0x12c   :  { %1919 = vmatprep.subr.bf16.mxu1 %v3177_v44  ;;  %v293_v44 = vrot.slane %v4247_v58, %v292_v42 }
 0x12f   :  { %1920 = vmatpush1.bf16.msra.mxu1 %v3175_v45  ;;  %v297_v45 = vrot.slane %v4247_v58, %v296_v43 }
 0x130   :  { %1921 = vmatprep.subr.bf16.mxu1 %v3180_v46 }
 0x133   :  { %1922 = vmatpush1.bf16.msra.mxu1 %v3178_v47 }
 0x134   :  { %1923 = vmatprep.subr.bf16.mxu1 %v3183_v48 }
 0x137   :  { %1924 = vmatpush1.bf16.msra.mxu1 %v3181_v49 }
 0x138   :  { %1925 = vmatprep.subr.bf16.mxu1 %v3186_v50 }
 0x13b   :  { %1926 = vmatpush1.bf16.msra.mxu1 %v3184_v52 }
 0x13c   :  { %1927 = vmatprep.subr.bf16.mxu1 %v3189_v53 }
 0x13f   :  { %1928 = vmatpush1.bf16.msra.mxu1 %v3187_v54 }
 0x142   :  { %1930 = vmatmul.mubr.bf16.vlgmr.msra.gmra.mrb[4].mxu1 %v3943_v20  ;;  %v289_v20 = vrot.slane %v4247_v58, %v288_v59  ;;  %v2018_v58 = vld [vmem:[%s4371_s4] sm:$0x3] }
 0x144   :  { %v1647_v62 = vadd.f32 %v1646_v27, %v289_v20  ;;  %v3267_v27 = vld [vmem:[%s4369_s3 + $0x194] ss:$8 sps:$4 sm:$0xff]  }
 0x196   :  { %v1767_v63 = vpop.f32.mrb[0].mxu0 }
 0x197   :  { %v2767_v0 = vadd.f32 %v1767_v63, %v1645_v61  ;;  %v1769_v1 = vpop.f32.mrb[1].mxu0  ;;  %v2027_v63 = vrot.slane %v2018_v58, %v288_v59 }
 0x198   :  { %v2769_v2 = vadd.f32 %v1769_v1, %v1647_v62  ;;  %v1771_v3 = vpop.f32.mrb[2].mxu0  ;;  %v2023_v62 = vrot.slane %v2018_v58, %v284_v57 }
 0x199   :  { %vm1938_vm0 = vcmp.gt.f32.partialorder %v2767_v0, 0.0  ;;  %v1942_v4 = vmul.f32 0.2, %v2767_v0  ;;  %v1772_v5 = vpop.f32.mrb[3].mxu0 }
 0x19a   :  { %vm1939_vm1 = vcmp.gt.f32.partialorder %v2769_v2, 0.0  ;;  %v1943_v8 = vmul.f32 0.2, %v2769_v2 }
 0x19b   :  { %v1946_v9 = vsel %vm1938_vm0, %v2767_v0, %v1942_v4 }
 0x19c   :  { %v1947_v10 = vsel %vm1939_vm1, %v2769_v2, %v1943_v8  ;;  %v1950_v14 = vpack.c.bf16 %v1946_v9, %v1946_v9 }
 0x19d   :  { %v1951_v11 = vpack.c.bf16 %v1947_v10, %v1947_v10 }
 0x19f   :  { %2382 = vmatprep.mubr.bf16.mxu0 %v1951_v11 }
 0x1a0   :  { %2383 = vmatmul.mubr.bf16.vlgmr.msra.gmra.mrb[4].mxu0 %v1950_v14 }
 0x1a1   :  { %2392 = vmatpush1.bf16.msra.mxu0 %v3238_v12 }
 0x1a2   :  { %2393 = vmatprep.subr.bf16.mxu0 %v3243_v15 }
 0x1a5   :  { %2394 = vmatpush1.bf16.msra.mxu0 %v3241_v16 }
 0x1a6   :  { %2395 = vmatprep.subr.bf16.mxu0 %v3246_v17 }
 0x1a9   :  { %2396 = vmatpush1.bf16.msra.mxu0 %v3244_v21 }
 0x1aa   :  { %2397 = vmatprep.subr.bf16.mxu0 %v3249_v22 }
 0x1ad   :  { %2398 = vmatpush1.bf16.msra.mxu0 %v3247_v18 }
 0x1ae   :  { %2399 = vmatprep.subr.bf16.mxu0 %v3252_v6 }
 0x1b1   :  { %2400 = vmatpush1.bf16.msra.mxu0 %v3250_v13 }
 0x1b2   :  { %2401 = vmatprep.subr.bf16.mxu0 %v3255_v19 }
 0x1b5   :  { %2402 = vmatpush1.bf16.msra.mxu0 %v3253_v23 }
 0x1b6   :  { %2403 = vmatprep.subr.bf16.mxu0 %v3258_v7 }
 0x1b9   :  { %2404 = vmatpush1.bf16.msra.mxu0 %v3256_v24 }
 0x1ba   :  { %2405 = vmatprep.subr.bf16.mxu0 %v3261_v25 }
 0x1bd   :  { %2406 = vmatpush1.bf16.msra.mxu0 %v3259_v34 }
 0x1be   :  { %2407 = vmatprep.subr.bf16.mxu0 %v3264_v51 }
 0x1c1   :  { %2408 = vmatpush1.bf16.msra.mxu0 %v3262_v26 }
 0x1c2   :  { %2409 = vmatprep.subr.bf16.mxu0 %v3267_v27 }
 0x1c5   :  { %2410 = vmatpush1.bf16.msra.mxu0 %v3265_v28 }
 0x1c6   :  { %2411 = vmatprep.subr.bf16.mxu0 %v3270_v29 }
 0x1c9   :  { %2412 = vmatpush1.bf16.msra.mxu0 %v3268_v30 }
 0x1ca   :  { %2413 = vmatprep.subr.bf16.mxu0 %v3273_v31 }
 0x1cd   :  { %2414 = vmatpush1.bf16.msra.mxu0 %v3271_v32 }
 0x1ce   :  { %2415 = vmatprep.subr.bf16.mxu0 %v3276_v33 }
 0x1d1   :  { %2416 = vmatpush1.bf16.msra.mxu0 %v3274_v35 }
 0x1d2   :  { %2417 = vmatprep.subr.bf16.mxu0 %v3279_v36 }
 0x1d5   :  { %2418 = vmatpush1.bf16.msra.mxu0 %v3277_v37 }
 0x1d6   :  { %2419 = vmatprep.subr.bf16.mxu0 %v3282_v38 }
 0x1d9   :  { %2420 = vmatpush1.bf16.msra.mxu0 %v3280_v39 }
 0x1da   :  { %2421 = vmatprep.subr.bf16.mxu0 %v3285_v40 }
 0x1dd   :  { %2422 = vmatpush1.bf16.msra.mxu0 %v3283_v41 }
 0x215   :  { %v1931_v46 = vpop.f32.mrb[4].mxu1 }
 0x216   :  { %v2770_v47 = vadd.f32 %v1931_v46, %v293_v44  ;;  %v1933_v48 = vpop.f32.mrb[5].mxu1 }
 0x217   :  { %v2771_v49 = vadd.f32 %v1933_v48, %v297_v45  ;;  %v1935_v50 = vpop.f32.mrb[6].mxu1 }
 0x218   :  { %vm1940_vm2 = vcmp.gt.f32.partialorder %v2770_v47, 0.0  ;;  %v1944_v52 = vmul.f32 0.2, %v2770_v47  ;;  %v1936_v53 = vpop.f32.mrb[7].mxu1 }
 0x219   :  { %vm1941_vm3 = vcmp.gt.f32.partialorder %v2771_v49, 0.0  ;;  %v1945_v54 = vmul.f32 0.2, %v2771_v49 }
 0x21a   :  { %v1948_v55 = vsel %vm1940_vm2, %v2770_v47, %v1944_v52 }
 0x21b   :  { %v1949_v60 = vsel %vm1941_vm3, %v2771_v49, %v1945_v54  ;;  %v1952_v61 = vpack.c.bf16 %v1948_v55, %v1948_v55 }
 0x21c   :  { %v1953_v20 = vpack.c.bf16 %v1949_v60, %v1949_v60 }
 0x21e   :  { %2423 = vmatprep.mubr.bf16.mxu0 %v1953_v20 }
 0x21f   :  { %2424 = vmatmul.mubr.bf16.vlgmr.msra.gmra.mrb[4].mxu0 %v1952_v61 }
 0x2f2   :  { %v2425_v0 = vpop.f32.mrb[4].mxu0 }
 0x2f3   :  { %v2772_v1 = vadd.f32 %v2425_v0, %v2023_v62  ;;  %v2427_v2 = vpop.f32.mrb[5].mxu0 }
 0x2f4   :  { %v2773_v3 = vadd.f32 %v2427_v2, %v2027_v63  ;;  %v2429_v4 = vpop.f32.mrb[6].mxu0 }
 0x2f5   :  { %2432 = vst [vmem:[%s4372_s5] sm:$0xff] %v2772_v1  ;;  %v2430_v5 = vpop.f32.mrb[7].mxu0 }
 0x2f6   :  { %2433 = vst [vmem:[%s4372_s5 + $0x8] sm:$0xff] %v2773_v3 }

</bundles_post_ra>
